<compile_context>
chip_gen: v6e
topology: v6e:2x2x1
jax: 0.10.0
libtpu: 0.0.40
codegen_flags: <defaults>
</compile_context>

<pallas_src>
import math

import jax
import jax.numpy as jnp
import numpy as np
from jax.experimental import pallas as pl
from jax.experimental.pallas import tpu as pltpu


# ----------------------------------------------------------------------------
# Fused kernel: manual weight DMAs overlapped with LHS assembly / attention,
# CLS-row attention for both branches, residual, and the final KL scalar.
# ----------------------------------------------------------------------------
def _kl_defen_kernel(cls_ref, clsn_ref, xn_ref,           # auto-DMA'd inputs
                     wq_hbm, wk_hbm, wv_hbm, wo_hbm,      # raw HBM weight refs
                     out_ref, kl_ref,                     # outputs
                     wq_v, wk_v, wv_v, wo_v, lhs_v, sems  # scratch
                     ):
    B, N, D = xn_ref.shape

    # 1) Kick off every weight DMA immediately; Wo last since it is consumed
    #    last (its ~1.1 MiB streams under the QKV matmuls / softmax).
    cp_q = pltpu.make_async_copy(wq_hbm, wq_v, sems.at[0])
    cp_k = pltpu.make_async_copy(wk_hbm, wk_v, sems.at[1])
    cp_v = pltpu.make_async_copy(wv_hbm, wv_v, sems.at[2])
    cp_o = pltpu.make_async_copy(wo_hbm, wo_v, sems.at[3])
    cp_q.start()
    cp_k.start()
    cp_v.start()
    cp_o.start()

    # 2) Assemble activations while the weights stream in.
    cls1 = cls_ref[...].astype(jnp.float32)      # (B, D)  x_feat[:, 0]
    cls1n = clsn_ref[...].astype(jnp.float32)    # (B, D)  x_feat_noise[:, 0]
    cls1_bf = cls_ref[...].astype(jnp.bfloat16)
    cls1n_bf = clsn_ref[...].astype(jnp.bfloat16)

    # new_x_feat1 = cat([x_feat[:, 0:1], x_feat_noise[:, 1:]], dim=1), built by
    # slice-stores into a bf16 VMEM scratch (single cast, no concat/select).
    lhs_v[...] = xn_ref[...].astype(jnp.bfloat16)
    lhs_v[:, 0:1, :] = cls1_bf.reshape(B, 1, D)
    lhs = lhs_v[...].reshape(B * N, D)           # (B*N, D) bf16

    # new_x_feat1_noise = cat([x_feat_noise[:,0:1], x_feat[:,0:1][:,1:]]) is a
    # 1-token sequence == cls1n; no scores/softmax needed for it.

    inv_sqrt_d = 1.0 / math.sqrt(D)

    # 3) Per-chunk wait + matmul: each chunk's compute overlaps the remaining
    #    weight DMAs still in flight.  f32 accumulation on the MXU throughout.
    cp_q.wait()
    q0 = jnp.dot(cls1_bf, wq_v[...], preferred_element_type=jnp.float32)  # (B, D)

    cp_k.wait()
    k = jnp.dot(lhs, wk_v[...], preferred_element_type=jnp.float32)
    k = k.reshape(B, N, D)
    # TODO(synk): for non-toy B/N switch the two reductions below to batched
    # lax.dot_general (MXU) instead of VPU multiply + XLU lane reduce.
    s = jnp.sum(q0[:, None, :] * k, axis=-1) * inv_sqrt_d                 # (B, N)
    s = s - jnp.max(s, axis=-1, keepdims=True)
    p = jnp.exp(s)
    p = p / jnp.sum(p, axis=-1, keepdims=True)   # exact divide (torch parity)

    cp_v.wait()
    v = jnp.dot(lhs, wv_v[...], preferred_element_type=jnp.float32).reshape(B, N, D)
    # 1-token noise branch: softmax over one key is exactly 1 -> attn == V row.
    v_noise = jnp.dot(cls1n_bf, wv_v[...], preferred_element_type=jnp.float32)  # (B, D)
    attn = jnp.sum(p[:, :, None] * v, axis=1)                             # (B, D)

    cp_o.wait()
    y1 = cls1 + jnp.dot(attn.astype(jnp.bfloat16), wo_v[...],
                        preferred_element_type=jnp.float32)               # (B, D)
    y1n = cls1n + jnp.dot(v_noise.astype(jnp.bfloat16), wo_v[...],
                          preferred_element_type=jnp.float32)             # (B, D)

    # 4) Single contiguous (2B, D) output block (one writeback DMA).
    out_ref[0:B, :] = y1.astype(out_ref.dtype)
    out_ref[B:2 * B, :] = y1n.astype(out_ref.dtype)

    # 5) Fused KL(batchmean) epilogue, per branch (no concats).  Stable
    #    log-softmax form so underflowed probabilities give 0 * finite
    #    (matches torch's xlogy path), never 0 * (-inf).
    def _kl_sum(gen, tgt):
        def lsm(z):
            zs = z - jnp.max(z, axis=-1, keepdims=True)
            return zs - jnp.log(jnp.sum(jnp.exp(zs), axis=-1, keepdims=True))
        lp = lsm(gen)
        lq = lsm(tgt)
        return jnp.sum(jnp.exp(lq) * (lq - lp))

    # (KL_1 + KL_1_noise) / 2, each batchmean over B  ==  total_sum / (2B)
    kl_ref[0] = (_kl_sum(y1, cls1) + _kl_sum(y1n, cls1n)) / (2.0 * B)


# ----------------------------------------------------------------------------
# KL_defen.forward — a single pallas_call.
# ----------------------------------------------------------------------------
def kl_defen_forward(x_feat, x_feat_noise, wq, wk, wv, wo):
    B, N, D = x_feat.shape
    cls1 = x_feat[:, 0, :]          # only the CLS row of x_feat is ever used
    cls1n = x_feat_noise[:, 0, :]

    out, kl = pl.pallas_call(
        _kl_defen_kernel,
        out_shape=(
            jax.ShapeDtypeStruct((2 * B, D), jnp.float32),   # [y1; y1n]
            jax.ShapeDtypeStruct((1,), jnp.float32),          # kl scalar
        ),
        grid=(1,),
        in_specs=[
            pl.BlockSpec((B, D), lambda i: (0, 0)),           # x_feat CLS
            pl.BlockSpec((B, D), lambda i: (0, 0)),           # x_feat_noise CLS
            pl.BlockSpec((B, N, D), lambda i: (0, 0, 0)),     # x_feat_noise
            pl.BlockSpec(memory_space=pl.ANY),                # Wq (HBM, bf16)
            pl.BlockSpec(memory_space=pl.ANY),                # Wk (HBM, bf16)
            pl.BlockSpec(memory_space=pl.ANY),                # Wv (HBM, bf16)
            pl.BlockSpec(memory_space=pl.ANY),                # Wo (HBM, bf16)
        ],
        out_specs=(
            pl.BlockSpec((2 * B, D), lambda i: (0, 0)),
            pl.BlockSpec(memory_space=pltpu.MemorySpace.SMEM),   # scalar KL
        ),
        scratch_shapes=[
            pltpu.VMEM((D, D), jnp.bfloat16),      # Wq landing buffer
            pltpu.VMEM((D, D), jnp.bfloat16),      # Wk landing buffer
            pltpu.VMEM((D, D), jnp.bfloat16),      # Wv landing buffer
            pltpu.VMEM((D, D), jnp.bfloat16),      # Wo landing buffer
            pltpu.VMEM((B, N, D), jnp.bfloat16),   # bf16 matmul LHS
            pltpu.SemaphoreType.DMA((4,)),
        ],
        compiler_params=pltpu.CompilerParams(
            dimension_semantics=("arbitrary",),
            vmem_limit_bytes=32 * 1024 * 1024,
        ),
        cost_estimate=pl.CostEstimate(
            flops=50_000_000,            # ~40 rows x (768x768) MXU work
            transcendentals=10_000,      # softmax / log-softmax exps
            bytes_accessed=4_800_000,    # dominated by 4 x (768x768) bf16 weights
        ),
    )(cls1, cls1n, x_feat_noise, wq, wk, wv, wo)

    a1 = out[:B]      # new_x_feat1_after
    a1n = out[B:]     # new_x_feat1_noise_after
    return kl[0], a1, a1n


# ----------------------------------------------------------------------------
# Pure-JAX references (correctness check only).
# ----------------------------------------------------------------------------
def _part_layer_ref(x, wq, wk, wv, wo, bf):
    d = x.shape[-1]
    xq = bf(x)
    q = jnp.einsum("bnd,de->bne", xq, wq)
    k = jnp.einsum("bnd,de->bne", xq, wk)
    v = jnp.einsum("bnd,de->bne", xq, wv)
    s = jnp.einsum("bnd,bmd->bnm", q, k) / math.sqrt(d)
    p = jax.nn.softmax(s, axis=-1)
    attn = jnp.einsum("bnm,bmd->bnd", p, v)
    return x + jnp.einsum("bnd,de->bne", bf(attn), wo)


def _kl_ref(gen, tgt):
    log_p = jax.nn.log_softmax(gen, axis=1)
    log_q = jax.nn.log_softmax(tgt, axis=1)
    q = jnp.exp(log_q)
    return jnp.sum(q * (log_q - log_p)) / gen.shape[0]


def _forward_ref(x_feat, x_feat_noise, wq, wk, wv, wo, quantize_activations):
    bf = ((lambda a: a.astype(jnp.bfloat16).astype(jnp.float32))
          if quantize_activations else (lambda a: a))
    pt1 = x_feat[:, 0:1]
    pt1n = x_feat_noise[:, 0:1]
    nx1 = jnp.concatenate([pt1, x_feat_noise[:, 1:]], axis=1)
    nx1n = jnp.concatenate([pt1n, pt1[:, 1:]], axis=1)   # (B, 1, D): 1-token seq
    a1 = _part_layer_ref(nx1, wq, wk, wv, wo, bf)[:, 0]
    a1n = _part_layer_ref(nx1n, wq, wk, wv, wo, bf)[:, 0]
    kl = (_kl_ref(a1, x_feat[:, 0]) + _kl_ref(a1n, x_feat_noise[:, 0])) / 2.0
    return kl, a1, a1n


if __name__ == "__main__":
    B, N, D = 2, 8, 768   # in_planes = 768 from the module __init__

    key = jax.random.PRNGKey(0)
    k1, k2, k3, k4, k5, k6 = jax.random.split(key, 6)
    x_feat = jax.random.normal(k1, (B, N, D), jnp.float32)
    x_feat_noise = jax.random.normal(k2, (B, N, D), jnp.float32)

    # Deterministic part_layer parameters, stored in bf16 (weights dominate HBM
    # traffic; MXU consumes bf16 with f32 accumulation).
    wq = (0.02 * jax.random.normal(k3, (D, D), jnp.float32)).astype(jnp.bfloat16)
    wk = (0.02 * jax.random.normal(k4, (D, D), jnp.float32)).astype(jnp.bfloat16)
    wv = (0.02 * jax.random.normal(k5, (D, D), jnp.float32)).astype(jnp.bfloat16)
    wo = (0.02 * jax.random.normal(k6, (D, D), jnp.float32)).astype(jnp.bfloat16)

    fwd = jax.jit(kl_defen_forward)
    kl_loss, a1, a1n = fwd(x_feat, x_feat_noise, wq, wk, wv, wo)
    jax.block_until_ready((kl_loss, a1, a1n))

    # Primary check: reference with the same numerics (f32 views of the bf16
    # weights, activations rounded to bf16 before each matmul, as the kernel does).
    wq32, wk32, wv32, wo32 = (w.astype(jnp.float32) for w in (wq, wk, wv, wo))
    kl_ref, a1_ref, a1n_ref = _forward_ref(
        x_feat, x_feat_noise, wq32, wk32, wv32, wo32, quantize_activations=True)
    np.testing.assert_allclose(np.asarray(a1), np.asarray(a1_ref), rtol=1e-2, atol=1e-2)
    np.testing.assert_allclose(np.asarray(a1n), np.asarray(a1n_ref), rtol=1e-2, atol=1e-2)
    np.testing.assert_allclose(np.asarray(kl_loss), np.asarray(kl_ref), rtol=1e-2, atol=1e-2)

    # Looser sanity check against full-f32-activation module semantics.
    kl_f, a1_f, a1n_f = _forward_ref(
        x_feat, x_feat_noise, wq32, wk32, wv32, wo32, quantize_activations=False)
    np.testing.assert_allclose(np.asarray(a1), np.asarray(a1_f), rtol=5e-2, atol=5e-2)
    np.testing.assert_allclose(np.asarray(a1n), np.asarray(a1n_f), rtol=5e-2, atol=5e-2)
    np.testing.assert_allclose(np.asarray(kl_loss), np.asarray(kl_f), rtol=5e-2, atol=5e-2)

    print("KERNEL_OK")
</pallas_src>

<mosaic_0001>
module attributes {stable_mosaic.version = 11 : i64} {
  func.func @_kl_defen_kernel(%arg0: i32, %arg1: memref<2x768xf32, #tpu.memory_space<vmem>>, %arg2: memref<2x768xf32, #tpu.memory_space<vmem>>, %arg3: memref<2x8x768xf32, #tpu.memory_space<vmem>>, %arg4: memref<768x768xbf16, #tpu.memory_space<any>>, %arg5: memref<768x768xbf16, #tpu.memory_space<any>>, %arg6: memref<768x768xbf16, #tpu.memory_space<any>>, %arg7: memref<768x768xbf16, #tpu.memory_space<any>>, %arg8: memref<4x768xf32, #tpu.memory_space<vmem>>, %arg9: memref<1xf32, #tpu.memory_space<smem>>, %arg10: memref<768x768xbf16, #tpu.memory_space<vmem>>, %arg11: memref<768x768xbf16, #tpu.memory_space<vmem>>, %arg12: memref<768x768xbf16, #tpu.memory_space<vmem>>, %arg13: memref<768x768xbf16, #tpu.memory_space<vmem>>, %arg14: memref<2x8x768xbf16, #tpu.memory_space<vmem>>, %arg15: memref<4x!tpu.dma_semaphore, #tpu.memory_space<semaphore_mem>>) attributes {dimension_semantics = [#tpu.dimension_semantics<arbitrary>], iteration_bounds = array<i64: 1>, scalar_prefetch = 0 : i64, scratch_operands = 6 : i64, tpu.core_type = #tpu.core_type<tc>, window_params = [{pipeline_mode = #tpu.pipeline_mode<synchronous>, transform_indices = @transform_0, window_bounds = array<i64: 2, 768>}, {pipeline_mode = #tpu.pipeline_mode<synchronous>, transform_indices = @transform_1, window_bounds = array<i64: 2, 768>}, {pipeline_mode = #tpu.pipeline_mode<synchronous>, transform_indices = @transform_2, window_bounds = array<i64: 2, 8, 768>}, {}, {}, {}, {}, {pipeline_mode = #tpu.pipeline_mode<synchronous>, transform_indices = @transform_7, window_bounds = array<i64: 4, 768>}, {transform_indices = @transform_8, window_bounds = array<i64: 1>}]} {
    %c0_i32 = arith.constant 0 : i32
    %0 = tpu.memref_slice %arg15[%c0_i32] : memref<4x!tpu.dma_semaphore, #tpu.memory_space<semaphore_mem>> -> memref<1x!tpu.dma_semaphore, #tpu.memory_space<semaphore_mem>>
    %1 = tpu.memref_squeeze %0 : memref<1x!tpu.dma_semaphore, #tpu.memory_space<semaphore_mem>> -> memref<!tpu.dma_semaphore, #tpu.memory_space<semaphore_mem>>
    tpu.enqueue_dma source(%arg4 : memref<768x768xbf16, #tpu.memory_space<any>>) target(%arg10 : memref<768x768xbf16, #tpu.memory_space<vmem>>) target_semaphore(%1 : memref<!tpu.dma_semaphore, #tpu.memory_space<semaphore_mem>>)
    %c1_i32 = arith.constant 1 : i32
    %2 = tpu.memref_slice %arg15[%c1_i32] : memref<4x!tpu.dma_semaphore, #tpu.memory_space<semaphore_mem>> -> memref<1x!tpu.dma_semaphore, #tpu.memory_space<semaphore_mem>>
    %3 = tpu.memref_squeeze %2 : memref<1x!tpu.dma_semaphore, #tpu.memory_space<semaphore_mem>> -> memref<!tpu.dma_semaphore, #tpu.memory_space<semaphore_mem>>
    tpu.enqueue_dma source(%arg5 : memref<768x768xbf16, #tpu.memory_space<any>>) target(%arg11 : memref<768x768xbf16, #tpu.memory_space<vmem>>) target_semaphore(%3 : memref<!tpu.dma_semaphore, #tpu.memory_space<semaphore_mem>>)
    %c2_i32 = arith.constant 2 : i32
    %4 = tpu.memref_slice %arg15[%c2_i32] : memref<4x!tpu.dma_semaphore, #tpu.memory_space<semaphore_mem>> -> memref<1x!tpu.dma_semaphore, #tpu.memory_space<semaphore_mem>>
    %5 = tpu.memref_squeeze %4 : memref<1x!tpu.dma_semaphore, #tpu.memory_space<semaphore_mem>> -> memref<!tpu.dma_semaphore, #tpu.memory_space<semaphore_mem>>
    tpu.enqueue_dma source(%arg6 : memref<768x768xbf16, #tpu.memory_space<any>>) target(%arg12 : memref<768x768xbf16, #tpu.memory_space<vmem>>) target_semaphore(%5 : memref<!tpu.dma_semaphore, #tpu.memory_space<semaphore_mem>>)
    %c3_i32 = arith.constant 3 : i32
    %6 = tpu.memref_slice %arg15[%c3_i32] : memref<4x!tpu.dma_semaphore, #tpu.memory_space<semaphore_mem>> -> memref<1x!tpu.dma_semaphore, #tpu.memory_space<semaphore_mem>>
    %7 = tpu.memref_squeeze %6 : memref<1x!tpu.dma_semaphore, #tpu.memory_space<semaphore_mem>> -> memref<!tpu.dma_semaphore, #tpu.memory_space<semaphore_mem>>
    tpu.enqueue_dma source(%arg7 : memref<768x768xbf16, #tpu.memory_space<any>>) target(%arg13 : memref<768x768xbf16, #tpu.memory_space<vmem>>) target_semaphore(%7 : memref<!tpu.dma_semaphore, #tpu.memory_space<semaphore_mem>>)
    %c0 = arith.constant 0 : index
    %c0_0 = arith.constant 0 : index
    %8 = vector.load %arg1[%c0, %c0_0] : memref<2x768xf32, #tpu.memory_space<vmem>>, vector<2x768xf32>
    %c0_1 = arith.constant 0 : index
    %c0_2 = arith.constant 0 : index
    %9 = vector.load %arg2[%c0_1, %c0_2] : memref<2x768xf32, #tpu.memory_space<vmem>>, vector<2x768xf32>
    %c0_3 = arith.constant 0 : index
    %c0_4 = arith.constant 0 : index
    %10 = vector.load %arg1[%c0_3, %c0_4] : memref<2x768xf32, #tpu.memory_space<vmem>>, vector<2x768xf32>
    %11 = arith.truncf %10 : vector<2x768xf32> to vector<2x768xbf16>
    %c0_5 = arith.constant 0 : index
    %c0_6 = arith.constant 0 : index
    %12 = vector.load %arg2[%c0_5, %c0_6] : memref<2x768xf32, #tpu.memory_space<vmem>>, vector<2x768xf32>
    %13 = arith.truncf %12 : vector<2x768xf32> to vector<2x768xbf16>
    %c0_7 = arith.constant 0 : index
    %c0_8 = arith.constant 0 : index
    %c0_9 = arith.constant 0 : index
    %14 = vector.load %arg3[%c0_7, %c0_8, %c0_9] : memref<2x8x768xf32, #tpu.memory_space<vmem>>, vector<2x8x768xf32>
    %15 = arith.truncf %14 : vector<2x8x768xf32> to vector<2x8x768xbf16>
    %c0_10 = arith.constant 0 : index
    %c0_11 = arith.constant 0 : index
    %c0_12 = arith.constant 0 : index
    %16 = vector.load %arg14[%c0_10, %c0_11, %c0_12] : memref<2x8x768xbf16, #tpu.memory_space<vmem>>, vector<2x8x768xbf16>
    tpu.vector_store %arg14[%c0_10, %c0_11, %c0_12], %15 {strides = array<i32>} : memref<2x8x768xbf16, #tpu.memory_space<vmem>>, vector<2x8x768xbf16>,
    %17 = vector.shape_cast %11 : vector<2x768xbf16> to vector<2x1x768xbf16>
    %c0_13 = arith.constant 0 : index
    %c0_14 = arith.constant 0 : index
    %c0_15 = arith.constant 0 : index
    %18 = vector.load %arg14[%c0_13, %c0_14, %c0_15] : memref<2x8x768xbf16, #tpu.memory_space<vmem>>, vector<2x1x768xbf16>
    tpu.vector_store %arg14[%c0_13, %c0_14, %c0_15], %17 {strides = array<i32>} : memref<2x8x768xbf16, #tpu.memory_space<vmem>>, vector<2x1x768xbf16>,
    %c0_16 = arith.constant 0 : index
    %c0_17 = arith.constant 0 : index
    %c0_18 = arith.constant 0 : index
    %19 = vector.load %arg14[%c0_16, %c0_17, %c0_18] : memref<2x8x768xbf16, #tpu.memory_space<vmem>>, vector<2x8x768xbf16>
    %20 = vector.shape_cast %19 : vector<2x8x768xbf16> to vector<16x768xbf16>
    %c0_i32_19 = arith.constant 0 : i32
    %21 = tpu.memref_slice %arg15[%c0_i32_19] : memref<4x!tpu.dma_semaphore, #tpu.memory_space<semaphore_mem>> -> memref<1x!tpu.dma_semaphore, #tpu.memory_space<semaphore_mem>>
    %22 = tpu.memref_squeeze %21 : memref<1x!tpu.dma_semaphore, #tpu.memory_space<semaphore_mem>> -> memref<!tpu.dma_semaphore, #tpu.memory_space<semaphore_mem>>
    tpu.wait_dma2 semaphore(%22 : memref<!tpu.dma_semaphore, #tpu.memory_space<semaphore_mem>>) src(%arg4 : memref<768x768xbf16, #tpu.memory_space<any>>) dst(%arg10 : memref<768x768xbf16, #tpu.memory_space<vmem>>)
    %c0_20 = arith.constant 0 : index
    %c0_21 = arith.constant 0 : index
    %23 = vector.load %arg10[%c0_20, %c0_21] : memref<768x768xbf16, #tpu.memory_space<vmem>>, vector<768x768xbf16>
    %cst = arith.constant dense<0.000000e+00> : vector<2x768xf32>
    %24 = tpu.matmul %11, %23, %cst {dimension_numbers = #tpu.dot_dimension_numbers<[1], [0], [0], [1], [0, 0, 1, 1], [], []>} : vector<2x768xbf16>, vector<768x768xbf16>, vector<2x768xf32> -> vector<2x768xf32>
    %c1_i32_22 = arith.constant 1 : i32
    %25 = tpu.memref_slice %arg15[%c1_i32_22] : memref<4x!tpu.dma_semaphore, #tpu.memory_space<semaphore_mem>> -> memref<1x!tpu.dma_semaphore, #tpu.memory_space<semaphore_mem>>
    %26 = tpu.memref_squeeze %25 : memref<1x!tpu.dma_semaphore, #tpu.memory_space<semaphore_mem>> -> memref<!tpu.dma_semaphore, #tpu.memory_space<semaphore_mem>>
    tpu.wait_dma2 semaphore(%26 : memref<!tpu.dma_semaphore, #tpu.memory_space<semaphore_mem>>) src(%arg5 : memref<768x768xbf16, #tpu.memory_space<any>>) dst(%arg11 : memref<768x768xbf16, #tpu.memory_space<vmem>>)
    %c0_23 = arith.constant 0 : index
    %c0_24 = arith.constant 0 : index
    %27 = vector.load %arg11[%c0_23, %c0_24] : memref<768x768xbf16, #tpu.memory_space<vmem>>, vector<768x768xbf16>
    %cst_25 = arith.constant dense<0.000000e+00> : vector<16x768xf32>
    %28 = tpu.matmul %20, %27, %cst_25 {dimension_numbers = #tpu.dot_dimension_numbers<[1], [0], [0], [1], [0, 0, 1, 1], [], []>} : vector<16x768xbf16>, vector<768x768xbf16>, vector<16x768xf32> -> vector<16x768xf32>
    %29 = vector.shape_cast %28 : vector<16x768xf32> to vector<2x8x768xf32>
    %30 = vector.shape_cast %24 : vector<2x768xf32> to vector<2x1x768xf32>
    %31 = vector.broadcast %30 : vector<2x1x768xf32> to vector<2x8x768xf32>
    %32 = arith.mulf %31, %29 : vector<2x8x768xf32>
    %cst_26 = arith.constant dense<0.000000e+00> : vector<2x8xf32>
    %33 = vector.multi_reduction <add>, %32, %cst_26 [2] : vector<2x8x768xf32> to vector<2x8xf32>
    %cst_27 = arith.constant 0.0360843912 : f32
    %34 = vector.broadcast %cst_27 : f32 to vector<2x8xf32>
    %35 = arith.mulf %33, %34 : vector<2x8xf32>
    %cst_28 = arith.constant dense<0xFF800000> : vector<2xf32>
    %36 = vector.multi_reduction <maximumf>, %35, %cst_28 [1] : vector<2x8xf32> to vector<2xf32>
    %37 = vector.shape_cast %36 : vector<2xf32> to vector<2x1xf32>
    %38 = vector.broadcast %37 : vector<2x1xf32> to vector<2x8xf32>
    %39 = arith.subf %35, %38 : vector<2x8xf32>
    %40 = math.exp %39 : vector<2x8xf32>
    %cst_29 = arith.constant dense<0.000000e+00> : vector<2xf32>
    %41 = vector.multi_reduction <add>, %40, %cst_29 [1] : vector<2x8xf32> to vector<2xf32>
    %42 = vector.shape_cast %41 : vector<2xf32> to vector<2x1xf32>
    %43 = vector.broadcast %42 : vector<2x1xf32> to vector<2x8xf32>
    %44 = arith.divf %40, %43 : vector<2x8xf32>
    %c2_i32_30 = arith.constant 2 : i32
    %45 = tpu.memref_slice %arg15[%c2_i32_30] : memref<4x!tpu.dma_semaphore, #tpu.memory_space<semaphore_mem>> -> memref<1x!tpu.dma_semaphore, #tpu.memory_space<semaphore_mem>>
    %46 = tpu.memref_squeeze %45 : memref<1x!tpu.dma_semaphore, #tpu.memory_space<semaphore_mem>> -> memref<!tpu.dma_semaphore, #tpu.memory_space<semaphore_mem>>
    tpu.wait_dma2 semaphore(%46 : memref<!tpu.dma_semaphore, #tpu.memory_space<semaphore_mem>>) src(%arg6 : memref<768x768xbf16, #tpu.memory_space<any>>) dst(%arg12 : memref<768x768xbf16, #tpu.memory_space<vmem>>)
    %c0_31 = arith.constant 0 : index
    %c0_32 = arith.constant 0 : index
    %47 = vector.load %arg12[%c0_31, %c0_32] : memref<768x768xbf16, #tpu.memory_space<vmem>>, vector<768x768xbf16>
    %cst_33 = arith.constant dense<0.000000e+00> : vector<16x768xf32>
    %48 = tpu.matmul %20, %47, %cst_33 {dimension_numbers = #tpu.dot_dimension_numbers<[1], [0], [0], [1], [0, 0, 1, 1], [], []>} : vector<16x768xbf16>, vector<768x768xbf16>, vector<16x768xf32> -> vector<16x768xf32>
    %49 = vector.shape_cast %48 : vector<16x768xf32> to vector<2x8x768xf32>
    %c0_34 = arith.constant 0 : index
    %c0_35 = arith.constant 0 : index
    %50 = vector.load %arg12[%c0_34, %c0_35] : memref<768x768xbf16, #tpu.memory_space<vmem>>, vector<768x768xbf16>
    %cst_36 = arith.constant dense<0.000000e+00> : vector<2x768xf32>
    %51 = tpu.matmul %13, %50, %cst_36 {dimension_numbers = #tpu.dot_dimension_numbers<[1], [0], [0], [1], [0, 0, 1, 1], [], []>} : vector<2x768xbf16>, vector<768x768xbf16>, vector<2x768xf32> -> vector<2x768xf32>
    %52 = vector.shape_cast %44 : vector<2x8xf32> to vector<2x8x1xf32>
    %53 = vector.broadcast %52 : vector<2x8x1xf32> to vector<2x8x768xf32>
    %54 = arith.mulf %53, %49 : vector<2x8x768xf32>
    %cst_37 = arith.constant dense<0.000000e+00> : vector<2x768xf32>
    %55 = vector.multi_reduction <add>, %54, %cst_37 [1] : vector<2x8x768xf32> to vector<2x768xf32>
    %c3_i32_38 = arith.constant 3 : i32
    %56 = tpu.memref_slice %arg15[%c3_i32_38] : memref<4x!tpu.dma_semaphore, #tpu.memory_space<semaphore_mem>> -> memref<1x!tpu.dma_semaphore, #tpu.memory_space<semaphore_mem>>
    %57 = tpu.memref_squeeze %56 : memref<1x!tpu.dma_semaphore, #tpu.memory_space<semaphore_mem>> -> memref<!tpu.dma_semaphore, #tpu.memory_space<semaphore_mem>>
    tpu.wait_dma2 semaphore(%57 : memref<!tpu.dma_semaphore, #tpu.memory_space<semaphore_mem>>) src(%arg7 : memref<768x768xbf16, #tpu.memory_space<any>>) dst(%arg13 : memref<768x768xbf16, #tpu.memory_space<vmem>>)
    %58 = arith.truncf %55 : vector<2x768xf32> to vector<2x768xbf16>
    %c0_39 = arith.constant 0 : index
    %c0_40 = arith.constant 0 : index
    %59 = vector.load %arg13[%c0_39, %c0_40] : memref<768x768xbf16, #tpu.memory_space<vmem>>, vector<768x768xbf16>
    %cst_41 = arith.constant dense<0.000000e+00> : vector<2x768xf32>
    %60 = tpu.matmul %58, %59, %cst_41 {dimension_numbers = #tpu.dot_dimension_numbers<[1], [0], [0], [1], [0, 0, 1, 1], [], []>} : vector<2x768xbf16>, vector<768x768xbf16>, vector<2x768xf32> -> vector<2x768xf32>
    %61 = arith.addf %8, %60 : vector<2x768xf32>
    %62 = arith.truncf %51 : vector<2x768xf32> to vector<2x768xbf16>
    %c0_42 = arith.constant 0 : index
    %c0_43 = arith.constant 0 : index
    %63 = vector.load %arg13[%c0_42, %c0_43] : memref<768x768xbf16, #tpu.memory_space<vmem>>, vector<768x768xbf16>
    %cst_44 = arith.constant dense<0.000000e+00> : vector<2x768xf32>
    %64 = tpu.matmul %62, %63, %cst_44 {dimension_numbers = #tpu.dot_dimension_numbers<[1], [0], [0], [1], [0, 0, 1, 1], [], []>} : vector<2x768xbf16>, vector<768x768xbf16>, vector<2x768xf32> -> vector<2x768xf32>
    %65 = arith.addf %9, %64 : vector<2x768xf32>
    %c0_45 = arith.constant 0 : index
    %c0_46 = arith.constant 0 : index
    %66 = vector.load %arg8[%c0_45, %c0_46] : memref<4x768xf32, #tpu.memory_space<vmem>>, vector<2x768xf32>
    tpu.vector_store %arg8[%c0_45, %c0_46], %61 {strides = array<i32>} : memref<4x768xf32, #tpu.memory_space<vmem>>, vector<2x768xf32>,
    %c2 = arith.constant 2 : index
    %c0_47 = arith.constant 0 : index
    %67 = vector.load %arg8[%c2, %c0_47] : memref<4x768xf32, #tpu.memory_space<vmem>>, vector<2x768xf32>
    tpu.vector_store %arg8[%c2, %c0_47], %65 {strides = array<i32>} : memref<4x768xf32, #tpu.memory_space<vmem>>, vector<2x768xf32>,
    %cst_48 = arith.constant dense<0xFF800000> : vector<2xf32>
    %68 = vector.multi_reduction <maximumf>, %61, %cst_48 [1] : vector<2x768xf32> to vector<2xf32>
    %69 = vector.shape_cast %68 : vector<2xf32> to vector<2x1xf32>
    %70 = vector.broadcast %69 : vector<2x1xf32> to vector<2x768xf32>
    %71 = arith.subf %61, %70 : vector<2x768xf32>
    %72 = math.exp %71 : vector<2x768xf32>
    %cst_49 = arith.constant dense<0.000000e+00> : vector<2xf32>
    %73 = vector.multi_reduction <add>, %72, %cst_49 [1] : vector<2x768xf32> to vector<2xf32>
    %74 = vector.shape_cast %73 : vector<2xf32> to vector<2x1xf32>
    %75 = math.log %74 : vector<2x1xf32>
    %76 = vector.broadcast %75 : vector<2x1xf32> to vector<2x768xf32>
    %77 = arith.subf %71, %76 : vector<2x768xf32>
    %cst_50 = arith.constant dense<0xFF800000> : vector<2xf32>
    %78 = vector.multi_reduction <maximumf>, %8, %cst_50 [1] : vector<2x768xf32> to vector<2xf32>
    %79 = vector.shape_cast %78 : vector<2xf32> to vector<2x1xf32>
    %80 = vector.broadcast %79 : vector<2x1xf32> to vector<2x768xf32>
    %81 = arith.subf %8, %80 : vector<2x768xf32>
    %82 = math.exp %81 : vector<2x768xf32>
    %cst_51 = arith.constant dense<0.000000e+00> : vector<2xf32>
    %83 = vector.multi_reduction <add>, %82, %cst_51 [1] : vector<2x768xf32> to vector<2xf32>
    %84 = vector.shape_cast %83 : vector<2xf32> to vector<2x1xf32>
    %85 = math.log %84 : vector<2x1xf32>
    %86 = vector.broadcast %85 : vector<2x1xf32> to vector<2x768xf32>
    %87 = arith.subf %81, %86 : vector<2x768xf32>
    %88 = math.exp %87 : vector<2x768xf32>
    %89 = arith.subf %87, %77 : vector<2x768xf32>
    %90 = arith.mulf %88, %89 : vector<2x768xf32>
    %91 = vector.shape_cast %90 : vector<2x768xf32> to vector<1x2x768xf32>
    %cst_52 = arith.constant dense<0.000000e+00> : vector<1xf32>
    %92 = vector.multi_reduction <add>, %91, %cst_52 [1, 2] : vector<1x2x768xf32> to vector<1xf32>
    %93 = vector.shape_cast %92 : vector<1xf32> to vector<1x1x1xf32>
    %94 = vector.extract %93[0, 0, 0] : f32 from vector<1x1x1xf32>
    %cst_53 = arith.constant dense<0xFF800000> : vector<2xf32>
    %95 = vector.multi_reduction <maximumf>, %65, %cst_53 [1] : vector<2x768xf32> to vector<2xf32>
    %96 = vector.shape_cast %95 : vector<2xf32> to vector<2x1xf32>
    %97 = vector.broadcast %96 : vector<2x1xf32> to vector<2x768xf32>
    %98 = arith.subf %65, %97 : vector<2x768xf32>
    %99 = math.exp %98 : vector<2x768xf32>
    %cst_54 = arith.constant dense<0.000000e+00> : vector<2xf32>
    %100 = vector.multi_reduction <add>, %99, %cst_54 [1] : vector<2x768xf32> to vector<2xf32>
    %101 = vector.shape_cast %100 : vector<2xf32> to vector<2x1xf32>
    %102 = math.log %101 : vector<2x1xf32>
    %103 = vector.broadcast %102 : vector<2x1xf32> to vector<2x768xf32>
    %104 = arith.subf %98, %103 : vector<2x768xf32>
    %cst_55 = arith.constant dense<0xFF800000> : vector<2xf32>
    %105 = vector.multi_reduction <maximumf>, %9, %cst_55 [1] : vector<2x768xf32> to vector<2xf32>
    %106 = vector.shape_cast %105 : vector<2xf32> to vector<2x1xf32>
    %107 = vector.broadcast %106 : vector<2x1xf32> to vector<2x768xf32>
    %108 = arith.subf %9, %107 : vector<2x768xf32>
    %109 = math.exp %108 : vector<2x768xf32>
    %cst_56 = arith.constant dense<0.000000e+00> : vector<2xf32>
    %110 = vector.multi_reduction <add>, %109, %cst_56 [1] : vector<2x768xf32> to vector<2xf32>
    %111 = vector.shape_cast %110 : vector<2xf32> to vector<2x1xf32>
    %112 = math.log %111 : vector<2x1xf32>
    %113 = vector.broadcast %112 : vector<2x1xf32> to vector<2x768xf32>
    %114 = arith.subf %108, %113 : vector<2x768xf32>
    %115 = math.exp %114 : vector<2x768xf32>
    %116 = arith.subf %114, %104 : vector<2x768xf32>
    %117 = arith.mulf %115, %116 : vector<2x768xf32>
    %118 = vector.shape_cast %117 : vector<2x768xf32> to vector<1x2x768xf32>
    %cst_57 = arith.constant dense<0.000000e+00> : vector<1xf32>
    %119 = vector.multi_reduction <add>, %118, %cst_57 [1, 2] : vector<1x2x768xf32> to vector<1xf32>
    %120 = vector.shape_cast %119 : vector<1xf32> to vector<1x1x1xf32>
    %121 = vector.extract %120[0, 0, 0] : f32 from vector<1x1x1xf32>
    %122 = arith.addf %94, %121 : f32
    %cst_58 = arith.constant 4.000000e+00 : f32
    %123 = arith.divf %122, %cst_58 : f32
    %c0_59 = arith.constant 0 : index
    %124 = memref.load %arg9[%c0_59] : memref<1xf32, #tpu.memory_space<smem>>
    memref.store %123, %arg9[%c0_59] : memref<1xf32, #tpu.memory_space<smem>>
    return
  }
  func.func @transform_0(%arg0: i32) -> (i32, i32) {
    %c0_i32 = arith.constant 0 : i32
    %c0_i32_0 = arith.constant 0 : i32
    %c0_i32_1 = arith.constant 0 : i32
    return %c0_i32, %c0_i32_0 : i32, i32
  }
  func.func @transform_1(%arg0: i32) -> (i32, i32) {
    %c0_i32 = arith.constant 0 : i32
    %c0_i32_0 = arith.constant 0 : i32
    %c0_i32_1 = arith.constant 0 : i32
    return %c0_i32, %c0_i32_0 : i32, i32
  }
  func.func @transform_2(%arg0: i32) -> (i32, i32, i32) {
    %c0_i32 = arith.constant 0 : i32
    %c0_i32_0 = arith.constant 0 : i32
    %c0_i32_1 = arith.constant 0 : i32
    %c0_i32_2 = arith.constant 0 : i32
    return %c0_i32, %c0_i32_0, %c0_i32_1 : i32, i32, i32
  }
  func.func @transform_7(%arg0: i32) -> (i32, i32) {
    %c0_i32 = arith.constant 0 : i32
    %c0_i32_0 = arith.constant 0 : i32
    %c0_i32_1 = arith.constant 0 : i32
    return %c0_i32, %c0_i32_0 : i32, i32
  }
  func.func @transform_8(%arg0: i32) -> i32 {
    %c0_i32 = arith.constant 0 : i32
    %c0_i32_0 = arith.constant 0 : i32
    return %c0_i32 : i32
  }
}

</mosaic_0001>

<bundles_post_ra>
// kernel: kl_defen_forward.1
= control target key start
LH: loop header
LB: loop body
LE: loop exit
PB: predicated region body
PF: predicated region fallthrough
CT: control target
= control target key end

     0   :  { %14 = vsyncpa [#allocation9], 0  ;;  %s15554_s0 = inlined_call_operand.vmem [shape: f32[2,768], index: 0, kind: input, shape index: {}]   ;;  %s15555_s1 = inlined_call_operand.vmem [shape: f32[2,768], index: 1, kind: input, shape index: {}]   ;;  %s15556_s2 = inlined_call_operand.hbm [shape: f32[2,8,768], index: 2, kind: input, shape index: {}]   ;;  %s15557_s3 = inlined_call_operand.hbm [shape: bf16[768,768], index: 3, kind: input, shape index: {}]   ;;  %s15558_s4 = inlined_call_operand.hbm [shape: bf16[768,768], index: 4, kind: input, shape index: {}]   ;;  %s15559_s5 = inlined_call_operand.hbm [shape: bf16[768,768], index: 5, kind: input, shape index: {}]   ;;  %s15560_s6 = inlined_call_operand.hbm [shape: bf16[768,768], index: 6, kind: input, shape index: {}]   ;;  %s15561_s7 = inlined_call_operand.vmem [shape: f32[4,768], index: 7, kind: output, shape index: {0}]   ;;  %s15562_s8 = inlined_call_operand.hbm [shape: f32[1], index: 8, kind: output, shape index: {1}]  }
   0x1   :  { %15 = vsyncpa [#allocation10], 0  ;;  %s14143_s27 = smov [#allocation8]  }
   0x2   :  { %s25_s28 = sshll.u32 %s14143_s27, 4  ;;  %s26_s28 = int_to_ptr.vmem [resolvable:$true] %s25_s28 }
   0x3   :  { %s14031_s29 = scalar_lea.vmem %s26_s28, 1536  ;;  %p14036_p1 = scmp.lt.s32.totalorder %s26_s28, %s26_s28 }
   0x4   :  { %p14032_p0 = scmp.ne.s32.totalorder %s26_s28, %s14031_s29  ;;  %p14037_p2 = scmp.lt.s32.totalorder %s14031_s29, %s14031_s29 }
   0x6   :  { %p14038_p3 = por %p14037_p2, %p14036_p1 }
   0x8   :  { %p14039_p4 = pnand %p14038_p3, %p14032_p0 }
   0xa   :  { %14042 = shalt.err (!%p14039_p4)
}
   0xb   :  { %s14144_s30 = smov 768   ;;  %s14145_s9 = smov 48  }
   0xc   :  { %31 = dma.hbm_to_vmem [thread:$0]  %s15556_s2, 1536, %s26_s28, [#allocation9], %s14144_s30, %s14144_s30, %s14145_s9  }
   0xd   :  { %14131 = dma.done.wait [#allocation9], 1536  }
   0xe   :  { %14132 = vsyncadd [#allocation9], 4294965760  ;;  %v15563_v0 = vlaneseq  ;;  %v14146_v1 = vmov 1983009808   ;;  %s14147_s12 = smov [#allocation2]   ;;  %s14148_s14 = smov [#allocation3]  }
   0xf   :  { %v90_v2 = vunpack.c.l.s4 %v14146_v1  ;;  %s42_s13 = sshll.u32 %s14147_s12, 4  ;;  %s54_s15 = sshll.u32 %s14148_s14, 4  ;;  %s43_s13 = int_to_ptr.vmem [resolvable:$true] %s42_s13  ;;  %s55_s15 = int_to_ptr.vmem [resolvable:$true] %s54_s15 }
  0x10   :  { %v14207_v4 = vshrl.u32 %v15563_v0, 7  ;;  %s14051_s16 = scalar_lea.vmem %s43_s13, 36864  ;;  %p14056_p6 = scmp.lt.s32.totalorder %s43_s13, %s43_s13 }
  0x11   :  { %v91_v3 = vunpack.c.0.s8 %v90_v2  ;;  %p14052_p5 = scmp.ne.s32.totalorder %s43_s13, %s14051_s16  ;;  %p14057_p7 = scmp.lt.s32.totalorder %s14051_s16, %s14051_s16 }
  0x12   :  { %15672 = vst [vmem:[#allocation28_spill] sm:$0xff] %v14207_v4 }
  0x13   :  { %p14058_p8 = por %p14057_p7, %p14056_p6 }
  0x15   :  { %p14059_p9 = pnand %p14058_p8, %p14052_p5 }
  0x17   :  { %14062 = shalt.err (!%p14059_p9)  }
  0x18   :  { %45 = dma.hbm_to_vmem [thread:$0]  %s15557_s3, 36864, %s43_s13, [#allocation7]  ;;  %v14149_v5 = vmov 1966171168  }
  0x19   :  { %v14212_v6 = vunpack.c.l.s4 %v14149_v5  ;;  %s14071_s18 = scalar_lea.vmem %s55_s15, 36864  ;;  %p14076_p11 = scmp.lt.s32.totalorder %s55_s15, %s55_s15 }
  0x1a   :  { %p14072_p10 = scmp.ne.s32.totalorder %s55_s15, %s14071_s18  ;;  %p14077_p12 = scmp.lt.s32.totalorder %s14071_s18, %s14071_s18 }
  0x1c   :  { %p14078_p13 = por %p14077_p12, %p14076_p11 }
  0x1e   :  { %p14079_p0 = pnand %p14078_p13, %p14072_p10 }
  0x20   :  { %14082 = shalt.err (!%p14079_p0)  }
  0x21   :  { %57 = dma.hbm_to_vmem [thread:$0]  %s15558_s4, 36864, %s55_s15, [#allocation7 + $0x1]  ;;  %v164_v7 = vld [vmem:[#allocation8] sm:$0xff]  ;;  %v165_v8 = vld [vmem:[#allocation8 + $0x8] sm:$0xff]  ;;  %v166_v9 = vld [vmem:[#allocation8 + $0x10] sm:$0xff]  ;;  %v14218_v14 = vsub.s32 %v91_v3, %v14207_v4  ;;  %v241_v20 = vunpack.c.0.s8 %v14212_v6 }
  0x22   :  { %s14150_s21 = smov [#allocation4]   ;;  %s14151_s3 = smov [#allocation5]   ;;  %v11798_v10 = vpack.c.bf16 %v165_v8, %v164_v7  ;;  %v167_v11 = vld [vmem:[#allocation8 + $0x18] sm:$0xff]  ;;  %v168_v12 = vld [vmem:[#allocation8 + $0x20] sm:$0xff]  ;;  %v169_v13 = vld [vmem:[#allocation8 + $0x28] sm:$0xff] }
  0x23   :  { %s66_s22 = sshll.u32 %s14150_s21, 4  ;;  %s78_s23 = sshll.u32 %s14151_s3, 4  ;;  %15673 = vst [vmem:[#allocation29_spill] sm:$0xff] %v14218_v14  ;;  %v11799_v15 = vpack.c.bf16 %v167_v11, %v166_v9  ;;  %v11800_v16 = vpack.c.bf16 %v169_v13, %v168_v12  ;;  %v170_v17 = vld [vmem:[#allocation8 + $0x30] sm:$0xff]  ;;  %v171_v18 = vld [vmem:[#allocation8 + $0x38] sm:$0xff]  ;;  %v172_v19 = vld [vmem:[#allocation8 + $0x40] sm:$0xff]  ;;  %s67_s22 = int_to_ptr.vmem [resolvable:$true] %s66_s22  ;;  %s79_s23 = int_to_ptr.vmem [resolvable:$true] %s78_s23 }
  0x24   :  { %s14091_s4 = scalar_lea.vmem %s67_s22, 36864  ;;  %p14096_p2 = scmp.lt.s32.totalorder %s67_s22, %s67_s22 }
  0x25   :  { %p14092_p1 = scmp.ne.s32.totalorder %s67_s22, %s14091_s4  ;;  %p14097_p3 = scmp.lt.s32.totalorder %s14091_s4, %s14091_s4 }
  0x27   :  { %p14098_p4 = por %p14097_p3, %p14096_p2 }
  0x29   :  { %p14099_p5 = pnand %p14098_p4, %p14092_p1 }
  0x2b   :  { %14102 = shalt.err (!%p14099_p5)  }
  0x2c   :  { %69 = dma.hbm_to_vmem [thread:$0]  %s15559_s5, 36864, %s67_s22, [#allocation7 + $0x2]  ;;  %224 = vst [vmem:[#allocation6 + $0x28] sm:$0xff] %v11798_v10  ;;  %v11801_v21 = vpack.c.bf16 %v171_v18, %v170_v17  ;;  %v173_v22 = vld [vmem:[#allocation8 + $0x48] sm:$0xff]  ;;  %v174_v23 = vld [vmem:[#allocation8 + $0x50] sm:$0xff]  ;;  %v175_v24 = vld [vmem:[#allocation8 + $0x58] sm:$0xff] }
  0x2d   :  { %s14111_s26 = scalar_lea.vmem %s79_s23, 36864  ;;  %p14116_p7 = scmp.lt.s32.totalorder %s79_s23, %s79_s23 }
  0x2e   :  { %p14112_p6 = scmp.ne.s32.totalorder %s79_s23, %s14111_s26  ;;  %p14117_p8 = scmp.lt.s32.totalorder %s14111_s26, %s14111_s26 }
  0x30   :  { %p14118_p9 = por %p14117_p8, %p14116_p7 }
  0x32   :  { %p14119_p10 = pnand %p14118_p9, %p14112_p6 }
  0x34   :  { %14122 = shalt.err (!%p14119_p10)  }
  0x35   :  { %81 = dma.hbm_to_vmem [thread:$0]  %s15560_s6, 36864, %s79_s23, [#allocation7 + $0x3]  ;;  %225 = vst [vmem:[#allocation6 + $0x10] sm:$0xff] %v11799_v15  ;;  %226 = vst [vmem:[#allocation6 + $0x8] sm:$0xff] %v11800_v16  ;;  %v11802_v25 = vpack.c.bf16 %v173_v22, %v172_v19  ;;  %v11803_v26 = vpack.c.bf16 %v175_v24, %v174_v23  ;;  %v14230_v27 = vld [vmem:[%s15554_s0] sm:$0xff]  ;;  %v14152_v30 = vmov 286326784   ;;  %v14268_v41 = vsub.s32 %v241_v20, %v14207_v4 }
  0x36   :  { %15674 = vst [vmem:[#allocation30_spill] sm:$0xff] %v14230_v27  ;;  %v14235_v28 = vld [vmem:[%s15554_s0 + $0x8] sm:$0xf]  ;;  %v14240_v29 = vld [vmem:[%s15555_s1] sm:$0xff]  ;;  %v281_v31 = vunpack.c.l.s4 %v14152_v30  ;;  %v14153_v32 = vmov 858989090   ;;  %v88_v35 = vcombine.high %v14230_v27, %v14230_v27  ;;  %v14251_v36 = vrot.slane %v14230_v27, %v14218_v14 }
  0x37   :  { %15675 = vst [vmem:[#allocation31_spill] sm:$0xff] %v14235_v28  ;;  %15676 = vst [vmem:[#allocation32_spill] sm:$0xff] %v14240_v29  ;;  %v288_v33 = vunpack.c.l.s4 %v14153_v32  ;;  %v14245_v34 = vld [vmem:[%s15555_s1 + $0x8] sm:$0xf]  ;;  %v14255_v37 = vrot.slane %v14235_v28, %v14218_v14  ;;  %v127_v38 = vcombine.high %v14240_v29, %v14240_v29  ;;  %v14261_v39 = vrot.slane %v14240_v29, %v14218_v14 }
  0x38   :  { %227 = vst [vmem:[#allocation6] sm:$0xff] %v11801_v21  ;;  %15677 = vst [vmem:[#allocation33_spill] sm:$0xff] %v14245_v34  ;;  %v14265_v40 = vrot.slane %v14245_v34, %v14218_v14  ;;  %v14271_v42 = vrot.slane %v88_v35, %v14218_v14  ;;  %v14275_v43 = vcombine.high %v14251_v36, %v14251_v36  ;;  %v14154_v2 = vmov 1431651396   ;;  %v335_v22 = vld [vmem:[#allocation6 + $0x28] sm:$0x11] }
  0x39   :  { %15678 = vst [vmem:[#allocation34_spill] sm:$0xff] %v14251_v36  ;;  %15679 = vst [vmem:[#allocation35_spill] sm:$0xff] %v14255_v37  ;;  %v14279_v44 = vcombine.high %v14255_v37, %v14255_v37  ;;  %v14283_v45 = vpack.c.bf16 %v14251_v36, %v14251_v36  ;;  %v14287_v46 = vpack.c.bf16 %v14255_v37, %v14255_v37  ;;  %v295_v3 = vunpack.c.l.s4 %v14154_v2 }
  0x3a   :  { %228 = vst [vmem:[#allocation6 + $0x18] sm:$0xff] %v11802_v25  ;;  %229 = vst [vmem:[#allocation6 + $0x20] sm:$0xff] %v11803_v26  ;;  %v14290_v47 = vrot.slane %v127_v38, %v14218_v14  ;;  %v14294_v48 = vcombine.high %v14261_v39, %v14261_v39  ;;  %v14298_v49 = vcombine.high %v14265_v40, %v14265_v40  ;;  %vm328_vm0 = vcmask 1040384  }
  0x3b   :  { %15680 = vst [vmem:[#allocation36_spill] sm:$0xff] %v14261_v39  ;;  %15681 = vst [vmem:[#allocation37_spill] sm:$0xff] %v14265_v40  ;;  %v14302_v50 = vcombine.high %v14271_v42, %v14271_v42  ;;  %v14306_v51 = vpack.c.bf16 %v14275_v43, %v14275_v43  ;;  %v14310_v52 = vpack.c.bf16 %v14271_v42, %v14271_v42  ;;  %v282_v8 = vunpack.c.0.s8 %v281_v31 }
  0x3c   :  { %15682 = vst [vmem:[#allocation38_spill] sm:$0xff] %v14271_v42  ;;  %15683 = vst [vmem:[#allocation39_spill] sm:$0xff] %v14275_v43  ;;  %v14314_v53 = vpack.c.bf16 %v14279_v44, %v14279_v44  ;;  %v14318_v54 = vcombine.high %v14290_v47, %v14290_v47  ;;  %v14322_v55 = vpack.c.bf16 %v14261_v39, %v14261_v39  ;;  %vm329_vm1 = vsmask.f32 256  ;;  %v338_v23 = vld [vmem:[#allocation6 + $0x10] sm:$0x11] }
  0x3d   :  { %15684 = vst [vmem:[#allocation40_spill] sm:$0xff] %v14279_v44  ;;  %15685 = vst [vmem:[#allocation41_spill] sm:$0xff] %v14290_v47  ;;  %v14326_v56 = vpack.c.bf16 %v14294_v48, %v14294_v48  ;;  %v14330_v57 = vpack.c.bf16 %v14290_v47, %v14290_v47  ;;  %v14334_v58 = vpack.c.bf16 %v14302_v50, %v14302_v50  ;;  %vm331_vm2 = vcmask 1044484   ;;  %v341_v24 = vld [vmem:[#allocation6 + $0x8] sm:$0x11] }
  0x3e   :  { %15686 = vst [vmem:[#allocation42_spill] sm:$0xff] %v14294_v48  ;;  %15687 = vst [vmem:[#allocation43_spill] sm:$0xff] %v14298_v49  ;;  %v14338_v59 = vpack.c.bf16 %v14265_v40, %v14265_v40  ;;  %v14342_v60 = vpack.c.bf16 %v14298_v49, %v14298_v49  ;;  %v10626_v61 = vpack.c.bf16 %v14275_v43, %v14251_v36  ;;  %vm332_vm3 = vsmask.f32 4352 }
  0x3f   :  { %15688 = vst [vmem:[#allocation44_spill] sm:$0xff] %v14302_v50  ;;  %15689 = vst [vmem:[#allocation45_spill] sm:$0xff] %v14318_v54  ;;  %v14348_v62 = vpack.c.bf16 %v14318_v54, %v14318_v54  ;;  %v10627_v63 = vpack.c.bf16 %v14302_v50, %v14271_v42  ;;  %v10628_v1 = vpack.c.bf16 %v14279_v44, %v14255_v37  ;;  %v289_v11 = vunpack.c.0.s8 %v288_v33  ;;  %v344_v32 = vld [vmem:[#allocation6] sm:$0x11] }
  0x40   :  { %v245_v5 = vrot.slane %v10626_v61, %v14268_v41  ;;  %v296_v12 = vunpack.c.0.s8 %v295_v3  ;;  %vm330_vm4 = vmand %vm328_vm0, %vm329_vm1  ;;  %v285_v16 = vsub.s32 %v282_v8, %v14207_v4 }
  0x41   :  { %15690 = vst [vmem:[#allocation46_spill] sm:$0xff] %v14348_v62  ;;  %v252_v6 = vrot.slane %v10627_v63, %v14268_v41  ;;  %v259_v7 = vrot.slane %v10628_v1, %v14268_v41  ;;  %vm333_vm5 = vmand %vm331_vm2, %vm332_vm3  ;;  %v292_v17 = vsub.s32 %v289_v11, %v14207_v4  ;;  %v347_v63 = vld [vmem:[#allocation6 + $0x18] sm:$0x11]  ;;  %v350_v1 = vld [vmem:[#allocation6 + $0x20] sm:$0x11] }
  0x42   :  { %v299_v18 = vsub.s32 %v296_v12, %v14207_v4  ;;  %vm14362_vm6 = vmor %vm333_vm5, %vm330_vm4 }
  0x43   :  { %v260_v9 = vcombine.low %v245_v5, %v252_v6  ;;  %v274_v10 = vrot.slane %v259_v7, %v14268_v41 }
  0x45   :  { %v267_v13 = vrot.slane %v260_v9, %v14268_v41 }
  0x47   :  { %v275_v15 = vcombine.low %v267_v13, %v274_v10 }
  0x49   :  { %v10629_v19 = vpack.i.b16 %v275_v15, %v275_v15  ;;  %v277_v21 = vunpack.i.h.s16 %v275_v15 }
  0x4b   :  { %v286_v25 = vrot.slane %v10629_v19, %v285_v16  ;;  %v293_v26 = vrot.slane %v10629_v19, %v292_v17  ;;  %v300_v30 = vrot.slane %v10629_v19, %v299_v18  ;;  %v279_v31 = vpack.i.b16 %v277_v21, %v277_v21 }
  0x4d   :  { %v336_v33 = vsel %vm14362_vm6, %v286_v25, %v335_v22  ;;  %v339_v35 = vsel %vm14362_vm6, %v293_v26, %v338_v23  ;;  %v342_v38 = vsel %vm14362_vm6, %v300_v30, %v341_v24  ;;  %v307_v61 = vrot.slane %v279_v31, %v285_v16 }
  0x4e   :  { %337 = vst [vmem:[#allocation6 + $0x28] sm:$0x11] %v336_v33  ;;  %340 = vst [vmem:[#allocation6 + $0x10] sm:$0x11] %v339_v35  ;;  %v314_v2 = vrot.slane %v279_v31, %v292_v17  ;;  %v321_v3 = vrot.slane %v279_v31, %v299_v18 }
  0x4f   :  { %343 = vst [vmem:[#allocation6 + $0x8] sm:$0x11] %v342_v38  ;;  %v345_v5 = vsel %vm14362_vm6, %v307_v61, %v344_v32 }
  0x50   :  { %346 = vst [vmem:[#allocation6] sm:$0x11] %v345_v5  ;;  %v348_v6 = vsel %vm14362_vm6, %v314_v2, %v347_v63  ;;  %v351_v7 = vsel %vm14362_vm6, %v321_v3, %v350_v1 }
  0x51   :  { %349 = vst [vmem:[#allocation6 + $0x18] sm:$0x11] %v348_v6  ;;  %352 = vst [vmem:[#allocation6 + $0x20] sm:$0x11] %v351_v7 }
  0x55   :  { %v14378_v8 = vld [vmem:[#allocation6 + $0x28] sm:$0xff]  ;;  %v14380_v9 = vld [vmem:[#allocation6 + $0x10] sm:$0xff] }
  0x56   :  { %v14382_v10 = vld [vmem:[#allocation6 + $0x8] sm:$0xff] }
  0x57   :  { %v14384_v11 = vld [vmem:[#allocation6] sm:$0xff] }
  0x58   :  { %v14386_v12 = vld [vmem:[#allocation6 + $0x18] sm:$0xff]  ;;  %v14388_v13 = vld [vmem:[#allocation6 + $0x20] sm:$0xff] }
  0x59   :  { %14133 = dma.done.wait [#allocation7], 36864 }
  0x5a   :  { %14134 = vsyncadd [#allocation7], 4294930432  ;;  %2123 = vmatprep.mubr.bf16.mxu0 %v14306_v51  ;;  %2164 = vmatprep.mubr.bf16.mxu1 %v14334_v58  ;;  %v11825_v15 = vld [vmem:[#allocation2 + $0x154] ss:$24 sps:$4 sm:$0xff]   ;;  %v11829_v17 = vld [vmem:[#allocation2 + $0x150] ss:$24 sps:$4 sm:$0xff]  }
  0x5b   :  { %v11827_v16 = vld [vmem:[#allocation2 + $0x454] ss:$24 sps:$4 sm:$0xff]   ;;  %2091 = vmatprep.subr.bf16.mxu0 %v11825_v15  ;;  %v11830_v18 = vld [vmem:[#allocation2 + $0x450] ss:$24 sps:$4 sm:$0xff]   ;;  %v11831_v19 = vld [vmem:[#allocation2 + $0x124] ss:$24 sps:$4 sm:$0xff]  }
  0x5c   :  { %2132 = vmatprep.subr.bf16.mxu1 %v11827_v16  ;;  %2092 = vmatpush1.bf16.msra.mxu0 %v11829_v17  ;;  %v11833_v20 = vld [vmem:[#allocation2 + $0x424] ss:$24 sps:$4 sm:$0xff]   ;;  %v11835_v21 = vld [vmem:[#allocation2 + $0x120] ss:$24 sps:$4 sm:$0xff]   ;;  %v11837_v23 = vld [vmem:[#allocation2 + $0xf4] ss:$24 sps:$4 sm:$0xff]  }
  0x5d   :  { %2133 = vmatpush1.bf16.msra.mxu1 %v11830_v18  ;;  %2093 = vmatprep.subr.bf16.mxu0 %v11831_v19  ;;  %v11836_v22 = vld [vmem:[#allocation2 + $0x420] ss:$24 sps:$4 sm:$0xff]   ;;  %v11839_v24 = vld [vmem:[#allocation2 + $0x3f4] ss:$24 sps:$4 sm:$0xff]   ;;  %v11841_v25 = vld [vmem:[#allocation2 + $0xf0] ss:$24 sps:$4 sm:$0xff]  }
  0x5e   :  { %2134 = vmatprep.subr.bf16.mxu1 %v11833_v20  ;;  %v11842_v26 = vld [vmem:[#allocation2 + $0x3f0] ss:$24 sps:$4 sm:$0xff]   ;;  %v11843_v30 = vld [vmem:[#allocation2 + $0xc4] ss:$24 sps:$4 sm:$0xff]   ;;  %v11847_v32 = vld [vmem:[#allocation2 + $0xc0] ss:$24 sps:$4 sm:$0xff]  }
  0x5f   :  { %v11845_v31 = vld [vmem:[#allocation2 + $0x3c4] ss:$24 sps:$4 sm:$0xff]   ;;  %v11848_v33 = vld [vmem:[#allocation2 + $0x3c0] ss:$24 sps:$4 sm:$0xff]   ;;  %v11849_v35 = vld [vmem:[#allocation2 + $0x94] ss:$24 sps:$4 sm:$0xff]  }
  0x60   :  { %2094 = vmatpush1.bf16.msra.mxu0 %v11835_v21  ;;  %v11851_v38 = vld [vmem:[#allocation2 + $0x394] ss:$24 sps:$4 sm:$0xff]   ;;  %v11853_v61 = vld [vmem:[#allocation2 + $0x90] ss:$24 sps:$4 sm:$0xff]   ;;  %v11855_v1 = vld [vmem:[#allocation2 + $0x64] ss:$24 sps:$4 sm:$0xff]  }
  0x61   :  { %2135 = vmatpush1.bf16.msra.mxu1 %v11836_v22  ;;  %2095 = vmatprep.subr.bf16.mxu0 %v11837_v23  ;;  %v11854_v63 = vld [vmem:[#allocation2 + $0x390] ss:$24 sps:$4 sm:$0xff]   ;;  %v11857_v2 = vld [vmem:[#allocation2 + $0x364] ss:$24 sps:$4 sm:$0xff]   ;;  %v11859_v3 = vld [vmem:[#allocation2 + $0x60] ss:$24 sps:$4 sm:$0xff]  }
  0x62   :  { %2136 = vmatprep.subr.bf16.mxu1 %v11839_v24  ;;  %v11860_v5 = vld [vmem:[#allocation2 + $0x360] ss:$24 sps:$4 sm:$0xff]   ;;  %v11861_v6 = vld [vmem:[#allocation2 + $0x34] ss:$24 sps:$4 sm:$0xff]   ;;  %v11865_v15 = vld [vmem:[#allocation2 + $0x30] ss:$24 sps:$4 sm:$0xff]  }
  0x63   :  { %v11863_v7 = vld [vmem:[#allocation2 + $0x334] ss:$24 sps:$4 sm:$0xff]   ;;  %v11866_v16 = vld [vmem:[#allocation2 + $0x330] ss:$24 sps:$4 sm:$0xff]   ;;  %v11867_v17 = vld [vmem:[#allocation2 + $0x4] ss:$24 sps:$4 sm:$0xff]  }
  0x64   :  { %2096 = vmatpush1.bf16.msra.mxu0 %v11841_v25  ;;  %v11869_v18 = vld [vmem:[#allocation2 + $0x304] ss:$24 sps:$4 sm:$0xff]   ;;  %v11871_v19 = vld [vmem:[#allocation2] ss:$24 sps:$4 sm:$0xff]   ;;  %v11873_v21 = vld [vmem:[#allocation2 + $0x2d4] ss:$24 sps:$4 sm:$0xff]  }
  0x65   :  { %2137 = vmatpush1.bf16.msra.mxu1 %v11842_v26  ;;  %2097 = vmatprep.subr.bf16.mxu0 %v11843_v30  ;;  %v11872_v20 = vld [vmem:[#allocation2 + $0x300] ss:$24 sps:$4 sm:$0xff]   ;;  %v11875_v22 = vld [vmem:[#allocation2 + $0x5d4] ss:$24 sps:$4 sm:$0xff]   ;;  %v11877_v23 = vld [vmem:[#allocation2 + $0x2d0] ss:$24 sps:$4 sm:$0xff]  }
  0x66   :  { %2138 = vmatprep.subr.bf16.mxu1 %v11845_v31  ;;  %v11878_v24 = vld [vmem:[#allocation2 + $0x5d0] ss:$24 sps:$4 sm:$0xff]   ;;  %v11879_v25 = vld [vmem:[#allocation2 + $0x2a4] ss:$24 sps:$4 sm:$0xff]   ;;  %v11883_v30 = vld [vmem:[#allocation2 + $0x2a0] ss:$24 sps:$4 sm:$0xff]  }
  0x67   :  { %v11881_v26 = vld [vmem:[#allocation2 + $0x5a4] ss:$24 sps:$4 sm:$0xff]   ;;  %v11884_v31 = vld [vmem:[#allocation2 + $0x5a0] ss:$24 sps:$4 sm:$0xff]  }
  0x68   :  { %2098 = vmatpush1.bf16.msra.mxu0 %v11847_v32  ;;  %v11885_v32 = vld [vmem:[#allocation2 + $0x274] ss:$24 sps:$4 sm:$0xff]  }
  0x69   :  { %2139 = vmatpush1.bf16.msra.mxu1 %v11848_v33  ;;  %2099 = vmatprep.subr.bf16.mxu0 %v11849_v35  ;;  %v11887_v33 = vld [vmem:[#allocation2 + $0x574] ss:$24 sps:$4 sm:$0xff]   ;;  %v11889_v35 = vld [vmem:[#allocation2 + $0x270] ss:$24 sps:$4 sm:$0xff]  }
  0x6a   :  { %2140 = vmatprep.subr.bf16.mxu1 %v11851_v38  ;;  %v11890_v38 = vld [vmem:[#allocation2 + $0x570] ss:$24 sps:$4 sm:$0xff]  }
  0x6c   :  { %2100 = vmatpush1.bf16.msra.mxu0 %v11853_v61  ;;  %v11891_v61 = vld [vmem:[#allocation2 + $0x244] ss:$24 sps:$4 sm:$0xff]  }
  0x6d   :  { %2141 = vmatpush1.bf16.msra.mxu1 %v11854_v63  ;;  %2101 = vmatprep.subr.bf16.mxu0 %v11855_v1  ;;  %v11893_v63 = vld [vmem:[#allocation2 + $0x544] ss:$24 sps:$4 sm:$0xff]   ;;  %v11895_v1 = vld [vmem:[#allocation2 + $0x240] ss:$24 sps:$4 sm:$0xff]  }
  0x6e   :  { %2142 = vmatprep.subr.bf16.mxu1 %v11857_v2  ;;  %v11896_v2 = vld [vmem:[#allocation2 + $0x540] ss:$24 sps:$4 sm:$0xff]  }
  0x70   :  { %2102 = vmatpush1.bf16.msra.mxu0 %v11859_v3  ;;  %v11897_v3 = vld [vmem:[#allocation2 + $0x214] ss:$24 sps:$4 sm:$0xff]  }
  0x71   :  { %2143 = vmatpush1.bf16.msra.mxu1 %v11860_v5  ;;  %2103 = vmatprep.subr.bf16.mxu0 %v11861_v6  ;;  %v11899_v5 = vld [vmem:[#allocation2 + $0x514] ss:$24 sps:$4 sm:$0xff]   ;;  %v11901_v6 = vld [vmem:[#allocation2 + $0x210] ss:$24 sps:$4 sm:$0xff]  }
  0x72   :  { %2144 = vmatprep.subr.bf16.mxu1 %v11863_v7  ;;  %v11902_v7 = vld [vmem:[#allocation2 + $0x510] ss:$24 sps:$4 sm:$0xff]  }
  0x74   :  { %2104 = vmatpush1.bf16.msra.mxu0 %v11865_v15  ;;  %v11903_v15 = vld [vmem:[#allocation2 + $0x1e4] ss:$24 sps:$4 sm:$0xff]  }
  0x75   :  { %2145 = vmatpush1.bf16.msra.mxu1 %v11866_v16  ;;  %2105 = vmatprep.subr.bf16.mxu0 %v11867_v17  ;;  %v11905_v16 = vld [vmem:[#allocation2 + $0x4e4] ss:$24 sps:$4 sm:$0xff]   ;;  %v11907_v17 = vld [vmem:[#allocation2 + $0x1e0] ss:$24 sps:$4 sm:$0xff]  }
  0x76   :  { %2146 = vmatprep.subr.bf16.mxu1 %v11869_v18  ;;  %v11908_v18 = vld [vmem:[#allocation2 + $0x4e0] ss:$24 sps:$4 sm:$0xff]  }
  0x78   :  { %2106 = vmatpush1.bf16.msra.mxu0 %v11871_v19  ;;  %v11909_v19 = vld [vmem:[#allocation2 + $0x1b4] ss:$24 sps:$4 sm:$0xff]  }
  0x79   :  { %2147 = vmatpush1.bf16.msra.mxu1 %v11872_v20  ;;  %2107 = vmatprep.subr.bf16.mxu0 %v11873_v21  ;;  %v11911_v20 = vld [vmem:[#allocation2 + $0x4b4] ss:$24 sps:$4 sm:$0xff]   ;;  %v11913_v21 = vld [vmem:[#allocation2 + $0x1b0] ss:$24 sps:$4 sm:$0xff]  }
  0x7a   :  { %2148 = vmatprep.subr.bf16.mxu1 %v11875_v22  ;;  %v11914_v22 = vld [vmem:[#allocation2 + $0x4b0] ss:$24 sps:$4 sm:$0xff]  }
  0x7c   :  { %2108 = vmatpush2.bf16.msra.mxu0 %v11877_v23  ;;  %v11915_v23 = vld [vmem:[#allocation2 + $0x184] ss:$24 sps:$4 sm:$0xff]  }
  0x7d   :  { %2149 = vmatpush2.bf16.msra.mxu1 %v11878_v24  ;;  %2109 = vmatprep.subr.bf16.mxu0 %v11879_v25  ;;  %v11917_v24 = vld [vmem:[#allocation2 + $0x484] ss:$24 sps:$4 sm:$0xff]   ;;  %v11919_v25 = vld [vmem:[#allocation2 + $0x180] ss:$24 sps:$4 sm:$0xff]  }
  0x7e   :  { %2150 = vmatprep.subr.bf16.mxu1 %v11881_v26  ;;  %v11920_v26 = vld [vmem:[#allocation2 + $0x480] ss:$24 sps:$4 sm:$0xff]  }
  0x80   :  { %2110 = vmatpush2.bf16.msra.mxu0 %v11883_v30  ;;  %v11923_v30 = vld [vmem:[#allocation2 + $0x754] ss:$24 sps:$4 sm:$0xff]  }
  0x81   :  { %2151 = vmatpush2.bf16.msra.mxu1 %v11884_v31  ;;  %2111 = vmatprep.subr.bf16.mxu0 %v11885_v32  ;;  %v11926_v31 = vld [vmem:[#allocation2 + $0x15c] ss:$24 sps:$4 sm:$0xff]   ;;  %v11921_v32 = vld [vmem:[#allocation2 + $0x750] ss:$24 sps:$4 sm:$0xff]  }
  0x82   :  { %2152 = vmatprep.subr.bf16.mxu1 %v11887_v33  ;;  %v11924_v33 = vld [vmem:[#allocation2 + $0x158] ss:$24 sps:$4 sm:$0xff]  }
  0x84   :  { %2112 = vmatpush2.bf16.msra.mxu0 %v11889_v35  ;;  %v11929_v35 = vld [vmem:[#allocation2 + $0x724] ss:$24 sps:$4 sm:$0xff]  }
  0x85   :  { %2153 = vmatpush2.bf16.msra.mxu1 %v11890_v38  ;;  %2113 = vmatprep.subr.bf16.mxu0 %v11891_v61  ;;  %v11932_v38 = vld [vmem:[#allocation2 + $0x12c] ss:$24 sps:$4 sm:$0xff]   ;;  %v11927_v61 = vld [vmem:[#allocation2 + $0x720] ss:$24 sps:$4 sm:$0xff]  }
  0x86   :  { %2154 = vmatprep.subr.bf16.mxu1 %v11893_v63  ;;  %v11930_v63 = vld [vmem:[#allocation2 + $0x128] ss:$24 sps:$4 sm:$0xff]  }
  0x88   :  { %2114 = vmatpush2.bf16.msra.mxu0 %v11895_v1  ;;  %v11935_v1 = vld [vmem:[#allocation2 + $0x6f4] ss:$24 sps:$4 sm:$0xff]  }
  0x89   :  { %2155 = vmatpush2.bf16.msra.mxu1 %v11896_v2  ;;  %2115 = vmatprep.subr.bf16.mxu0 %v11897_v3  ;;  %v11938_v2 = vld [vmem:[#allocation2 + $0xfc] ss:$24 sps:$4 sm:$0xff]   ;;  %v11933_v3 = vld [vmem:[#allocation2 + $0x6f0] ss:$24 sps:$4 sm:$0xff]  }
  0x8a   :  { %2156 = vmatprep.subr.bf16.mxu1 %v11899_v5  ;;  %v11936_v5 = vld [vmem:[#allocation2 + $0xf8] ss:$24 sps:$4 sm:$0xff]  }
  0x8c   :  { %2116 = vmatpush2.bf16.msra.mxu0 %v11901_v6  ;;  %v11941_v6 = vld [vmem:[#allocation2 + $0x6c4] ss:$24 sps:$4 sm:$0xff]  }
  0x8d   :  { %2157 = vmatpush2.bf16.msra.mxu1 %v11902_v7  ;;  %2117 = vmatprep.subr.bf16.mxu0 %v11903_v15  ;;  %v11944_v7 = vld [vmem:[#allocation2 + $0xcc] ss:$24 sps:$4 sm:$0xff]   ;;  %v11939_v15 = vld [vmem:[#allocation2 + $0x6c0] ss:$24 sps:$4 sm:$0xff]  }
  0x8e   :  { %2158 = vmatprep.subr.bf16.mxu1 %v11905_v16  ;;  %v11942_v16 = vld [vmem:[#allocation2 + $0xc8] ss:$24 sps:$4 sm:$0xff]  }
  0x90   :  { %2118 = vmatpush2.bf16.msra.mxu0 %v11907_v17  ;;  %v11947_v17 = vld [vmem:[#allocation2 + $0x694] ss:$24 sps:$4 sm:$0xff]  }
  0x91   :  { %2159 = vmatpush2.bf16.msra.mxu1 %v11908_v18  ;;  %2119 = vmatprep.subr.bf16.mxu0 %v11909_v19  ;;  %v11950_v18 = vld [vmem:[#allocation2 + $0x9c] ss:$24 sps:$4 sm:$0xff]   ;;  %v11945_v19 = vld [vmem:[#allocation2 + $0x690] ss:$24 sps:$4 sm:$0xff]  }
  0x92   :  { %2160 = vmatprep.subr.bf16.mxu1 %v11911_v20  ;;  %v11948_v20 = vld [vmem:[#allocation2 + $0x98] ss:$24 sps:$4 sm:$0xff]  }
  0x94   :  { %2120 = vmatpush2.bf16.msra.mxu0 %v11913_v21  ;;  %v11953_v21 = vld [vmem:[#allocation2 + $0x664] ss:$24 sps:$4 sm:$0xff]  }
  0x95   :  { %2161 = vmatpush2.bf16.msra.mxu1 %v11914_v22  ;;  %2121 = vmatprep.subr.bf16.mxu0 %v11915_v23  ;;  %v11956_v22 = vld [vmem:[#allocation2 + $0x6c] ss:$24 sps:$4 sm:$0xff]   ;;  %v11951_v23 = vld [vmem:[#allocation2 + $0x660] ss:$24 sps:$4 sm:$0xff]  }
  0x96   :  { %2162 = vmatprep.subr.bf16.mxu1 %v11917_v24  ;;  %v11954_v24 = vld [vmem:[#allocation2 + $0x68] ss:$24 sps:$4 sm:$0xff]  }
  0x98   :  { %2122 = vmatpush2.bf16.msra.mxu0 %v11919_v25  ;;  %v11959_v25 = vld [vmem:[#allocation2 + $0x634] ss:$24 sps:$4 sm:$0xff]  }
  0x99   :  { %2163 = vmatpush2.bf16.msra.mxu1 %v11920_v26  ;;  %2173 = vmatprep.subr.bf16.mxu0 %v11923_v30  ;;  %v11962_v26 = vld [vmem:[#allocation2 + $0x3c] ss:$24 sps:$4 sm:$0xff]   ;;  %v11957_v30 = vld [vmem:[#allocation2 + $0x630] ss:$24 sps:$4 sm:$0xff]  }
  0x9a   :  { %2214 = vmatprep.subr.bf16.mxu1 %v11926_v31  ;;  %v11960_v31 = vld [vmem:[#allocation2 + $0x38] ss:$24 sps:$4 sm:$0xff]  }
  0x9b   :  { %2124 = vmatmul.mubr.bf16.vlgmr.msra.gmra.mxu0 %v14283_v45 }
  0x9c   :  { %2165 = vmatmul.mubr.bf16.vlgmr.msra.gmra.mxu1 %v14310_v52  ;;  %2174 = vmatpush1.bf16.msra.mxu0 %v11921_v32  ;;  %v11965_v32 = vld [vmem:[#allocation2 + $0x604] ss:$24 sps:$4 sm:$0xff]  }
  0x9d   :  { %2215 = vmatpush1.bf16.msra.mxu1 %v11924_v33  ;;  %2175 = vmatprep.subr.bf16.mxu0 %v11929_v35  ;;  %v11968_v33 = vld [vmem:[#allocation2 + $0xc] ss:$24 sps:$4 sm:$0xff]   ;;  %v11963_v35 = vld [vmem:[#allocation2 + $0x600] ss:$24 sps:$4 sm:$0xff]  }
  0x9e   :  { %2216 = vmatprep.subr.bf16.mxu1 %v11932_v38  ;;  %2205 = vmatprep.mubr.bf16.mxu0 %v14314_v53  ;;  %v11966_v38 = vld [vmem:[#allocation2 + $0x8] ss:$24 sps:$4 sm:$0xff]  }
  0x9f   :  { %2246 = vmatprep.mubr.bf16.mxu1 %v14306_v51 }
  0xa0   :  { %2176 = vmatpush1.bf16.msra.mxu0 %v11927_v61  ;;  %v11971_v61 = vld [vmem:[#allocation2 + $0x8d4] ss:$24 sps:$4 sm:$0xff]  }
  0xa1   :  { %2217 = vmatpush1.bf16.msra.mxu1 %v11930_v63  ;;  %2177 = vmatprep.subr.bf16.mxu0 %v11935_v1  ;;  %v11974_v63 = vld [vmem:[#allocation2 + $0x2dc] ss:$24 sps:$4 sm:$0xff]   ;;  %v11969_v1 = vld [vmem:[#allocation2 + $0x8d0] ss:$24 sps:$4 sm:$0xff]  }
  0xa2   :  { %2218 = vmatprep.subr.bf16.mxu1 %v11938_v2  ;;  %v11972_v2 = vld [vmem:[#allocation2 + $0x2d8] ss:$24 sps:$4 sm:$0xff]  }
  0xa4   :  { %2178 = vmatpush1.bf16.msra.mxu0 %v11933_v3  ;;  %v11977_v3 = vld [vmem:[#allocation2 + $0x8a4] ss:$24 sps:$4 sm:$0xff]  }
  0xa5   :  { %2219 = vmatpush1.bf16.msra.mxu1 %v11936_v5  ;;  %2179 = vmatprep.subr.bf16.mxu0 %v11941_v6  ;;  %v11980_v5 = vld [vmem:[#allocation2 + $0x2ac] ss:$24 sps:$4 sm:$0xff]   ;;  %v11975_v6 = vld [vmem:[#allocation2 + $0x8a0] ss:$24 sps:$4 sm:$0xff]  }
  0xa6   :  { %2220 = vmatprep.subr.bf16.mxu1 %v11944_v7  ;;  %v11978_v7 = vld [vmem:[#allocation2 + $0x2a8] ss:$24 sps:$4 sm:$0xff]  }
  0xa8   :  { %2180 = vmatpush1.bf16.msra.mxu0 %v11939_v15  ;;  %v11983_v15 = vld [vmem:[#allocation2 + $0x874] ss:$24 sps:$4 sm:$0xff]  }
  0xa9   :  { %2221 = vmatpush1.bf16.msra.mxu1 %v11942_v16  ;;  %2181 = vmatprep.subr.bf16.mxu0 %v11947_v17  ;;  %v11986_v16 = vld [vmem:[#allocation2 + $0x27c] ss:$24 sps:$4 sm:$0xff]   ;;  %v11981_v17 = vld [vmem:[#allocation2 + $0x870] ss:$24 sps:$4 sm:$0xff]  }
  0xaa   :  { %2222 = vmatprep.subr.bf16.mxu1 %v11950_v18  ;;  %v11984_v18 = vld [vmem:[#allocation2 + $0x278] ss:$24 sps:$4 sm:$0xff]  }
  0xac   :  { %2182 = vmatpush1.bf16.msra.mxu0 %v11945_v19  ;;  %v11989_v19 = vld [vmem:[#allocation2 + $0x844] ss:$24 sps:$4 sm:$0xff]  }
  0xad   :  { %2223 = vmatpush1.bf16.msra.mxu1 %v11948_v20  ;;  %2183 = vmatprep.subr.bf16.mxu0 %v11953_v21  ;;  %v11992_v20 = vld [vmem:[#allocation2 + $0x24c] ss:$24 sps:$4 sm:$0xff]   ;;  %v11987_v21 = vld [vmem:[#allocation2 + $0x840] ss:$24 sps:$4 sm:$0xff]  }
  0xae   :  { %2224 = vmatprep.subr.bf16.mxu1 %v11956_v22  ;;  %v11990_v22 = vld [vmem:[#allocation2 + $0x248] ss:$24 sps:$4 sm:$0xff]  }
  0xb0   :  { %2184 = vmatpush1.bf16.msra.mxu0 %v11951_v23  ;;  %v11995_v23 = vld [vmem:[#allocation2 + $0x814] ss:$24 sps:$4 sm:$0xff]  }
  0xb1   :  { %2225 = vmatpush1.bf16.msra.mxu1 %v11954_v24  ;;  %2185 = vmatprep.subr.bf16.mxu0 %v11959_v25  ;;  %v11998_v24 = vld [vmem:[#allocation2 + $0x21c] ss:$24 sps:$4 sm:$0xff]   ;;  %v11993_v25 = vld [vmem:[#allocation2 + $0x810] ss:$24 sps:$4 sm:$0xff]  }
  0xb2   :  { %2226 = vmatprep.subr.bf16.mxu1 %v11962_v26  ;;  %v11996_v26 = vld [vmem:[#allocation2 + $0x218] ss:$24 sps:$4 sm:$0xff]  }
  0xb4   :  { %2186 = vmatpush1.bf16.msra.mxu0 %v11957_v30  ;;  %v12001_v30 = vld [vmem:[#allocation2 + $0x7e4] ss:$24 sps:$4 sm:$0xff]  }
  0xb5   :  { %2227 = vmatpush1.bf16.msra.mxu1 %v11960_v31  ;;  %2187 = vmatprep.subr.bf16.mxu0 %v11965_v32  ;;  %v12004_v31 = vld [vmem:[#allocation2 + $0x1ec] ss:$24 sps:$4 sm:$0xff]   ;;  %v11999_v32 = vld [vmem:[#allocation2 + $0x7e0] ss:$24 sps:$4 sm:$0xff]  }
  0xb6   :  { %2228 = vmatprep.subr.bf16.mxu1 %v11968_v33  ;;  %v12002_v33 = vld [vmem:[#allocation2 + $0x1e8] ss:$24 sps:$4 sm:$0xff]  }
  0xb8   :  { %2188 = vmatpush1.bf16.msra.mxu0 %v11963_v35  ;;  %v12007_v35 = vld [vmem:[#allocation2 + $0x7b4] ss:$24 sps:$4 sm:$0xff]  }
  0xb9   :  { %2229 = vmatpush1.bf16.msra.mxu1 %v11966_v38  ;;  %2189 = vmatprep.subr.bf16.mxu0 %v11971_v61  ;;  %v12010_v38 = vld [vmem:[#allocation2 + $0x1bc] ss:$24 sps:$4 sm:$0xff]   ;;  %v12005_v61 = vld [vmem:[#allocation2 + $0x7b0] ss:$24 sps:$4 sm:$0xff]  }
  0xba   :  { %2230 = vmatprep.subr.bf16.mxu1 %v11974_v63  ;;  %v12008_v63 = vld [vmem:[#allocation2 + $0x1b8] ss:$24 sps:$4 sm:$0xff]  }
  0xbc   :  { %2190 = vmatpush2.bf16.msra.mxu0 %v11969_v1  ;;  %v12013_v1 = vld [vmem:[#allocation2 + $0x784] ss:$24 sps:$4 sm:$0xff]  }
  0xbd   :  { %2231 = vmatpush2.bf16.msra.mxu1 %v11972_v2  ;;  %2191 = vmatprep.subr.bf16.mxu0 %v11977_v3  ;;  %v12016_v2 = vld [vmem:[#allocation2 + $0x18c] ss:$24 sps:$4 sm:$0xff]   ;;  %v12011_v3 = vld [vmem:[#allocation2 + $0x780] ss:$24 sps:$4 sm:$0xff]  }
  0xbe   :  { %2232 = vmatprep.subr.bf16.mxu1 %v11980_v5  ;;  %v12014_v5 = vld [vmem:[#allocation2 + $0x188] ss:$24 sps:$4 sm:$0xff]  }
  0xc0   :  { %2192 = vmatpush2.bf16.msra.mxu0 %v11975_v6  ;;  %v12019_v6 = vld [vmem:[#allocation2 + $0x45c] ss:$24 sps:$4 sm:$0xff]  }
  0xc1   :  { %2233 = vmatpush2.bf16.msra.mxu1 %v11978_v7  ;;  %2193 = vmatprep.subr.bf16.mxu0 %v11983_v15  ;;  %v12022_v7 = vld [vmem:[#allocation2 + $0x75c] ss:$24 sps:$4 sm:$0xff]   ;;  %v12017_v15 = vld [vmem:[#allocation2 + $0x458] ss:$24 sps:$4 sm:$0xff]  }
  0xc2   :  { %2234 = vmatprep.subr.bf16.mxu1 %v11986_v16  ;;  %v12020_v16 = vld [vmem:[#allocation2 + $0x758] ss:$24 sps:$4 sm:$0xff]  }
  0xc4   :  { %2194 = vmatpush2.bf16.msra.mxu0 %v11981_v17  ;;  %v12025_v17 = vld [vmem:[#allocation2 + $0x42c] ss:$24 sps:$4 sm:$0xff]  }
  0xc5   :  { %2235 = vmatpush2.bf16.msra.mxu1 %v11984_v18  ;;  %2195 = vmatprep.subr.bf16.mxu0 %v11989_v19  ;;  %v12028_v18 = vld [vmem:[#allocation2 + $0x72c] ss:$24 sps:$4 sm:$0xff]   ;;  %v12023_v19 = vld [vmem:[#allocation2 + $0x428] ss:$24 sps:$4 sm:$0xff]  }
  0xc6   :  { %2236 = vmatprep.subr.bf16.mxu1 %v11992_v20  ;;  %v12026_v20 = vld [vmem:[#allocation2 + $0x728] ss:$24 sps:$4 sm:$0xff]  }
  0xc8   :  { %2196 = vmatpush2.bf16.msra.mxu0 %v11987_v21  ;;  %v12031_v21 = vld [vmem:[#allocation2 + $0x3fc] ss:$24 sps:$4 sm:$0xff]  }
  0xc9   :  { %2237 = vmatpush2.bf16.msra.mxu1 %v11990_v22  ;;  %2197 = vmatprep.subr.bf16.mxu0 %v11995_v23  ;;  %v12034_v22 = vld [vmem:[#allocation2 + $0x6fc] ss:$24 sps:$4 sm:$0xff]   ;;  %v12029_v23 = vld [vmem:[#allocation2 + $0x3f8] ss:$24 sps:$4 sm:$0xff]  }
  0xca   :  { %2238 = vmatprep.subr.bf16.mxu1 %v11998_v24  ;;  %v12032_v24 = vld [vmem:[#allocation2 + $0x6f8] ss:$24 sps:$4 sm:$0xff]  }
  0xcc   :  { %2198 = vmatpush2.bf16.msra.mxu0 %v11993_v25  ;;  %v12037_v25 = vld [vmem:[#allocation2 + $0x3cc] ss:$24 sps:$4 sm:$0xff]  }
  0xcd   :  { %2239 = vmatpush2.bf16.msra.mxu1 %v11996_v26  ;;  %2199 = vmatprep.subr.bf16.mxu0 %v12001_v30  ;;  %v12040_v26 = vld [vmem:[#allocation2 + $0x6cc] ss:$24 sps:$4 sm:$0xff]   ;;  %v12035_v30 = vld [vmem:[#allocation2 + $0x3c8] ss:$24 sps:$4 sm:$0xff]  }
  0xce   :  { %2240 = vmatprep.subr.bf16.mxu1 %v12004_v31  ;;  %v12038_v31 = vld [vmem:[#allocation2 + $0x6c8] ss:$24 sps:$4 sm:$0xff]  }
  0xd0   :  { %2200 = vmatpush2.bf16.msra.mxu0 %v11999_v32  ;;  %v12043_v32 = vld [vmem:[#allocation2 + $0x39c] ss:$24 sps:$4 sm:$0xff]  }
  0xd1   :  { %2241 = vmatpush2.bf16.msra.mxu1 %v12002_v33  ;;  %2201 = vmatprep.subr.bf16.mxu0 %v12007_v35  ;;  %v12046_v33 = vld [vmem:[#allocation2 + $0x69c] ss:$24 sps:$4 sm:$0xff]   ;;  %v12041_v35 = vld [vmem:[#allocation2 + $0x398] ss:$24 sps:$4 sm:$0xff]  }
  0xd2   :  { %2242 = vmatprep.subr.bf16.mxu1 %v12010_v38  ;;  %v12044_v38 = vld [vmem:[#allocation2 + $0x698] ss:$24 sps:$4 sm:$0xff]  }
  0xd4   :  { %2202 = vmatpush2.bf16.msra.mxu0 %v12005_v61  ;;  %v12049_v61 = vld [vmem:[#allocation2 + $0x36c] ss:$24 sps:$4 sm:$0xff]  }
  0xd5   :  { %2243 = vmatpush2.bf16.msra.mxu1 %v12008_v63  ;;  %2203 = vmatprep.subr.bf16.mxu0 %v12013_v1  ;;  %v12052_v63 = vld [vmem:[#allocation2 + $0x66c] ss:$24 sps:$4 sm:$0xff]   ;;  %v12047_v1 = vld [vmem:[#allocation2 + $0x368] ss:$24 sps:$4 sm:$0xff]  }
  0xd6   :  { %2244 = vmatprep.subr.bf16.mxu1 %v12016_v2  ;;  %v12050_v2 = vld [vmem:[#allocation2 + $0x668] ss:$24 sps:$4 sm:$0xff]  }
  0xd8   :  { %2204 = vmatpush2.bf16.msra.mxu0 %v12011_v3  ;;  %v12055_v3 = vld [vmem:[#allocation2 + $0x33c] ss:$24 sps:$4 sm:$0xff]  }
  0xd9   :  { %2245 = vmatpush2.bf16.msra.mxu1 %v12014_v5  ;;  %2255 = vmatprep.subr.bf16.mxu0 %v12019_v6  ;;  %v12058_v5 = vld [vmem:[#allocation2 + $0x63c] ss:$24 sps:$4 sm:$0xff]   ;;  %v12053_v6 = vld [vmem:[#allocation2 + $0x338] ss:$24 sps:$4 sm:$0xff]  }
  0xda   :  { %2296 = vmatprep.subr.bf16.mxu1 %v12022_v7  ;;  %v12056_v7 = vld [vmem:[#allocation2 + $0x638] ss:$24 sps:$4 sm:$0xff]  }
  0xdb   :  { %2206 = vmatmul.mubr.bf16.vlgmr.msra.gmra.mxu0 %v14287_v46 }
  0xdc   :  { %2247 = vmatmul.mubr.bf16.vlgmr.msra.gmra.mxu1 %v14283_v45  ;;  %2256 = vmatpush1.bf16.msra.mxu0 %v12017_v15  ;;  %v12061_v15 = vld [vmem:[#allocation2 + $0x30c] ss:$24 sps:$4 sm:$0xff]  }
  0xdd   :  { %2297 = vmatpush1.bf16.msra.mxu1 %v12020_v16  ;;  %2257 = vmatprep.subr.bf16.mxu0 %v12025_v17  ;;  %v12064_v16 = vld [vmem:[#allocation2 + $0x60c] ss:$24 sps:$4 sm:$0xff]   ;;  %v12059_v17 = vld [vmem:[#allocation2 + $0x308] ss:$24 sps:$4 sm:$0xff]  }
  0xde   :  { %2298 = vmatprep.subr.bf16.mxu1 %v12028_v18  ;;  %2287 = vmatprep.mubr.bf16.mxu0 %v14334_v58  ;;  %v12062_v18 = vld [vmem:[#allocation2 + $0x608] ss:$24 sps:$4 sm:$0xff]  }
  0xdf   :  { %2328 = vmatprep.mubr.bf16.mxu1 %v14314_v53 }
  0xe0   :  { %2258 = vmatpush1.bf16.msra.mxu0 %v12023_v19  ;;  %v12067_v19 = vld [vmem:[#allocation2 + $0x5dc] ss:$24 sps:$4 sm:$0xff]  }
  0xe1   :  { %2299 = vmatpush1.bf16.msra.mxu1 %v12026_v20  ;;  %2259 = vmatprep.subr.bf16.mxu0 %v12031_v21  ;;  %v12070_v20 = vld [vmem:[#allocation2 + $0x8dc] ss:$24 sps:$4 sm:$0xff]   ;;  %v12065_v21 = vld [vmem:[#allocation2 + $0x5d8] ss:$24 sps:$4 sm:$0xff]  }
  0xe2   :  { %2300 = vmatprep.subr.bf16.mxu1 %v12034_v22  ;;  %v12068_v22 = vld [vmem:[#allocation2 + $0x8d8] ss:$24 sps:$4 sm:$0xff]  }
  0xe4   :  { %2260 = vmatpush1.bf16.msra.mxu0 %v12029_v23  ;;  %v12073_v23 = vld [vmem:[#allocation2 + $0x5ac] ss:$24 sps:$4 sm:$0xff]  }
  0xe5   :  { %2301 = vmatpush1.bf16.msra.mxu1 %v12032_v24  ;;  %2261 = vmatprep.subr.bf16.mxu0 %v12037_v25  ;;  %v12076_v24 = vld [vmem:[#allocation2 + $0x8ac] ss:$24 sps:$4 sm:$0xff]   ;;  %v12071_v25 = vld [vmem:[#allocation2 + $0x5a8] ss:$24 sps:$4 sm:$0xff]  }
  0xe6   :  { %2302 = vmatprep.subr.bf16.mxu1 %v12040_v26  ;;  %v12074_v26 = vld [vmem:[#allocation2 + $0x8a8] ss:$24 sps:$4 sm:$0xff]  }
  0xe8   :  { %2262 = vmatpush1.bf16.msra.mxu0 %v12035_v30  ;;  %v12079_v30 = vld [vmem:[#allocation2 + $0x57c] ss:$24 sps:$4 sm:$0xff]  }
  0xe9   :  { %2303 = vmatpush1.bf16.msra.mxu1 %v12038_v31  ;;  %2263 = vmatprep.subr.bf16.mxu0 %v12043_v32  ;;  %v12082_v31 = vld [vmem:[#allocation2 + $0x87c] ss:$24 sps:$4 sm:$0xff]   ;;  %v12077_v32 = vld [vmem:[#allocation2 + $0x578] ss:$24 sps:$4 sm:$0xff]  }
  0xea   :  { %2304 = vmatprep.subr.bf16.mxu1 %v12046_v33  ;;  %v12080_v33 = vld [vmem:[#allocation2 + $0x878] ss:$24 sps:$4 sm:$0xff]  }
  0xec   :  { %2264 = vmatpush1.bf16.msra.mxu0 %v12041_v35  ;;  %v12085_v35 = vld [vmem:[#allocation2 + $0x54c] ss:$24 sps:$4 sm:$0xff]  }
  0xed   :  { %2305 = vmatpush1.bf16.msra.mxu1 %v12044_v38  ;;  %2265 = vmatprep.subr.bf16.mxu0 %v12049_v61  ;;  %v12088_v38 = vld [vmem:[#allocation2 + $0x84c] ss:$24 sps:$4 sm:$0xff]   ;;  %v12083_v61 = vld [vmem:[#allocation2 + $0x548] ss:$24 sps:$4 sm:$0xff]  }
  0xee   :  { %2306 = vmatprep.subr.bf16.mxu1 %v12052_v63  ;;  %v12086_v63 = vld [vmem:[#allocation2 + $0x848] ss:$24 sps:$4 sm:$0xff]  }
  0xf0   :  { %2266 = vmatpush1.bf16.msra.mxu0 %v12047_v1  ;;  %v12091_v1 = vld [vmem:[#allocation2 + $0x51c] ss:$24 sps:$4 sm:$0xff]  }
  0xf1   :  { %2307 = vmatpush1.bf16.msra.mxu1 %v12050_v2  ;;  %2267 = vmatprep.subr.bf16.mxu0 %v12055_v3  ;;  %v12094_v2 = vld [vmem:[#allocation2 + $0x81c] ss:$24 sps:$4 sm:$0xff]   ;;  %v12089_v3 = vld [vmem:[#allocation2 + $0x518] ss:$24 sps:$4 sm:$0xff]  }
  0xf2   :  { %2308 = vmatprep.subr.bf16.mxu1 %v12058_v5  ;;  %v12092_v5 = vld [vmem:[#allocation2 + $0x818] ss:$24 sps:$4 sm:$0xff]  }
  0xf4   :  { %2268 = vmatpush1.bf16.msra.mxu0 %v12053_v6  ;;  %v12097_v6 = vld [vmem:[#allocation2 + $0x4ec] ss:$24 sps:$4 sm:$0xff]  }
  0xf5   :  { %2309 = vmatpush1.bf16.msra.mxu1 %v12056_v7  ;;  %2269 = vmatprep.subr.bf16.mxu0 %v12061_v15  ;;  %v12100_v7 = vld [vmem:[#allocation2 + $0x7ec] ss:$24 sps:$4 sm:$0xff]   ;;  %v12095_v15 = vld [vmem:[#allocation2 + $0x4e8] ss:$24 sps:$4 sm:$0xff]  }
  0xf6   :  { %2310 = vmatprep.subr.bf16.mxu1 %v12064_v16  ;;  %v12098_v16 = vld [vmem:[#allocation2 + $0x7e8] ss:$24 sps:$4 sm:$0xff]  }
  0xf8   :  { %2270 = vmatpush1.bf16.msra.mxu0 %v12059_v17  ;;  %v12103_v17 = vld [vmem:[#allocation2 + $0x4bc] ss:$24 sps:$4 sm:$0xff]  }
  0xf9   :  { %2311 = vmatpush1.bf16.msra.mxu1 %v12062_v18  ;;  %2271 = vmatprep.subr.bf16.mxu0 %v12067_v19  ;;  %v12106_v18 = vld [vmem:[#allocation2 + $0x7bc] ss:$24 sps:$4 sm:$0xff]   ;;  %v12101_v19 = vld [vmem:[#allocation2 + $0x4b8] ss:$24 sps:$4 sm:$0xff]  }
  0xfa   :  { %2312 = vmatprep.subr.bf16.mxu1 %v12070_v20  ;;  %v12104_v20 = vld [vmem:[#allocation2 + $0x7b8] ss:$24 sps:$4 sm:$0xff]  }
  0xfc   :  { %2272 = vmatpush2.bf16.msra.mxu0 %v12065_v21  ;;  %v12109_v21 = vld [vmem:[#allocation2 + $0x48c] ss:$24 sps:$4 sm:$0xff]  }
  0xfd   :  { %2313 = vmatpush2.bf16.msra.mxu1 %v12068_v22  ;;  %2273 = vmatprep.subr.bf16.mxu0 %v12073_v23  ;;  %v12112_v22 = vld [vmem:[#allocation2 + $0x78c] ss:$24 sps:$4 sm:$0xff]   ;;  %v12107_v23 = vld [vmem:[#allocation2 + $0x488] ss:$24 sps:$4 sm:$0xff]  }
  0xfe   :  { %2314 = vmatprep.subr.bf16.mxu1 %v12076_v24  ;;  %v12110_v24 = vld [vmem:[#allocation2 + $0x788] ss:$24 sps:$4 sm:$0xff]  }
 0x100   :  { %2274 = vmatpush2.bf16.msra.mxu0 %v12071_v25  ;;  %v12115_v25 = vld [vmem:[#allocation2 + $0x164] ss:$24 sps:$4 sm:$0xff]  }
 0x101   :  { %2315 = vmatpush2.bf16.msra.mxu1 %v12074_v26  ;;  %2275 = vmatprep.subr.bf16.mxu0 %v12079_v30  ;;  %v12118_v26 = vld [vmem:[#allocation2 + $0x464] ss:$24 sps:$4 sm:$0xff]   ;;  %v12113_v30 = vld [vmem:[#allocation2 + $0x160] ss:$24 sps:$4 sm:$0xff]  }
 0x102   :  { %2316 = vmatprep.subr.bf16.mxu1 %v12082_v31  ;;  %v12116_v31 = vld [vmem:[#allocation2 + $0x460] ss:$24 sps:$4 sm:$0xff]  }
 0x104   :  { %2276 = vmatpush2.bf16.msra.mxu0 %v12077_v32  ;;  %v12121_v32 = vld [vmem:[#allocation2 + $0x134] ss:$24 sps:$4 sm:$0xff]  }
 0x105   :  { %2317 = vmatpush2.bf16.msra.mxu1 %v12080_v33  ;;  %2277 = vmatprep.subr.bf16.mxu0 %v12085_v35  ;;  %v12124_v33 = vld [vmem:[#allocation2 + $0x434] ss:$24 sps:$4 sm:$0xff]   ;;  %v12119_v35 = vld [vmem:[#allocation2 + $0x130] ss:$24 sps:$4 sm:$0xff]  }
 0x106   :  { %2318 = vmatprep.subr.bf16.mxu1 %v12088_v38  ;;  %v12122_v38 = vld [vmem:[#allocation2 + $0x430] ss:$24 sps:$4 sm:$0xff]  }
 0x108   :  { %2278 = vmatpush2.bf16.msra.mxu0 %v12083_v61  ;;  %v12127_v61 = vld [vmem:[#allocation2 + $0x104] ss:$24 sps:$4 sm:$0xff]  }
 0x109   :  { %2319 = vmatpush2.bf16.msra.mxu1 %v12086_v63  ;;  %2279 = vmatprep.subr.bf16.mxu0 %v12091_v1  ;;  %v12130_v63 = vld [vmem:[#allocation2 + $0x404] ss:$24 sps:$4 sm:$0xff]   ;;  %v12125_v1 = vld [vmem:[#allocation2 + $0x100] ss:$24 sps:$4 sm:$0xff]  }
 0x10a   :  { %2320 = vmatprep.subr.bf16.mxu1 %v12094_v2  ;;  %v12128_v2 = vld [vmem:[#allocation2 + $0x400] ss:$24 sps:$4 sm:$0xff]  }
 0x10c   :  { %2280 = vmatpush2.bf16.msra.mxu0 %v12089_v3  ;;  %v12133_v3 = vld [vmem:[#allocation2 + $0xd4] ss:$24 sps:$4 sm:$0xff]  }
 0x10d   :  { %2321 = vmatpush2.bf16.msra.mxu1 %v12092_v5  ;;  %2281 = vmatprep.subr.bf16.mxu0 %v12097_v6  ;;  %v12136_v5 = vld [vmem:[#allocation2 + $0x3d4] ss:$24 sps:$4 sm:$0xff]   ;;  %v12131_v6 = vld [vmem:[#allocation2 + $0xd0] ss:$24 sps:$4 sm:$0xff]  }
 0x10e   :  { %2322 = vmatprep.subr.bf16.mxu1 %v12100_v7  ;;  %v12134_v7 = vld [vmem:[#allocation2 + $0x3d0] ss:$24 sps:$4 sm:$0xff]  }
 0x110   :  { %2282 = vmatpush2.bf16.msra.mxu0 %v12095_v15  ;;  %v12139_v15 = vld [vmem:[#allocation2 + $0xa4] ss:$24 sps:$4 sm:$0xff]  }
 0x111   :  { %2323 = vmatpush2.bf16.msra.mxu1 %v12098_v16  ;;  %2283 = vmatprep.subr.bf16.mxu0 %v12103_v17  ;;  %v12142_v16 = vld [vmem:[#allocation2 + $0x3a4] ss:$24 sps:$4 sm:$0xff]   ;;  %v12145_v17 = vld [vmem:[#allocation2 + $0x74] ss:$24 sps:$4 sm:$0xff]  }
 0x112   :  { %2324 = vmatprep.subr.bf16.mxu1 %v12106_v18  ;;  %v12148_v18 = vld [vmem:[#allocation2 + $0x374] ss:$24 sps:$4 sm:$0xff]  }
 0x114   :  { %2284 = vmatpush2.bf16.msra.mxu0 %v12101_v19  ;;  %v12143_v19 = vld [vmem:[#allocation2 + $0x70] ss:$24 sps:$4 sm:$0xff]  }
 0x115   :  { %2325 = vmatpush2.bf16.msra.mxu1 %v12104_v20  ;;  %2285 = vmatprep.subr.bf16.mxu0 %v12109_v21  ;;  %v12146_v20 = vld [vmem:[#allocation2 + $0x370] ss:$24 sps:$4 sm:$0xff]   ;;  %v12151_v21 = vld [vmem:[#allocation2 + $0x44] ss:$24 sps:$4 sm:$0xff]  }
 0x116   :  { %2326 = vmatprep.subr.bf16.mxu1 %v12112_v22  ;;  %v12154_v22 = vld [vmem:[#allocation2 + $0x344] ss:$24 sps:$4 sm:$0xff]  }
 0x118   :  { %2286 = vmatpush2.bf16.msra.mxu0 %v12107_v23  ;;  %v12149_v23 = vld [vmem:[#allocation2 + $0x40] ss:$24 sps:$4 sm:$0xff]  }
 0x119   :  { %2327 = vmatpush2.bf16.msra.mxu1 %v12110_v24  ;;  %2337 = vmatprep.subr.bf16.mxu0 %v12115_v25  ;;  %v12152_v24 = vld [vmem:[#allocation2 + $0x340] ss:$24 sps:$4 sm:$0xff]   ;;  %v12157_v25 = vld [vmem:[#allocation2 + $0x14] ss:$24 sps:$4 sm:$0xff]  }
 0x11a   :  { %2378 = vmatprep.subr.bf16.mxu1 %v12118_v26  ;;  %v12160_v26 = vld [vmem:[#allocation2 + $0x314] ss:$24 sps:$4 sm:$0xff]  }
 0x11b   :  { %2288 = vmatmul.mubr.bf16.vlgmr.msra.gmra.mxu0 %v14310_v52 }
 0x11c   :  { %2329 = vmatmul.mubr.bf16.vlgmr.msra.gmra.mxu1 %v14287_v46  ;;  %2338 = vmatpush1.bf16.msra.mxu0 %v12113_v30  ;;  %v12155_v30 = vld [vmem:[#allocation2 + $0x10] ss:$24 sps:$4 sm:$0xff]  }
 0x11d   :  { %2379 = vmatpush1.bf16.msra.mxu1 %v12116_v31  ;;  %2339 = vmatprep.subr.bf16.mxu0 %v12121_v32  ;;  %v12158_v31 = vld [vmem:[#allocation2 + $0x310] ss:$24 sps:$4 sm:$0xff]   ;;  %v12163_v32 = vld [vmem:[#allocation2 + $0x2e4] ss:$24 sps:$4 sm:$0xff]  }
 0x11e   :  { %2380 = vmatprep.subr.bf16.mxu1 %v12124_v33  ;;  %2369 = vmatprep.mubr.bf16.mxu0 %v14306_v51  ;;  %v12137_v51 = vld [vmem:[#allocation2 + $0xa0] ss:$24 sps:$4 sm:$0xff]   ;;  %v12166_v33 = vld [vmem:[#allocation2 + $0x5e4] ss:$24 sps:$4 sm:$0xff]  }
 0x11f   :  { %2410 = vmatprep.mubr.bf16.mxu1 %v14334_v58  ;;  %v12140_v58 = vld [vmem:[#allocation2 + $0x3a0] ss:$24 sps:$4 sm:$0xff]  }
 0x120   :  { %2340 = vmatpush1.bf16.msra.mxu0 %v12119_v35  ;;  %v12161_v35 = vld [vmem:[#allocation2 + $0x2e0] ss:$24 sps:$4 sm:$0xff]  }
 0x121   :  { %2381 = vmatpush1.bf16.msra.mxu1 %v12122_v38  ;;  %2341 = vmatprep.subr.bf16.mxu0 %v12127_v61  ;;  %v12164_v38 = vld [vmem:[#allocation2 + $0x5e0] ss:$24 sps:$4 sm:$0xff]   ;;  %v12169_v61 = vld [vmem:[#allocation2 + $0x2b4] ss:$24 sps:$4 sm:$0xff]  }
 0x122   :  { %2382 = vmatprep.subr.bf16.mxu1 %v12130_v63  ;;  %v12172_v63 = vld [vmem:[#allocation2 + $0x5b4] ss:$24 sps:$4 sm:$0xff]  }
 0x124   :  { %2342 = vmatpush1.bf16.msra.mxu0 %v12125_v1  ;;  %v12167_v1 = vld [vmem:[#allocation2 + $0x2b0] ss:$24 sps:$4 sm:$0xff]  }
 0x125   :  { %2383 = vmatpush1.bf16.msra.mxu1 %v12128_v2  ;;  %2343 = vmatprep.subr.bf16.mxu0 %v12133_v3  ;;  %v12170_v2 = vld [vmem:[#allocation2 + $0x5b0] ss:$24 sps:$4 sm:$0xff]   ;;  %v12175_v3 = vld [vmem:[#allocation2 + $0x284] ss:$24 sps:$4 sm:$0xff]  }
 0x126   :  { %2384 = vmatprep.subr.bf16.mxu1 %v12136_v5  ;;  %v12178_v5 = vld [vmem:[#allocation2 + $0x584] ss:$24 sps:$4 sm:$0xff]  }
 0x128   :  { %2344 = vmatpush1.bf16.msra.mxu0 %v12131_v6  ;;  %v12173_v6 = vld [vmem:[#allocation2 + $0x280] ss:$24 sps:$4 sm:$0xff]  }
 0x129   :  { %2385 = vmatpush1.bf16.msra.mxu1 %v12134_v7  ;;  %2345 = vmatprep.subr.bf16.mxu0 %v12139_v15  ;;  %v12176_v7 = vld [vmem:[#allocation2 + $0x580] ss:$24 sps:$4 sm:$0xff]   ;;  %v12181_v15 = vld [vmem:[#allocation2 + $0x254] ss:$24 sps:$4 sm:$0xff]  }
 0x12a   :  { %2386 = vmatprep.subr.bf16.mxu1 %v12142_v16  ;;  %v12184_v16 = vld [vmem:[#allocation2 + $0x554] ss:$24 sps:$4 sm:$0xff]  }
 0x12c   :  { %2346 = vmatpush1.bf16.msra.mxu0 %v12137_v51  ;;  %v12179_v51 = vld [vmem:[#allocation2 + $0x250] ss:$24 sps:$4 sm:$0xff]  }
 0x12d   :  { %2387 = vmatpush1.bf16.msra.mxu1 %v12140_v58  ;;  %2347 = vmatprep.subr.bf16.mxu0 %v12145_v17  ;;  %v12182_v58 = vld [vmem:[#allocation2 + $0x550] ss:$24 sps:$4 sm:$0xff]   ;;  %v12187_v17 = vld [vmem:[#allocation2 + $0x224] ss:$24 sps:$4 sm:$0xff]  }
 0x12e   :  { %2388 = vmatprep.subr.bf16.mxu1 %v12148_v18  ;;  %v12190_v18 = vld [vmem:[#allocation2 + $0x524] ss:$24 sps:$4 sm:$0xff]  }
 0x130   :  { %2348 = vmatpush1.bf16.msra.mxu0 %v12143_v19  ;;  %v12185_v19 = vld [vmem:[#allocation2 + $0x220] ss:$24 sps:$4 sm:$0xff]  }
 0x131   :  { %2389 = vmatpush1.bf16.msra.mxu1 %v12146_v20  ;;  %2349 = vmatprep.subr.bf16.mxu0 %v12151_v21  ;;  %v12188_v20 = vld [vmem:[#allocation2 + $0x520] ss:$24 sps:$4 sm:$0xff]   ;;  %v12193_v21 = vld [vmem:[#allocation2 + $0x1f4] ss:$24 sps:$4 sm:$0xff]  }
 0x132   :  { %2390 = vmatprep.subr.bf16.mxu1 %v12154_v22  ;;  %v12196_v22 = vld [vmem:[#allocation2 + $0x4f4] ss:$24 sps:$4 sm:$0xff]  }
 0x134   :  { %2350 = vmatpush1.bf16.msra.mxu0 %v12149_v23  ;;  %v12191_v23 = vld [vmem:[#allocation2 + $0x1f0] ss:$24 sps:$4 sm:$0xff]  }
 0x135   :  { %2391 = vmatpush1.bf16.msra.mxu1 %v12152_v24  ;;  %2351 = vmatprep.subr.bf16.mxu0 %v12157_v25  ;;  %v12194_v24 = vld [vmem:[#allocation2 + $0x4f0] ss:$24 sps:$4 sm:$0xff]   ;;  %v12199_v25 = vld [vmem:[#allocation2 + $0x1c4] ss:$24 sps:$4 sm:$0xff]  }
 0x136   :  { %2392 = vmatprep.subr.bf16.mxu1 %v12160_v26  ;;  %v12202_v26 = vld [vmem:[#allocation2 + $0x4c4] ss:$24 sps:$4 sm:$0xff]  }
 0x138   :  { %2352 = vmatpush1.bf16.msra.mxu0 %v12155_v30  ;;  %v12197_v30 = vld [vmem:[#allocation2 + $0x1c0] ss:$24 sps:$4 sm:$0xff]  }
 0x139   :  { %2393 = vmatpush1.bf16.msra.mxu1 %v12158_v31  ;;  %2353 = vmatprep.subr.bf16.mxu0 %v12163_v32  ;;  %v12200_v31 = vld [vmem:[#allocation2 + $0x4c0] ss:$24 sps:$4 sm:$0xff]   ;;  %v12205_v32 = vld [vmem:[#allocation2 + $0x194] ss:$24 sps:$4 sm:$0xff]  }
 0x13a   :  { %2394 = vmatprep.subr.bf16.mxu1 %v12166_v33  ;;  %v12208_v33 = vld [vmem:[#allocation2 + $0x494] ss:$24 sps:$4 sm:$0xff]  }
 0x13c   :  { %2354 = vmatpush2.bf16.msra.mxu0 %v12161_v35  ;;  %v12203_v35 = vld [vmem:[#allocation2 + $0x190] ss:$24 sps:$4 sm:$0xff]  }
 0x13d   :  { %2395 = vmatpush2.bf16.msra.mxu1 %v12164_v38  ;;  %2355 = vmatprep.subr.bf16.mxu0 %v12169_v61  ;;  %v12206_v38 = vld [vmem:[#allocation2 + $0x490] ss:$24 sps:$4 sm:$0xff]   ;;  %v12211_v61 = vld [vmem:[#allocation2 + $0x764] ss:$24 sps:$4 sm:$0xff]  }
 0x13e   :  { %2396 = vmatprep.subr.bf16.mxu1 %v12172_v63  ;;  %v12209_v63 = vld [vmem:[#allocation2 + $0x760] ss:$24 sps:$4 sm:$0xff]  }
 0x140   :  { %2356 = vmatpush2.bf16.msra.mxu0 %v12167_v1  ;;  %v12214_v1 = vld [vmem:[#allocation2 + $0x734] ss:$24 sps:$4 sm:$0xff]  }
 0x141   :  { %2397 = vmatpush2.bf16.msra.mxu1 %v12170_v2  ;;  %2357 = vmatprep.subr.bf16.mxu0 %v12175_v3 }
 0x142   :  { %2398 = vmatprep.subr.bf16.mxu1 %v12178_v5 }
 0x144   :  { %2358 = vmatpush2.bf16.msra.mxu0 %v12173_v6  ;;  %v12212_v6 = vld [vmem:[#allocation2 + $0x730] ss:$24 sps:$4 sm:$0xff]  }
 0x145   :  { %2399 = vmatpush2.bf16.msra.mxu1 %v12176_v7  ;;  %2359 = vmatprep.subr.bf16.mxu0 %v12181_v15 }
 0x146   :  { %2400 = vmatprep.subr.bf16.mxu1 %v12184_v16  ;;  %v12217_v16 = vld [vmem:[#allocation2 + $0x704] ss:$24 sps:$4 sm:$0xff]  }
 0x148   :  { %2360 = vmatpush2.bf16.msra.mxu0 %v12179_v51 }
 0x149   :  { %2401 = vmatpush2.bf16.msra.mxu1 %v12182_v58  ;;  %2361 = vmatprep.subr.bf16.mxu0 %v12187_v17 }
 0x14a   :  { %2402 = vmatprep.subr.bf16.mxu1 %v12190_v18  ;;  %v12215_v18 = vld [vmem:[#allocation2 + $0x700] ss:$24 sps:$4 sm:$0xff]  }
 0x14c   :  { %2362 = vmatpush2.bf16.msra.mxu0 %v12185_v19 }
 0x14d   :  { %2403 = vmatpush2.bf16.msra.mxu1 %v12188_v20  ;;  %2363 = vmatprep.subr.bf16.mxu0 %v12193_v21  ;;  %v12218_v20 = vld [vmem:[#allocation2 + $0x6d0] ss:$24 sps:$4 sm:$0xff]   ;;  %v12223_v21 = vld [vmem:[#allocation2 + $0x6a4] ss:$24 sps:$4 sm:$0xff]  }
 0x14e   :  { %2404 = vmatprep.subr.bf16.mxu1 %v12196_v22  ;;  %v12226_v22 = vld [vmem:[#allocation2 + $0x674] ss:$24 sps:$4 sm:$0xff]  }
 0x150   :  { %2364 = vmatpush2.bf16.msra.mxu0 %v12191_v23  ;;  %v12224_v23 = vld [vmem:[#allocation2 + $0x670] ss:$24 sps:$4 sm:$0xff]  }
 0x151   :  { %2405 = vmatpush2.bf16.msra.mxu1 %v12194_v24  ;;  %2365 = vmatprep.subr.bf16.mxu0 %v12199_v25  ;;  %v12229_v24 = vld [vmem:[#allocation2 + $0x644] ss:$24 sps:$4 sm:$0xff]   ;;  %v12227_v25 = vld [vmem:[#allocation2 + $0x640] ss:$24 sps:$4 sm:$0xff]  }
 0x152   :  { %2406 = vmatprep.subr.bf16.mxu1 %v12202_v26  ;;  %v12232_v26 = vld [vmem:[#allocation2 + $0x614] ss:$24 sps:$4 sm:$0xff]  }
 0x154   :  { %2366 = vmatpush2.bf16.msra.mxu0 %v12197_v30  ;;  %v12230_v30 = vld [vmem:[#allocation2 + $0x610] ss:$24 sps:$4 sm:$0xff]  }
 0x155   :  { %2407 = vmatpush2.bf16.msra.mxu1 %v12200_v31  ;;  %2367 = vmatprep.subr.bf16.mxu0 %v12205_v32  ;;  %v12235_v31 = vld [vmem:[#allocation2 + $0x8e4] ss:$24 sps:$4 sm:$0xff]   ;;  %v12233_v32 = vld [vmem:[#allocation2 + $0x8e0] ss:$24 sps:$4 sm:$0xff]  }
 0x156   :  { %2408 = vmatprep.subr.bf16.mxu1 %v12208_v33  ;;  %v12238_v33 = vld [vmem:[#allocation2 + $0x8b4] ss:$24 sps:$4 sm:$0xff]  }
 0x158   :  { %2368 = vmatpush2.bf16.msra.mxu0 %v12203_v35  ;;  %v12236_v35 = vld [vmem:[#allocation2 + $0x8b0] ss:$24 sps:$4 sm:$0xff]  }
 0x159   :  { %2409 = vmatpush2.bf16.msra.mxu1 %v12206_v38  ;;  %2419 = vmatprep.subr.bf16.mxu0 %v12211_v61  ;;  %v12241_v38 = vld [vmem:[#allocation2 + $0x884] ss:$24 sps:$4 sm:$0xff]   ;;  %v12239_v61 = vld [vmem:[#allocation2 + $0x880] ss:$24 sps:$4 sm:$0xff]  }
 0x15b   :  { %v2125_v2 = vpop.f32.mrf.mxu0  ;;  %2370 = vmatmul.mubr.bf16.vlgmr.msra.gmra.mxu0 %v14283_v45  ;;  %v12220_v45 = vld [vmem:[#allocation2 + $0x6d4] ss:$24 sps:$4 sm:$0xff]  }
 0x15c   :  { %v2166_v3 = vpop.f32.mrf.mxu1  ;;  %2411 = vmatmul.mubr.bf16.vlgmr.msra.gmra.mxu1 %v14310_v52  ;;  %2420 = vmatpush1.bf16.msra.mxu0 %v12209_v63  ;;  %v12244_v63 = vld [vmem:[#allocation2 + $0x854] ss:$24 sps:$4 sm:$0xff]  }
 0x15d   :  { %v14406_v5 = vadd.f32 %v2166_v3, %v2125_v2  ;;  %2451 = vmatprep.mubr.bf16.mxu0 %v14314_v53  ;;  %v2127_v7 = vpop.f32.mrf.mxu0  ;;  %2421 = vmatprep.subr.bf16.mxu0 %v12214_v1  ;;  %v12221_v53 = vld [vmem:[#allocation2 + $0x6a0] ss:$24 sps:$4 sm:$0xff]   ;;  %v12242_v1 = vld [vmem:[#allocation2 + $0x850] ss:$24 sps:$4 sm:$0xff]   ;;  %v12247_v2 = vld [vmem:[#allocation2 + $0x824] ss:$24 sps:$4 sm:$0xff]  }
 0x15e   :  { %v2168_v15 = vpop.f32.mrf.mxu1  ;;  %v12245_v3 = vld [vmem:[#allocation2 + $0x820] ss:$24 sps:$4 sm:$0xff]  }
 0x15f   :  { %v14409_v51 = vadd.f32 %v2168_v15, %v2127_v7  ;;  %v2129_v58 = vpop.f32.mrf.mxu0  ;;  %v12248_v7 = vld [vmem:[#allocation2 + $0x7f0] ss:$24 sps:$4 sm:$0xff]   ;;  %v12253_v15 = vld [vmem:[#allocation2 + $0x7c4] ss:$24 sps:$4 sm:$0xff]  }
 0x160   :  { %v2170_v17 = vpop.f32.mrf.mxu1  ;;  %2422 = vmatpush1.bf16.msra.mxu0 %v12212_v6  ;;  %v12250_v6 = vld [vmem:[#allocation2 + $0x7f4] ss:$24 sps:$4 sm:$0xff]  }
 0x161   :  { %v2130_v19 = vpop.f32.mrf.mxu0  ;;  %2423 = vmatprep.subr.bf16.mxu0 %v12217_v16  ;;  %v12251_v16 = vld [vmem:[#allocation2 + $0x7c0] ss:$24 sps:$4 sm:$0xff]   ;;  %v12256_v58 = vld [vmem:[#allocation2 + $0x794] ss:$24 sps:$4 sm:$0xff]   ;;  %v12254_v17 = vld [vmem:[#allocation2 + $0x790] ss:$24 sps:$4 sm:$0xff]  }
 0x162   :  { %v2171_v52 = vpop.f32.mrf.mxu1 }
 0x164   :  { %2424 = vmatpush1.bf16.msra.mxu0 %v12215_v18 }
 0x165   :  { %2425 = vmatprep.subr.bf16.mxu0 %v12220_v45 }
 0x168   :  { %2426 = vmatpush1.bf16.msra.mxu0 %v12218_v20 }
 0x169   :  { %2427 = vmatprep.subr.bf16.mxu0 %v12223_v21 }
 0x16c   :  { %2428 = vmatpush1.bf16.msra.mxu0 %v12221_v53 }
 0x16d   :  { %2429 = vmatprep.subr.bf16.mxu0 %v12226_v22 }
 0x170   :  { %2430 = vmatpush1.bf16.msra.mxu0 %v12224_v23 }
 0x171   :  { %2431 = vmatprep.subr.bf16.mxu0 %v12229_v24 }
 0x174   :  { %2432 = vmatpush1.bf16.msra.mxu0 %v12227_v25 }
 0x175   :  { %2433 = vmatprep.subr.bf16.mxu0 %v12232_v26 }
 0x178   :  { %2434 = vmatpush1.bf16.msra.mxu0 %v12230_v30 }
 0x179   :  { %2435 = vmatprep.subr.bf16.mxu0 %v12235_v31 }
 0x17c   :  { %2436 = vmatpush2.bf16.msra.mxu0 %v12233_v32 }
 0x17d   :  { %2437 = vmatprep.subr.bf16.mxu0 %v12238_v33 }
 0x180   :  { %2438 = vmatpush2.bf16.msra.mxu0 %v12236_v35 }
 0x181   :  { %2439 = vmatprep.subr.bf16.mxu0 %v12241_v38 }
 0x184   :  { %2440 = vmatpush2.bf16.msra.mxu0 %v12239_v61 }
 0x185   :  { %2441 = vmatprep.subr.bf16.mxu0 %v12244_v63 }
 0x188   :  { %2442 = vmatpush2.bf16.msra.mxu0 %v12242_v1 }
 0x189   :  { %2443 = vmatprep.subr.bf16.mxu0 %v12247_v2 }
 0x18c   :  { %2444 = vmatpush2.bf16.msra.mxu0 %v12245_v3 }
 0x18d   :  { %2445 = vmatprep.subr.bf16.mxu0 %v12250_v6 }
 0x190   :  { %2446 = vmatpush2.bf16.msra.mxu0 %v12248_v7 }
 0x191   :  { %2447 = vmatprep.subr.bf16.mxu0 %v12253_v15 }
 0x194   :  { %2448 = vmatpush2.bf16.msra.mxu0 %v12251_v16 }
 0x195   :  { %2449 = vmatprep.subr.bf16.mxu0 %v12256_v58 }
 0x198   :  { %2450 = vmatpush2.bf16.msra.mxu0 %v12254_v17 }
 0x19b   :  { %v2207_v18 = vpop.f32.mrf.mxu0  ;;  %2452 = vmatmul.mubr.bf16.vlgmr.msra.gmra.mxu0 %v14287_v46 }
 0x19c   :  { %v2248_v19 = vpop.f32.mrf.mxu1  ;;  %v14413_v45 = vadd.f32 %v2207_v18, %v14406_v5 }
 0x19d   :  { %v2209_v52 = vpop.f32.mrf.mxu0 }
 0x19e   :  { %v2250_v20 = vpop.f32.mrf.mxu1  ;;  %v14416_v21 = vadd.f32 %v2209_v52, %v14409_v51 }
 0x19f   :  { %v2211_v53 = vpop.f32.mrf.mxu0 }
 0x1a0   :  { %v2252_v22 = vpop.f32.mrf.mxu1 }
 0x1a1   :  { %v2212_v23 = vpop.f32.mrf.mxu0 }
 0x1a2   :  { %v2253_v24 = vpop.f32.mrf.mxu1 }
 0x1db   :  { %v2289_v25 = vpop.f32.mrf.mxu0 }
 0x1dc   :  { %v2330_v26 = vpop.f32.mrf.mxu1  ;;  %v2290_v30 = vadd.f32 %v2289_v25, %v2248_v19 }
 0x1dd   :  { %v2291_v31 = vpop.f32.mrf.mxu0 }
 0x1de   :  { %v2332_v32 = vpop.f32.mrf.mxu1  ;;  %v2292_v33 = vadd.f32 %v2291_v31, %v2250_v20  ;;  %v14418_v46 = vadd.f32 %v2330_v26, %v2290_v30 }
 0x1df   :  { %v2293_v35 = vpop.f32.mrf.mxu0 }
 0x1e0   :  { %v2334_v5 = vpop.f32.mrf.mxu1  ;;  %v14420_v38 = vadd.f32 %v2332_v32, %v2292_v33 }
 0x1e1   :  { %v2294_v61 = vpop.f32.mrf.mxu0 }
 0x1e2   :  { %v2335_v63 = vpop.f32.mrf.mxu1 }
 0x21b   :  { %v2371_v51 = vpop.f32.mrf.mxu0 }
 0x21c   :  { %v2412_v1 = vpop.f32.mrf.mxu1 }
 0x21d   :  { %v2413_v2 = vadd.f32 %v2412_v1, %v2371_v51  ;;  %v2373_v3 = vpop.f32.mrf.mxu0 }
 0x21e   :  { %v2414_v6 = vpop.f32.mrf.mxu1 }
 0x21f   :  { %v2415_v7 = vadd.f32 %v2414_v6, %v2373_v3  ;;  %v2375_v15 = vpop.f32.mrf.mxu0 }
 0x220   :  { %v2416_v16 = vpop.f32.mrf.mxu1 }
 0x221   :  { %v2376_v58 = vpop.f32.mrf.mxu0 }
 0x222   :  { %v2417_v17 = vpop.f32.mrf.mxu1 }
 0x25b   :  { %v2453_v18 = vpop.f32.mrf.mxu0 }
 0x25c   :  { %v14422_v19 = vadd.f32 %v2453_v18, %v2413_v2 }
 0x25d   :  { %v2455_v52 = vpop.f32.mrf.mxu0 }
 0x25e   :  { %v14424_v20 = vadd.f32 %v2455_v52, %v2415_v7 }
 0x25f   :  { %v2457_v53 = vpop.f32.mrf.mxu0 }
 0x261   :  { %v2458_v22 = vpop.f32.mrf.mxu0 }
 0x262   :  { %14135 = dma.done.wait [#allocation7 + $0x1], 36864 }
 0x263   :  { %14136 = vsyncadd [#allocation7 + $0x1], 4294930432  ;;  %v14428_v23 = vcombine.high %v14378_v8, %v14384_v11  ;;  %v14432_v24 = vcombine.high %v14380_v9, %v14386_v12  ;;  %v12259_v25 = vld [vmem:[#allocation3 + $0x154] ss:$24 sps:$4 sm:$0xff]   ;;  %v12263_v30 = vld [vmem:[#allocation3 + $0x150] ss:$24 sps:$4 sm:$0xff]  }
 0x264   :  { %v12261_v26 = vld [vmem:[#allocation3 + $0x454] ss:$24 sps:$4 sm:$0xff]   ;;  %4220 = vmatprep.subr.bf16.mxu1 %v12259_v25  ;;  %v12264_v31 = vld [vmem:[#allocation3 + $0x450] ss:$24 sps:$4 sm:$0xff]   ;;  %v12265_v32 = vld [vmem:[#allocation3 + $0x124] ss:$24 sps:$4 sm:$0xff]  }
 0x265   :  { %4252 = vmatprep.mubr.bf16.mxu1 %v14428_v23  ;;  %4295 = vmatprep.mubr.bf16.mxu0 %v14432_v24  ;;  %v12267_v33 = vld [vmem:[#allocation3 + $0x424] ss:$24 sps:$4 sm:$0xff]   ;;  %v12269_v35 = vld [vmem:[#allocation3 + $0x120] ss:$24 sps:$4 sm:$0xff]   ;;  %v12271_v61 = vld [vmem:[#allocation3 + $0xf4] ss:$24 sps:$4 sm:$0xff]  }
 0x266   :  { %4263 = vmatprep.subr.bf16.mxu0 %v12261_v26  ;;  %4221 = vmatpush1.bf16.msra.mxu1 %v12263_v30  ;;  %v12270_v5 = vld [vmem:[#allocation3 + $0x420] ss:$24 sps:$4 sm:$0xff]   ;;  %v12273_v63 = vld [vmem:[#allocation3 + $0x3f4] ss:$24 sps:$4 sm:$0xff]   ;;  %v12275_v51 = vld [vmem:[#allocation3 + $0xf0] ss:$24 sps:$4 sm:$0xff]  }
 0x267   :  { %4264 = vmatpush1.bf16.msra.mxu0 %v12264_v31  ;;  %4222 = vmatprep.subr.bf16.mxu1 %v12265_v32  ;;  %v12276_v1 = vld [vmem:[#allocation3 + $0x3f0] ss:$24 sps:$4 sm:$0xff]   ;;  %v12277_v2 = vld [vmem:[#allocation3 + $0xc4] ss:$24 sps:$4 sm:$0xff]   ;;  %v12281_v6 = vld [vmem:[#allocation3 + $0xc0] ss:$24 sps:$4 sm:$0xff]  }
 0x268   :  { %4265 = vmatprep.subr.bf16.mxu0 %v12267_v33  ;;  %v12279_v3 = vld [vmem:[#allocation3 + $0x3c4] ss:$24 sps:$4 sm:$0xff]   ;;  %v12282_v7 = vld [vmem:[#allocation3 + $0x3c0] ss:$24 sps:$4 sm:$0xff]   ;;  %v12283_v15 = vld [vmem:[#allocation3 + $0x94] ss:$24 sps:$4 sm:$0xff]  }
 0x269   :  { %v12285_v16 = vld [vmem:[#allocation3 + $0x394] ss:$24 sps:$4 sm:$0xff]   ;;  %v12287_v58 = vld [vmem:[#allocation3 + $0x90] ss:$24 sps:$4 sm:$0xff]   ;;  %v12289_v18 = vld [vmem:[#allocation3 + $0x64] ss:$24 sps:$4 sm:$0xff]  }
 0x26a   :  { %4223 = vmatpush1.bf16.msra.mxu1 %v12269_v35  ;;  %v12288_v17 = vld [vmem:[#allocation3 + $0x390] ss:$24 sps:$4 sm:$0xff]   ;;  %v12291_v52 = vld [vmem:[#allocation3 + $0x364] ss:$24 sps:$4 sm:$0xff]   ;;  %v12293_v53 = vld [vmem:[#allocation3 + $0x60] ss:$24 sps:$4 sm:$0xff]  }
 0x26b   :  { %4266 = vmatpush1.bf16.msra.mxu0 %v12270_v5  ;;  %4224 = vmatprep.subr.bf16.mxu1 %v12271_v61  ;;  %v12294_v22 = vld [vmem:[#allocation3 + $0x360] ss:$24 sps:$4 sm:$0xff]   ;;  %v12295_v25 = vld [vmem:[#allocation3 + $0x34] ss:$24 sps:$4 sm:$0xff]   ;;  %v12299_v30 = vld [vmem:[#allocation3 + $0x30] ss:$24 sps:$4 sm:$0xff]  }
 0x26c   :  { %4267 = vmatprep.subr.bf16.mxu0 %v12273_v63  ;;  %v12297_v26 = vld [vmem:[#allocation3 + $0x334] ss:$24 sps:$4 sm:$0xff]   ;;  %v12300_v31 = vld [vmem:[#allocation3 + $0x330] ss:$24 sps:$4 sm:$0xff]   ;;  %v12301_v32 = vld [vmem:[#allocation3 + $0x4] ss:$24 sps:$4 sm:$0xff]  }
 0x26d   :  { %v12303_v33 = vld [vmem:[#allocation3 + $0x304] ss:$24 sps:$4 sm:$0xff]   ;;  %v12305_v35 = vld [vmem:[#allocation3] ss:$24 sps:$4 sm:$0xff]   ;;  %v12307_v61 = vld [vmem:[#allocation3 + $0x2d4] ss:$24 sps:$4 sm:$0xff]  }
 0x26e   :  { %4225 = vmatpush1.bf16.msra.mxu1 %v12275_v51  ;;  %v12306_v5 = vld [vmem:[#allocation3 + $0x300] ss:$24 sps:$4 sm:$0xff]   ;;  %v12309_v63 = vld [vmem:[#allocation3 + $0x5d4] ss:$24 sps:$4 sm:$0xff]   ;;  %v12311_v51 = vld [vmem:[#allocation3 + $0x2d0] ss:$24 sps:$4 sm:$0xff]  }
 0x26f   :  { %4268 = vmatpush1.bf16.msra.mxu0 %v12276_v1  ;;  %4226 = vmatprep.subr.bf16.mxu1 %v12277_v2  ;;  %v12312_v1 = vld [vmem:[#allocation3 + $0x5d0] ss:$24 sps:$4 sm:$0xff]   ;;  %v12313_v2 = vld [vmem:[#allocation3 + $0x2a4] ss:$24 sps:$4 sm:$0xff]   ;;  %v4684_v27 = vsub.s32 3, %v14207_v4  ;;  %vm4770_vm7 = vcmask 1041409  }
 0x270   :  { %4269 = vmatprep.subr.bf16.mxu0 %v12279_v3  ;;  %v12315_v3 = vld [vmem:[#allocation3 + $0x5a4] ss:$24 sps:$4 sm:$0xff]   ;;  %vm4773_vm8 = vcmask 58368  }
 0x272   :  { %4227 = vmatpush1.bf16.msra.mxu1 %v12281_v6  ;;  %v12317_v6 = vld [vmem:[#allocation3 + $0x2a0] ss:$24 sps:$4 sm:$0xff]  }
 0x273   :  { %4270 = vmatpush1.bf16.msra.mxu0 %v12282_v7  ;;  %4228 = vmatprep.subr.bf16.mxu1 %v12283_v15  ;;  %v12318_v7 = vld [vmem:[#allocation3 + $0x5a0] ss:$24 sps:$4 sm:$0xff]   ;;  %v12319_v15 = vld [vmem:[#allocation3 + $0x274] ss:$24 sps:$4 sm:$0xff]  }
 0x274   :  { %4271 = vmatprep.subr.bf16.mxu0 %v12285_v16  ;;  %v12321_v16 = vld [vmem:[#allocation3 + $0x574] ss:$24 sps:$4 sm:$0xff]  }
 0x276   :  { %4229 = vmatpush1.bf16.msra.mxu1 %v12287_v58  ;;  %v12323_v58 = vld [vmem:[#allocation3 + $0x270] ss:$24 sps:$4 sm:$0xff]  }
 0x277   :  { %4272 = vmatpush1.bf16.msra.mxu0 %v12288_v17  ;;  %4230 = vmatprep.subr.bf16.mxu1 %v12289_v18  ;;  %v12324_v17 = vld [vmem:[#allocation3 + $0x570] ss:$24 sps:$4 sm:$0xff]   ;;  %v12325_v18 = vld [vmem:[#allocation3 + $0x244] ss:$24 sps:$4 sm:$0xff]  }
 0x278   :  { %4273 = vmatprep.subr.bf16.mxu0 %v12291_v52  ;;  %v12327_v52 = vld [vmem:[#allocation3 + $0x544] ss:$24 sps:$4 sm:$0xff]  }
 0x27a   :  { %4231 = vmatpush1.bf16.msra.mxu1 %v12293_v53  ;;  %v12329_v53 = vld [vmem:[#allocation3 + $0x240] ss:$24 sps:$4 sm:$0xff]  }
 0x27b   :  { %4274 = vmatpush1.bf16.msra.mxu0 %v12294_v22  ;;  %4232 = vmatprep.subr.bf16.mxu1 %v12295_v25  ;;  %v12330_v22 = vld [vmem:[#allocation3 + $0x540] ss:$24 sps:$4 sm:$0xff]   ;;  %v12331_v25 = vld [vmem:[#allocation3 + $0x214] ss:$24 sps:$4 sm:$0xff]  }
 0x27c   :  { %4275 = vmatprep.subr.bf16.mxu0 %v12297_v26  ;;  %v12333_v26 = vld [vmem:[#allocation3 + $0x514] ss:$24 sps:$4 sm:$0xff]  }
 0x27e   :  { %4233 = vmatpush1.bf16.msra.mxu1 %v12299_v30  ;;  %v12335_v30 = vld [vmem:[#allocation3 + $0x210] ss:$24 sps:$4 sm:$0xff]  }
 0x27f   :  { %4276 = vmatpush1.bf16.msra.mxu0 %v12300_v31  ;;  %4234 = vmatprep.subr.bf16.mxu1 %v12301_v32  ;;  %v12336_v31 = vld [vmem:[#allocation3 + $0x510] ss:$24 sps:$4 sm:$0xff]   ;;  %v12337_v32 = vld [vmem:[#allocation3 + $0x1e4] ss:$24 sps:$4 sm:$0xff]  }
 0x280   :  { %4277 = vmatprep.subr.bf16.mxu0 %v12303_v33  ;;  %v12339_v33 = vld [vmem:[#allocation3 + $0x4e4] ss:$24 sps:$4 sm:$0xff]  }
 0x282   :  { %4235 = vmatpush1.bf16.msra.mxu1 %v12305_v35  ;;  %v12341_v35 = vld [vmem:[#allocation3 + $0x1e0] ss:$24 sps:$4 sm:$0xff]  }
 0x283   :  { %4278 = vmatpush1.bf16.msra.mxu0 %v12306_v5  ;;  %4236 = vmatprep.subr.bf16.mxu1 %v12307_v61  ;;  %v12342_v5 = vld [vmem:[#allocation3 + $0x4e0] ss:$24 sps:$4 sm:$0xff]   ;;  %v12343_v61 = vld [vmem:[#allocation3 + $0x1b4] ss:$24 sps:$4 sm:$0xff]  }
 0x284   :  { %4279 = vmatprep.subr.bf16.mxu0 %v12309_v63  ;;  %v12345_v63 = vld [vmem:[#allocation3 + $0x4b4] ss:$24 sps:$4 sm:$0xff]  }
 0x286   :  { %4237 = vmatpush2.bf16.msra.mxu1 %v12311_v51  ;;  %v12347_v51 = vld [vmem:[#allocation3 + $0x1b0] ss:$24 sps:$4 sm:$0xff]  }
 0x287   :  { %4280 = vmatpush2.bf16.msra.mxu0 %v12312_v1  ;;  %4238 = vmatprep.subr.bf16.mxu1 %v12313_v2  ;;  %v12348_v1 = vld [vmem:[#allocation3 + $0x4b0] ss:$24 sps:$4 sm:$0xff]   ;;  %v12349_v2 = vld [vmem:[#allocation3 + $0x184] ss:$24 sps:$4 sm:$0xff]  }
 0x288   :  { %4281 = vmatprep.subr.bf16.mxu0 %v12315_v3  ;;  %v12351_v3 = vld [vmem:[#allocation3 + $0x484] ss:$24 sps:$4 sm:$0xff]  }
 0x28a   :  { %4239 = vmatpush2.bf16.msra.mxu1 %v12317_v6  ;;  %v12353_v6 = vld [vmem:[#allocation3 + $0x180] ss:$24 sps:$4 sm:$0xff]  }
 0x28b   :  { %4282 = vmatpush2.bf16.msra.mxu0 %v12318_v7  ;;  %4240 = vmatprep.subr.bf16.mxu1 %v12319_v15  ;;  %v12354_v7 = vld [vmem:[#allocation3 + $0x480] ss:$24 sps:$4 sm:$0xff]   ;;  %v12357_v15 = vld [vmem:[#allocation3 + $0x754] ss:$24 sps:$4 sm:$0xff]  }
 0x28c   :  { %4283 = vmatprep.subr.bf16.mxu0 %v12321_v16  ;;  %v12360_v16 = vld [vmem:[#allocation3 + $0x15c] ss:$24 sps:$4 sm:$0xff]  }
 0x28e   :  { %4241 = vmatpush2.bf16.msra.mxu1 %v12323_v58  ;;  %v14438_v58 = vcombine.low %v14378_v8, %v14384_v11  ;;  %v12361_v8 = vld [vmem:[#allocation3 + $0x720] ss:$24 sps:$4 sm:$0xff]  }
 0x28f   :  { %4284 = vmatpush2.bf16.msra.mxu0 %v12324_v17  ;;  %4242 = vmatprep.subr.bf16.mxu1 %v12325_v18  ;;  %v14442_v17 = vcombine.low %v14380_v9, %v14386_v12  ;;  %v12355_v18 = vld [vmem:[#allocation3 + $0x750] ss:$24 sps:$4 sm:$0xff]   ;;  %v12369_v9 = vld [vmem:[#allocation3 + $0x6f4] ss:$24 sps:$4 sm:$0xff]  }
 0x290   :  { %4285 = vmatprep.subr.bf16.mxu0 %v12327_v52  ;;  %v12358_v52 = vld [vmem:[#allocation3 + $0x158] ss:$24 sps:$4 sm:$0xff]   ;;  %v12364_v11 = vld [vmem:[#allocation3 + $0x128] ss:$24 sps:$4 sm:$0xff]   ;;  %v12372_v12 = vld [vmem:[#allocation3 + $0xfc] ss:$24 sps:$4 sm:$0xff]  }
 0x292   :  { %4243 = vmatpush2.bf16.msra.mxu1 %v12329_v53  ;;  %v12363_v53 = vld [vmem:[#allocation3 + $0x724] ss:$24 sps:$4 sm:$0xff]  }
 0x293   :  { %4286 = vmatpush2.bf16.msra.mxu0 %v12330_v22  ;;  %4244 = vmatprep.subr.bf16.mxu1 %v12331_v25  ;;  %v12366_v22 = vld [vmem:[#allocation3 + $0x12c] ss:$24 sps:$4 sm:$0xff]   ;;  %v14446_v25 = vcombine.high %v14382_v10, %v14388_v13 }
 0x294   :  { %4287 = vmatprep.subr.bf16.mxu0 %v12333_v26  ;;  %v12367_v26 = vld [vmem:[#allocation3 + $0x6f0] ss:$24 sps:$4 sm:$0xff]  }
 0x296   :  { %4245 = vmatpush2.bf16.msra.mxu1 %v12335_v30  ;;  %v12370_v30 = vld [vmem:[#allocation3 + $0xf8] ss:$24 sps:$4 sm:$0xff]  }
 0x297   :  { %4288 = vmatpush2.bf16.msra.mxu0 %v12336_v31  ;;  %4246 = vmatprep.subr.bf16.mxu1 %v12337_v32  ;;  %v12375_v31 = vld [vmem:[#allocation3 + $0x6c4] ss:$24 sps:$4 sm:$0xff]  }
 0x298   :  { %4289 = vmatprep.subr.bf16.mxu0 %v12339_v33  ;;  %v12378_v32 = vld [vmem:[#allocation3 + $0xcc] ss:$24 sps:$4 sm:$0xff]   ;;  %v12373_v33 = vld [vmem:[#allocation3 + $0x6c0] ss:$24 sps:$4 sm:$0xff]  }
 0x29a   :  { %4247 = vmatpush2.bf16.msra.mxu1 %v12341_v35  ;;  %v12376_v35 = vld [vmem:[#allocation3 + $0xc8] ss:$24 sps:$4 sm:$0xff]  }
 0x29b   :  { %4290 = vmatpush2.bf16.msra.mxu0 %v12342_v5  ;;  %4248 = vmatprep.subr.bf16.mxu1 %v12343_v61  ;;  %v12381_v5 = vld [vmem:[#allocation3 + $0x694] ss:$24 sps:$4 sm:$0xff]  }
 0x29c   :  { %4291 = vmatprep.subr.bf16.mxu0 %v12345_v63  ;;  %v12384_v61 = vld [vmem:[#allocation3 + $0x9c] ss:$24 sps:$4 sm:$0xff]   ;;  %v12379_v63 = vld [vmem:[#allocation3 + $0x690] ss:$24 sps:$4 sm:$0xff]  }
 0x29e   :  { %4249 = vmatpush2.bf16.msra.mxu1 %v12347_v51  ;;  %v12382_v51 = vld [vmem:[#allocation3 + $0x98] ss:$24 sps:$4 sm:$0xff]  }
 0x29f   :  { %4292 = vmatpush2.bf16.msra.mxu0 %v12348_v1  ;;  %4250 = vmatprep.subr.bf16.mxu1 %v12349_v2  ;;  %v12387_v1 = vld [vmem:[#allocation3 + $0x664] ss:$24 sps:$4 sm:$0xff]  }
 0x2a0   :  { %4293 = vmatprep.subr.bf16.mxu0 %v12351_v3  ;;  %v12390_v2 = vld [vmem:[#allocation3 + $0x6c] ss:$24 sps:$4 sm:$0xff]   ;;  %v12385_v3 = vld [vmem:[#allocation3 + $0x660] ss:$24 sps:$4 sm:$0xff]  }
 0x2a2   :  { %4251 = vmatpush2.bf16.msra.mxu1 %v12353_v6  ;;  %v12388_v6 = vld [vmem:[#allocation3 + $0x68] ss:$24 sps:$4 sm:$0xff]  }
 0x2a3   :  { %4294 = vmatpush2.bf16.msra.mxu0 %v12354_v7  ;;  %4306 = vmatprep.subr.bf16.mxu1 %v12357_v15  ;;  %v12393_v7 = vld [vmem:[#allocation3 + $0x634] ss:$24 sps:$4 sm:$0xff]  }
 0x2a4   :  { %4349 = vmatprep.subr.bf16.mxu0 %v12360_v16  ;;  %v12396_v15 = vld [vmem:[#allocation3 + $0x3c] ss:$24 sps:$4 sm:$0xff]   ;;  %v12391_v16 = vld [vmem:[#allocation3 + $0x630] ss:$24 sps:$4 sm:$0xff]  }
 0x2a5   :  { %4253 = vmatmul.mubr.bf16.vlgmr.msra.gmra.mxu1 %v14438_v58 }
 0x2a6   :  { %4296 = vmatmul.mubr.bf16.vlgmr.msra.gmra.mxu0 %v14442_v17  ;;  %4307 = vmatpush1.bf16.msra.mxu1 %v12355_v18  ;;  %v12394_v18 = vld [vmem:[#allocation3 + $0x38] ss:$24 sps:$4 sm:$0xff]  }
 0x2a7   :  { %4350 = vmatpush1.bf16.msra.mxu0 %v12358_v52  ;;  %4308 = vmatprep.subr.bf16.mxu1 %v12363_v53  ;;  %v12399_v52 = vld [vmem:[#allocation3 + $0x604] ss:$24 sps:$4 sm:$0xff]  }
 0x2a8   :  { %4351 = vmatprep.subr.bf16.mxu0 %v12366_v22  ;;  %4338 = vmatprep.mubr.bf16.mxu1 %v14446_v25  ;;  %v12402_v53 = vld [vmem:[#allocation3 + $0xc] ss:$24 sps:$4 sm:$0xff]   ;;  %v12397_v22 = vld [vmem:[#allocation3 + $0x600] ss:$24 sps:$4 sm:$0xff]  }
 0x2a9   :  { %4381 = vmatprep.mubr.bf16.mxu0 %v14428_v23 }
 0x2aa   :  { %4309 = vmatpush1.bf16.msra.mxu1 %v12361_v8  ;;  %v12400_v8 = vld [vmem:[#allocation3 + $0x8] ss:$24 sps:$4 sm:$0xff]  }
 0x2ab   :  { %4352 = vmatpush1.bf16.msra.mxu0 %v12364_v11  ;;  %4310 = vmatprep.subr.bf16.mxu1 %v12369_v9  ;;  %v12405_v11 = vld [vmem:[#allocation3 + $0x8d4] ss:$24 sps:$4 sm:$0xff]  }
 0x2ac   :  { %4353 = vmatprep.subr.bf16.mxu0 %v12372_v12  ;;  %v12408_v9 = vld [vmem:[#allocation3 + $0x2dc] ss:$24 sps:$4 sm:$0xff]   ;;  %v12403_v12 = vld [vmem:[#allocation3 + $0x8d0] ss:$24 sps:$4 sm:$0xff]  }
 0x2ae   :  { %4311 = vmatpush1.bf16.msra.mxu1 %v12367_v26  ;;  %v12406_v26 = vld [vmem:[#allocation3 + $0x2d8] ss:$24 sps:$4 sm:$0xff]  }
 0x2af   :  { %4354 = vmatpush1.bf16.msra.mxu0 %v12370_v30  ;;  %4312 = vmatprep.subr.bf16.mxu1 %v12375_v31  ;;  %v12411_v30 = vld [vmem:[#allocation3 + $0x8a4] ss:$24 sps:$4 sm:$0xff]  }
 0x2b0   :  { %4355 = vmatprep.subr.bf16.mxu0 %v12378_v32  ;;  %v12414_v31 = vld [vmem:[#allocation3 + $0x2ac] ss:$24 sps:$4 sm:$0xff]   ;;  %v12409_v32 = vld [vmem:[#allocation3 + $0x8a0] ss:$24 sps:$4 sm:$0xff]  }
 0x2b2   :  { %4313 = vmatpush1.bf16.msra.mxu1 %v12373_v33  ;;  %v12412_v33 = vld [vmem:[#allocation3 + $0x2a8] ss:$24 sps:$4 sm:$0xff]  }
 0x2b3   :  { %4356 = vmatpush1.bf16.msra.mxu0 %v12376_v35  ;;  %4314 = vmatprep.subr.bf16.mxu1 %v12381_v5  ;;  %v12417_v35 = vld [vmem:[#allocation3 + $0x874] ss:$24 sps:$4 sm:$0xff]  }
 0x2b4   :  { %4357 = vmatprep.subr.bf16.mxu0 %v12384_v61  ;;  %v12420_v5 = vld [vmem:[#allocation3 + $0x27c] ss:$24 sps:$4 sm:$0xff]   ;;  %v12415_v61 = vld [vmem:[#allocation3 + $0x870] ss:$24 sps:$4 sm:$0xff]  }
 0x2b6   :  { %4315 = vmatpush1.bf16.msra.mxu1 %v12379_v63  ;;  %v12418_v63 = vld [vmem:[#allocation3 + $0x278] ss:$24 sps:$4 sm:$0xff]  }
 0x2b7   :  { %4358 = vmatpush1.bf16.msra.mxu0 %v12382_v51  ;;  %4316 = vmatprep.subr.bf16.mxu1 %v12387_v1  ;;  %v12423_v51 = vld [vmem:[#allocation3 + $0x844] ss:$24 sps:$4 sm:$0xff]  }
 0x2b8   :  { %4359 = vmatprep.subr.bf16.mxu0 %v12390_v2  ;;  %v12426_v1 = vld [vmem:[#allocation3 + $0x24c] ss:$24 sps:$4 sm:$0xff]   ;;  %v12421_v2 = vld [vmem:[#allocation3 + $0x840] ss:$24 sps:$4 sm:$0xff]  }
 0x2ba   :  { %4317 = vmatpush1.bf16.msra.mxu1 %v12385_v3  ;;  %v12424_v3 = vld [vmem:[#allocation3 + $0x248] ss:$24 sps:$4 sm:$0xff]  }
 0x2bb   :  { %4360 = vmatpush1.bf16.msra.mxu0 %v12388_v6  ;;  %4318 = vmatprep.subr.bf16.mxu1 %v12393_v7  ;;  %v12429_v6 = vld [vmem:[#allocation3 + $0x814] ss:$24 sps:$4 sm:$0xff]  }
 0x2bc   :  { %4361 = vmatprep.subr.bf16.mxu0 %v12396_v15  ;;  %v12432_v7 = vld [vmem:[#allocation3 + $0x21c] ss:$24 sps:$4 sm:$0xff]   ;;  %v12427_v15 = vld [vmem:[#allocation3 + $0x810] ss:$24 sps:$4 sm:$0xff]  }
 0x2be   :  { %4319 = vmatpush1.bf16.msra.mxu1 %v12391_v16  ;;  %v12430_v16 = vld [vmem:[#allocation3 + $0x218] ss:$24 sps:$4 sm:$0xff]  }
 0x2bf   :  { %4362 = vmatpush1.bf16.msra.mxu0 %v12394_v18  ;;  %4320 = vmatprep.subr.bf16.mxu1 %v12399_v52  ;;  %v12435_v18 = vld [vmem:[#allocation3 + $0x7e4] ss:$24 sps:$4 sm:$0xff]  }
 0x2c0   :  { %4363 = vmatprep.subr.bf16.mxu0 %v12402_v53  ;;  %v12438_v52 = vld [vmem:[#allocation3 + $0x1ec] ss:$24 sps:$4 sm:$0xff]   ;;  %v12433_v53 = vld [vmem:[#allocation3 + $0x7e0] ss:$24 sps:$4 sm:$0xff]  }
 0x2c2   :  { %4321 = vmatpush1.bf16.msra.mxu1 %v12397_v22  ;;  %v12436_v22 = vld [vmem:[#allocation3 + $0x1e8] ss:$24 sps:$4 sm:$0xff]  }
 0x2c3   :  { %4364 = vmatpush1.bf16.msra.mxu0 %v12400_v8  ;;  %4322 = vmatprep.subr.bf16.mxu1 %v12405_v11  ;;  %v12441_v8 = vld [vmem:[#allocation3 + $0x7b4] ss:$24 sps:$4 sm:$0xff]  }
 0x2c4   :  { %4365 = vmatprep.subr.bf16.mxu0 %v12408_v9  ;;  %v12444_v11 = vld [vmem:[#allocation3 + $0x1bc] ss:$24 sps:$4 sm:$0xff]   ;;  %v12439_v9 = vld [vmem:[#allocation3 + $0x7b0] ss:$24 sps:$4 sm:$0xff]  }
 0x2c6   :  { %4323 = vmatpush2.bf16.msra.mxu1 %v12403_v12  ;;  %v12442_v12 = vld [vmem:[#allocation3 + $0x1b8] ss:$24 sps:$4 sm:$0xff]  }
 0x2c7   :  { %4366 = vmatpush2.bf16.msra.mxu0 %v12406_v26  ;;  %4324 = vmatprep.subr.bf16.mxu1 %v12411_v30  ;;  %v12447_v26 = vld [vmem:[#allocation3 + $0x784] ss:$24 sps:$4 sm:$0xff]  }
 0x2c8   :  { %4367 = vmatprep.subr.bf16.mxu0 %v12414_v31  ;;  %v12450_v30 = vld [vmem:[#allocation3 + $0x18c] ss:$24 sps:$4 sm:$0xff]   ;;  %v12445_v31 = vld [vmem:[#allocation3 + $0x780] ss:$24 sps:$4 sm:$0xff]  }
 0x2ca   :  { %4325 = vmatpush2.bf16.msra.mxu1 %v12409_v32  ;;  %v12448_v32 = vld [vmem:[#allocation3 + $0x188] ss:$24 sps:$4 sm:$0xff]  }
 0x2cb   :  { %4368 = vmatpush2.bf16.msra.mxu0 %v12412_v33  ;;  %4326 = vmatprep.subr.bf16.mxu1 %v12417_v35  ;;  %v12453_v33 = vld [vmem:[#allocation3 + $0x45c] ss:$24 sps:$4 sm:$0xff]  }
 0x2cc   :  { %4369 = vmatprep.subr.bf16.mxu0 %v12420_v5  ;;  %v12456_v35 = vld [vmem:[#allocation3 + $0x75c] ss:$24 sps:$4 sm:$0xff]   ;;  %v14454_v5 = vcombine.low %v14382_v10, %v14388_v13  ;;  %v12463_v13 = vld [vmem:[#allocation3 + $0x3f8] ss:$24 sps:$4 sm:$0xff]  }
 0x2cd   :  { %v12468_v10 = vld [vmem:[#allocation3 + $0x6fc] ss:$24 sps:$4 sm:$0xff]  }
 0x2ce   :  { %4327 = vmatpush2.bf16.msra.mxu1 %v12415_v61  ;;  %v12451_v61 = vld [vmem:[#allocation3 + $0x458] ss:$24 sps:$4 sm:$0xff]  }
 0x2cf   :  { %4370 = vmatpush2.bf16.msra.mxu0 %v12418_v63  ;;  %4328 = vmatprep.subr.bf16.mxu1 %v12423_v51  ;;  %v12454_v63 = vld [vmem:[#allocation3 + $0x758] ss:$24 sps:$4 sm:$0xff]   ;;  %v12459_v51 = vld [vmem:[#allocation3 + $0x42c] ss:$24 sps:$4 sm:$0xff]  }
 0x2d0   :  { %4371 = vmatprep.subr.bf16.mxu0 %v12426_v1  ;;  %v12462_v1 = vld [vmem:[#allocation3 + $0x72c] ss:$24 sps:$4 sm:$0xff]  }
 0x2d2   :  { %4329 = vmatpush2.bf16.msra.mxu1 %v12421_v2  ;;  %v12457_v2 = vld [vmem:[#allocation3 + $0x428] ss:$24 sps:$4 sm:$0xff]  }
 0x2d3   :  { %4372 = vmatpush2.bf16.msra.mxu0 %v12424_v3  ;;  %4330 = vmatprep.subr.bf16.mxu1 %v12429_v6  ;;  %v12460_v3 = vld [vmem:[#allocation3 + $0x728] ss:$24 sps:$4 sm:$0xff]   ;;  %v12465_v6 = vld [vmem:[#allocation3 + $0x3fc] ss:$24 sps:$4 sm:$0xff]  }
 0x2d4   :  { %4373 = vmatprep.subr.bf16.mxu0 %v12432_v7  ;;  %v12466_v7 = vld [vmem:[#allocation3 + $0x6f8] ss:$24 sps:$4 sm:$0xff]  }
 0x2d6   :  { %4331 = vmatpush2.bf16.msra.mxu1 %v12427_v15  ;;  %v12471_v15 = vld [vmem:[#allocation3 + $0x3cc] ss:$24 sps:$4 sm:$0xff]  }
 0x2d7   :  { %4374 = vmatpush2.bf16.msra.mxu0 %v12430_v16  ;;  %4332 = vmatprep.subr.bf16.mxu1 %v12435_v18  ;;  %v12474_v16 = vld [vmem:[#allocation3 + $0x6cc] ss:$24 sps:$4 sm:$0xff]   ;;  %v12469_v18 = vld [vmem:[#allocation3 + $0x3c8] ss:$24 sps:$4 sm:$0xff]  }
 0x2d8   :  { %4375 = vmatprep.subr.bf16.mxu0 %v12438_v52  ;;  %v12472_v52 = vld [vmem:[#allocation3 + $0x6c8] ss:$24 sps:$4 sm:$0xff]  }
 0x2da   :  { %4333 = vmatpush2.bf16.msra.mxu1 %v12433_v53  ;;  %v12477_v53 = vld [vmem:[#allocation3 + $0x39c] ss:$24 sps:$4 sm:$0xff]  }
 0x2db   :  { %4376 = vmatpush2.bf16.msra.mxu0 %v12436_v22  ;;  %4334 = vmatprep.subr.bf16.mxu1 %v12441_v8  ;;  %v12480_v22 = vld [vmem:[#allocation3 + $0x69c] ss:$24 sps:$4 sm:$0xff]   ;;  %v12475_v8 = vld [vmem:[#allocation3 + $0x398] ss:$24 sps:$4 sm:$0xff]  }
 0x2dc   :  { %4377 = vmatprep.subr.bf16.mxu0 %v12444_v11  ;;  %v12478_v11 = vld [vmem:[#allocation3 + $0x698] ss:$24 sps:$4 sm:$0xff]  }
 0x2de   :  { %4335 = vmatpush2.bf16.msra.mxu1 %v12439_v9  ;;  %v12483_v9 = vld [vmem:[#allocation3 + $0x36c] ss:$24 sps:$4 sm:$0xff]  }
 0x2df   :  { %4378 = vmatpush2.bf16.msra.mxu0 %v12442_v12  ;;  %4336 = vmatprep.subr.bf16.mxu1 %v12447_v26  ;;  %v12486_v12 = vld [vmem:[#allocation3 + $0x66c] ss:$24 sps:$4 sm:$0xff]   ;;  %v12481_v26 = vld [vmem:[#allocation3 + $0x368] ss:$24 sps:$4 sm:$0xff]  }
 0x2e0   :  { %4379 = vmatprep.subr.bf16.mxu0 %v12450_v30  ;;  %v12484_v30 = vld [vmem:[#allocation3 + $0x668] ss:$24 sps:$4 sm:$0xff]  }
 0x2e2   :  { %4337 = vmatpush2.bf16.msra.mxu1 %v12445_v31  ;;  %v12489_v31 = vld [vmem:[#allocation3 + $0x33c] ss:$24 sps:$4 sm:$0xff]  }
 0x2e3   :  { %4380 = vmatpush2.bf16.msra.mxu0 %v12448_v32  ;;  %4392 = vmatprep.subr.bf16.mxu1 %v12453_v33  ;;  %v12492_v32 = vld [vmem:[#allocation3 + $0x63c] ss:$24 sps:$4 sm:$0xff]   ;;  %v12487_v33 = vld [vmem:[#allocation3 + $0x338] ss:$24 sps:$4 sm:$0xff]  }
 0x2e4   :  { %4435 = vmatprep.subr.bf16.mxu0 %v12456_v35  ;;  %v12490_v35 = vld [vmem:[#allocation3 + $0x638] ss:$24 sps:$4 sm:$0xff]  }
 0x2e5   :  { %4339 = vmatmul.mubr.bf16.vlgmr.msra.gmra.mxu1 %v14454_v5 }
 0x2e6   :  { %4382 = vmatmul.mubr.bf16.vlgmr.msra.gmra.mxu0 %v14438_v58  ;;  %4393 = vmatpush1.bf16.msra.mxu1 %v12451_v61  ;;  %v12495_v61 = vld [vmem:[#allocation3 + $0x30c] ss:$24 sps:$4 sm:$0xff]  }
 0x2e7   :  { %4436 = vmatpush1.bf16.msra.mxu0 %v12454_v63  ;;  %4394 = vmatprep.subr.bf16.mxu1 %v12459_v51  ;;  %v12498_v63 = vld [vmem:[#allocation3 + $0x60c] ss:$24 sps:$4 sm:$0xff]   ;;  %v12493_v51 = vld [vmem:[#allocation3 + $0x308] ss:$24 sps:$4 sm:$0xff]  }
 0x2e8   :  { %4437 = vmatprep.subr.bf16.mxu0 %v12462_v1  ;;  %4424 = vmatprep.mubr.bf16.mxu1 %v14432_v24  ;;  %v12496_v1 = vld [vmem:[#allocation3 + $0x608] ss:$24 sps:$4 sm:$0xff]  }
 0x2e9   :  { %4467 = vmatprep.mubr.bf16.mxu0 %v14446_v25 }
 0x2ea   :  { %4395 = vmatpush1.bf16.msra.mxu1 %v12457_v2  ;;  %v12501_v2 = vld [vmem:[#allocation3 + $0x5dc] ss:$24 sps:$4 sm:$0xff]  }
 0x2eb   :  { %4438 = vmatpush1.bf16.msra.mxu0 %v12460_v3  ;;  %4396 = vmatprep.subr.bf16.mxu1 %v12465_v6  ;;  %v12504_v3 = vld [vmem:[#allocation3 + $0x8dc] ss:$24 sps:$4 sm:$0xff]   ;;  %v12499_v6 = vld [vmem:[#allocation3 + $0x5d8] ss:$24 sps:$4 sm:$0xff]  }
 0x2ec   :  { %4439 = vmatprep.subr.bf16.mxu0 %v12468_v10  ;;  %v12502_v10 = vld [vmem:[#allocation3 + $0x8d8] ss:$24 sps:$4 sm:$0xff]  }
 0x2ee   :  { %4397 = vmatpush1.bf16.msra.mxu1 %v12463_v13  ;;  %v12507_v13 = vld [vmem:[#allocation3 + $0x5ac] ss:$24 sps:$4 sm:$0xff]  }
 0x2ef   :  { %4440 = vmatpush1.bf16.msra.mxu0 %v12466_v7  ;;  %4398 = vmatprep.subr.bf16.mxu1 %v12471_v15  ;;  %v12510_v7 = vld [vmem:[#allocation3 + $0x8ac] ss:$24 sps:$4 sm:$0xff]   ;;  %v12505_v15 = vld [vmem:[#allocation3 + $0x5a8] ss:$24 sps:$4 sm:$0xff]  }
 0x2f0   :  { %4441 = vmatprep.subr.bf16.mxu0 %v12474_v16  ;;  %v12508_v16 = vld [vmem:[#allocation3 + $0x8a8] ss:$24 sps:$4 sm:$0xff]  }
 0x2f2   :  { %4399 = vmatpush1.bf16.msra.mxu1 %v12469_v18  ;;  %v12513_v18 = vld [vmem:[#allocation3 + $0x57c] ss:$24 sps:$4 sm:$0xff]  }
 0x2f3   :  { %4442 = vmatpush1.bf16.msra.mxu0 %v12472_v52  ;;  %4400 = vmatprep.subr.bf16.mxu1 %v12477_v53  ;;  %v12516_v52 = vld [vmem:[#allocation3 + $0x87c] ss:$24 sps:$4 sm:$0xff]   ;;  %v12511_v53 = vld [vmem:[#allocation3 + $0x578] ss:$24 sps:$4 sm:$0xff]  }
 0x2f4   :  { %4443 = vmatprep.subr.bf16.mxu0 %v12480_v22  ;;  %v12514_v22 = vld [vmem:[#allocation3 + $0x878] ss:$24 sps:$4 sm:$0xff]  }
 0x2f6   :  { %4401 = vmatpush1.bf16.msra.mxu1 %v12475_v8  ;;  %v12519_v8 = vld [vmem:[#allocation3 + $0x54c] ss:$24 sps:$4 sm:$0xff]  }
 0x2f7   :  { %4444 = vmatpush1.bf16.msra.mxu0 %v12478_v11  ;;  %4402 = vmatprep.subr.bf16.mxu1 %v12483_v9  ;;  %v12522_v11 = vld [vmem:[#allocation3 + $0x84c] ss:$24 sps:$4 sm:$0xff]   ;;  %v12517_v9 = vld [vmem:[#allocation3 + $0x548] ss:$24 sps:$4 sm:$0xff]  }
 0x2f8   :  { %4445 = vmatprep.subr.bf16.mxu0 %v12486_v12  ;;  %v12520_v12 = vld [vmem:[#allocation3 + $0x848] ss:$24 sps:$4 sm:$0xff]  }
 0x2fa   :  { %4403 = vmatpush1.bf16.msra.mxu1 %v12481_v26  ;;  %v12525_v26 = vld [vmem:[#allocation3 + $0x51c] ss:$24 sps:$4 sm:$0xff]  }
 0x2fb   :  { %4446 = vmatpush1.bf16.msra.mxu0 %v12484_v30  ;;  %4404 = vmatprep.subr.bf16.mxu1 %v12489_v31  ;;  %v12528_v30 = vld [vmem:[#allocation3 + $0x81c] ss:$24 sps:$4 sm:$0xff]   ;;  %v12523_v31 = vld [vmem:[#allocation3 + $0x518] ss:$24 sps:$4 sm:$0xff]  }
 0x2fc   :  { %4447 = vmatprep.subr.bf16.mxu0 %v12492_v32  ;;  %v12526_v32 = vld [vmem:[#allocation3 + $0x818] ss:$24 sps:$4 sm:$0xff]  }
 0x2fe   :  { %4405 = vmatpush1.bf16.msra.mxu1 %v12487_v33  ;;  %v12531_v33 = vld [vmem:[#allocation3 + $0x4ec] ss:$24 sps:$4 sm:$0xff]  }
 0x2ff   :  { %4448 = vmatpush1.bf16.msra.mxu0 %v12490_v35  ;;  %4406 = vmatprep.subr.bf16.mxu1 %v12495_v61  ;;  %v12534_v35 = vld [vmem:[#allocation3 + $0x7ec] ss:$24 sps:$4 sm:$0xff]   ;;  %v12529_v61 = vld [vmem:[#allocation3 + $0x4e8] ss:$24 sps:$4 sm:$0xff]  }
 0x300   :  { %4449 = vmatprep.subr.bf16.mxu0 %v12498_v63  ;;  %v12532_v63 = vld [vmem:[#allocation3 + $0x7e8] ss:$24 sps:$4 sm:$0xff]  }
 0x302   :  { %4407 = vmatpush1.bf16.msra.mxu1 %v12493_v51  ;;  %v12537_v51 = vld [vmem:[#allocation3 + $0x4bc] ss:$24 sps:$4 sm:$0xff]  }
 0x303   :  { %4450 = vmatpush1.bf16.msra.mxu0 %v12496_v1  ;;  %4408 = vmatprep.subr.bf16.mxu1 %v12501_v2  ;;  %v12540_v1 = vld [vmem:[#allocation3 + $0x7bc] ss:$24 sps:$4 sm:$0xff]   ;;  %v12535_v2 = vld [vmem:[#allocation3 + $0x4b8] ss:$24 sps:$4 sm:$0xff]  }
 0x304   :  { %4451 = vmatprep.subr.bf16.mxu0 %v12504_v3  ;;  %v12538_v3 = vld [vmem:[#allocation3 + $0x7b8] ss:$24 sps:$4 sm:$0xff]  }
 0x306   :  { %4409 = vmatpush2.bf16.msra.mxu1 %v12499_v6  ;;  %v12543_v6 = vld [vmem:[#allocation3 + $0x48c] ss:$24 sps:$4 sm:$0xff]  }
 0x307   :  { %4452 = vmatpush2.bf16.msra.mxu0 %v12502_v10  ;;  %4410 = vmatprep.subr.bf16.mxu1 %v12507_v13  ;;  %v12546_v10 = vld [vmem:[#allocation3 + $0x78c] ss:$24 sps:$4 sm:$0xff]   ;;  %v12541_v13 = vld [vmem:[#allocation3 + $0x488] ss:$24 sps:$4 sm:$0xff]  }
 0x308   :  { %4453 = vmatprep.subr.bf16.mxu0 %v12510_v7  ;;  %v12544_v7 = vld [vmem:[#allocation3 + $0x788] ss:$24 sps:$4 sm:$0xff]  }
 0x30a   :  { %4411 = vmatpush2.bf16.msra.mxu1 %v12505_v15  ;;  %v12549_v15 = vld [vmem:[#allocation3 + $0x164] ss:$24 sps:$4 sm:$0xff]  }
 0x30b   :  { %4454 = vmatpush2.bf16.msra.mxu0 %v12508_v16  ;;  %4412 = vmatprep.subr.bf16.mxu1 %v12513_v18  ;;  %v12552_v16 = vld [vmem:[#allocation3 + $0x464] ss:$24 sps:$4 sm:$0xff]   ;;  %v12547_v18 = vld [vmem:[#allocation3 + $0x160] ss:$24 sps:$4 sm:$0xff]  }
 0x30c   :  { %4455 = vmatprep.subr.bf16.mxu0 %v12516_v52  ;;  %v12550_v52 = vld [vmem:[#allocation3 + $0x460] ss:$24 sps:$4 sm:$0xff]  }
 0x30e   :  { %4413 = vmatpush2.bf16.msra.mxu1 %v12511_v53  ;;  %v12555_v53 = vld [vmem:[#allocation3 + $0x134] ss:$24 sps:$4 sm:$0xff]  }
 0x30f   :  { %4456 = vmatpush2.bf16.msra.mxu0 %v12514_v22  ;;  %4414 = vmatprep.subr.bf16.mxu1 %v12519_v8  ;;  %v12558_v22 = vld [vmem:[#allocation3 + $0x434] ss:$24 sps:$4 sm:$0xff]   ;;  %v12553_v8 = vld [vmem:[#allocation3 + $0x130] ss:$24 sps:$4 sm:$0xff]  }
 0x310   :  { %4457 = vmatprep.subr.bf16.mxu0 %v12522_v11  ;;  %v12556_v11 = vld [vmem:[#allocation3 + $0x430] ss:$24 sps:$4 sm:$0xff]  }
 0x312   :  { %4415 = vmatpush2.bf16.msra.mxu1 %v12517_v9  ;;  %v12561_v9 = vld [vmem:[#allocation3 + $0x104] ss:$24 sps:$4 sm:$0xff]  }
 0x313   :  { %4458 = vmatpush2.bf16.msra.mxu0 %v12520_v12  ;;  %4416 = vmatprep.subr.bf16.mxu1 %v12525_v26  ;;  %v12564_v12 = vld [vmem:[#allocation3 + $0x404] ss:$24 sps:$4 sm:$0xff]   ;;  %v12559_v26 = vld [vmem:[#allocation3 + $0x100] ss:$24 sps:$4 sm:$0xff]  }
 0x314   :  { %4459 = vmatprep.subr.bf16.mxu0 %v12528_v30  ;;  %v12562_v30 = vld [vmem:[#allocation3 + $0x400] ss:$24 sps:$4 sm:$0xff]  }
 0x316   :  { %4417 = vmatpush2.bf16.msra.mxu1 %v12523_v31  ;;  %v12567_v31 = vld [vmem:[#allocation3 + $0xd4] ss:$24 sps:$4 sm:$0xff]  }
 0x317   :  { %4460 = vmatpush2.bf16.msra.mxu0 %v12526_v32  ;;  %4418 = vmatprep.subr.bf16.mxu1 %v12531_v33  ;;  %v12570_v32 = vld [vmem:[#allocation3 + $0x3d4] ss:$24 sps:$4 sm:$0xff]   ;;  %v12565_v33 = vld [vmem:[#allocation3 + $0xd0] ss:$24 sps:$4 sm:$0xff]  }
 0x318   :  { %4461 = vmatprep.subr.bf16.mxu0 %v12534_v35  ;;  %v12568_v35 = vld [vmem:[#allocation3 + $0x3d0] ss:$24 sps:$4 sm:$0xff]  }
 0x31a   :  { %4419 = vmatpush2.bf16.msra.mxu1 %v12529_v61  ;;  %v12573_v61 = vld [vmem:[#allocation3 + $0xa4] ss:$24 sps:$4 sm:$0xff]  }
 0x31b   :  { %4462 = vmatpush2.bf16.msra.mxu0 %v12532_v63  ;;  %4420 = vmatprep.subr.bf16.mxu1 %v12537_v51  ;;  %v12576_v63 = vld [vmem:[#allocation3 + $0x3a4] ss:$24 sps:$4 sm:$0xff]   ;;  %v12571_v51 = vld [vmem:[#allocation3 + $0xa0] ss:$24 sps:$4 sm:$0xff]  }
 0x31c   :  { %4463 = vmatprep.subr.bf16.mxu0 %v12540_v1  ;;  %v12574_v1 = vld [vmem:[#allocation3 + $0x3a0] ss:$24 sps:$4 sm:$0xff]  }
 0x31e   :  { %4421 = vmatpush2.bf16.msra.mxu1 %v12535_v2  ;;  %v12579_v2 = vld [vmem:[#allocation3 + $0x74] ss:$24 sps:$4 sm:$0xff]  }
 0x31f   :  { %4464 = vmatpush2.bf16.msra.mxu0 %v12538_v3  ;;  %4422 = vmatprep.subr.bf16.mxu1 %v12543_v6  ;;  %v12582_v3 = vld [vmem:[#allocation3 + $0x374] ss:$24 sps:$4 sm:$0xff]   ;;  %v12577_v6 = vld [vmem:[#allocation3 + $0x70] ss:$24 sps:$4 sm:$0xff]  }
 0x320   :  { %4465 = vmatprep.subr.bf16.mxu0 %v12546_v10  ;;  %v12580_v10 = vld [vmem:[#allocation3 + $0x370] ss:$24 sps:$4 sm:$0xff]  }
 0x322   :  { %4423 = vmatpush2.bf16.msra.mxu1 %v12541_v13  ;;  %v12585_v13 = vld [vmem:[#allocation3 + $0x44] ss:$24 sps:$4 sm:$0xff]  }
 0x323   :  { %4466 = vmatpush2.bf16.msra.mxu0 %v12544_v7  ;;  %4478 = vmatprep.subr.bf16.mxu1 %v12549_v15  ;;  %v12588_v7 = vld [vmem:[#allocation3 + $0x344] ss:$24 sps:$4 sm:$0xff]   ;;  %v12583_v15 = vld [vmem:[#allocation3 + $0x40] ss:$24 sps:$4 sm:$0xff]  }
 0x324   :  { %4521 = vmatprep.subr.bf16.mxu0 %v12552_v16  ;;  %v12586_v16 = vld [vmem:[#allocation3 + $0x340] ss:$24 sps:$4 sm:$0xff]  }
 0x325   :  { %4425 = vmatmul.mubr.bf16.vlgmr.msra.gmra.mxu1 %v14442_v17 }
 0x326   :  { %4468 = vmatmul.mubr.bf16.vlgmr.msra.gmra.mxu0 %v14454_v5  ;;  %4479 = vmatpush1.bf16.msra.mxu1 %v12547_v18  ;;  %v12591_v18 = vld [vmem:[#allocation3 + $0x14] ss:$24 sps:$4 sm:$0xff]  }
 0x327   :  { %4522 = vmatpush1.bf16.msra.mxu0 %v12550_v52  ;;  %4480 = vmatprep.subr.bf16.mxu1 %v12555_v53  ;;  %v12594_v52 = vld [vmem:[#allocation3 + $0x314] ss:$24 sps:$4 sm:$0xff]   ;;  %v12589_v53 = vld [vmem:[#allocation3 + $0x10] ss:$24 sps:$4 sm:$0xff]  }
 0x328   :  { %4523 = vmatprep.subr.bf16.mxu0 %v12558_v22  ;;  %4510 = vmatprep.mubr.bf16.mxu1 %v14428_v23  ;;  %v12592_v22 = vld [vmem:[#allocation3 + $0x310] ss:$24 sps:$4 sm:$0xff]  }
 0x329   :  { %4553 = vmatprep.mubr.bf16.mxu0 %v14432_v24 }
 0x32a   :  { %4481 = vmatpush1.bf16.msra.mxu1 %v12553_v8  ;;  %v12597_v8 = vld [vmem:[#allocation3 + $0x2e4] ss:$24 sps:$4 sm:$0xff]  }
 0x32b   :  { %4524 = vmatpush1.bf16.msra.mxu0 %v12556_v11  ;;  %4482 = vmatprep.subr.bf16.mxu1 %v12561_v9  ;;  %v12600_v11 = vld [vmem:[#allocation3 + $0x5e4] ss:$24 sps:$4 sm:$0xff]   ;;  %v12595_v9 = vld [vmem:[#allocation3 + $0x2e0] ss:$24 sps:$4 sm:$0xff]  }
 0x32c   :  { %4525 = vmatprep.subr.bf16.mxu0 %v12564_v12  ;;  %v12598_v12 = vld [vmem:[#allocation3 + $0x5e0] ss:$24 sps:$4 sm:$0xff]  }
 0x32e   :  { %4483 = vmatpush1.bf16.msra.mxu1 %v12559_v26  ;;  %v12603_v26 = vld [vmem:[#allocation3 + $0x2b4] ss:$24 sps:$4 sm:$0xff]  }
 0x32f   :  { %4526 = vmatpush1.bf16.msra.mxu0 %v12562_v30  ;;  %4484 = vmatprep.subr.bf16.mxu1 %v12567_v31  ;;  %v12606_v30 = vld [vmem:[#allocation3 + $0x5b4] ss:$24 sps:$4 sm:$0xff]   ;;  %v12601_v31 = vld [vmem:[#allocation3 + $0x2b0] ss:$24 sps:$4 sm:$0xff]  }
 0x330   :  { %4527 = vmatprep.subr.bf16.mxu0 %v12570_v32  ;;  %v12604_v32 = vld [vmem:[#allocation3 + $0x5b0] ss:$24 sps:$4 sm:$0xff]  }
 0x332   :  { %4485 = vmatpush1.bf16.msra.mxu1 %v12565_v33  ;;  %v12609_v33 = vld [vmem:[#allocation3 + $0x284] ss:$24 sps:$4 sm:$0xff]  }
 0x333   :  { %4528 = vmatpush1.bf16.msra.mxu0 %v12568_v35  ;;  %4486 = vmatprep.subr.bf16.mxu1 %v12573_v61  ;;  %v12612_v35 = vld [vmem:[#allocation3 + $0x584] ss:$24 sps:$4 sm:$0xff]   ;;  %v12607_v61 = vld [vmem:[#allocation3 + $0x280] ss:$24 sps:$4 sm:$0xff]  }
 0x334   :  { %4529 = vmatprep.subr.bf16.mxu0 %v12576_v63  ;;  %v12610_v63 = vld [vmem:[#allocation3 + $0x580] ss:$24 sps:$4 sm:$0xff]  }
 0x336   :  { %4487 = vmatpush1.bf16.msra.mxu1 %v12571_v51  ;;  %v12615_v51 = vld [vmem:[#allocation3 + $0x254] ss:$24 sps:$4 sm:$0xff]  }
 0x337   :  { %4530 = vmatpush1.bf16.msra.mxu0 %v12574_v1  ;;  %4488 = vmatprep.subr.bf16.mxu1 %v12579_v2  ;;  %v12618_v1 = vld [vmem:[#allocation3 + $0x554] ss:$24 sps:$4 sm:$0xff]   ;;  %v12613_v2 = vld [vmem:[#allocation3 + $0x250] ss:$24 sps:$4 sm:$0xff]  }
 0x338   :  { %4531 = vmatprep.subr.bf16.mxu0 %v12582_v3  ;;  %v12616_v3 = vld [vmem:[#allocation3 + $0x550] ss:$24 sps:$4 sm:$0xff]  }
 0x33a   :  { %4489 = vmatpush1.bf16.msra.mxu1 %v12577_v6  ;;  %v12621_v6 = vld [vmem:[#allocation3 + $0x224] ss:$24 sps:$4 sm:$0xff]  }
 0x33b   :  { %4532 = vmatpush1.bf16.msra.mxu0 %v12580_v10  ;;  %4490 = vmatprep.subr.bf16.mxu1 %v12585_v13  ;;  %v12624_v10 = vld [vmem:[#allocation3 + $0x524] ss:$24 sps:$4 sm:$0xff]   ;;  %v12619_v13 = vld [vmem:[#allocation3 + $0x220] ss:$24 sps:$4 sm:$0xff]  }
 0x33c   :  { %4533 = vmatprep.subr.bf16.mxu0 %v12588_v7  ;;  %v12622_v7 = vld [vmem:[#allocation3 + $0x520] ss:$24 sps:$4 sm:$0xff]  }
 0x33e   :  { %4491 = vmatpush1.bf16.msra.mxu1 %v12583_v15  ;;  %v12627_v15 = vld [vmem:[#allocation3 + $0x1f4] ss:$24 sps:$4 sm:$0xff]  }
 0x33f   :  { %4534 = vmatpush1.bf16.msra.mxu0 %v12586_v16  ;;  %4492 = vmatprep.subr.bf16.mxu1 %v12591_v18  ;;  %v12630_v16 = vld [vmem:[#allocation3 + $0x4f4] ss:$24 sps:$4 sm:$0xff]   ;;  %v12625_v18 = vld [vmem:[#allocation3 + $0x1f0] ss:$24 sps:$4 sm:$0xff]  }
 0x340   :  { %4535 = vmatprep.subr.bf16.mxu0 %v12594_v52  ;;  %v12628_v52 = vld [vmem:[#allocation3 + $0x4f0] ss:$24 sps:$4 sm:$0xff]  }
 0x342   :  { %4493 = vmatpush1.bf16.msra.mxu1 %v12589_v53  ;;  %v12633_v53 = vld [vmem:[#allocation3 + $0x1c4] ss:$24 sps:$4 sm:$0xff]  }
 0x343   :  { %4536 = vmatpush1.bf16.msra.mxu0 %v12592_v22  ;;  %4494 = vmatprep.subr.bf16.mxu1 %v12597_v8  ;;  %v12636_v22 = vld [vmem:[#allocation3 + $0x4c4] ss:$24 sps:$4 sm:$0xff]   ;;  %v12631_v8 = vld [vmem:[#allocation3 + $0x1c0] ss:$24 sps:$4 sm:$0xff]  }
 0x344   :  { %4537 = vmatprep.subr.bf16.mxu0 %v12600_v11  ;;  %v12634_v11 = vld [vmem:[#allocation3 + $0x4c0] ss:$24 sps:$4 sm:$0xff]  }
 0x346   :  { %4495 = vmatpush2.bf16.msra.mxu1 %v12595_v9  ;;  %v12639_v9 = vld [vmem:[#allocation3 + $0x194] ss:$24 sps:$4 sm:$0xff]  }
 0x347   :  { %4538 = vmatpush2.bf16.msra.mxu0 %v12598_v12  ;;  %4496 = vmatprep.subr.bf16.mxu1 %v12603_v26  ;;  %v12642_v12 = vld [vmem:[#allocation3 + $0x494] ss:$24 sps:$4 sm:$0xff]   ;;  %v12637_v26 = vld [vmem:[#allocation3 + $0x190] ss:$24 sps:$4 sm:$0xff]  }
 0x348   :  { %4539 = vmatprep.subr.bf16.mxu0 %v12606_v30  ;;  %v12640_v30 = vld [vmem:[#allocation3 + $0x490] ss:$24 sps:$4 sm:$0xff]  }
 0x34a   :  { %4497 = vmatpush2.bf16.msra.mxu1 %v12601_v31  ;;  %v12645_v31 = vld [vmem:[#allocation3 + $0x764] ss:$24 sps:$4 sm:$0xff]  }
 0x34b   :  { %4540 = vmatpush2.bf16.msra.mxu0 %v12604_v32  ;;  %4498 = vmatprep.subr.bf16.mxu1 %v12609_v33  ;;  %v12643_v32 = vld [vmem:[#allocation3 + $0x760] ss:$24 sps:$4 sm:$0xff]   ;;  %v12648_v33 = vld [vmem:[#allocation3 + $0x734] ss:$24 sps:$4 sm:$0xff]  }
 0x34c   :  { %4541 = vmatprep.subr.bf16.mxu0 %v12612_v35  ;;  %v12646_v35 = vld [vmem:[#allocation3 + $0x730] ss:$24 sps:$4 sm:$0xff]  }
 0x34e   :  { %4499 = vmatpush2.bf16.msra.mxu1 %v12607_v61  ;;  %v12651_v61 = vld [vmem:[#allocation3 + $0x704] ss:$24 sps:$4 sm:$0xff]  }
 0x34f   :  { %4542 = vmatpush2.bf16.msra.mxu0 %v12610_v63  ;;  %4500 = vmatprep.subr.bf16.mxu1 %v12615_v51  ;;  %v12649_v63 = vld [vmem:[#allocation3 + $0x700] ss:$24 sps:$4 sm:$0xff]   ;;  %v12654_v51 = vld [vmem:[#allocation3 + $0x6d4] ss:$24 sps:$4 sm:$0xff]  }
 0x350   :  { %4543 = vmatprep.subr.bf16.mxu0 %v12618_v1  ;;  %v12652_v1 = vld [vmem:[#allocation3 + $0x6d0] ss:$24 sps:$4 sm:$0xff]  }
 0x352   :  { %4501 = vmatpush2.bf16.msra.mxu1 %v12613_v2  ;;  %v12657_v2 = vld [vmem:[#allocation3 + $0x6a4] ss:$24 sps:$4 sm:$0xff]  }
 0x353   :  { %4544 = vmatpush2.bf16.msra.mxu0 %v12616_v3  ;;  %4502 = vmatprep.subr.bf16.mxu1 %v12621_v6  ;;  %v12655_v3 = vld [vmem:[#allocation3 + $0x6a0] ss:$24 sps:$4 sm:$0xff]   ;;  %v12660_v6 = vld [vmem:[#allocation3 + $0x674] ss:$24 sps:$4 sm:$0xff]  }
 0x354   :  { %4545 = vmatprep.subr.bf16.mxu0 %v12624_v10  ;;  %v12658_v10 = vld [vmem:[#allocation3 + $0x670] ss:$24 sps:$4 sm:$0xff]  }
 0x356   :  { %4503 = vmatpush2.bf16.msra.mxu1 %v12619_v13  ;;  %v12663_v13 = vld [vmem:[#allocation3 + $0x644] ss:$24 sps:$4 sm:$0xff]  }
 0x357   :  { %4546 = vmatpush2.bf16.msra.mxu0 %v12622_v7  ;;  %4504 = vmatprep.subr.bf16.mxu1 %v12627_v15  ;;  %v12661_v7 = vld [vmem:[#allocation3 + $0x640] ss:$24 sps:$4 sm:$0xff]   ;;  %v12666_v15 = vld [vmem:[#allocation3 + $0x614] ss:$24 sps:$4 sm:$0xff]  }
 0x358   :  { %4547 = vmatprep.subr.bf16.mxu0 %v12630_v16  ;;  %v12664_v16 = vld [vmem:[#allocation3 + $0x610] ss:$24 sps:$4 sm:$0xff]  }
 0x35a   :  { %4505 = vmatpush2.bf16.msra.mxu1 %v12625_v18  ;;  %v12669_v18 = vld [vmem:[#allocation3 + $0x8e4] ss:$24 sps:$4 sm:$0xff]  }
 0x35b   :  { %4548 = vmatpush2.bf16.msra.mxu0 %v12628_v52  ;;  %4506 = vmatprep.subr.bf16.mxu1 %v12633_v53  ;;  %v12667_v52 = vld [vmem:[#allocation3 + $0x8e0] ss:$24 sps:$4 sm:$0xff]   ;;  %v12672_v53 = vld [vmem:[#allocation3 + $0x8b4] ss:$24 sps:$4 sm:$0xff]  }
 0x35c   :  { %4549 = vmatprep.subr.bf16.mxu0 %v12636_v22  ;;  %v12670_v22 = vld [vmem:[#allocation3 + $0x8b0] ss:$24 sps:$4 sm:$0xff]  }
 0x35e   :  { %4507 = vmatpush2.bf16.msra.mxu1 %v12631_v8  ;;  %v12675_v8 = vld [vmem:[#allocation3 + $0x884] ss:$24 sps:$4 sm:$0xff]  }
 0x35f   :  { %4550 = vmatpush2.bf16.msra.mxu0 %v12634_v11  ;;  %4508 = vmatprep.subr.bf16.mxu1 %v12639_v9  ;;  %v12673_v11 = vld [vmem:[#allocation3 + $0x880] ss:$24 sps:$4 sm:$0xff]   ;;  %v12678_v9 = vld [vmem:[#allocation3 + $0x854] ss:$24 sps:$4 sm:$0xff]  }
 0x360   :  { %4551 = vmatprep.subr.bf16.mxu0 %v12642_v12  ;;  %v12676_v12 = vld [vmem:[#allocation3 + $0x850] ss:$24 sps:$4 sm:$0xff]  }
 0x362   :  { %4509 = vmatpush2.bf16.msra.mxu1 %v12637_v26  ;;  %v12681_v26 = vld [vmem:[#allocation3 + $0x824] ss:$24 sps:$4 sm:$0xff]  }
 0x363   :  { %4552 = vmatpush2.bf16.msra.mxu0 %v12640_v30  ;;  %4564 = vmatprep.subr.bf16.mxu1 %v12645_v31  ;;  %v12679_v30 = vld [vmem:[#allocation3 + $0x820] ss:$24 sps:$4 sm:$0xff]   ;;  %v12684_v31 = vld [vmem:[#allocation3 + $0x7f4] ss:$24 sps:$4 sm:$0xff]  }
 0x365   :  { %4511 = vmatmul.mubr.bf16.vlgmr.msra.gmra.mxu1 %v14438_v58 }
 0x366   :  { %4554 = vmatmul.mubr.bf16.vlgmr.msra.gmra.mxu0 %v14442_v17  ;;  %4565 = vmatpush1.bf16.msra.mxu1 %v12643_v32  ;;  %v12682_v32 = vld [vmem:[#allocation3 + $0x7f0] ss:$24 sps:$4 sm:$0xff]  }
 0x367   :  { %4596 = vmatprep.mubr.bf16.mxu1 %v14446_v25  ;;  %4566 = vmatprep.subr.bf16.mxu1 %v12648_v33  ;;  %v12687_v33 = vld [vmem:[#allocation3 + $0x7c4] ss:$24 sps:$4 sm:$0xff]  }
 0x36a   :  { %4567 = vmatpush1.bf16.msra.mxu1 %v12646_v35  ;;  %v12685_v35 = vld [vmem:[#allocation3 + $0x7c0] ss:$24 sps:$4 sm:$0xff]  }
 0x36b   :  { %4568 = vmatprep.subr.bf16.mxu1 %v12651_v61  ;;  %v12690_v61 = vld [vmem:[#allocation3 + $0x794] ss:$24 sps:$4 sm:$0xff]  }
 0x36e   :  { %4569 = vmatpush1.bf16.msra.mxu1 %v12649_v63  ;;  %v12688_v63 = vld [vmem:[#allocation3 + $0x790] ss:$24 sps:$4 sm:$0xff]  }
 0x36f   :  { %4570 = vmatprep.subr.bf16.mxu1 %v12654_v51  ;;  %v4254_v51 = vpop.f32.mrf.mxu1 }
 0x372   :  { %4571 = vmatpush1.bf16.msra.mxu1 %v12652_v1  ;;  %v4297_v1 = vpop.f32.mrf.mxu0 }
 0x373   :  { %4572 = vmatprep.subr.bf16.mxu1 %v12657_v2  ;;  %v4256_v2 = vpop.f32.mrf.mxu1 }
 0x376   :  { %4573 = vmatpush1.bf16.msra.mxu1 %v12655_v3  ;;  %v4299_v3 = vpop.f32.mrf.mxu0 }
 0x377   :  { %4574 = vmatprep.subr.bf16.mxu1 %v12660_v6  ;;  %v4258_v6 = vpop.f32.mrf.mxu1  ;;  %v4300_v49 = vadd.f32 %v4299_v3, %v4256_v2 }
 0x37a   :  { %4575 = vmatpush1.bf16.msra.mxu1 %v12658_v10  ;;  %v4301_v10 = vpop.f32.mrf.mxu0 }
 0x37b   :  { %4576 = vmatprep.subr.bf16.mxu1 %v12663_v13  ;;  %v4260_v13 = vpop.f32.mrf.mxu1  ;;  %v4302_v3 = vadd.f32 %v4301_v10, %v4258_v6  ;;  %v4692_v10 = vsub.s32 5, %v14207_v4 }
 0x37e   :  { %4577 = vmatpush1.bf16.msra.mxu1 %v12661_v7  ;;  %v4303_v7 = vpop.f32.mrf.mxu0 }
 0x37f   :  { %4578 = vmatprep.subr.bf16.mxu1 %v12666_v15 }
 0x382   :  { %4579 = vmatpush1.bf16.msra.mxu1 %v12664_v16 }
 0x383   :  { %4580 = vmatprep.subr.bf16.mxu1 %v12669_v18 }
 0x386   :  { %4581 = vmatpush2.bf16.msra.mxu1 %v12667_v52 }
 0x387   :  { %4582 = vmatprep.subr.bf16.mxu1 %v12672_v53 }
 0x38a   :  { %4583 = vmatpush2.bf16.msra.mxu1 %v12670_v22  ;;  %v4613_v22 = vcombine.low %v14413_v45, %v14416_v21 }
 0x38b   :  { %4584 = vmatprep.subr.bf16.mxu1 %v12675_v8  ;;  %v4614_v8 = vcombine.low %v14418_v46, %v14420_v38 }
 0x38e   :  { %4585 = vmatpush2.bf16.msra.mxu1 %v12673_v11 }
 0x38f   :  { %4586 = vmatprep.subr.bf16.mxu1 %v12678_v9 }
 0x392   :  { %4587 = vmatpush2.bf16.msra.mxu1 %v12676_v12  ;;  %v4615_v12 = vcombine.low %v14422_v19, %v14424_v20  ;;  %v14480_v20 = vsub.s32 0, %v14207_v4 }
 0x393   :  { %4588 = vmatprep.subr.bf16.mxu1 %v12681_v26  ;;  %v4622_v26 = vrot.slane %v4613_v22, %v14268_v41  ;;  %v14483_v22 = vsub.s32 1, %v14207_v4 }
 0x396   :  { %4589 = vmatpush2.bf16.msra.mxu1 %v12679_v30  ;;  %v4629_v30 = vrot.slane %v4614_v8, %v14268_v41 }
 0x397   :  { %4590 = vmatprep.subr.bf16.mxu1 %v12684_v31 }
 0x398   :  { %v4638_v0 = vcombine.high %v4622_v26, %v4629_v30 }
 0x39a   :  { %4591 = vmatpush2.bf16.msra.mxu1 %v12682_v32  ;;  %v4653_v29 = vrot.slane %v4638_v0, %v14268_v41  ;;  %v4304_v0 = vadd.f32 %v4303_v7, %v4260_v13 }
 0x39b   :  { %4592 = vmatprep.subr.bf16.mxu1 %v12687_v33  ;;  %v4636_v33 = vrot.slane %v4615_v12, %v14268_v41 }
 0x39d   :  { %v4660_v21 = vrot.slane %v4636_v33, %v14268_v41  ;;  %v4639_v34 = vcombine.high %v4636_v33, %v4636_v33 }
 0x39e   :  { %4593 = vmatpush2.bf16.msra.mxu1 %v12685_v35  ;;  %v4637_v35 = vcombine.low %v4622_v26, %v4629_v30  ;;  %v4298_v26 = vadd.f32 %v4297_v1, %v4254_v51 }
 0x39f   :  { %4594 = vmatprep.subr.bf16.mxu1 %v12690_v61  ;;  %v4667_v28 = vrot.slane %v4639_v34, %v14268_v41 }
 0x3a0   :  { %v4646_v45 = vrot.slane %v4637_v35, %v14268_v41  ;;  %v4680_v35 = vsub.s32 2, %v14207_v4 }
 0x3a1   :  { %v4669_v48 = vcombine.low %v4653_v29, %v4667_v28 }
 0x3a2   :  { %4595 = vmatpush2.bf16.msra.mxu1 %v12688_v63  ;;  %v4668_v19 = vcombine.low %v4646_v45, %v4660_v21 }
 0x3a3   :  { %v4701_v1 = vrot.slane %v4669_v48, %v14483_v22 }
 0x3a4   :  { %v4673_v30 = vrot.slane %v4668_v19, %v14480_v20  ;;  %v4677_v45 = vrot.slane %v4668_v19, %v14483_v22  ;;  %v4681_v39 = vrot.slane %v4668_v19, %v4680_v35 }
 0x3a5   :  { %4597 = vmatmul.mubr.bf16.vlgmr.msra.gmra.mxu1 %v14454_v5  ;;  %v4340_v15 = vpop.f32.mrf.mxu1 }
 0x3a6   :  { %v4383_v16 = vpop.f32.mrf.mxu0  ;;  %v4341_v47 = vadd.f32 %v4340_v15, %v4298_v26  ;;  %v4705_v15 = vrot.slane %v4669_v48, %v4680_v35 }
 0x3a7   :  { %v4342_v18 = vpop.f32.mrf.mxu1 }
 0x3a8   :  { %v4385_v52 = vpop.f32.mrf.mxu0  ;;  %v4343_v33 = vadd.f32 %v4342_v18, %v4300_v49  ;;  %v4730_v49 = vmul.f32 %v4673_v30, %v4341_v47  ;;  %v4697_v18 = vrot.slane %v4669_v48, %v14480_v20 }
 0x3a9   :  { %v4344_v53 = vpop.f32.mrf.mxu1 }
 0x3aa   :  { %v4387_v11 = vpop.f32.mrf.mxu0  ;;  %v4345_v28 = vadd.f32 %v4344_v53, %v4302_v3  ;;  %v4709_v53 = vrot.slane %v4669_v48, %v4684_v27 }
 0x3ab   :  { %v4346_v9 = vpop.f32.mrf.mxu1 }
 0x3ac   :  { %v4389_v31 = vpop.f32.mrf.mxu0  ;;  %v4347_v51 = vadd.f32 %v4346_v9, %v4304_v0  ;;  %v4736_v9 = vmul.f32 %v4697_v18, %v4345_v28  ;;  %v4717_v18 = vrot.slane %v4669_v48, %v4692_v10 }
 0x3ae   :  { %v4737_v6 = vmul.f32 %v4701_v1, %v4347_v51 }
 0x3e5   :  { %v4426_v32 = vpop.f32.mrf.mxu1 }
 0x3e6   :  { %v4469_v63 = vpop.f32.mrf.mxu0  ;;  %v4427_v40 = vadd.f32 %v4426_v32, %v4383_v16  ;;  %v4731_v16 = vmul.f32 %v4677_v45, %v4343_v33  ;;  %v4685_v32 = vrot.slane %v4668_v19, %v4684_v27 }
 0x3e7   :  { %v4428_v61 = vpop.f32.mrf.mxu1 }
 0x3e8   :  { %v4471_v38 = vpop.f32.mrf.mxu0  ;;  %v4429_v14 = vadd.f32 %v4428_v61, %v4385_v52  ;;  %v4470_v34 = vadd.f32 %v4469_v63, %v4427_v40  ;;  %v4688_v52 = vsub.s32 4, %v14207_v4 }
 0x3e9   :  { %v4430_v46 = vpop.f32.mrf.mxu1 }
 0x3ea   :  { %v4473_v12 = vpop.f32.mrf.mxu0  ;;  %v4431_v41 = vadd.f32 %v4430_v46, %v4387_v11  ;;  %v4732_v29 = vmul.f32 %v4681_v39, %v4470_v34  ;;  %v4472_v26 = vadd.f32 %v4471_v38, %v4429_v14  ;;  %v4742_v11 = vadd.f32 %v4731_v16, %v4730_v49 }
 0x3eb   :  { %v4432_v8 = vpop.f32.mrf.mxu1  ;;  %v4689_v14 = vrot.slane %v4668_v19, %v4688_v52  ;;  %v4749_v38 = vadd.f32 %v4737_v6, %v4736_v9 }
 0x3ec   :  { %v4475_v21 = vpop.f32.mrf.mxu0  ;;  %v4474_v42 = vadd.f32 %v4473_v12, %v4431_v41  ;;  %v4433_v40 = vadd.f32 %v4432_v8, %v4389_v31  ;;  %v4743_v61 = vadd.f32 %v4742_v11, %v4732_v29  ;;  %v4733_v47 = vmul.f32 %v4685_v32, %v4472_v26 }
 0x3ed   :  { %v4693_v8 = vrot.slane %v4668_v19, %v4692_v10  ;;  %v4713_v41 = vrot.slane %v4669_v48, %v4688_v52 }
 0x3ee   :  { %v4738_v63 = vmul.f32 %v4705_v15, %v4474_v42  ;;  %v4476_v35 = vadd.f32 %v4475_v21, %v4433_v40  ;;  %v4744_v3 = vadd.f32 %v4743_v61, %v4733_v47  ;;  %v15693_v40 = vlaneseq }
 0x3f0   :  { %v4750_v45 = vadd.f32 %v4749_v38, %v4738_v63  ;;  %v4739_v16 = vmul.f32 %v4709_v53, %v4476_v35 }
 0x3f2   :  { %v4751_v15 = vadd.f32 %v4750_v45, %v4739_v16 }
 0x425   :  { %v4512_v54 = vpop.f32.mrf.mxu1 }
 0x426   :  { %v4555_v50 = vpop.f32.mrf.mxu0 }
 0x427   :  { %v4514_v2 = vpop.f32.mrf.mxu1  ;;  %v4556_v39 = vadd.f32 %v4555_v50, %v4512_v54 }
 0x428   :  { %v4557_v13 = vpop.f32.mrf.mxu0 }
 0x429   :  { %v4516_v7 = vpop.f32.mrf.mxu1  ;;  %v4558_v33 = vadd.f32 %v4557_v13, %v4514_v2 }
 0x42a   :  { %v4559_v46 = vpop.f32.mrf.mxu0 }
 0x42b   :  { %v4518_v30 = vpop.f32.mrf.mxu1  ;;  %v4560_v51 = vadd.f32 %v4559_v46, %v4516_v7  ;;  %v4761_v7 = vand.u32 127, %v15693_v40  ;;  %v14155_v46 = vmov 0  }
 0x42c   :  { %v4561_v0 = vpop.f32.mrf.mxu0  ;;  %12258 = vset.pattern.permute.xlu0 %v14155_v46  ;;  %12257 = vset.pattern.permute.xlu1 %v14155_v46 }
 0x42d   :  { %v4562_v21 = vadd.f32 %v4561_v0, %v4518_v30  ;;  %v4764_v11 = vsub.s32 %v4761_v7, %v14207_v4 }
 0x465   :  { %v4598_v12 = vpop.f32.mrf.mxu1 }
 0x466   :  { %v4599_v31 = vadd.f32 %v4598_v12, %v4556_v39 }
 0x467   :  { %v4600_v34 = vpop.f32.mrf.mxu1 }
 0x468   :  { %v4734_v1 = vmul.f32 %v4689_v14, %v4599_v31  ;;  %v4601_v42 = vadd.f32 %v4600_v34, %v4558_v33 }
 0x469   :  { %v4602_v49 = vpop.f32.mrf.mxu1 }
 0x46a   :  { %v4603_v27 = vadd.f32 %v4602_v49, %v4560_v51  ;;  %v4735_v50 = vmul.f32 %v4693_v8, %v4601_v42  ;;  %v4745_v54 = vadd.f32 %v4744_v3, %v4734_v1 }
 0x46b   :  { %v4604_v32 = vpop.f32.mrf.mxu1 }
 0x46c   :  { %v4740_v2 = vmul.f32 %v4713_v41, %v4603_v27  ;;  %v4605_v28 = vadd.f32 %v4604_v32, %v4562_v21  ;;  %v4746_v19 = vadd.f32 %v4745_v54, %v4735_v50 }
 0x46e   :  { %v4741_v29 = vmul.f32 %v4717_v18, %v4605_v28  ;;  %4747 = vadd.xlane.f32.xlu0 %v4746_v19  ;;  %v4752_v26 = vadd.f32 %v4751_v15, %v4740_v2 }
 0x470   :  { %v4753_v13 = vadd.f32 %v4752_v26, %v4741_v29 }
 0x472   :  { %4754 = vadd.xlane.f32.xlu0 %v4753_v13 }
 0x4f7   :  { %v4748_v52 = vpop.xlane.xlu0 %4747 }
 0x4f8   :  { %v4756_v48 = vmul.f32 0.03608439, %v4748_v52 }
 0x4fa   :  { %v4765_v9 = vrot.slane %v4756_v48, %v4764_v11 }
 0x4fb   :  { %v4755_v6 = vpop.xlane.xlu0 %4754 }
 0x4fc   :  { %v4757_v10 = vmul.f32 0.03608439, %v4755_v6 }
 0x4fe   :  { %v4769_v61 = vrot.slane %v4757_v10, %v4764_v11 }
 0x500   :  { %v4771_v47 = vsel %vm4770_vm7, %v4769_v61, %v4765_v9 }
 0x501   :  { %v4774_v63 = vsel %vm4773_vm8, %v4771_v47, -inf }
 0x502   :  { %4775 = vmax.xlane.f32.xlu1 %v4774_v63 }
 0x58b   :  { %v4776_v30 = vpop.xlane.xlu1 %4775 }
 0x58c   :  { %v4781_v35 = vrot.slane %v4776_v30, %v14480_v20  ;;  %v4785_v53 = vrot.slane %v4776_v30, %v14483_v22 }
 0x58e   :  { %v4788_v39 = vsub.f32 %v4756_v48, %v4781_v35  ;;  %v4789_v14 = vsub.f32 %v4757_v10, %v4785_v53 }
 0x590   :  { %v4790_v38 = vmul.f32 1.442695, %v4788_v39  ;;  %v4792_v12 = vmul.f32 1.442695, %v4789_v14 }
 0x592   :  { %12691 = vpow2.f32 %v4790_v38 }
 0x593   :  { %12693 = vpow2.f32 %v4792_v12 }
 0x59f   :  { %v12692_v33 = vpop.eup %12691 }
 0x5a0   :  { %v12694_v31 = vpop.eup %12693  ;;  %4797 = vperm.xlu1 %12257, %v12692_v33  }
 0x5a1   :  { %4800 = vperm.xlu0 %12258, %v12694_v31  }
 0x61b   :  { %v4798_v8 = vpop.permute.xlu1 %4797 }
 0x61c   :  { %v4801_v45 = vpop.permute.xlu0 %4800  ;;  %v4805_v0 = vrot.slane %v4798_v8, %v4764_v11 }
 0x61d   :  { %v4809_v34 = vrot.slane %v4801_v45, %v4764_v11 }
 0x61f   :  { %v4810_v41 = vsel %vm4770_vm7, %v4809_v34, %v4805_v0 }
 0x620   :  { %v4812_v3 = vsel %vm4773_vm8, %v4810_v41, 0.0 }
 0x621   :  { %4813 = vadd.xlane.f32.xlu1 %v4812_v3 }
 0x6aa   :  { %v4814_v16 = vpop.xlane.xlu1 %4813 }
 0x6ab   :  { %v4819_v51 = vrot.slane %v4814_v16, %v14480_v20  ;;  %v4823_v1 = vrot.slane %v4814_v16, %v14483_v22 }
 0x6ad   :  { %12695 = vrcp.f32 %v4819_v51 }
 0x6ae   :  { %12697 = vrcp.f32 %v4823_v1 }
 0x6ba   :  { %v12696_v42 = vpop.eup %12695 }
 0x6bb   :  { %v12698_v49 = vpop.eup %12697  ;;  %v4827_v18 = vmul.f32 %v12696_v42, %v12692_v33 }
 0x6bc   :  { %v4829_v21 = vmul.f32 %v12698_v49, %v12694_v31 }
 0x6bd   :  { %14137 = dma.done.wait [#allocation7 + $0x2], 36864 }
 0x6be   :  { %14138 = vsyncadd [#allocation7 + $0x2], 4294930432  ;;  %6592 = vmatprep.mubr.bf16.mxu0 %v14428_v23  ;;  %6635 = vmatprep.mubr.bf16.mxu1 %v14432_v24  ;;  %v12700_v27 = vld [vmem:[#allocation4 + $0x154] ss:$24 sps:$4 sm:$0xff]   ;;  %v12704_v20 = vld [vmem:[#allocation4 + $0x150] ss:$24 sps:$4 sm:$0xff]  }
 0x6bf   :  { %12699 = vset.pattern.permute.xlu0 %v14155_v46  ;;  %v12702_v50 = vld [vmem:[#allocation4 + $0x454] ss:$24 sps:$4 sm:$0xff]   ;;  %6560 = vmatprep.subr.bf16.mxu0 %v12700_v27  ;;  %v12705_v22 = vld [vmem:[#allocation4 + $0x450] ss:$24 sps:$4 sm:$0xff]   ;;  %v12706_v54 = vld [vmem:[#allocation4 + $0x124] ss:$24 sps:$4 sm:$0xff]  }
 0x6c0   :  { %7318 = vperm.xlu0 %12699, %v4827_v18   ;;  %6603 = vmatprep.subr.bf16.mxu1 %v12702_v50  ;;  %v12708_v32 = vld [vmem:[#allocation4 + $0x424] ss:$24 sps:$4 sm:$0xff]   ;;  %v12710_v15 = vld [vmem:[#allocation4 + $0x120] ss:$24 sps:$4 sm:$0xff]   ;;  %v12712_v28 = vld [vmem:[#allocation4 + $0xf4] ss:$24 sps:$4 sm:$0xff]  }
 0x6c1   :  { %6561 = vmatpush1.bf16.msra.mxu0 %v12704_v20  ;;  %6604 = vmatpush1.bf16.msra.mxu1 %v12705_v22  ;;  %v12711_v2 = vld [vmem:[#allocation4 + $0x420] ss:$24 sps:$4 sm:$0xff]   ;;  %v12714_v19 = vld [vmem:[#allocation4 + $0x3f4] ss:$24 sps:$4 sm:$0xff]   ;;  %v12716_v29 = vld [vmem:[#allocation4 + $0xf0] ss:$24 sps:$4 sm:$0xff]  }
 0x6c2   :  { %6562 = vmatprep.subr.bf16.mxu0 %v12706_v54  ;;  %6605 = vmatprep.subr.bf16.mxu1 %v12708_v32  ;;  %v12717_v26 = vld [vmem:[#allocation4 + $0x3f0] ss:$24 sps:$4 sm:$0xff]   ;;  %v12718_v13 = vld [vmem:[#allocation4 + $0xc4] ss:$24 sps:$4 sm:$0xff]   ;;  %v12722_v7 = vld [vmem:[#allocation4 + $0xc0] ss:$24 sps:$4 sm:$0xff]  }
 0x6c3   :  { %v12720_v40 = vld [vmem:[#allocation4 + $0x3c4] ss:$24 sps:$4 sm:$0xff]   ;;  %v12723_v52 = vld [vmem:[#allocation4 + $0x3c0] ss:$24 sps:$4 sm:$0xff]   ;;  %v12724_v11 = vld [vmem:[#allocation4 + $0x94] ss:$24 sps:$4 sm:$0xff]  }
 0x6c4   :  { %7323 = vperm.xlu0 %12699, %v4829_v21   ;;  %v12726_v48 = vld [vmem:[#allocation4 + $0x394] ss:$24 sps:$4 sm:$0xff]   ;;  %v12728_v6 = vld [vmem:[#allocation4 + $0x90] ss:$24 sps:$4 sm:$0xff]   ;;  %v12730_v9 = vld [vmem:[#allocation4 + $0x64] ss:$24 sps:$4 sm:$0xff]  }
 0x6c5   :  { %6563 = vmatpush1.bf16.msra.mxu0 %v12710_v15  ;;  %6606 = vmatpush1.bf16.msra.mxu1 %v12711_v2  ;;  %v12729_v10 = vld [vmem:[#allocation4 + $0x390] ss:$24 sps:$4 sm:$0xff]   ;;  %v12732_v61 = vld [vmem:[#allocation4 + $0x364] ss:$24 sps:$4 sm:$0xff]   ;;  %v12734_v47 = vld [vmem:[#allocation4 + $0x60] ss:$24 sps:$4 sm:$0xff]  }
 0x6c6   :  { %6564 = vmatprep.subr.bf16.mxu0 %v12712_v28  ;;  %6607 = vmatprep.subr.bf16.mxu1 %v12714_v19  ;;  %v12735_v63 = vld [vmem:[#allocation4 + $0x360] ss:$24 sps:$4 sm:$0xff]   ;;  %v12736_v46 = vld [vmem:[#allocation4 + $0x34] ss:$24 sps:$4 sm:$0xff]   ;;  %v12740_v35 = vld [vmem:[#allocation4 + $0x30] ss:$24 sps:$4 sm:$0xff]  }
 0x6c7   :  { %v12738_v30 = vld [vmem:[#allocation4 + $0x334] ss:$24 sps:$4 sm:$0xff]   ;;  %v12741_v53 = vld [vmem:[#allocation4 + $0x330] ss:$24 sps:$4 sm:$0xff]   ;;  %v12742_v39 = vld [vmem:[#allocation4 + $0x4] ss:$24 sps:$4 sm:$0xff]  }
 0x6c8   :  { %v12744_v14 = vld [vmem:[#allocation4 + $0x304] ss:$24 sps:$4 sm:$0xff]   ;;  %v12746_v38 = vld [vmem:[#allocation4] ss:$24 sps:$4 sm:$0xff]   ;;  %v12748_v33 = vld [vmem:[#allocation4 + $0x2d4] ss:$24 sps:$4 sm:$0xff]  }
 0x6c9   :  { %6565 = vmatpush1.bf16.msra.mxu0 %v12716_v29  ;;  %6608 = vmatpush1.bf16.msra.mxu1 %v12717_v26  ;;  %v12747_v12 = vld [vmem:[#allocation4 + $0x300] ss:$24 sps:$4 sm:$0xff]   ;;  %v12750_v31 = vld [vmem:[#allocation4 + $0x5d4] ss:$24 sps:$4 sm:$0xff]   ;;  %v12752_v8 = vld [vmem:[#allocation4 + $0x2d0] ss:$24 sps:$4 sm:$0xff]  }
 0x6ca   :  { %6566 = vmatprep.subr.bf16.mxu0 %v12718_v13  ;;  %6609 = vmatprep.subr.bf16.mxu1 %v12720_v40  ;;  %v12753_v45 = vld [vmem:[#allocation4 + $0x5d0] ss:$24 sps:$4 sm:$0xff]   ;;  %v12754_v0 = vld [vmem:[#allocation4 + $0x2a4] ss:$24 sps:$4 sm:$0xff]   ;;  %v12758_v41 = vld [vmem:[#allocation4 + $0x2a0] ss:$24 sps:$4 sm:$0xff]  }
 0x6cb   :  { %v12756_v34 = vld [vmem:[#allocation4 + $0x5a4] ss:$24 sps:$4 sm:$0xff]   ;;  %v12759_v3 = vld [vmem:[#allocation4 + $0x5a0] ss:$24 sps:$4 sm:$0xff]   ;;  %v12760_v16 = vld [vmem:[#allocation4 + $0x274] ss:$24 sps:$4 sm:$0xff]  }
 0x6cc   :  { %v12762_v51 = vld [vmem:[#allocation4 + $0x574] ss:$24 sps:$4 sm:$0xff]   ;;  %v12764_v1 = vld [vmem:[#allocation4 + $0x270] ss:$24 sps:$4 sm:$0xff]   ;;  %v12766_v49 = vld [vmem:[#allocation4 + $0x244] ss:$24 sps:$4 sm:$0xff]  }
 0x6cd   :  { %6567 = vmatpush1.bf16.msra.mxu0 %v12722_v7  ;;  %6610 = vmatpush1.bf16.msra.mxu1 %v12723_v52  ;;  %v12765_v42 = vld [vmem:[#allocation4 + $0x570] ss:$24 sps:$4 sm:$0xff]   ;;  %v12768_v18 = vld [vmem:[#allocation4 + $0x544] ss:$24 sps:$4 sm:$0xff]   ;;  %v12770_v21 = vld [vmem:[#allocation4 + $0x240] ss:$24 sps:$4 sm:$0xff]  }
 0x6ce   :  { %6568 = vmatprep.subr.bf16.mxu0 %v12724_v11  ;;  %6611 = vmatprep.subr.bf16.mxu1 %v12726_v48  ;;  %v12771_v27 = vld [vmem:[#allocation4 + $0x540] ss:$24 sps:$4 sm:$0xff]   ;;  %v12772_v50 = vld [vmem:[#allocation4 + $0x214] ss:$24 sps:$4 sm:$0xff]   ;;  %v12776_v22 = vld [vmem:[#allocation4 + $0x210] ss:$24 sps:$4 sm:$0xff]  }
 0x6cf   :  { %v12774_v20 = vld [vmem:[#allocation4 + $0x514] ss:$24 sps:$4 sm:$0xff]   ;;  %v12777_v54 = vld [vmem:[#allocation4 + $0x510] ss:$24 sps:$4 sm:$0xff]   ;;  %v12778_v32 = vld [vmem:[#allocation4 + $0x1e4] ss:$24 sps:$4 sm:$0xff]  }
 0x6d0   :  { %v12780_v15 = vld [vmem:[#allocation4 + $0x4e4] ss:$24 sps:$4 sm:$0xff]   ;;  %v12782_v2 = vld [vmem:[#allocation4 + $0x1e0] ss:$24 sps:$4 sm:$0xff]   ;;  %v12784_v19 = vld [vmem:[#allocation4 + $0x1b4] ss:$24 sps:$4 sm:$0xff]  }
 0x6d1   :  { %6569 = vmatpush1.bf16.msra.mxu0 %v12728_v6  ;;  %6612 = vmatpush1.bf16.msra.mxu1 %v12729_v10  ;;  %v12783_v28 = vld [vmem:[#allocation4 + $0x4e0] ss:$24 sps:$4 sm:$0xff]   ;;  %v12786_v29 = vld [vmem:[#allocation4 + $0x4b4] ss:$24 sps:$4 sm:$0xff]   ;;  %v12788_v26 = vld [vmem:[#allocation4 + $0x1b0] ss:$24 sps:$4 sm:$0xff]  }
 0x6d2   :  { %6570 = vmatprep.subr.bf16.mxu0 %v12730_v9  ;;  %6613 = vmatprep.subr.bf16.mxu1 %v12732_v61  ;;  %v12789_v13 = vld [vmem:[#allocation4 + $0x4b0] ss:$24 sps:$4 sm:$0xff]   ;;  %v12790_v40 = vld [vmem:[#allocation4 + $0x184] ss:$24 sps:$4 sm:$0xff]   ;;  %v12794_v52 = vld [vmem:[#allocation4 + $0x180] ss:$24 sps:$4 sm:$0xff]  }
 0x6d3   :  { %v12792_v7 = vld [vmem:[#allocation4 + $0x484] ss:$24 sps:$4 sm:$0xff]   ;;  %v12795_v11 = vld [vmem:[#allocation4 + $0x480] ss:$24 sps:$4 sm:$0xff]   ;;  %v12798_v48 = vld [vmem:[#allocation4 + $0x754] ss:$24 sps:$4 sm:$0xff]  }
 0x6d4   :  { %v12801_v6 = vld [vmem:[#allocation4 + $0x15c] ss:$24 sps:$4 sm:$0xff]   ;;  %v12796_v10 = vld [vmem:[#allocation4 + $0x750] ss:$24 sps:$4 sm:$0xff]  }
 0x6d5   :  { %6571 = vmatpush1.bf16.msra.mxu0 %v12734_v47  ;;  %6614 = vmatpush1.bf16.msra.mxu1 %v12735_v63  ;;  %v12799_v9 = vld [vmem:[#allocation4 + $0x158] ss:$24 sps:$4 sm:$0xff]   ;;  %v12804_v61 = vld [vmem:[#allocation4 + $0x724] ss:$24 sps:$4 sm:$0xff]  }
 0x6d6   :  { %6572 = vmatprep.subr.bf16.mxu0 %v12736_v46  ;;  %6615 = vmatprep.subr.bf16.mxu1 %v12738_v30  ;;  %v12807_v47 = vld [vmem:[#allocation4 + $0x12c] ss:$24 sps:$4 sm:$0xff]   ;;  %v12802_v63 = vld [vmem:[#allocation4 + $0x720] ss:$24 sps:$4 sm:$0xff]  }
 0x6d7   :  { %v12805_v46 = vld [vmem:[#allocation4 + $0x128] ss:$24 sps:$4 sm:$0xff]   ;;  %v12810_v30 = vld [vmem:[#allocation4 + $0x6f4] ss:$24 sps:$4 sm:$0xff]   ;;  %v14651_v44 = vld [vmem:[#allocation4 + $0x704] ss:$24 sps:$4 sm:$0xff]  }
 0x6d8   :  { %15702 = vst [vmem:[#allocation55_spill] sm:$0xff] %v14651_v44  ;;  %v14671_v36 = vld [vmem:[#allocation4 + $0x6a4] ss:$24 sps:$4 sm:$0xff]  }
 0x6d9   :  { %6573 = vmatpush1.bf16.msra.mxu0 %v12740_v35  ;;  %6616 = vmatpush1.bf16.msra.mxu1 %v12741_v53  ;;  %v12813_v35 = vld [vmem:[#allocation4 + $0xfc] ss:$24 sps:$4 sm:$0xff]   ;;  %v12808_v53 = vld [vmem:[#allocation4 + $0x6f0] ss:$24 sps:$4 sm:$0xff]   ;;  %15706 = vst [vmem:[#allocation59_spill] sm:$0xff] %v14671_v36 }
 0x6da   :  { %6574 = vmatprep.subr.bf16.mxu0 %v12742_v39  ;;  %6617 = vmatprep.subr.bf16.mxu1 %v12744_v14  ;;  %v12811_v39 = vld [vmem:[#allocation4 + $0xf8] ss:$24 sps:$4 sm:$0xff]   ;;  %v12816_v14 = vld [vmem:[#allocation4 + $0x6c4] ss:$24 sps:$4 sm:$0xff]  }
 0x6dd   :  { %6575 = vmatpush1.bf16.msra.mxu0 %v12746_v38  ;;  %6618 = vmatpush1.bf16.msra.mxu1 %v12747_v12  ;;  %v12819_v38 = vld [vmem:[#allocation4 + $0xcc] ss:$24 sps:$4 sm:$0xff]   ;;  %v12814_v12 = vld [vmem:[#allocation4 + $0x6c0] ss:$24 sps:$4 sm:$0xff]  }
 0x6de   :  { %6576 = vmatprep.subr.bf16.mxu0 %v12748_v33  ;;  %6619 = vmatprep.subr.bf16.mxu1 %v12750_v31  ;;  %v12817_v33 = vld [vmem:[#allocation4 + $0xc8] ss:$24 sps:$4 sm:$0xff]   ;;  %v12822_v31 = vld [vmem:[#allocation4 + $0x694] ss:$24 sps:$4 sm:$0xff]  }
 0x6e1   :  { %6577 = vmatpush2.bf16.msra.mxu0 %v12752_v8  ;;  %6620 = vmatpush2.bf16.msra.mxu1 %v12753_v45  ;;  %v12825_v8 = vld [vmem:[#allocation4 + $0x9c] ss:$24 sps:$4 sm:$0xff]   ;;  %v12820_v45 = vld [vmem:[#allocation4 + $0x690] ss:$24 sps:$4 sm:$0xff]  }
 0x6e2   :  { %6578 = vmatprep.subr.bf16.mxu0 %v12754_v0  ;;  %6621 = vmatprep.subr.bf16.mxu1 %v12756_v34  ;;  %v12823_v0 = vld [vmem:[#allocation4 + $0x98] ss:$24 sps:$4 sm:$0xff]   ;;  %v12828_v34 = vld [vmem:[#allocation4 + $0x664] ss:$24 sps:$4 sm:$0xff]  }
 0x6e5   :  { %6579 = vmatpush2.bf16.msra.mxu0 %v12758_v41  ;;  %6622 = vmatpush2.bf16.msra.mxu1 %v12759_v3  ;;  %v12831_v41 = vld [vmem:[#allocation4 + $0x6c] ss:$24 sps:$4 sm:$0xff]   ;;  %v12826_v3 = vld [vmem:[#allocation4 + $0x660] ss:$24 sps:$4 sm:$0xff]  }
 0x6e6   :  { %6580 = vmatprep.subr.bf16.mxu0 %v12760_v16  ;;  %6623 = vmatprep.subr.bf16.mxu1 %v12762_v51  ;;  %v12829_v16 = vld [vmem:[#allocation4 + $0x68] ss:$24 sps:$4 sm:$0xff]   ;;  %v12834_v51 = vld [vmem:[#allocation4 + $0x634] ss:$24 sps:$4 sm:$0xff]  }
 0x6e9   :  { %6581 = vmatpush2.bf16.msra.mxu0 %v12764_v1  ;;  %6624 = vmatpush2.bf16.msra.mxu1 %v12765_v42  ;;  %v12837_v1 = vld [vmem:[#allocation4 + $0x3c] ss:$24 sps:$4 sm:$0xff]   ;;  %v12832_v42 = vld [vmem:[#allocation4 + $0x630] ss:$24 sps:$4 sm:$0xff]  }
 0x6ea   :  { %6582 = vmatprep.subr.bf16.mxu0 %v12766_v49  ;;  %6625 = vmatprep.subr.bf16.mxu1 %v12768_v18  ;;  %v12835_v49 = vld [vmem:[#allocation4 + $0x38] ss:$24 sps:$4 sm:$0xff]   ;;  %v12840_v18 = vld [vmem:[#allocation4 + $0x604] ss:$24 sps:$4 sm:$0xff]  }
 0x6ed   :  { %6583 = vmatpush2.bf16.msra.mxu0 %v12770_v21  ;;  %6626 = vmatpush2.bf16.msra.mxu1 %v12771_v27  ;;  %v12843_v21 = vld [vmem:[#allocation4 + $0xc] ss:$24 sps:$4 sm:$0xff]   ;;  %v12838_v27 = vld [vmem:[#allocation4 + $0x600] ss:$24 sps:$4 sm:$0xff]  }
 0x6ee   :  { %6584 = vmatprep.subr.bf16.mxu0 %v12772_v50  ;;  %6627 = vmatprep.subr.bf16.mxu1 %v12774_v20  ;;  %v12841_v50 = vld [vmem:[#allocation4 + $0x8] ss:$24 sps:$4 sm:$0xff]   ;;  %v12846_v20 = vld [vmem:[#allocation4 + $0x8d4] ss:$24 sps:$4 sm:$0xff]  }
 0x6f1   :  { %6585 = vmatpush2.bf16.msra.mxu0 %v12776_v22  ;;  %6628 = vmatpush2.bf16.msra.mxu1 %v12777_v54  ;;  %v12849_v22 = vld [vmem:[#allocation4 + $0x2dc] ss:$24 sps:$4 sm:$0xff]   ;;  %v12844_v54 = vld [vmem:[#allocation4 + $0x8d0] ss:$24 sps:$4 sm:$0xff]  }
 0x6f2   :  { %6586 = vmatprep.subr.bf16.mxu0 %v12778_v32  ;;  %6629 = vmatprep.subr.bf16.mxu1 %v12780_v15  ;;  %v12847_v32 = vld [vmem:[#allocation4 + $0x2d8] ss:$24 sps:$4 sm:$0xff]   ;;  %v12852_v15 = vld [vmem:[#allocation4 + $0x8a4] ss:$24 sps:$4 sm:$0xff]  }
 0x6f5   :  { %6587 = vmatpush2.bf16.msra.mxu0 %v12782_v2  ;;  %6630 = vmatpush2.bf16.msra.mxu1 %v12783_v28  ;;  %v12855_v2 = vld [vmem:[#allocation4 + $0x2ac] ss:$24 sps:$4 sm:$0xff]   ;;  %v12850_v28 = vld [vmem:[#allocation4 + $0x8a0] ss:$24 sps:$4 sm:$0xff]  }
 0x6f6   :  { %6588 = vmatprep.subr.bf16.mxu0 %v12784_v19  ;;  %6631 = vmatprep.subr.bf16.mxu1 %v12786_v29  ;;  %v12853_v19 = vld [vmem:[#allocation4 + $0x2a8] ss:$24 sps:$4 sm:$0xff]   ;;  %v12858_v29 = vld [vmem:[#allocation4 + $0x874] ss:$24 sps:$4 sm:$0xff]  }
 0x6f9   :  { %6589 = vmatpush2.bf16.msra.mxu0 %v12788_v26  ;;  %6632 = vmatpush2.bf16.msra.mxu1 %v12789_v13  ;;  %v12861_v26 = vld [vmem:[#allocation4 + $0x27c] ss:$24 sps:$4 sm:$0xff]   ;;  %v12856_v13 = vld [vmem:[#allocation4 + $0x870] ss:$24 sps:$4 sm:$0xff]  }
 0x6fa   :  { %6590 = vmatprep.subr.bf16.mxu0 %v12790_v40  ;;  %6633 = vmatprep.subr.bf16.mxu1 %v12792_v7  ;;  %v12859_v40 = vld [vmem:[#allocation4 + $0x278] ss:$24 sps:$4 sm:$0xff]   ;;  %v12864_v7 = vld [vmem:[#allocation4 + $0x844] ss:$24 sps:$4 sm:$0xff]  }
 0x6fd   :  { %6591 = vmatpush2.bf16.msra.mxu0 %v12794_v52  ;;  %6634 = vmatpush2.bf16.msra.mxu1 %v12795_v11  ;;  %v12867_v52 = vld [vmem:[#allocation4 + $0x24c] ss:$24 sps:$4 sm:$0xff]   ;;  %v12862_v11 = vld [vmem:[#allocation4 + $0x840] ss:$24 sps:$4 sm:$0xff]  }
 0x6fe   :  { %6646 = vmatprep.subr.bf16.mxu0 %v12798_v48  ;;  %6689 = vmatprep.subr.bf16.mxu1 %v12801_v6  ;;  %v12865_v48 = vld [vmem:[#allocation4 + $0x248] ss:$24 sps:$4 sm:$0xff]   ;;  %v12870_v6 = vld [vmem:[#allocation4 + $0x814] ss:$24 sps:$4 sm:$0xff]  }
 0x700   :  { %6593 = vmatmul.mubr.bf16.vlgmr.msra.gmra.mxu0 %v14438_v58  ;;  %6636 = vmatmul.mubr.bf16.vlgmr.msra.gmra.mxu1 %v14442_v17 }
 0x701   :  { %6647 = vmatpush1.bf16.msra.mxu0 %v12796_v10  ;;  %6690 = vmatpush1.bf16.msra.mxu1 %v12799_v9  ;;  %v12873_v10 = vld [vmem:[#allocation4 + $0x21c] ss:$24 sps:$4 sm:$0xff]   ;;  %v12868_v9 = vld [vmem:[#allocation4 + $0x810] ss:$24 sps:$4 sm:$0xff]  }
 0x702   :  { %6648 = vmatprep.subr.bf16.mxu0 %v12804_v61  ;;  %6691 = vmatprep.subr.bf16.mxu1 %v12807_v47  ;;  %v12871_v61 = vld [vmem:[#allocation4 + $0x218] ss:$24 sps:$4 sm:$0xff]   ;;  %v12876_v47 = vld [vmem:[#allocation4 + $0x7e4] ss:$24 sps:$4 sm:$0xff]  }
 0x703   :  { %6678 = vmatprep.mubr.bf16.mxu0 %v14446_v25  ;;  %6721 = vmatprep.mubr.bf16.mxu1 %v14428_v23 }
 0x705   :  { %6649 = vmatpush1.bf16.msra.mxu0 %v12802_v63  ;;  %6692 = vmatpush1.bf16.msra.mxu1 %v12805_v46  ;;  %v12879_v63 = vld [vmem:[#allocation4 + $0x1ec] ss:$24 sps:$4 sm:$0xff]   ;;  %v12874_v46 = vld [vmem:[#allocation4 + $0x7e0] ss:$24 sps:$4 sm:$0xff]  }
 0x706   :  { %6650 = vmatprep.subr.bf16.mxu0 %v12810_v30  ;;  %6693 = vmatprep.subr.bf16.mxu1 %v12813_v35  ;;  %v12877_v30 = vld [vmem:[#allocation4 + $0x1e8] ss:$24 sps:$4 sm:$0xff]   ;;  %v12882_v35 = vld [vmem:[#allocation4 + $0x7b4] ss:$24 sps:$4 sm:$0xff]  }
 0x709   :  { %6651 = vmatpush1.bf16.msra.mxu0 %v12808_v53  ;;  %6694 = vmatpush1.bf16.msra.mxu1 %v12811_v39  ;;  %v12885_v53 = vld [vmem:[#allocation4 + $0x1bc] ss:$24 sps:$4 sm:$0xff]   ;;  %v12880_v39 = vld [vmem:[#allocation4 + $0x7b0] ss:$24 sps:$4 sm:$0xff]  }
 0x70a   :  { %6652 = vmatprep.subr.bf16.mxu0 %v12816_v14  ;;  %6695 = vmatprep.subr.bf16.mxu1 %v12819_v38  ;;  %v12883_v14 = vld [vmem:[#allocation4 + $0x1b8] ss:$24 sps:$4 sm:$0xff]   ;;  %v12888_v38 = vld [vmem:[#allocation4 + $0x784] ss:$24 sps:$4 sm:$0xff]  }
 0x70d   :  { %6653 = vmatpush1.bf16.msra.mxu0 %v12814_v12  ;;  %6696 = vmatpush1.bf16.msra.mxu1 %v12817_v33  ;;  %v12891_v12 = vld [vmem:[#allocation4 + $0x18c] ss:$24 sps:$4 sm:$0xff]   ;;  %v12886_v33 = vld [vmem:[#allocation4 + $0x780] ss:$24 sps:$4 sm:$0xff]  }
 0x70e   :  { %6654 = vmatprep.subr.bf16.mxu0 %v12822_v31  ;;  %6697 = vmatprep.subr.bf16.mxu1 %v12825_v8  ;;  %v12889_v31 = vld [vmem:[#allocation4 + $0x188] ss:$24 sps:$4 sm:$0xff]   ;;  %v12894_v8 = vld [vmem:[#allocation4 + $0x45c] ss:$24 sps:$4 sm:$0xff]  }
 0x711   :  { %6655 = vmatpush1.bf16.msra.mxu0 %v12820_v45  ;;  %6698 = vmatpush1.bf16.msra.mxu1 %v12823_v0  ;;  %v12897_v45 = vld [vmem:[#allocation4 + $0x75c] ss:$24 sps:$4 sm:$0xff]   ;;  %v12892_v0 = vld [vmem:[#allocation4 + $0x458] ss:$24 sps:$4 sm:$0xff]  }
 0x712   :  { %6656 = vmatprep.subr.bf16.mxu0 %v12828_v34  ;;  %6699 = vmatprep.subr.bf16.mxu1 %v12831_v41  ;;  %v12895_v34 = vld [vmem:[#allocation4 + $0x758] ss:$24 sps:$4 sm:$0xff]   ;;  %v12900_v41 = vld [vmem:[#allocation4 + $0x42c] ss:$24 sps:$4 sm:$0xff]  }
 0x715   :  { %6657 = vmatpush1.bf16.msra.mxu0 %v12826_v3  ;;  %6700 = vmatpush1.bf16.msra.mxu1 %v12829_v16  ;;  %v12903_v3 = vld [vmem:[#allocation4 + $0x72c] ss:$24 sps:$4 sm:$0xff]   ;;  %v12898_v16 = vld [vmem:[#allocation4 + $0x428] ss:$24 sps:$4 sm:$0xff]  }
 0x716   :  { %6658 = vmatprep.subr.bf16.mxu0 %v12834_v51  ;;  %6701 = vmatprep.subr.bf16.mxu1 %v12837_v1  ;;  %v12901_v51 = vld [vmem:[#allocation4 + $0x728] ss:$24 sps:$4 sm:$0xff]   ;;  %v12906_v1 = vld [vmem:[#allocation4 + $0x3fc] ss:$24 sps:$4 sm:$0xff]  }
 0x719   :  { %6659 = vmatpush1.bf16.msra.mxu0 %v12832_v42  ;;  %6702 = vmatpush1.bf16.msra.mxu1 %v12835_v49  ;;  %v12909_v42 = vld [vmem:[#allocation4 + $0x6fc] ss:$24 sps:$4 sm:$0xff]   ;;  %v12904_v49 = vld [vmem:[#allocation4 + $0x3f8] ss:$24 sps:$4 sm:$0xff]  }
 0x71a   :  { %6660 = vmatprep.subr.bf16.mxu0 %v12840_v18  ;;  %6703 = vmatprep.subr.bf16.mxu1 %v12843_v21  ;;  %v12907_v18 = vld [vmem:[#allocation4 + $0x6f8] ss:$24 sps:$4 sm:$0xff]   ;;  %v12912_v21 = vld [vmem:[#allocation4 + $0x3cc] ss:$24 sps:$4 sm:$0xff]  }
 0x71d   :  { %6661 = vmatpush1.bf16.msra.mxu0 %v12838_v27  ;;  %6704 = vmatpush1.bf16.msra.mxu1 %v12841_v50  ;;  %v12915_v27 = vld [vmem:[#allocation4 + $0x6cc] ss:$24 sps:$4 sm:$0xff]   ;;  %v12910_v50 = vld [vmem:[#allocation4 + $0x3c8] ss:$24 sps:$4 sm:$0xff]  }
 0x71e   :  { %6662 = vmatprep.subr.bf16.mxu0 %v12846_v20  ;;  %6705 = vmatprep.subr.bf16.mxu1 %v12849_v22  ;;  %v12913_v20 = vld [vmem:[#allocation4 + $0x6c8] ss:$24 sps:$4 sm:$0xff]   ;;  %v12918_v22 = vld [vmem:[#allocation4 + $0x39c] ss:$24 sps:$4 sm:$0xff]  }
 0x721   :  { %6663 = vmatpush2.bf16.msra.mxu0 %v12844_v54  ;;  %6706 = vmatpush2.bf16.msra.mxu1 %v12847_v32  ;;  %v12921_v54 = vld [vmem:[#allocation4 + $0x69c] ss:$24 sps:$4 sm:$0xff]   ;;  %v12916_v32 = vld [vmem:[#allocation4 + $0x398] ss:$24 sps:$4 sm:$0xff]  }
 0x722   :  { %6664 = vmatprep.subr.bf16.mxu0 %v12852_v15  ;;  %6707 = vmatprep.subr.bf16.mxu1 %v12855_v2  ;;  %v12919_v15 = vld [vmem:[#allocation4 + $0x698] ss:$24 sps:$4 sm:$0xff]   ;;  %v12924_v2 = vld [vmem:[#allocation4 + $0x36c] ss:$24 sps:$4 sm:$0xff]  }
 0x725   :  { %6665 = vmatpush2.bf16.msra.mxu0 %v12850_v28  ;;  %6708 = vmatpush2.bf16.msra.mxu1 %v12853_v19  ;;  %v12927_v28 = vld [vmem:[#allocation4 + $0x66c] ss:$24 sps:$4 sm:$0xff]   ;;  %v12922_v19 = vld [vmem:[#allocation4 + $0x368] ss:$24 sps:$4 sm:$0xff]  }
 0x726   :  { %6666 = vmatprep.subr.bf16.mxu0 %v12858_v29  ;;  %6709 = vmatprep.subr.bf16.mxu1 %v12861_v26  ;;  %v12925_v29 = vld [vmem:[#allocation4 + $0x668] ss:$24 sps:$4 sm:$0xff]   ;;  %v12930_v26 = vld [vmem:[#allocation4 + $0x33c] ss:$24 sps:$4 sm:$0xff]  }
 0x729   :  { %6667 = vmatpush2.bf16.msra.mxu0 %v12856_v13  ;;  %6710 = vmatpush2.bf16.msra.mxu1 %v12859_v40  ;;  %v12933_v13 = vld [vmem:[#allocation4 + $0x63c] ss:$24 sps:$4 sm:$0xff]   ;;  %v12928_v40 = vld [vmem:[#allocation4 + $0x338] ss:$24 sps:$4 sm:$0xff]  }
 0x72a   :  { %6668 = vmatprep.subr.bf16.mxu0 %v12864_v7  ;;  %6711 = vmatprep.subr.bf16.mxu1 %v12867_v52  ;;  %v12931_v7 = vld [vmem:[#allocation4 + $0x638] ss:$24 sps:$4 sm:$0xff]   ;;  %v12936_v52 = vld [vmem:[#allocation4 + $0x30c] ss:$24 sps:$4 sm:$0xff]  }
 0x72d   :  { %6669 = vmatpush2.bf16.msra.mxu0 %v12862_v11  ;;  %6712 = vmatpush2.bf16.msra.mxu1 %v12865_v48  ;;  %v12939_v11 = vld [vmem:[#allocation4 + $0x60c] ss:$24 sps:$4 sm:$0xff]   ;;  %v12934_v48 = vld [vmem:[#allocation4 + $0x308] ss:$24 sps:$4 sm:$0xff]  }
 0x72e   :  { %6670 = vmatprep.subr.bf16.mxu0 %v12870_v6  ;;  %6713 = vmatprep.subr.bf16.mxu1 %v12873_v10  ;;  %v12937_v6 = vld [vmem:[#allocation4 + $0x608] ss:$24 sps:$4 sm:$0xff]   ;;  %v12942_v10 = vld [vmem:[#allocation4 + $0x5dc] ss:$24 sps:$4 sm:$0xff]  }
 0x731   :  { %6671 = vmatpush2.bf16.msra.mxu0 %v12868_v9  ;;  %6714 = vmatpush2.bf16.msra.mxu1 %v12871_v61  ;;  %v12945_v9 = vld [vmem:[#allocation4 + $0x8dc] ss:$24 sps:$4 sm:$0xff]   ;;  %v12940_v61 = vld [vmem:[#allocation4 + $0x5d8] ss:$24 sps:$4 sm:$0xff]  }
 0x732   :  { %6672 = vmatprep.subr.bf16.mxu0 %v12876_v47  ;;  %6715 = vmatprep.subr.bf16.mxu1 %v12879_v63  ;;  %v12943_v47 = vld [vmem:[#allocation4 + $0x8d8] ss:$24 sps:$4 sm:$0xff]   ;;  %v12948_v63 = vld [vmem:[#allocation4 + $0x5ac] ss:$24 sps:$4 sm:$0xff]  }
 0x735   :  { %6673 = vmatpush2.bf16.msra.mxu0 %v12874_v46  ;;  %6716 = vmatpush2.bf16.msra.mxu1 %v12877_v30  ;;  %v12951_v46 = vld [vmem:[#allocation4 + $0x8ac] ss:$24 sps:$4 sm:$0xff]   ;;  %v12946_v30 = vld [vmem:[#allocation4 + $0x5a8] ss:$24 sps:$4 sm:$0xff]  }
 0x736   :  { %6674 = vmatprep.subr.bf16.mxu0 %v12882_v35  ;;  %6717 = vmatprep.subr.bf16.mxu1 %v12885_v53  ;;  %v12949_v35 = vld [vmem:[#allocation4 + $0x8a8] ss:$24 sps:$4 sm:$0xff]   ;;  %v12954_v53 = vld [vmem:[#allocation4 + $0x57c] ss:$24 sps:$4 sm:$0xff]  }
 0x739   :  { %6675 = vmatpush2.bf16.msra.mxu0 %v12880_v39  ;;  %6718 = vmatpush2.bf16.msra.mxu1 %v12883_v14  ;;  %v12957_v39 = vld [vmem:[#allocation4 + $0x87c] ss:$24 sps:$4 sm:$0xff]   ;;  %v12952_v14 = vld [vmem:[#allocation4 + $0x578] ss:$24 sps:$4 sm:$0xff]  }
 0x73a   :  { %6676 = vmatprep.subr.bf16.mxu0 %v12888_v38  ;;  %6719 = vmatprep.subr.bf16.mxu1 %v12891_v12  ;;  %v12955_v38 = vld [vmem:[#allocation4 + $0x878] ss:$24 sps:$4 sm:$0xff]   ;;  %v12960_v12 = vld [vmem:[#allocation4 + $0x54c] ss:$24 sps:$4 sm:$0xff]  }
 0x73d   :  { %6677 = vmatpush2.bf16.msra.mxu0 %v12886_v33  ;;  %6720 = vmatpush2.bf16.msra.mxu1 %v12889_v31  ;;  %v12963_v33 = vld [vmem:[#allocation4 + $0x84c] ss:$24 sps:$4 sm:$0xff]   ;;  %v12958_v31 = vld [vmem:[#allocation4 + $0x548] ss:$24 sps:$4 sm:$0xff]  }
 0x73e   :  { %6732 = vmatprep.subr.bf16.mxu0 %v12894_v8  ;;  %6775 = vmatprep.subr.bf16.mxu1 %v12897_v45  ;;  %v12961_v8 = vld [vmem:[#allocation4 + $0x848] ss:$24 sps:$4 sm:$0xff]   ;;  %v12966_v45 = vld [vmem:[#allocation4 + $0x51c] ss:$24 sps:$4 sm:$0xff]  }
 0x740   :  { %6679 = vmatmul.mubr.bf16.vlgmr.msra.gmra.mxu0 %v14454_v5  ;;  %6722 = vmatmul.mubr.bf16.vlgmr.msra.gmra.mxu1 %v14438_v58 }
 0x741   :  { %6733 = vmatpush1.bf16.msra.mxu0 %v12892_v0  ;;  %6776 = vmatpush1.bf16.msra.mxu1 %v12895_v34  ;;  %v12969_v0 = vld [vmem:[#allocation4 + $0x81c] ss:$24 sps:$4 sm:$0xff]   ;;  %v14515_v34 = vld [vmem:[#allocation4 + $0x518] ss:$24 sps:$4 sm:$0xff]  }
 0x742   :  { %6734 = vmatprep.subr.bf16.mxu0 %v12900_v41  ;;  %6777 = vmatprep.subr.bf16.mxu1 %v12903_v3  ;;  %v12967_v41 = vld [vmem:[#allocation4 + $0x818] ss:$24 sps:$4 sm:$0xff]   ;;  %v14517_v3 = vld [vmem:[#allocation4 + $0x4ec] ss:$24 sps:$4 sm:$0xff]  }
 0x743   :  { %6764 = vmatprep.mubr.bf16.mxu0 %v14432_v24  ;;  %6807 = vmatprep.mubr.bf16.mxu1 %v14446_v25 }
 0x745   :  { %6735 = vmatpush1.bf16.msra.mxu0 %v12898_v16  ;;  %6778 = vmatpush1.bf16.msra.mxu1 %v12901_v51  ;;  %v12975_v16 = vld [vmem:[#allocation4 + $0x7ec] ss:$24 sps:$4 sm:$0xff]   ;;  %v14519_v51 = vld [vmem:[#allocation4 + $0x4e8] ss:$24 sps:$4 sm:$0xff]  }
 0x746   :  { %6736 = vmatprep.subr.bf16.mxu0 %v12906_v1  ;;  %6779 = vmatprep.subr.bf16.mxu1 %v12909_v42  ;;  %v12973_v1 = vld [vmem:[#allocation4 + $0x7e8] ss:$24 sps:$4 sm:$0xff]   ;;  %v14522_v42 = vld [vmem:[#allocation4 + $0x4bc] ss:$24 sps:$4 sm:$0xff]  }
 0x749   :  { %6737 = vmatpush1.bf16.msra.mxu0 %v12904_v49  ;;  %6780 = vmatpush1.bf16.msra.mxu1 %v12907_v18  ;;  %v12981_v49 = vld [vmem:[#allocation4 + $0x7bc] ss:$24 sps:$4 sm:$0xff]   ;;  %v14525_v18 = vld [vmem:[#allocation4 + $0x4b8] ss:$24 sps:$4 sm:$0xff]  }
 0x74a   :  { %6738 = vmatprep.subr.bf16.mxu0 %v12912_v21  ;;  %6781 = vmatprep.subr.bf16.mxu1 %v12915_v27  ;;  %v12979_v21 = vld [vmem:[#allocation4 + $0x7b8] ss:$24 sps:$4 sm:$0xff]   ;;  %v14528_v27 = vld [vmem:[#allocation4 + $0x48c] ss:$24 sps:$4 sm:$0xff]  }
 0x74d   :  { %6739 = vmatpush1.bf16.msra.mxu0 %v12910_v50  ;;  %6782 = vmatpush1.bf16.msra.mxu1 %v12913_v20  ;;  %v12987_v50 = vld [vmem:[#allocation4 + $0x78c] ss:$24 sps:$4 sm:$0xff]   ;;  %v14531_v20 = vld [vmem:[#allocation4 + $0x488] ss:$24 sps:$4 sm:$0xff]  }
 0x74e   :  { %6740 = vmatprep.subr.bf16.mxu0 %v12918_v22  ;;  %6783 = vmatprep.subr.bf16.mxu1 %v12921_v54  ;;  %v12985_v22 = vld [vmem:[#allocation4 + $0x788] ss:$24 sps:$4 sm:$0xff]   ;;  %v14534_v54 = vld [vmem:[#allocation4 + $0x164] ss:$24 sps:$4 sm:$0xff]  }
 0x751   :  { %6741 = vmatpush1.bf16.msra.mxu0 %v12916_v32  ;;  %6784 = vmatpush1.bf16.msra.mxu1 %v12919_v15  ;;  %v12993_v32 = vld [vmem:[#allocation4 + $0x464] ss:$24 sps:$4 sm:$0xff]   ;;  %v14538_v15 = vld [vmem:[#allocation4 + $0x160] ss:$24 sps:$4 sm:$0xff]  }
 0x752   :  { %6742 = vmatprep.subr.bf16.mxu0 %v12924_v2  ;;  %6785 = vmatprep.subr.bf16.mxu1 %v12927_v28  ;;  %v12991_v2 = vld [vmem:[#allocation4 + $0x460] ss:$24 sps:$4 sm:$0xff]   ;;  %v14541_v28 = vld [vmem:[#allocation4 + $0x134] ss:$24 sps:$4 sm:$0xff]  }
 0x755   :  { %6743 = vmatpush1.bf16.msra.mxu0 %v12922_v19  ;;  %6786 = vmatpush1.bf16.msra.mxu1 %v12925_v29  ;;  %v12999_v19 = vld [vmem:[#allocation4 + $0x434] ss:$24 sps:$4 sm:$0xff]   ;;  %v14546_v29 = vld [vmem:[#allocation4 + $0x130] ss:$24 sps:$4 sm:$0xff]  }
 0x756   :  { %6744 = vmatprep.subr.bf16.mxu0 %v12930_v26  ;;  %6787 = vmatprep.subr.bf16.mxu1 %v12933_v13  ;;  %v12997_v26 = vld [vmem:[#allocation4 + $0x430] ss:$24 sps:$4 sm:$0xff]   ;;  %v14549_v13 = vld [vmem:[#allocation4 + $0x104] ss:$24 sps:$4 sm:$0xff]  }
 0x759   :  { %6745 = vmatpush1.bf16.msra.mxu0 %v12928_v40  ;;  %6788 = vmatpush1.bf16.msra.mxu1 %v12931_v7  ;;  %v13005_v40 = vld [vmem:[#allocation4 + $0x404] ss:$24 sps:$4 sm:$0xff]   ;;  %v14554_v7 = vld [vmem:[#allocation4 + $0x100] ss:$24 sps:$4 sm:$0xff]  }
 0x75a   :  { %6746 = vmatprep.subr.bf16.mxu0 %v12936_v52  ;;  %6789 = vmatprep.subr.bf16.mxu1 %v12939_v11  ;;  %v13003_v52 = vld [vmem:[#allocation4 + $0x400] ss:$24 sps:$4 sm:$0xff]   ;;  %v14557_v11 = vld [vmem:[#allocation4 + $0xd4] ss:$24 sps:$4 sm:$0xff]  }
 0x75d   :  { %6747 = vmatpush1.bf16.msra.mxu0 %v12934_v48  ;;  %6790 = vmatpush1.bf16.msra.mxu1 %v12937_v6  ;;  %v13011_v48 = vld [vmem:[#allocation4 + $0x3d4] ss:$24 sps:$4 sm:$0xff]   ;;  %v14560_v6 = vld [vmem:[#allocation4 + $0xd0] ss:$24 sps:$4 sm:$0xff]  }
 0x75e   :  { %6748 = vmatprep.subr.bf16.mxu0 %v12942_v10  ;;  %6791 = vmatprep.subr.bf16.mxu1 %v12945_v9  ;;  %v13017_v10 = vld [vmem:[#allocation4 + $0x3a4] ss:$24 sps:$4 sm:$0xff]   ;;  %v14566_v9 = vld [vmem:[#allocation4 + $0xa0] ss:$24 sps:$4 sm:$0xff]  }
 0x761   :  { %6749 = vmatpush2.bf16.msra.mxu0 %v12940_v61  ;;  %6792 = vmatpush2.bf16.msra.mxu1 %v12943_v47  ;;  %v13015_v61 = vld [vmem:[#allocation4 + $0x3a0] ss:$24 sps:$4 sm:$0xff]   ;;  %v14569_v47 = vld [vmem:[#allocation4 + $0x74] ss:$24 sps:$4 sm:$0xff]  }
 0x762   :  { %6750 = vmatprep.subr.bf16.mxu0 %v12948_v63  ;;  %6793 = vmatprep.subr.bf16.mxu1 %v12951_v46  ;;  %v13023_v63 = vld [vmem:[#allocation4 + $0x374] ss:$24 sps:$4 sm:$0xff]   ;;  %v14572_v46 = vld [vmem:[#allocation4 + $0x70] ss:$24 sps:$4 sm:$0xff]  }
 0x765   :  { %6751 = vmatpush2.bf16.msra.mxu0 %v12946_v30  ;;  %6794 = vmatpush2.bf16.msra.mxu1 %v12949_v35  ;;  %v13021_v30 = vld [vmem:[#allocation4 + $0x370] ss:$24 sps:$4 sm:$0xff]   ;;  %v14575_v35 = vld [vmem:[#allocation4 + $0x44] ss:$24 sps:$4 sm:$0xff]  }
 0x766   :  { %6752 = vmatprep.subr.bf16.mxu0 %v12954_v53  ;;  %6795 = vmatprep.subr.bf16.mxu1 %v12957_v39  ;;  %v13029_v53 = vld [vmem:[#allocation4 + $0x344] ss:$24 sps:$4 sm:$0xff]   ;;  %v14578_v39 = vld [vmem:[#allocation4 + $0x40] ss:$24 sps:$4 sm:$0xff]  }
 0x769   :  { %6753 = vmatpush2.bf16.msra.mxu0 %v12952_v14  ;;  %6796 = vmatpush2.bf16.msra.mxu1 %v12955_v38  ;;  %v13027_v14 = vld [vmem:[#allocation4 + $0x340] ss:$24 sps:$4 sm:$0xff]   ;;  %v14581_v38 = vld [vmem:[#allocation4 + $0x14] ss:$24 sps:$4 sm:$0xff]  }
 0x76a   :  { %6754 = vmatprep.subr.bf16.mxu0 %v12960_v12  ;;  %6797 = vmatprep.subr.bf16.mxu1 %v12963_v33  ;;  %v13035_v12 = vld [vmem:[#allocation4 + $0x314] ss:$24 sps:$4 sm:$0xff]   ;;  %v14584_v33 = vld [vmem:[#allocation4 + $0x10] ss:$24 sps:$4 sm:$0xff]  }
 0x76d   :  { %6755 = vmatpush2.bf16.msra.mxu0 %v12958_v31  ;;  %6798 = vmatpush2.bf16.msra.mxu1 %v12961_v8  ;;  %v13033_v31 = vld [vmem:[#allocation4 + $0x310] ss:$24 sps:$4 sm:$0xff]   ;;  %v14587_v8 = vld [vmem:[#allocation4 + $0x2e4] ss:$24 sps:$4 sm:$0xff]  }
 0x76e   :  { %6756 = vmatprep.subr.bf16.mxu0 %v12966_v45  ;;  %6799 = vmatprep.subr.bf16.mxu1 %v12969_v0  ;;  %v13041_v45 = vld [vmem:[#allocation4 + $0x5e4] ss:$24 sps:$4 sm:$0xff]   ;;  %v14590_v0 = vld [vmem:[#allocation4 + $0x2e0] ss:$24 sps:$4 sm:$0xff]  }
 0x771   :  { %6757 = vmatpush2.bf16.msra.mxu0 %v14515_v34  ;;  %6800 = vmatpush2.bf16.msra.mxu1 %v12967_v41  ;;  %v13039_v41 = vld [vmem:[#allocation4 + $0x5e0] ss:$24 sps:$4 sm:$0xff]  }
 0x772   :  { %6758 = vmatprep.subr.bf16.mxu0 %v14517_v3  ;;  %6801 = vmatprep.subr.bf16.mxu1 %v12975_v16  ;;  %v14593_v16 = vld [vmem:[#allocation4 + $0x2b4] ss:$24 sps:$4 sm:$0xff]  }
 0x775   :  { %6759 = vmatpush2.bf16.msra.mxu0 %v14519_v51  ;;  %6802 = vmatpush2.bf16.msra.mxu1 %v12973_v1  ;;  %v13047_v1 = vld [vmem:[#allocation4 + $0x5b4] ss:$24 sps:$4 sm:$0xff]  }
 0x776   :  { %6760 = vmatprep.subr.bf16.mxu0 %v14522_v42  ;;  %6803 = vmatprep.subr.bf16.mxu1 %v12981_v49  ;;  %v14596_v49 = vld [vmem:[#allocation4 + $0x2b0] ss:$24 sps:$4 sm:$0xff]  }
 0x779   :  { %6761 = vmatpush2.bf16.msra.mxu0 %v14525_v18  ;;  %6804 = vmatpush2.bf16.msra.mxu1 %v12979_v21  ;;  %v13045_v21 = vld [vmem:[#allocation4 + $0x5b0] ss:$24 sps:$4 sm:$0xff]  }
 0x77a   :  { %6762 = vmatprep.subr.bf16.mxu0 %v14528_v27  ;;  %6805 = vmatprep.subr.bf16.mxu1 %v12987_v50  ;;  %v14599_v50 = vld [vmem:[#allocation4 + $0x284] ss:$24 sps:$4 sm:$0xff]  }
 0x77d   :  { %6763 = vmatpush2.bf16.msra.mxu0 %v14531_v20  ;;  %6806 = vmatpush2.bf16.msra.mxu1 %v12985_v22  ;;  %v13053_v22 = vld [vmem:[#allocation4 + $0x584] ss:$24 sps:$4 sm:$0xff]  }
 0x77e   :  { %6818 = vmatprep.subr.bf16.mxu0 %v14534_v54  ;;  %6861 = vmatprep.subr.bf16.mxu1 %v12993_v32  ;;  %v14602_v32 = vld [vmem:[#allocation4 + $0x280] ss:$24 sps:$4 sm:$0xff]  }
 0x780   :  { %6765 = vmatmul.mubr.bf16.vlgmr.msra.gmra.mxu0 %v14442_v17  ;;  %6808 = vmatmul.mubr.bf16.vlgmr.msra.gmra.mxu1 %v14454_v5 }
 0x781   :  { %6819 = vmatpush1.bf16.msra.mxu0 %v14538_v15  ;;  %6862 = vmatpush1.bf16.msra.mxu1 %v12991_v2  ;;  %v13051_v2 = vld [vmem:[#allocation4 + $0x580] ss:$24 sps:$4 sm:$0xff]  }
 0x782   :  { %6820 = vmatprep.subr.bf16.mxu0 %v14541_v28  ;;  %6863 = vmatprep.subr.bf16.mxu1 %v12999_v19  ;;  %v14605_v19 = vld [vmem:[#allocation4 + $0x254] ss:$24 sps:$4 sm:$0xff]  }
 0x783   :  { %6850 = vmatprep.mubr.bf16.mxu0 %v14428_v23  ;;  %6893 = vmatprep.mubr.bf16.mxu1 %v14432_v24  ;;  %v13009_v23 = vld [vmem:[#allocation4 + $0x3d0] ss:$24 sps:$4 sm:$0xff]   ;;  %v14563_v24 = vld [vmem:[#allocation4 + $0xa4] ss:$24 sps:$4 sm:$0xff]  }
 0x785   :  { %6821 = vmatpush1.bf16.msra.mxu0 %v14546_v29  ;;  %6864 = vmatpush1.bf16.msra.mxu1 %v12997_v26  ;;  %v13059_v26 = vld [vmem:[#allocation4 + $0x554] ss:$24 sps:$4 sm:$0xff]  }
 0x786   :  { %6822 = vmatprep.subr.bf16.mxu0 %v14549_v13  ;;  %6865 = vmatprep.subr.bf16.mxu1 %v13005_v40  ;;  %v14608_v40 = vld [vmem:[#allocation4 + $0x250] ss:$24 sps:$4 sm:$0xff]  }
 0x789   :  { %6823 = vmatpush1.bf16.msra.mxu0 %v14554_v7  ;;  %6866 = vmatpush1.bf16.msra.mxu1 %v13003_v52  ;;  %v13057_v52 = vld [vmem:[#allocation4 + $0x550] ss:$24 sps:$4 sm:$0xff]  }
 0x78a   :  { %6824 = vmatprep.subr.bf16.mxu0 %v14557_v11  ;;  %6867 = vmatprep.subr.bf16.mxu1 %v13011_v48  ;;  %v14611_v48 = vld [vmem:[#allocation4 + $0x224] ss:$24 sps:$4 sm:$0xff]  }
 0x78d   :  { %6825 = vmatpush1.bf16.msra.mxu0 %v14560_v6  ;;  %6868 = vmatpush1.bf16.msra.mxu1 %v13009_v23  ;;  %v13065_v23 = vld [vmem:[#allocation4 + $0x524] ss:$24 sps:$4 sm:$0xff]  }
 0x78e   :  { %6826 = vmatprep.subr.bf16.mxu0 %v14563_v24  ;;  %6869 = vmatprep.subr.bf16.mxu1 %v13017_v10  ;;  %v14614_v10 = vld [vmem:[#allocation4 + $0x220] ss:$24 sps:$4 sm:$0xff]  }
 0x791   :  { %6827 = vmatpush1.bf16.msra.mxu0 %v14566_v9  ;;  %6870 = vmatpush1.bf16.msra.mxu1 %v13015_v61  ;;  %v13063_v61 = vld [vmem:[#allocation4 + $0x520] ss:$24 sps:$4 sm:$0xff]  }
 0x792   :  { %6828 = vmatprep.subr.bf16.mxu0 %v14569_v47  ;;  %6871 = vmatprep.subr.bf16.mxu1 %v13023_v63  ;;  %v14617_v63 = vld [vmem:[#allocation4 + $0x1f4] ss:$24 sps:$4 sm:$0xff]  }
 0x795   :  { %6829 = vmatpush1.bf16.msra.mxu0 %v14572_v46  ;;  %6872 = vmatpush1.bf16.msra.mxu1 %v13021_v30  ;;  %v13071_v30 = vld [vmem:[#allocation4 + $0x4f4] ss:$24 sps:$4 sm:$0xff]  }
 0x796   :  { %6830 = vmatprep.subr.bf16.mxu0 %v14575_v35  ;;  %6873 = vmatprep.subr.bf16.mxu1 %v13029_v53  ;;  %v14620_v53 = vld [vmem:[#allocation4 + $0x1f0] ss:$24 sps:$4 sm:$0xff]  }
 0x799   :  { %6831 = vmatpush1.bf16.msra.mxu0 %v14578_v39  ;;  %6874 = vmatpush1.bf16.msra.mxu1 %v13027_v14  ;;  %v13069_v14 = vld [vmem:[#allocation4 + $0x4f0] ss:$24 sps:$4 sm:$0xff]  }
 0x79a   :  { %6832 = vmatprep.subr.bf16.mxu0 %v14581_v38  ;;  %6875 = vmatprep.subr.bf16.mxu1 %v13035_v12  ;;  %v14623_v12 = vld [vmem:[#allocation4 + $0x1c4] ss:$24 sps:$4 sm:$0xff]  }
 0x79b   :  { %15694 = vst [vmem:[#allocation47_spill] sm:$0xff] %v14623_v12 }
 0x79d   :  { %6833 = vmatpush1.bf16.msra.mxu0 %v14584_v33  ;;  %6876 = vmatpush1.bf16.msra.mxu1 %v13033_v31  ;;  %v13077_v31 = vld [vmem:[#allocation4 + $0x4c4] ss:$24 sps:$4 sm:$0xff]  }
 0x79e   :  { %6834 = vmatprep.subr.bf16.mxu0 %v14587_v8  ;;  %6877 = vmatprep.subr.bf16.mxu1 %v13041_v45  ;;  %v14626_v45 = vld [vmem:[#allocation4 + $0x1c0] ss:$24 sps:$4 sm:$0xff]  }
 0x79f   :  { %15695 = vst [vmem:[#allocation48_spill] sm:$0xff] %v14626_v45 }
 0x7a1   :  { %6835 = vmatpush2.bf16.msra.mxu0 %v14590_v0  ;;  %6878 = vmatpush2.bf16.msra.mxu1 %v13039_v41  ;;  %v13075_v41 = vld [vmem:[#allocation4 + $0x4c0] ss:$24 sps:$4 sm:$0xff]  }
 0x7a2   :  { %6836 = vmatprep.subr.bf16.mxu0 %v14593_v16  ;;  %6879 = vmatprep.subr.bf16.mxu1 %v13047_v1  ;;  %v14629_v1 = vld [vmem:[#allocation4 + $0x194] ss:$24 sps:$4 sm:$0xff]  }
 0x7a3   :  { %15696 = vst [vmem:[#allocation49_spill] sm:$0xff] %v14629_v1 }
 0x7a5   :  { %6837 = vmatpush2.bf16.msra.mxu0 %v14596_v49  ;;  %6880 = vmatpush2.bf16.msra.mxu1 %v13045_v21  ;;  %v13083_v21 = vld [vmem:[#allocation4 + $0x494] ss:$24 sps:$4 sm:$0xff]  }
 0x7a6   :  { %6838 = vmatprep.subr.bf16.mxu0 %v14599_v50  ;;  %6881 = vmatprep.subr.bf16.mxu1 %v13053_v22  ;;  %v14632_v22 = vld [vmem:[#allocation4 + $0x190] ss:$24 sps:$4 sm:$0xff]  }
 0x7a7   :  { %15697 = vst [vmem:[#allocation50_spill] sm:$0xff] %v14632_v22 }
 0x7a9   :  { %6839 = vmatpush2.bf16.msra.mxu0 %v14602_v32  ;;  %6882 = vmatpush2.bf16.msra.mxu1 %v13051_v2  ;;  %v13081_v2 = vld [vmem:[#allocation4 + $0x490] ss:$24 sps:$4 sm:$0xff]  }
 0x7aa   :  { %6840 = vmatprep.subr.bf16.mxu0 %v14605_v19  ;;  %6883 = vmatprep.subr.bf16.mxu1 %v13059_v26  ;;  %v14635_v26 = vld [vmem:[#allocation4 + $0x764] ss:$24 sps:$4 sm:$0xff]  }
 0x7ab   :  { %15698 = vst [vmem:[#allocation51_spill] sm:$0xff] %v14635_v26 }
 0x7ad   :  { %6841 = vmatpush2.bf16.msra.mxu0 %v14608_v40  ;;  %6884 = vmatpush2.bf16.msra.mxu1 %v13057_v52  ;;  %v14638_v52 = vld [vmem:[#allocation4 + $0x760] ss:$24 sps:$4 sm:$0xff]  }
 0x7ae   :  { %6842 = vmatprep.subr.bf16.mxu0 %v14611_v48  ;;  %6885 = vmatprep.subr.bf16.mxu1 %v13065_v23  ;;  %15699 = vst [vmem:[#allocation52_spill] sm:$0xff] %v14638_v52  ;;  %v13132_v23 = vld [vmem:[#allocation4 + $0x154] ss:$24 sps:$4 sm:$0xff]  }
 0x7b1   :  { %6843 = vmatpush2.bf16.msra.mxu0 %v14614_v10  ;;  %6886 = vmatpush2.bf16.msra.mxu1 %v13063_v61  ;;  %v14641_v61 = vld [vmem:[#allocation4 + $0x734] ss:$24 sps:$4 sm:$0xff]  }
 0x7b2   :  { %6844 = vmatprep.subr.bf16.mxu0 %v14617_v63  ;;  %6887 = vmatprep.subr.bf16.mxu1 %v13071_v30  ;;  %15700 = vst [vmem:[#allocation53_spill] sm:$0xff] %v14641_v61 }
 0x7b5   :  { %6845 = vmatpush2.bf16.msra.mxu0 %v14620_v53  ;;  %6888 = vmatpush2.bf16.msra.mxu1 %v13069_v14 }
 0x7b6   :  { %6846 = vmatprep.subr.bf16.mxu0 %v14623_v12  ;;  %6889 = vmatprep.subr.bf16.mxu1 %v13077_v31 }
 0x7b9   :  { %6847 = vmatpush2.bf16.msra.mxu0 %v14626_v45  ;;  %6890 = vmatpush2.bf16.msra.mxu1 %v13075_v41  ;;  %v13133_v41 = vld [vmem:[#allocation4 + $0x150] ss:$24 sps:$4 sm:$0xff]  }
 0x7ba   :  { %6848 = vmatprep.subr.bf16.mxu0 %v14629_v1  ;;  %6891 = vmatprep.subr.bf16.mxu1 %v13083_v21  ;;  %v14648_v21 = vld [vmem:[#allocation4 + $0x730] ss:$24 sps:$4 sm:$0xff]  }
 0x7bb   :  { %15701 = vst [vmem:[#allocation54_spill] sm:$0xff] %v14648_v21 }
 0x7bd   :  { %6849 = vmatpush2.bf16.msra.mxu0 %v14632_v22  ;;  %6892 = vmatpush2.bf16.msra.mxu1 %v13081_v2 }
 0x7be   :  { %6904 = vmatprep.subr.bf16.mxu0 %v14635_v26  ;;  %6947 = vmatprep.subr.bf16.mxu1 %v13132_v23  ;;  %v13134_v23 = vld [vmem:[#allocation4 + $0x124] ss:$24 sps:$4 sm:$0xff]  }
 0x7c0   :  { %v6594_v30 = vpop.f32.mrf.mxu0  ;;  %v6637_v14 = vpop.f32.mrf.mxu1  ;;  %6851 = vmatmul.mubr.bf16.vlgmr.msra.gmra.mxu0 %v14438_v58  ;;  %6894 = vmatmul.mubr.bf16.vlgmr.msra.gmra.mxu1 %v14442_v17 }
 0x7c1   :  { %v14645_v31 = vadd.f32 %v6637_v14, %v6594_v30  ;;  %6905 = vmatpush1.bf16.msra.mxu0 %v14638_v52  ;;  %6948 = vmatpush1.bf16.msra.mxu1 %v13133_v41  ;;  %v13135_v14 = vld [vmem:[#allocation4 + $0x120] ss:$24 sps:$4 sm:$0xff]  }
 0x7c2   :  { %v6596_v2 = vpop.f32.mrf.mxu0  ;;  %v6639_v4 = vpop.f32.mrf.mxu1  ;;  %6906 = vmatprep.subr.bf16.mxu0 %v14641_v61  ;;  %6949 = vmatprep.subr.bf16.mxu1 %v13134_v23  ;;  %v14660_v41 = vld [vmem:[#allocation4 + $0x700] ss:$24 sps:$4 sm:$0xff]  }
 0x7c3   :  { %v14653_v37 = vadd.f32 %v6639_v4, %v6596_v2  ;;  %6936 = vmatprep.mubr.bf16.mxu0 %v14446_v25  ;;  %6979 = vmatprep.mubr.bf16.mxu1 %v14326_v56  ;;  %15703 = vst [vmem:[#allocation56_spill] sm:$0xff] %v14660_v41  ;;  %v13136_v4 = vld [vmem:[#allocation4 + $0xf4] ss:$24 sps:$4 sm:$0xff]  }
 0x7c4   :  { %v6598_v58 = vpop.f32.mrf.mxu0  ;;  %v6641_v17 = vpop.f32.mrf.mxu1  ;;  %v14663_v2 = vld [vmem:[#allocation4 + $0x6d4] ss:$24 sps:$4 sm:$0xff]  }
 0x7c5   :  { %v14657_v30 = vadd.f32 %v6641_v17, %v6598_v58  ;;  %6907 = vmatpush1.bf16.msra.mxu0 %v14648_v21  ;;  %6950 = vmatpush1.bf16.msra.mxu1 %v13135_v14  ;;  %15704 = vst [vmem:[#allocation57_spill] sm:$0xff] %v14663_v2  ;;  %v13137_v58 = vld [vmem:[#allocation4 + $0xf0] ss:$24 sps:$4 sm:$0xff]   ;;  %v13138_v14 = vld [vmem:[#allocation4 + $0xc4] ss:$24 sps:$4 sm:$0xff]  }
 0x7c6   :  { %v6600_v43 = vpop.f32.mrf.mxu0  ;;  %v6643_v23 = vpop.f32.mrf.mxu1  ;;  %6908 = vmatprep.subr.bf16.mxu0 %v14651_v44  ;;  %6951 = vmatprep.subr.bf16.mxu1 %v13136_v4  ;;  %v14668_v17 = vld [vmem:[#allocation4 + $0x6d0] ss:$24 sps:$4 sm:$0xff]   ;;  %v13139_v44 = vld [vmem:[#allocation4 + $0xc0] ss:$24 sps:$4 sm:$0xff]  }
 0x7c7   :  { %v14665_v25 = vadd.f32 %v6643_v23, %v6600_v43  ;;  %15705 = vst [vmem:[#allocation58_spill] sm:$0xff] %v14668_v17  ;;  %v14674_v4 = vld [vmem:[#allocation4 + $0x6a0] ss:$24 sps:$4 sm:$0xff]   ;;  %v13140_v43 = vld [vmem:[#allocation4 + $0x94] ss:$24 sps:$4 sm:$0xff]  }
 0x7c8   :  { %15707 = vst [vmem:[#allocation60_spill] sm:$0xff] %v14674_v4  ;;  %v14677_v23 = vld [vmem:[#allocation4 + $0x674] ss:$24 sps:$4 sm:$0xff]  }
 0x7c9   :  { %6909 = vmatpush1.bf16.msra.mxu0 %v14660_v41  ;;  %6952 = vmatpush1.bf16.msra.mxu1 %v13137_v58  ;;  %15708 = vst [vmem:[#allocation61_spill] sm:$0xff] %v14677_v23  ;;  %v13141_v58 = vld [vmem:[#allocation4 + $0x90] ss:$24 sps:$4 sm:$0xff]  }
 0x7ca   :  { %6910 = vmatprep.subr.bf16.mxu0 %v14663_v2  ;;  %6953 = vmatprep.subr.bf16.mxu1 %v13138_v14  ;;  %v14680_v2 = vld [vmem:[#allocation4 + $0x670] ss:$24 sps:$4 sm:$0xff]   ;;  %v13142_v14 = vld [vmem:[#allocation4 + $0x64] ss:$24 sps:$4 sm:$0xff]  }
 0x7cb   :  { %15709 = vst [vmem:[#allocation62_spill] sm:$0xff] %v14680_v2 }
 0x7cd   :  { %6911 = vmatpush1.bf16.msra.mxu0 %v14668_v17  ;;  %6954 = vmatpush1.bf16.msra.mxu1 %v13139_v44  ;;  %v14683_v17 = vld [vmem:[#allocation4 + $0x644] ss:$24 sps:$4 sm:$0xff]   ;;  %v13143_v44 = vld [vmem:[#allocation4 + $0x60] ss:$24 sps:$4 sm:$0xff]  }
 0x7ce   :  { %6912 = vmatprep.subr.bf16.mxu0 %v14671_v36  ;;  %6955 = vmatprep.subr.bf16.mxu1 %v13140_v43  ;;  %15710 = vst [vmem:[#allocation63_spill] sm:$0xff] %v14683_v17  ;;  %v14686_v36 = vld [vmem:[#allocation4 + $0x640] ss:$24 sps:$4 sm:$0xff]   ;;  %v13144_v43 = vld [vmem:[#allocation4 + $0x34] ss:$24 sps:$4 sm:$0xff]  }
 0x7cf   :  { %15711 = vst [vmem:[#allocation64_spill] sm:$0xff] %v14686_v36 }
 0x7d1   :  { %6913 = vmatpush1.bf16.msra.mxu0 %v14674_v4  ;;  %6956 = vmatpush1.bf16.msra.mxu1 %v13141_v58  ;;  %v14689_v4 = vld [vmem:[#allocation4 + $0x614] ss:$24 sps:$4 sm:$0xff]   ;;  %v13145_v58 = vld [vmem:[#allocation4 + $0x30] ss:$24 sps:$4 sm:$0xff]  }
 0x7d2   :  { %6914 = vmatprep.subr.bf16.mxu0 %v14677_v23  ;;  %6957 = vmatprep.subr.bf16.mxu1 %v13142_v14  ;;  %15712 = vst [vmem:[#allocation65_spill] sm:$0xff] %v14689_v4  ;;  %v14692_v23 = vld [vmem:[#allocation4 + $0x610] ss:$24 sps:$4 sm:$0xff]   ;;  %v13146_v14 = vld [vmem:[#allocation4 + $0x4] ss:$24 sps:$4 sm:$0xff]  }
 0x7d3   :  { %15713 = vst [vmem:[#allocation66_spill] sm:$0xff] %v14692_v23 }
 0x7d5   :  { %6915 = vmatpush1.bf16.msra.mxu0 %v14680_v2  ;;  %6958 = vmatpush1.bf16.msra.mxu1 %v13143_v44  ;;  %v14695_v2 = vld [vmem:[#allocation4 + $0x8e4] ss:$24 sps:$4 sm:$0xff]   ;;  %v13147_v44 = vld [vmem:[#allocation4] ss:$24 sps:$4 sm:$0xff]  }
 0x7d6   :  { %6916 = vmatprep.subr.bf16.mxu0 %v14683_v17  ;;  %6959 = vmatprep.subr.bf16.mxu1 %v13144_v43  ;;  %15714 = vst [vmem:[#allocation67_spill] sm:$0xff] %v14695_v2  ;;  %v14698_v17 = vld [vmem:[#allocation4 + $0x8e0] ss:$24 sps:$4 sm:$0xff]   ;;  %v13148_v43 = vld [vmem:[#allocation4 + $0x2d4] ss:$24 sps:$4 sm:$0xff]  }
 0x7d7   :  { %15715 = vst [vmem:[#allocation68_spill] sm:$0xff] %v14698_v17 }
 0x7d9   :  { %6917 = vmatpush1.bf16.msra.mxu0 %v14686_v36  ;;  %6960 = vmatpush1.bf16.msra.mxu1 %v13145_v58  ;;  %v14701_v36 = vld [vmem:[#allocation4 + $0x8b4] ss:$24 sps:$4 sm:$0xff]   ;;  %v13149_v58 = vld [vmem:[#allocation4 + $0x2d0] ss:$24 sps:$4 sm:$0xff]  }
 0x7da   :  { %6918 = vmatprep.subr.bf16.mxu0 %v14689_v4  ;;  %6961 = vmatprep.subr.bf16.mxu1 %v13146_v14  ;;  %15716 = vst [vmem:[#allocation69_spill] sm:$0xff] %v14701_v36  ;;  %v14704_v4 = vld [vmem:[#allocation4 + $0x8b0] ss:$24 sps:$4 sm:$0xff]   ;;  %v13150_v14 = vld [vmem:[#allocation4 + $0x2a4] ss:$24 sps:$4 sm:$0xff]  }
 0x7db   :  { %15717 = vst [vmem:[#allocation70_spill] sm:$0xff] %v14704_v4 }
 0x7dd   :  { %6919 = vmatpush1.bf16.msra.mxu0 %v14692_v23  ;;  %6962 = vmatpush1.bf16.msra.mxu1 %v13147_v44  ;;  %v14707_v23 = vld [vmem:[#allocation4 + $0x884] ss:$24 sps:$4 sm:$0xff]   ;;  %v13151_v44 = vld [vmem:[#allocation4 + $0x2a0] ss:$24 sps:$4 sm:$0xff]  }
 0x7de   :  { %6920 = vmatprep.subr.bf16.mxu0 %v14695_v2  ;;  %6963 = vmatprep.subr.bf16.mxu1 %v13148_v43  ;;  %15718 = vst [vmem:[#allocation71_spill] sm:$0xff] %v14707_v23  ;;  %v14710_v2 = vld [vmem:[#allocation4 + $0x880] ss:$24 sps:$4 sm:$0xff]   ;;  %v13152_v43 = vld [vmem:[#allocation4 + $0x274] ss:$24 sps:$4 sm:$0xff]  }
 0x7df   :  { %15719 = vst [vmem:[#allocation72_spill] sm:$0xff] %v14710_v2 }
 0x7e1   :  { %6921 = vmatpush2.bf16.msra.mxu0 %v14698_v17  ;;  %6964 = vmatpush2.bf16.msra.mxu1 %v13149_v58  ;;  %v14713_v17 = vld [vmem:[#allocation4 + $0x854] ss:$24 sps:$4 sm:$0xff]   ;;  %v13153_v58 = vld [vmem:[#allocation4 + $0x270] ss:$24 sps:$4 sm:$0xff]  }
 0x7e2   :  { %6922 = vmatprep.subr.bf16.mxu0 %v14701_v36  ;;  %6965 = vmatprep.subr.bf16.mxu1 %v13150_v14  ;;  %15720 = vst [vmem:[#allocation73_spill] sm:$0xff] %v14713_v17  ;;  %v14716_v36 = vld [vmem:[#allocation4 + $0x850] ss:$24 sps:$4 sm:$0xff]   ;;  %v13154_v14 = vld [vmem:[#allocation4 + $0x244] ss:$24 sps:$4 sm:$0xff]  }
 0x7e3   :  { %15721 = vst [vmem:[#allocation74_spill] sm:$0xff] %v14716_v36 }
 0x7e5   :  { %6923 = vmatpush2.bf16.msra.mxu0 %v14704_v4  ;;  %6966 = vmatpush2.bf16.msra.mxu1 %v13151_v44  ;;  %v14719_v4 = vld [vmem:[#allocation4 + $0x824] ss:$24 sps:$4 sm:$0xff]   ;;  %v13155_v44 = vld [vmem:[#allocation4 + $0x240] ss:$24 sps:$4 sm:$0xff]  }
 0x7e6   :  { %6924 = vmatprep.subr.bf16.mxu0 %v14707_v23  ;;  %6967 = vmatprep.subr.bf16.mxu1 %v13152_v43  ;;  %15722 = vst [vmem:[#allocation75_spill] sm:$0xff] %v14719_v4  ;;  %v14722_v23 = vld [vmem:[#allocation4 + $0x820] ss:$24 sps:$4 sm:$0xff]   ;;  %v13156_v43 = vld [vmem:[#allocation4 + $0x214] ss:$24 sps:$4 sm:$0xff]  }
 0x7e7   :  { %15723 = vst [vmem:[#allocation76_spill] sm:$0xff] %v14722_v23 }
 0x7e9   :  { %6925 = vmatpush2.bf16.msra.mxu0 %v14710_v2  ;;  %6968 = vmatpush2.bf16.msra.mxu1 %v13153_v58  ;;  %v14725_v2 = vld [vmem:[#allocation4 + $0x7f4] ss:$24 sps:$4 sm:$0xff]   ;;  %v13157_v58 = vld [vmem:[#allocation4 + $0x210] ss:$24 sps:$4 sm:$0xff]  }
 0x7ea   :  { %6926 = vmatprep.subr.bf16.mxu0 %v14713_v17  ;;  %6969 = vmatprep.subr.bf16.mxu1 %v13154_v14  ;;  %15724 = vst [vmem:[#allocation77_spill] sm:$0xff] %v14725_v2  ;;  %v14728_v17 = vld [vmem:[#allocation4 + $0x7f0] ss:$24 sps:$4 sm:$0xff]   ;;  %v13158_v14 = vld [vmem:[#allocation4 + $0x1e4] ss:$24 sps:$4 sm:$0xff]  }
 0x7eb   :  { %15725 = vst [vmem:[#allocation78_spill] sm:$0xff] %v14728_v17 }
 0x7ed   :  { %6927 = vmatpush2.bf16.msra.mxu0 %v14716_v36  ;;  %6970 = vmatpush2.bf16.msra.mxu1 %v13155_v44  ;;  %v14731_v36 = vld [vmem:[#allocation4 + $0x7c4] ss:$24 sps:$4 sm:$0xff]   ;;  %v13159_v44 = vld [vmem:[#allocation4 + $0x1e0] ss:$24 sps:$4 sm:$0xff]  }
 0x7ee   :  { %6928 = vmatprep.subr.bf16.mxu0 %v14719_v4  ;;  %6971 = vmatprep.subr.bf16.mxu1 %v13156_v43  ;;  %15726 = vst [vmem:[#allocation79_spill] sm:$0xff] %v14731_v36  ;;  %v14734_v4 = vld [vmem:[#allocation4 + $0x7c0] ss:$24 sps:$4 sm:$0xff]   ;;  %v13160_v43 = vld [vmem:[#allocation4 + $0x1b4] ss:$24 sps:$4 sm:$0xff]  }
 0x7ef   :  { %15727 = vst [vmem:[#allocation80_spill] sm:$0xff] %v14734_v4 }
 0x7f1   :  { %6929 = vmatpush2.bf16.msra.mxu0 %v14722_v23  ;;  %6972 = vmatpush2.bf16.msra.mxu1 %v13157_v58  ;;  %v14737_v23 = vld [vmem:[#allocation4 + $0x794] ss:$24 sps:$4 sm:$0xff]   ;;  %v13161_v58 = vld [vmem:[#allocation4 + $0x1b0] ss:$24 sps:$4 sm:$0xff]  }
 0x7f2   :  { %6930 = vmatprep.subr.bf16.mxu0 %v14725_v2  ;;  %6973 = vmatprep.subr.bf16.mxu1 %v13158_v14  ;;  %15728 = vst [vmem:[#allocation81_spill] sm:$0xff] %v14737_v23  ;;  %v14740_v2 = vld [vmem:[#allocation4 + $0x790] ss:$24 sps:$4 sm:$0xff]   ;;  %v13162_v14 = vld [vmem:[#allocation4 + $0x184] ss:$24 sps:$4 sm:$0xff]  }
 0x7f3   :  { %15729 = vst [vmem:[#allocation82_spill] sm:$0xff] %v14740_v2 }
 0x7f5   :  { %6931 = vmatpush2.bf16.msra.mxu0 %v14728_v17  ;;  %6974 = vmatpush2.bf16.msra.mxu1 %v13159_v44  ;;  %v13163_v44 = vld [vmem:[#allocation4 + $0x180] ss:$24 sps:$4 sm:$0xff]   ;;  %v13164_v17 = vld [vmem:[#allocation4 + $0x454] ss:$24 sps:$4 sm:$0xff]  }
 0x7f6   :  { %6932 = vmatprep.subr.bf16.mxu0 %v14731_v36  ;;  %6975 = vmatprep.subr.bf16.mxu1 %v13160_v43  ;;  %v13165_v36 = vld [vmem:[#allocation4 + $0x754] ss:$24 sps:$4 sm:$0xff]   ;;  %v14744_v43 = vpop.permute.xlu0 %7318 }
 0x7f9   :  { %6933 = vmatpush2.bf16.msra.mxu0 %v14734_v4  ;;  %6976 = vmatpush2.bf16.msra.mxu1 %v13161_v58  ;;  %v13168_v4 = vld [vmem:[#allocation4 + $0x424] ss:$24 sps:$4 sm:$0xff]  }
 0x7fa   :  { %6934 = vmatprep.subr.bf16.mxu0 %v14737_v23  ;;  %6977 = vmatprep.subr.bf16.mxu1 %v13162_v14  ;;  %v13166_v23 = vld [vmem:[#allocation4 + $0x450] ss:$24 sps:$4 sm:$0xff]   ;;  %v14753_v21 = vpop.permute.xlu0 %7323 }
 0x7fb   :  { %v13167_v14 = vld [vmem:[#allocation4 + $0x750] ss:$24 sps:$4 sm:$0xff]  }
 0x7fd   :  { %6935 = vmatpush2.bf16.msra.mxu0 %v14740_v2  ;;  %6978 = vmatpush2.bf16.msra.mxu1 %v13163_v44  ;;  %v13169_v44 = vld [vmem:[#allocation4 + $0x724] ss:$24 sps:$4 sm:$0xff]  }
 0x7fe   :  { %6988 = vmatprep.subr.bf16.mxu0 %v13164_v17  ;;  %7029 = vmatprep.subr.bf16.mxu1 %v13165_v36 }
 0x800   :  { %v6680_v41 = vpop.f32.mrf.mxu0  ;;  %6937 = vmatmul.mubr.bf16.vlgmr.msra.gmra.mxu0 %v14454_v5  ;;  %6980 = vmatmul.mubr.bf16.vlgmr.msra.gmra.mxu1 %v14322_v55 }
 0x801   :  { %v6681_v58 = vadd.f32 %v6680_v41, %v14645_v31  ;;  %6989 = vmatpush1.bf16.msra.mxu0 %v13166_v23  ;;  %7030 = vmatpush1.bf16.msra.mxu1 %v13167_v14  ;;  %v13170_v14 = vld [vmem:[#allocation4 + $0x420] ss:$24 sps:$4 sm:$0xff]  }
 0x802   :  { %v6682_v2 = vpop.f32.mrf.mxu0  ;;  %6990 = vmatprep.subr.bf16.mxu0 %v13168_v4  ;;  %7031 = vmatprep.subr.bf16.mxu1 %v13169_v44  ;;  %v13171_v4 = vld [vmem:[#allocation4 + $0x720] ss:$24 sps:$4 sm:$0xff]  }
 0x803   :  { %v7326_v36 = vmul.f32 %v14744_v43, %v6681_v58  ;;  %v6683_v17 = vadd.f32 %v6682_v2, %v14653_v37  ;;  %7020 = vmatprep.mubr.bf16.mxu0 %v14348_v62  ;;  %7061 = vmatprep.mubr.bf16.mxu1 %v14342_v60  ;;  %v13172_v58 = vld [vmem:[#allocation4 + $0x3f4] ss:$24 sps:$4 sm:$0xff]  }
 0x804   :  { %v6684_v5 = vpop.f32.mrf.mxu0  ;;  %v13173_v37 = vld [vmem:[#allocation4 + $0x6f4] ss:$24 sps:$4 sm:$0xff]  }
 0x805   :  { %v7338_v31 = vrot.slane %v7326_v36, 4  ;;  %v7327_v41 = vmul.f32 %v14744_v43, %v6683_v17  ;;  %v6685_v23 = vadd.f32 %v6684_v5, %v14657_v30  ;;  %6991 = vmatpush1.bf16.msra.mxu0 %v13170_v14  ;;  %7032 = vmatpush1.bf16.msra.mxu1 %v13171_v4  ;;  %v13174_v5 = vld [vmem:[#allocation4 + $0x3f0] ss:$24 sps:$4 sm:$0xff]   ;;  %v13176_v4 = vld [vmem:[#allocation4 + $0x3c4] ss:$24 sps:$4 sm:$0xff]  }
 0x806   :  { %v6686_v44 = vpop.f32.mrf.mxu0  ;;  %6992 = vmatprep.subr.bf16.mxu0 %v13172_v58  ;;  %7033 = vmatprep.subr.bf16.mxu1 %v13173_v37  ;;  %v13175_v14 = vld [vmem:[#allocation4 + $0x6f0] ss:$24 sps:$4 sm:$0xff]   ;;  %v13177_v58 = vld [vmem:[#allocation4 + $0x6c4] ss:$24 sps:$4 sm:$0xff]  }
 0x807   :  { %v7339_v2 = vadd.f32 %v7338_v31, %v7326_v36  ;;  %v7344_v61 = vrot.slane %v7327_v41, 4  ;;  %v7332_v52 = vmul.f32 %v14753_v21, %v6685_v23  ;;  %v6687_v26 = vadd.f32 %v6686_v44, %v14665_v25 }
 0x809   :  { %v7340_v22 = vrot.slane %v7339_v2, 2  ;;  %v7345_v1 = vadd.f32 %v7344_v61, %v7327_v41  ;;  %v7374_v17 = vrot.slane %v7332_v52, 4  ;;  %v7333_v30 = vmul.f32 %v14753_v21, %v6687_v26  ;;  %6993 = vmatpush1.bf16.msra.mxu0 %v13174_v5  ;;  %7034 = vmatpush1.bf16.msra.mxu1 %v13175_v14  ;;  %v13178_v61 = vld [vmem:[#allocation4 + $0x3c0] ss:$24 sps:$4 sm:$0xff]   ;;  %v13180_v26 = vld [vmem:[#allocation4 + $0x394] ss:$24 sps:$4 sm:$0xff]  }
 0x80a   :  { %6994 = vmatprep.subr.bf16.mxu0 %v13176_v4  ;;  %7035 = vmatprep.subr.bf16.mxu1 %v13177_v58  ;;  %v13179_v41 = vld [vmem:[#allocation4 + $0x6c0] ss:$24 sps:$4 sm:$0xff]   ;;  %v13181_v5 = vld [vmem:[#allocation4 + $0x694] ss:$24 sps:$4 sm:$0xff]  }
 0x80b   :  { %v7341_v37 = vadd.f32 %v7340_v22, %v7339_v2  ;;  %v7346_v36 = vrot.slane %v7345_v1, 2  ;;  %v7375_v31 = vadd.f32 %v7374_v17, %v7332_v52  ;;  %v7380_v45 = vrot.slane %v7333_v30, 4 }
 0x80d   :  { %v7342_v23 = vrot.slane %v7341_v37, 1  ;;  %v7347_v12 = vadd.f32 %v7346_v36, %v7345_v1  ;;  %v7376_v25 = vrot.slane %v7375_v31, 2  ;;  %v7381_v44 = vadd.f32 %v7380_v45, %v7333_v30  ;;  %6995 = vmatpush1.bf16.msra.mxu0 %v13178_v61  ;;  %7036 = vmatpush1.bf16.msra.mxu1 %v13179_v41  ;;  %v13182_v1 = vld [vmem:[#allocation4 + $0x390] ss:$24 sps:$4 sm:$0xff]   ;;  %v13184_v30 = vld [vmem:[#allocation4 + $0x364] ss:$24 sps:$4 sm:$0xff]  }
 0x80e   :  { %6996 = vmatprep.subr.bf16.mxu0 %v13180_v26  ;;  %7037 = vmatprep.subr.bf16.mxu1 %v13181_v5  ;;  %v13183_v45 = vld [vmem:[#allocation4 + $0x690] ss:$24 sps:$4 sm:$0xff]   ;;  %v13185_v36 = vld [vmem:[#allocation4 + $0x664] ss:$24 sps:$4 sm:$0xff]  }
 0x80f   :  { %v14760_v14 = vadd.f32 %v7342_v23, %v7341_v37  ;;  %v7348_v4 = vrot.slane %v7347_v12, 1  ;;  %v7377_v58 = vadd.f32 %v7376_v25, %v7375_v31  ;;  %v7382_v22 = vrot.slane %v7381_v44, 2  ;;  %v13186_v23 = vld [vmem:[#allocation4 + $0x360] ss:$24 sps:$4 sm:$0xff]   ;;  %v13189_v25 = vld [vmem:[#allocation4 + $0x634] ss:$24 sps:$4 sm:$0xff]  }
 0x810   :  { %v13187_v31 = vld [vmem:[#allocation4 + $0x660] ss:$24 sps:$4 sm:$0xff]   ;;  %v13191_v26 = vld [vmem:[#allocation4 + $0x630] ss:$24 sps:$4 sm:$0xff]   ;;  %v13192_v5 = vld [vmem:[#allocation4 + $0x304] ss:$24 sps:$4 sm:$0xff]  }
 0x811   :  { %15730 = vst [vmem:[#allocation83_spill] sm:$0xff] %v14760_v14  ;;  %v14762_v2 = vadd.f32 %v7348_v4, %v7347_v12  ;;  %v7378_v52 = vrot.slane %v7377_v58, 1  ;;  %v7383_v17 = vadd.f32 %v7382_v22, %v7381_v44  ;;  %6997 = vmatpush1.bf16.msra.mxu0 %v13182_v1  ;;  %7038 = vmatpush1.bf16.msra.mxu1 %v13183_v45  ;;  %v13188_v12 = vld [vmem:[#allocation4 + $0x334] ss:$24 sps:$4 sm:$0xff]   ;;  %v13190_v44 = vld [vmem:[#allocation4 + $0x330] ss:$24 sps:$4 sm:$0xff]  }
 0x812   :  { %6998 = vmatprep.subr.bf16.mxu0 %v13184_v30  ;;  %7039 = vmatprep.subr.bf16.mxu1 %v13185_v36  ;;  %v13193_v4 = vld [vmem:[#allocation4 + $0x604] ss:$24 sps:$4 sm:$0xff]   ;;  %v13195_v22 = vld [vmem:[#allocation4 + $0x600] ss:$24 sps:$4 sm:$0xff]   ;;  %v13198_v1 = vld [vmem:[#allocation4 + $0x5d0] ss:$24 sps:$4 sm:$0xff]  }
 0x813   :  { %15731 = vst [vmem:[#allocation84_spill] sm:$0xff] %v14762_v2  ;;  %v14764_v61 = vadd.f32 %v7378_v52, %v7377_v58  ;;  %v7384_v41 = vrot.slane %v7383_v17, 1  ;;  %v13194_v58 = vld [vmem:[#allocation4 + $0x300] ss:$24 sps:$4 sm:$0xff]   ;;  %v13196_v52 = vld [vmem:[#allocation4 + $0x5d4] ss:$24 sps:$4 sm:$0xff]  }
 0x814   :  { %v13199_v45 = vld [vmem:[#allocation4 + $0x8d0] ss:$24 sps:$4 sm:$0xff]   ;;  %v13200_v30 = vld [vmem:[#allocation4 + $0x5a4] ss:$24 sps:$4 sm:$0xff]  }
 0x815   :  { %15732 = vst [vmem:[#allocation85_spill] sm:$0xff] %v14764_v61  ;;  %v14766_v37 = vadd.f32 %v7384_v41, %v7383_v17  ;;  %6999 = vmatpush1.bf16.msra.mxu0 %v13186_v23  ;;  %7040 = vmatpush1.bf16.msra.mxu1 %v13187_v31  ;;  %v13197_v17 = vld [vmem:[#allocation4 + $0x8d4] ss:$24 sps:$4 sm:$0xff]   ;;  %v13201_v36 = vld [vmem:[#allocation4 + $0x8a4] ss:$24 sps:$4 sm:$0xff]  }
 0x816   :  { %7000 = vmatprep.subr.bf16.mxu0 %v13188_v12  ;;  %7041 = vmatprep.subr.bf16.mxu1 %v13189_v25  ;;  %v13202_v41 = vld [vmem:[#allocation4 + $0x5a0] ss:$24 sps:$4 sm:$0xff]   ;;  %v13204_v31 = vld [vmem:[#allocation4 + $0x574] ss:$24 sps:$4 sm:$0xff]   ;;  %v13206_v25 = vld [vmem:[#allocation4 + $0x570] ss:$24 sps:$4 sm:$0xff]  }
 0x817   :  { %15733 = vst [vmem:[#allocation86_spill] sm:$0xff] %v14766_v37  ;;  %v13203_v23 = vld [vmem:[#allocation4 + $0x8a0] ss:$24 sps:$4 sm:$0xff]   ;;  %v13205_v12 = vld [vmem:[#allocation4 + $0x874] ss:$24 sps:$4 sm:$0xff]  }
 0x818   :  { %v13234_v61 = vld [vmem:[#allocation4 + $0x128] ss:$24 sps:$4 sm:$0xff]  }
 0x819   :  { %7001 = vmatpush1.bf16.msra.mxu0 %v13190_v44  ;;  %7042 = vmatpush1.bf16.msra.mxu1 %v13191_v26  ;;  %v13207_v44 = vld [vmem:[#allocation4 + $0x870] ss:$24 sps:$4 sm:$0xff]   ;;  %v13208_v26 = vld [vmem:[#allocation4 + $0x544] ss:$24 sps:$4 sm:$0xff]  }
 0x81a   :  { %7002 = vmatprep.subr.bf16.mxu0 %v13192_v5  ;;  %7043 = vmatprep.subr.bf16.mxu1 %v13193_v4  ;;  %v13209_v5 = vld [vmem:[#allocation4 + $0x844] ss:$24 sps:$4 sm:$0xff]   ;;  %v13210_v4 = vld [vmem:[#allocation4 + $0x540] ss:$24 sps:$4 sm:$0xff]  }
 0x81d   :  { %7003 = vmatpush1.bf16.msra.mxu0 %v13194_v58  ;;  %7044 = vmatpush1.bf16.msra.mxu1 %v13195_v22  ;;  %v13211_v58 = vld [vmem:[#allocation4 + $0x840] ss:$24 sps:$4 sm:$0xff]   ;;  %v13212_v22 = vld [vmem:[#allocation4 + $0x514] ss:$24 sps:$4 sm:$0xff]  }
 0x81e   :  { %7004 = vmatprep.subr.bf16.mxu0 %v13196_v52  ;;  %7045 = vmatprep.subr.bf16.mxu1 %v13197_v17  ;;  %v13213_v52 = vld [vmem:[#allocation4 + $0x814] ss:$24 sps:$4 sm:$0xff]   ;;  %v13214_v17 = vld [vmem:[#allocation4 + $0x510] ss:$24 sps:$4 sm:$0xff]  }
 0x821   :  { %7005 = vmatpush2.bf16.msra.mxu0 %v13198_v1  ;;  %7046 = vmatpush2.bf16.msra.mxu1 %v13199_v45  ;;  %v13215_v1 = vld [vmem:[#allocation4 + $0x810] ss:$24 sps:$4 sm:$0xff]   ;;  %v6723_v45 = vpop.f32.mrf.mxu1 }
 0x822   :  { %7006 = vmatprep.subr.bf16.mxu0 %v13200_v30  ;;  %7047 = vmatprep.subr.bf16.mxu1 %v13201_v36  ;;  %v13216_v30 = vld [vmem:[#allocation4 + $0x4e4] ss:$24 sps:$4 sm:$0xff]  }
 0x823   :  { %v13217_v36 = vld [vmem:[#allocation4 + $0x7e4] ss:$24 sps:$4 sm:$0xff]  }
 0x825   :  { %7007 = vmatpush2.bf16.msra.mxu0 %v13202_v41  ;;  %7048 = vmatpush2.bf16.msra.mxu1 %v13203_v23  ;;  %v13218_v41 = vld [vmem:[#allocation4 + $0x4e0] ss:$24 sps:$4 sm:$0xff]  }
 0x826   :  { %7008 = vmatprep.subr.bf16.mxu0 %v13204_v31  ;;  %7049 = vmatprep.subr.bf16.mxu1 %v13205_v12  ;;  %v13219_v23 = vld [vmem:[#allocation4 + $0x7e0] ss:$24 sps:$4 sm:$0xff]   ;;  %v6725_v31 = vpop.f32.mrf.mxu1  ;;  %v13220_v12 = vld [vmem:[#allocation4 + $0x4b4] ss:$24 sps:$4 sm:$0xff]  }
 0x829   :  { %7009 = vmatpush2.bf16.msra.mxu0 %v13206_v25  ;;  %7050 = vmatpush2.bf16.msra.mxu1 %v13207_v44  ;;  %v13221_v25 = vld [vmem:[#allocation4 + $0x7b4] ss:$24 sps:$4 sm:$0xff]   ;;  %v13222_v44 = vld [vmem:[#allocation4 + $0x4b0] ss:$24 sps:$4 sm:$0xff]  }
 0x82a   :  { %7010 = vmatprep.subr.bf16.mxu0 %v13208_v26  ;;  %7051 = vmatprep.subr.bf16.mxu1 %v13209_v5  ;;  %v13223_v26 = vld [vmem:[#allocation4 + $0x7b0] ss:$24 sps:$4 sm:$0xff]   ;;  %v6727_v5 = vpop.f32.mrf.mxu1 }
 0x82d   :  { %7011 = vmatpush2.bf16.msra.mxu0 %v13210_v4  ;;  %7052 = vmatpush2.bf16.msra.mxu1 %v13211_v58  ;;  %v13224_v4 = vld [vmem:[#allocation4 + $0x484] ss:$24 sps:$4 sm:$0xff]  }
 0x82e   :  { %7012 = vmatprep.subr.bf16.mxu0 %v13212_v22  ;;  %7053 = vmatprep.subr.bf16.mxu1 %v13213_v52  ;;  %v13225_v58 = vld [vmem:[#allocation4 + $0x784] ss:$24 sps:$4 sm:$0xff]   ;;  %v13226_v22 = vld [vmem:[#allocation4 + $0x480] ss:$24 sps:$4 sm:$0xff]  }
 0x82f   :  { %v13227_v52 = vld [vmem:[#allocation4 + $0x780] ss:$24 sps:$4 sm:$0xff]  }
 0x831   :  { %7013 = vmatpush2.bf16.msra.mxu0 %v13214_v17  ;;  %7054 = vmatpush2.bf16.msra.mxu1 %v13215_v1  ;;  %v6729_v17 = vpop.f32.mrf.mxu1  ;;  %v13228_v1 = vld [vmem:[#allocation4 + $0x15c] ss:$24 sps:$4 sm:$0xff]  }
 0x832   :  { %7014 = vmatprep.subr.bf16.mxu0 %v13216_v30  ;;  %7055 = vmatprep.subr.bf16.mxu1 %v13217_v36  ;;  %v13229_v30 = vld [vmem:[#allocation4 + $0x45c] ss:$24 sps:$4 sm:$0xff]  }
 0x835   :  { %7015 = vmatpush2.bf16.msra.mxu0 %v13218_v41  ;;  %7056 = vmatpush2.bf16.msra.mxu1 %v13219_v23 }
 0x836   :  { %7016 = vmatprep.subr.bf16.mxu0 %v13220_v12  ;;  %7057 = vmatprep.subr.bf16.mxu1 %v13221_v25  ;;  %v13230_v12 = vld [vmem:[#allocation4 + $0x158] ss:$24 sps:$4 sm:$0xff]  }
 0x837   :  { %v13231_v25 = vld [vmem:[#allocation4 + $0x458] ss:$24 sps:$4 sm:$0xff]  }
 0x839   :  { %7017 = vmatpush2.bf16.msra.mxu0 %v13222_v44  ;;  %7058 = vmatpush2.bf16.msra.mxu1 %v13223_v26 }
 0x83a   :  { %7018 = vmatprep.subr.bf16.mxu0 %v13224_v4  ;;  %7059 = vmatprep.subr.bf16.mxu1 %v13225_v58  ;;  %v13232_v4 = vld [vmem:[#allocation4 + $0x12c] ss:$24 sps:$4 sm:$0xff]  }
 0x83b   :  { %v13233_v58 = vld [vmem:[#allocation4 + $0x42c] ss:$24 sps:$4 sm:$0xff]  }
 0x83d   :  { %7019 = vmatpush2.bf16.msra.mxu0 %v13226_v22  ;;  %7060 = vmatpush2.bf16.msra.mxu1 %v13227_v52 }
 0x83e   :  { %7070 = vmatprep.subr.bf16.mxu0 %v13228_v1  ;;  %7111 = vmatprep.subr.bf16.mxu1 %v13229_v30 }
 0x840   :  { %v6766_v36 = vpop.f32.mrf.mxu0  ;;  %v6809_v41 = vpop.f32.mrf.mxu1  ;;  %7021 = vmatmul.mubr.bf16.vlgmr.msra.gmra.mxu0 %v14330_v57  ;;  %7062 = vmatmul.mubr.bf16.vlgmr.msra.gmra.mxu1 %v14338_v59 }
 0x841   :  { %v6767_v23 = vadd.f32 %v6766_v36, %v6723_v45  ;;  %7071 = vmatpush1.bf16.msra.mxu0 %v13230_v12  ;;  %7112 = vmatpush1.bf16.msra.mxu1 %v13231_v25  ;;  %v13235_v25 = vld [vmem:[#allocation4 + $0x428] ss:$24 sps:$4 sm:$0xff]  }
 0x842   :  { %v6768_v44 = vpop.f32.mrf.mxu0  ;;  %v6811_v26 = vpop.f32.mrf.mxu1  ;;  %7072 = vmatprep.subr.bf16.mxu0 %v13232_v4  ;;  %7113 = vmatprep.subr.bf16.mxu1 %v13233_v58  ;;  %v13236_v4 = vld [vmem:[#allocation4 + $0xfc] ss:$24 sps:$4 sm:$0xff]  }
 0x843   :  { %v6810_v22 = vadd.f32 %v6809_v41, %v6767_v23  ;;  %v6769_v52 = vadd.f32 %v6768_v44, %v6725_v31  ;;  %7102 = vmatprep.mubr.bf16.mxu0 %v14326_v56  ;;  %7143 = vmatprep.mubr.bf16.mxu1 %v14348_v62  ;;  %v13237_v58 = vld [vmem:[#allocation4 + $0x3fc] ss:$24 sps:$4 sm:$0xff]  }
 0x844   :  { %v6770_v1 = vpop.f32.mrf.mxu0  ;;  %v6813_v30 = vpop.f32.mrf.mxu1 }
 0x845   :  { %v7328_v45 = vmul.f32 %v14744_v43, %v6810_v22  ;;  %v6812_v36 = vadd.f32 %v6811_v26, %v6769_v52  ;;  %v6771_v12 = vadd.f32 %v6770_v1, %v6727_v5  ;;  %7073 = vmatpush1.bf16.msra.mxu0 %v13234_v61  ;;  %7114 = vmatpush1.bf16.msra.mxu1 %v13235_v25  ;;  %v13238_v22 = vld [vmem:[#allocation4 + $0xf8] ss:$24 sps:$4 sm:$0xff]   ;;  %v13240_v52 = vld [vmem:[#allocation4 + $0xcc] ss:$24 sps:$4 sm:$0xff]  }
 0x846   :  { %v6772_v14 = vpop.f32.mrf.mxu0  ;;  %7074 = vmatprep.subr.bf16.mxu0 %v13236_v4  ;;  %7115 = vmatprep.subr.bf16.mxu1 %v13237_v58  ;;  %v6815_v37 = vpop.f32.mrf.mxu1  ;;  %v13239_v61 = vld [vmem:[#allocation4 + $0x3f8] ss:$24 sps:$4 sm:$0xff]   ;;  %v13241_v1 = vld [vmem:[#allocation4 + $0x3cc] ss:$24 sps:$4 sm:$0xff]  }
 0x847   :  { %v7350_v31 = vrot.slane %v7328_v45, 4  ;;  %v7329_v41 = vmul.f32 %v14744_v43, %v6812_v36  ;;  %v6814_v23 = vadd.f32 %v6813_v30, %v6771_v12  ;;  %v6773_v44 = vadd.f32 %v6772_v14, %v6729_v17  ;;  %v13242_v12 = vld [vmem:[#allocation4 + $0xc8] ss:$24 sps:$4 sm:$0xff]  }
 0x849   :  { %v7351_v2 = vadd.f32 %v7350_v31, %v7328_v45  ;;  %v7356_v62 = vrot.slane %v7329_v41, 4  ;;  %v7334_v26 = vmul.f32 %v14753_v21, %v6814_v23  ;;  %v6816_v5 = vadd.f32 %v6815_v37, %v6773_v44  ;;  %7075 = vmatpush1.bf16.msra.mxu0 %v13238_v22  ;;  %7116 = vmatpush1.bf16.msra.mxu1 %v13239_v61  ;;  %v13243_v37 = vld [vmem:[#allocation4 + $0x3c8] ss:$24 sps:$4 sm:$0xff]   ;;  %v13244_v31 = vld [vmem:[#allocation4 + $0x9c] ss:$24 sps:$4 sm:$0xff]  }
 0x84a   :  { %7076 = vmatprep.subr.bf16.mxu0 %v13240_v52  ;;  %7117 = vmatprep.subr.bf16.mxu1 %v13241_v1  ;;  %v13245_v23 = vld [vmem:[#allocation4 + $0x39c] ss:$24 sps:$4 sm:$0xff]   ;;  %v13246_v1 = vld [vmem:[#allocation4 + $0x98] ss:$24 sps:$4 sm:$0xff]  }
 0x84b   :  { %v7352_v25 = vrot.slane %v7351_v2, 2  ;;  %v7357_v4 = vadd.f32 %v7356_v62, %v7329_v41  ;;  %v7386_v58 = vrot.slane %v7334_v26, 4  ;;  %v7335_v30 = vmul.f32 %v14753_v21, %v6816_v5 }
 0x84d   :  { %v7353_v14 = vadd.f32 %v7352_v25, %v7351_v2  ;;  %v7358_v17 = vrot.slane %v7357_v4, 2  ;;  %v7387_v45 = vadd.f32 %v7386_v58, %v7334_v26  ;;  %v7392_v36 = vrot.slane %v7335_v30, 4  ;;  %7077 = vmatpush1.bf16.msra.mxu0 %v13242_v12  ;;  %7118 = vmatpush1.bf16.msra.mxu1 %v13243_v37  ;;  %v13247_v26 = vld [vmem:[#allocation4 + $0x398] ss:$24 sps:$4 sm:$0xff]   ;;  %v13248_v25 = vld [vmem:[#allocation4 + $0x6c] ss:$24 sps:$4 sm:$0xff]  }
 0x84e   :  { %7078 = vmatprep.subr.bf16.mxu0 %v13244_v31  ;;  %7119 = vmatprep.subr.bf16.mxu1 %v13245_v23  ;;  %v13249_v58 = vld [vmem:[#allocation4 + $0x36c] ss:$24 sps:$4 sm:$0xff]  }
 0x84f   :  { %v7354_v44 = vrot.slane %v7353_v14, 1  ;;  %v7359_v22 = vadd.f32 %v7358_v17, %v7357_v4  ;;  %v7388_v61 = vrot.slane %v7387_v45, 2  ;;  %v7393_v52 = vadd.f32 %v7392_v36, %v7335_v30  ;;  %v13251_v17 = vld [vmem:[#allocation4 + $0x368] ss:$24 sps:$4 sm:$0xff]   ;;  %v13253_v36 = vld [vmem:[#allocation4 + $0x33c] ss:$24 sps:$4 sm:$0xff]  }
 0x851   :  { %v14776_v62 = vadd.f32 %v7354_v44, %v7353_v14  ;;  %v7360_v41 = vrot.slane %v7359_v22, 1  ;;  %v7389_v5 = vadd.f32 %v7388_v61, %v7387_v45  ;;  %v7394_v2 = vrot.slane %v7393_v52, 2  ;;  %7079 = vmatpush1.bf16.msra.mxu0 %v13246_v1  ;;  %7120 = vmatpush1.bf16.msra.mxu1 %v13247_v26  ;;  %v13250_v14 = vld [vmem:[#allocation4 + $0x68] ss:$24 sps:$4 sm:$0xff]   ;;  %v13252_v45 = vld [vmem:[#allocation4 + $0x3c] ss:$24 sps:$4 sm:$0xff]  }
 0x852   :  { %7080 = vmatprep.subr.bf16.mxu0 %v13248_v25  ;;  %7121 = vmatprep.subr.bf16.mxu1 %v13249_v58  ;;  %v13254_v44 = vld [vmem:[#allocation4 + $0x38] ss:$24 sps:$4 sm:$0xff]   ;;  %v13261_v1 = vld [vmem:[#allocation4 + $0x5dc] ss:$24 sps:$4 sm:$0xff]   ;;  %v13264_v58 = vld [vmem:[#allocation4 + $0x2ac] ss:$24 sps:$4 sm:$0xff]  }
 0x853   :  { %v14778_v12 = vadd.f32 %v7360_v41, %v7359_v22  ;;  %v7390_v37 = vrot.slane %v7389_v5, 1  ;;  %v7395_v31 = vadd.f32 %v7394_v2, %v7393_v52  ;;  %v13255_v61 = vld [vmem:[#allocation4 + $0x338] ss:$24 sps:$4 sm:$0xff]   ;;  %v13256_v22 = vld [vmem:[#allocation4 + $0xc] ss:$24 sps:$4 sm:$0xff]  }
 0x854   :  { %v13257_v52 = vld [vmem:[#allocation4 + $0x30c] ss:$24 sps:$4 sm:$0xff]   ;;  %v13258_v41 = vld [vmem:[#allocation4 + $0x8] ss:$24 sps:$4 sm:$0xff]   ;;  %v13260_v2 = vld [vmem:[#allocation4 + $0x2dc] ss:$24 sps:$4 sm:$0xff]  }
 0x855   :  { %v14780_v4 = vadd.f32 %v7390_v37, %v7389_v5  ;;  %v7396_v30 = vrot.slane %v7395_v31, 1  ;;  %7081 = vmatpush1.bf16.msra.mxu0 %v13250_v14  ;;  %7122 = vmatpush1.bf16.msra.mxu1 %v13251_v17  ;;  %v13259_v5 = vld [vmem:[#allocation4 + $0x308] ss:$24 sps:$4 sm:$0xff]   ;;  %v13262_v26 = vld [vmem:[#allocation4 + $0x2d8] ss:$24 sps:$4 sm:$0xff]  }
 0x856   :  { %7082 = vmatprep.subr.bf16.mxu0 %v13252_v45  ;;  %7123 = vmatprep.subr.bf16.mxu1 %v13253_v36  ;;  %v13263_v25 = vld [vmem:[#allocation4 + $0x5d8] ss:$24 sps:$4 sm:$0xff]   ;;  %v13265_v37 = vld [vmem:[#allocation4 + $0x5ac] ss:$24 sps:$4 sm:$0xff]   ;;  %v13268_v14 = vld [vmem:[#allocation4 + $0x27c] ss:$24 sps:$4 sm:$0xff]  }
 0x857   :  { %v14782_v23 = vadd.f32 %v7396_v30, %v7395_v31  ;;  %v13266_v31 = vld [vmem:[#allocation4 + $0x2a8] ss:$24 sps:$4 sm:$0xff]   ;;  %v13269_v17 = vld [vmem:[#allocation4 + $0x57c] ss:$24 sps:$4 sm:$0xff]   ;;  %v13270_v45 = vld [vmem:[#allocation4 + $0x278] ss:$24 sps:$4 sm:$0xff]  }
 0x858   :  { %v13267_v30 = vld [vmem:[#allocation4 + $0x5a8] ss:$24 sps:$4 sm:$0xff]   ;;  %v13271_v36 = vld [vmem:[#allocation4 + $0x578] ss:$24 sps:$4 sm:$0xff]  }
 0x859   :  { %7083 = vmatpush1.bf16.msra.mxu0 %v13254_v44  ;;  %7124 = vmatpush1.bf16.msra.mxu1 %v13255_v61  ;;  %v13272_v44 = vld [vmem:[#allocation4 + $0x24c] ss:$24 sps:$4 sm:$0xff]  }
 0x85a   :  { %7084 = vmatprep.subr.bf16.mxu0 %v13256_v22  ;;  %7125 = vmatprep.subr.bf16.mxu1 %v13257_v52  ;;  %v13273_v61 = vld [vmem:[#allocation4 + $0x54c] ss:$24 sps:$4 sm:$0xff]   ;;  %v13274_v22 = vld [vmem:[#allocation4 + $0x248] ss:$24 sps:$4 sm:$0xff]  }
 0x85b   :  { %v13275_v52 = vld [vmem:[#allocation4 + $0x548] ss:$24 sps:$4 sm:$0xff]  }
 0x85d   :  { %7085 = vmatpush1.bf16.msra.mxu0 %v13258_v41  ;;  %7126 = vmatpush1.bf16.msra.mxu1 %v13259_v5  ;;  %v13276_v41 = vld [vmem:[#allocation4 + $0x21c] ss:$24 sps:$4 sm:$0xff]  }
 0x85e   :  { %7086 = vmatprep.subr.bf16.mxu0 %v13260_v2  ;;  %7127 = vmatprep.subr.bf16.mxu1 %v13261_v1  ;;  %v13277_v5 = vld [vmem:[#allocation4 + $0x51c] ss:$24 sps:$4 sm:$0xff]   ;;  %v13278_v2 = vld [vmem:[#allocation4 + $0x218] ss:$24 sps:$4 sm:$0xff]   ;;  %v13279_v1 = vld [vmem:[#allocation4 + $0x1ec] ss:$24 sps:$4 sm:$0xff]  }
 0x861   :  { %7087 = vmatpush2.bf16.msra.mxu0 %v13262_v26  ;;  %7128 = vmatpush2.bf16.msra.mxu1 %v13263_v25  ;;  %v13280_v26 = vld [vmem:[#allocation4 + $0x1e8] ss:$24 sps:$4 sm:$0xff]   ;;  %v13281_v25 = vld [vmem:[#allocation4 + $0x1bc] ss:$24 sps:$4 sm:$0xff]  }
 0x862   :  { %7088 = vmatprep.subr.bf16.mxu0 %v13264_v58  ;;  %7129 = vmatprep.subr.bf16.mxu1 %v13265_v37  ;;  %v13282_v58 = vld [vmem:[#allocation4 + $0x1b8] ss:$24 sps:$4 sm:$0xff]   ;;  %v13283_v37 = vld [vmem:[#allocation4 + $0x18c] ss:$24 sps:$4 sm:$0xff]  }
 0x865   :  { %7089 = vmatpush2.bf16.msra.mxu0 %v13266_v31  ;;  %7130 = vmatpush2.bf16.msra.mxu1 %v13267_v30 }
 0x866   :  { %7090 = vmatprep.subr.bf16.mxu0 %v13268_v14  ;;  %7131 = vmatprep.subr.bf16.mxu1 %v13269_v17  ;;  %v13287_v14 = vld [vmem:[#allocation4 + $0x72c] ss:$24 sps:$4 sm:$0xff]  }
 0x869   :  { %7091 = vmatpush2.bf16.msra.mxu0 %v13270_v45  ;;  %7132 = vmatpush2.bf16.msra.mxu1 %v13271_v36  ;;  %v13288_v36 = vld [vmem:[#allocation4 + $0x728] ss:$24 sps:$4 sm:$0xff]  }
 0x86a   :  { %7092 = vmatprep.subr.bf16.mxu0 %v13272_v44  ;;  %7133 = vmatprep.subr.bf16.mxu1 %v13273_v61  ;;  %v13289_v61 = vld [vmem:[#allocation4 + $0x6fc] ss:$24 sps:$4 sm:$0xff]  }
 0x86d   :  { %7093 = vmatpush2.bf16.msra.mxu0 %v13274_v22  ;;  %7134 = vmatpush2.bf16.msra.mxu1 %v13275_v52  ;;  %v13290_v22 = vld [vmem:[#allocation4 + $0x6f8] ss:$24 sps:$4 sm:$0xff]   ;;  %v13292_v52 = vld [vmem:[#allocation4 + $0x6c8] ss:$24 sps:$4 sm:$0xff]  }
 0x86e   :  { %7094 = vmatprep.subr.bf16.mxu0 %v13276_v41  ;;  %7135 = vmatprep.subr.bf16.mxu1 %v13277_v5  ;;  %v13294_v41 = vld [vmem:[#allocation4 + $0x698] ss:$24 sps:$4 sm:$0xff]   ;;  %v15734_v5 = vld [vmem:[#allocation47_spill] sm:$0xff] }
 0x871   :  { %7095 = vmatpush2.bf16.msra.mxu0 %v13278_v2  ;;  %7136 = vmatpush2.bf16.msra.mxu1 %v14515_v34  ;;  %v13284_v34 = vld [vmem:[#allocation4 + $0x188] ss:$24 sps:$4 sm:$0xff]   ;;  %v15735_v2 = vld [vmem:[#allocation48_spill] sm:$0xff] }
 0x872   :  { %7096 = vmatprep.subr.bf16.mxu0 %v13279_v1  ;;  %7137 = vmatprep.subr.bf16.mxu1 %v14517_v3  ;;  %v13285_v3 = vld [vmem:[#allocation4 + $0x75c] ss:$24 sps:$4 sm:$0xff]  }
 0x873   :  { %v15736_v1 = vld [vmem:[#allocation49_spill] sm:$0xff] }
 0x875   :  { %7097 = vmatpush2.bf16.msra.mxu0 %v13280_v26  ;;  %7138 = vmatpush2.bf16.msra.mxu1 %v14519_v51  ;;  %v15737_v26 = vld [vmem:[#allocation50_spill] sm:$0xff] }
 0x876   :  { %7098 = vmatprep.subr.bf16.mxu0 %v13281_v25  ;;  %7139 = vmatprep.subr.bf16.mxu1 %v14522_v42  ;;  %v15738_v25 = vld [vmem:[#allocation51_spill] sm:$0xff] }
 0x879   :  { %7099 = vmatpush2.bf16.msra.mxu0 %v13282_v58  ;;  %7140 = vmatpush2.bf16.msra.mxu1 %v14525_v18  ;;  %v13286_v18 = vld [vmem:[#allocation4 + $0x758] ss:$24 sps:$4 sm:$0xff]  }
 0x87a   :  { %7100 = vmatprep.subr.bf16.mxu0 %v13283_v37  ;;  %7141 = vmatprep.subr.bf16.mxu1 %v14528_v27 }
 0x87d   :  { %7101 = vmatpush2.bf16.msra.mxu0 %v13284_v34  ;;  %7142 = vmatpush2.bf16.msra.mxu1 %v14531_v20  ;;  %v13318_v34 = vld [vmem:[#allocation4 + $0x460] ss:$24 sps:$4 sm:$0xff]  }
 0x87e   :  { %7152 = vmatprep.subr.bf16.mxu0 %v13285_v3  ;;  %7193 = vmatprep.subr.bf16.mxu1 %v14534_v54  ;;  %v15739_v3 = vld [vmem:[#allocation52_spill] sm:$0xff] }
 0x880   :  { %v6852_v51 = vpop.f32.mrf.mxu0  ;;  %v6895_v31 = vpop.f32.mrf.mxu1  ;;  %7103 = vmatmul.mubr.bf16.vlgmr.msra.gmra.mxu0 %v14322_v55  ;;  %7144 = vmatmul.mubr.bf16.vlgmr.msra.gmra.mxu1 %v14330_v57 }
 0x881   :  { %v14794_v42 = vadd.f32 %v6895_v31, %v6852_v51  ;;  %7153 = vmatpush1.bf16.msra.mxu0 %v13286_v18  ;;  %7194 = vmatpush1.bf16.msra.mxu1 %v14538_v15  ;;  %v13319_v18 = vld [vmem:[#allocation4 + $0x434] ss:$24 sps:$4 sm:$0xff]  }
 0x882   :  { %v6854_v27 = vpop.f32.mrf.mxu0  ;;  %v6897_v30 = vpop.f32.mrf.mxu1  ;;  %7154 = vmatprep.subr.bf16.mxu0 %v13287_v14  ;;  %7195 = vmatprep.subr.bf16.mxu1 %v14541_v28 }
 0x883   :  { %v14798_v20 = vadd.f32 %v6897_v30, %v6854_v27  ;;  %7184 = vmatprep.mubr.bf16.mxu0 %v14342_v60  ;;  %7225 = vmatprep.mubr.bf16.mxu1 %v14326_v56  ;;  %v13291_v56 = vld [vmem:[#allocation4 + $0x6cc] ss:$24 sps:$4 sm:$0xff]   ;;  %v15740_v27 = vld [vmem:[#allocation53_spill] sm:$0xff] }
 0x884   :  { %v6856_v54 = vpop.f32.mrf.mxu0  ;;  %v6899_v17 = vpop.f32.mrf.mxu1 }
 0x885   :  { %v14802_v45 = vadd.f32 %v6899_v17, %v6856_v54  ;;  %7155 = vmatpush1.bf16.msra.mxu0 %v13288_v36  ;;  %7196 = vmatpush1.bf16.msra.mxu1 %v14546_v29  ;;  %v13293_v29 = vld [vmem:[#allocation4 + $0x69c] ss:$24 sps:$4 sm:$0xff]   ;;  %v15741_v54 = vld [vmem:[#allocation46_spill] sm:$0xff] }
 0x886   :  { %v6858_v15 = vpop.f32.mrf.mxu0  ;;  %v6901_v44 = vpop.f32.mrf.mxu1  ;;  %7156 = vmatprep.subr.bf16.mxu0 %v13289_v61  ;;  %7197 = vmatprep.subr.bf16.mxu1 %v14549_v13  ;;  %v13295_v13 = vld [vmem:[#allocation4 + $0x66c] ss:$24 sps:$4 sm:$0xff]  }
 0x887   :  { %v14806_v28 = vadd.f32 %v6901_v44, %v6858_v15  ;;  %v13320_v44 = vld [vmem:[#allocation4 + $0x430] ss:$24 sps:$4 sm:$0xff]   ;;  %v15742_v61 = vld [vmem:[#allocation54_spill] sm:$0xff] }
 0x889   :  { %7157 = vmatpush1.bf16.msra.mxu0 %v13290_v22  ;;  %7198 = vmatpush1.bf16.msra.mxu1 %v14554_v7  ;;  %v13296_v7 = vld [vmem:[#allocation4 + $0x668] ss:$24 sps:$4 sm:$0xff]  }
 0x88a   :  { %7158 = vmatprep.subr.bf16.mxu0 %v13291_v56  ;;  %7199 = vmatprep.subr.bf16.mxu1 %v14557_v11  ;;  %v13297_v11 = vld [vmem:[#allocation4 + $0x63c] ss:$24 sps:$4 sm:$0xff]  }
 0x88d   :  { %7159 = vmatpush1.bf16.msra.mxu0 %v13292_v52  ;;  %7200 = vmatpush1.bf16.msra.mxu1 %v14560_v6  ;;  %v13298_v6 = vld [vmem:[#allocation4 + $0x638] ss:$24 sps:$4 sm:$0xff]   ;;  %v13321_v52 = vld [vmem:[#allocation4 + $0x404] ss:$24 sps:$4 sm:$0xff]  }
 0x88e   :  { %7160 = vmatprep.subr.bf16.mxu0 %v13293_v29  ;;  %7201 = vmatprep.subr.bf16.mxu1 %v14563_v24  ;;  %v13299_v24 = vld [vmem:[#allocation4 + $0x60c] ss:$24 sps:$4 sm:$0xff]  }
 0x891   :  { %7161 = vmatpush1.bf16.msra.mxu0 %v13294_v41  ;;  %7202 = vmatpush1.bf16.msra.mxu1 %v14566_v9  ;;  %v13300_v9 = vld [vmem:[#allocation4 + $0x608] ss:$24 sps:$4 sm:$0xff]  }
 0x892   :  { %7162 = vmatprep.subr.bf16.mxu0 %v13295_v13  ;;  %7203 = vmatprep.subr.bf16.mxu1 %v14569_v47  ;;  %v13301_v47 = vld [vmem:[#allocation4 + $0x8dc] ss:$24 sps:$4 sm:$0xff]  }
 0x895   :  { %7163 = vmatpush1.bf16.msra.mxu0 %v13296_v7  ;;  %7204 = vmatpush1.bf16.msra.mxu1 %v14572_v46  ;;  %v13302_v46 = vld [vmem:[#allocation4 + $0x8d8] ss:$24 sps:$4 sm:$0xff]  }
 0x896   :  { %7164 = vmatprep.subr.bf16.mxu0 %v13297_v11  ;;  %7205 = vmatprep.subr.bf16.mxu1 %v14575_v35  ;;  %v13303_v35 = vld [vmem:[#allocation4 + $0x8ac] ss:$24 sps:$4 sm:$0xff]  }
 0x899   :  { %7165 = vmatpush1.bf16.msra.mxu0 %v13298_v6  ;;  %7206 = vmatpush1.bf16.msra.mxu1 %v14578_v39  ;;  %v13304_v39 = vld [vmem:[#allocation4 + $0x8a8] ss:$24 sps:$4 sm:$0xff]  }
 0x89a   :  { %7166 = vmatprep.subr.bf16.mxu0 %v13299_v24  ;;  %7207 = vmatprep.subr.bf16.mxu1 %v14581_v38  ;;  %v13305_v38 = vld [vmem:[#allocation4 + $0x87c] ss:$24 sps:$4 sm:$0xff]   ;;  %v13322_v6 = vld [vmem:[#allocation4 + $0x400] ss:$24 sps:$4 sm:$0xff]  }
 0x89b   :  { %v15744_v24 = vld [vmem:[#allocation56_spill] sm:$0xff] }
 0x89d   :  { %7167 = vmatpush1.bf16.msra.mxu0 %v13300_v9  ;;  %7208 = vmatpush1.bf16.msra.mxu1 %v14584_v33  ;;  %v13306_v33 = vld [vmem:[#allocation4 + $0x878] ss:$24 sps:$4 sm:$0xff]   ;;  %v13323_v9 = vld [vmem:[#allocation4 + $0x3d4] ss:$24 sps:$4 sm:$0xff]  }
 0x89e   :  { %7168 = vmatprep.subr.bf16.mxu0 %v13301_v47  ;;  %7209 = vmatprep.subr.bf16.mxu1 %v14587_v8  ;;  %v13307_v8 = vld [vmem:[#allocation4 + $0x84c] ss:$24 sps:$4 sm:$0xff]   ;;  %v15745_v47 = vld [vmem:[#allocation57_spill] sm:$0xff] }
 0x8a1   :  { %7169 = vmatpush2.bf16.msra.mxu0 %v13302_v46  ;;  %7210 = vmatpush2.bf16.msra.mxu1 %v14590_v0  ;;  %v13308_v0 = vld [vmem:[#allocation4 + $0x848] ss:$24 sps:$4 sm:$0xff]  }
 0x8a2   :  { %7170 = vmatprep.subr.bf16.mxu0 %v13303_v35  ;;  %7211 = vmatprep.subr.bf16.mxu1 %v14593_v16  ;;  %v13309_v16 = vld [vmem:[#allocation4 + $0x81c] ss:$24 sps:$4 sm:$0xff]  }
 0x8a5   :  { %7171 = vmatpush2.bf16.msra.mxu0 %v13304_v39  ;;  %7212 = vmatpush2.bf16.msra.mxu1 %v14596_v49  ;;  %v13310_v49 = vld [vmem:[#allocation4 + $0x818] ss:$24 sps:$4 sm:$0xff]  }
 0x8a6   :  { %7172 = vmatprep.subr.bf16.mxu0 %v13305_v38  ;;  %7213 = vmatprep.subr.bf16.mxu1 %v14599_v50  ;;  %v13311_v50 = vld [vmem:[#allocation4 + $0x7ec] ss:$24 sps:$4 sm:$0xff]  }
 0x8a9   :  { %7173 = vmatpush2.bf16.msra.mxu0 %v13306_v33  ;;  %7214 = vmatpush2.bf16.msra.mxu1 %v14602_v32  ;;  %v13312_v32 = vld [vmem:[#allocation4 + $0x7e8] ss:$24 sps:$4 sm:$0xff]  }
 0x8aa   :  { %7174 = vmatprep.subr.bf16.mxu0 %v13307_v8  ;;  %7215 = vmatprep.subr.bf16.mxu1 %v14605_v19  ;;  %v13313_v19 = vld [vmem:[#allocation4 + $0x7bc] ss:$24 sps:$4 sm:$0xff]  }
 0x8ad   :  { %7175 = vmatpush2.bf16.msra.mxu0 %v13308_v0  ;;  %7216 = vmatpush2.bf16.msra.mxu1 %v14608_v40  ;;  %v13314_v40 = vld [vmem:[#allocation4 + $0x7b8] ss:$24 sps:$4 sm:$0xff]  }
 0x8ae   :  { %7176 = vmatprep.subr.bf16.mxu0 %v13309_v16  ;;  %7217 = vmatprep.subr.bf16.mxu1 %v14611_v48  ;;  %v13315_v48 = vld [vmem:[#allocation4 + $0x78c] ss:$24 sps:$4 sm:$0xff]   ;;  %v13324_v16 = vld [vmem:[#allocation4 + $0x3d0] ss:$24 sps:$4 sm:$0xff]  }
 0x8b1   :  { %7177 = vmatpush2.bf16.msra.mxu0 %v13310_v49  ;;  %7218 = vmatpush2.bf16.msra.mxu1 %v14614_v10  ;;  %v13316_v10 = vld [vmem:[#allocation4 + $0x788] ss:$24 sps:$4 sm:$0xff]  }
 0x8b2   :  { %7178 = vmatprep.subr.bf16.mxu0 %v13311_v50  ;;  %7219 = vmatprep.subr.bf16.mxu1 %v14617_v63  ;;  %v13317_v63 = vld [vmem:[#allocation4 + $0x464] ss:$24 sps:$4 sm:$0xff]   ;;  %v15747_v50 = vld [vmem:[#allocation59_spill] sm:$0xff] }
 0x8b3   :  { %v15746_v49 = vld [vmem:[#allocation58_spill] sm:$0xff] }
 0x8b5   :  { %7179 = vmatpush2.bf16.msra.mxu0 %v13312_v32  ;;  %7220 = vmatpush2.bf16.msra.mxu1 %v14620_v53 }
 0x8b6   :  { %7180 = vmatprep.subr.bf16.mxu0 %v13313_v19  ;;  %7221 = vmatprep.subr.bf16.mxu1 %v15734_v5 }
 0x8b9   :  { %7181 = vmatpush2.bf16.msra.mxu0 %v13314_v40  ;;  %7222 = vmatpush2.bf16.msra.mxu1 %v15735_v2 }
 0x8ba   :  { %7182 = vmatprep.subr.bf16.mxu0 %v13315_v48  ;;  %7223 = vmatprep.subr.bf16.mxu1 %v15736_v1 }
 0x8bd   :  { %7183 = vmatpush2.bf16.msra.mxu0 %v13316_v10  ;;  %7224 = vmatpush2.bf16.msra.mxu1 %v15737_v26  ;;  %v13326_v10 = vld [vmem:[#allocation4 + $0x3a0] ss:$24 sps:$4 sm:$0xff]   ;;  %v15748_v26 = vld [vmem:[#allocation60_spill] sm:$0xff] }
 0x8be   :  { %7234 = vmatprep.subr.bf16.mxu0 %v13317_v63  ;;  %7275 = vmatprep.subr.bf16.mxu1 %v15738_v25  ;;  %v13327_v63 = vld [vmem:[#allocation4 + $0x374] ss:$24 sps:$4 sm:$0xff]   ;;  %v15749_v25 = vld [vmem:[#allocation61_spill] sm:$0xff] }
 0x8c0   :  { %v6938_v53 = vpop.f32.mrf.mxu0  ;;  %v14836_v58 = vpop.f32.mrf.mxu1  ;;  %7185 = vmatmul.mubr.bf16.vlgmr.msra.gmra.mxu0 %v14338_v59  ;;  %7226 = vmatmul.mubr.bf16.vlgmr.msra.gmra.mxu1 %v14322_v55 }
 0x8c1   :  { %v6939_v37 = vadd.f32 %v6938_v53, %v14794_v42  ;;  %7235 = vmatpush1.bf16.msra.mxu0 %v13318_v34  ;;  %7276 = vmatpush1.bf16.msra.mxu1 %v15739_v3  ;;  %v13328_v3 = vld [vmem:[#allocation4 + $0x370] ss:$24 sps:$4 sm:$0xff]  }
 0x8c2   :  { %v6940_v51 = vpop.f32.mrf.mxu0  ;;  %v14842_v31 = vpop.f32.mrf.mxu1  ;;  %7236 = vmatprep.subr.bf16.mxu0 %v13319_v18  ;;  %7277 = vmatprep.subr.bf16.mxu1 %v15740_v27  ;;  %v13329_v18 = vld [vmem:[#allocation4 + $0x344] ss:$24 sps:$4 sm:$0xff]   ;;  %v15751_v27 = vld [vmem:[#allocation63_spill] sm:$0xff] }
 0x8c3   :  { %v7330_v30 = vmul.f32 %v14744_v43, %v6939_v37  ;;  %v6941_v14 = vadd.f32 %v6940_v51, %v14798_v20  ;;  %7266 = vmatprep.mubr.bf16.mxu0 %v15741_v54  ;;  %7307 = vmatprep.mubr.bf16.mxu1 %v14342_v60  ;;  %v15743_v20 = vld [vmem:[#allocation55_spill] sm:$0xff]  ;;  %v15750_v51 = vld [vmem:[#allocation62_spill] sm:$0xff] }
 0x8c4   :  { %v6942_v55 = vpop.f32.mrf.mxu0  ;;  %v6985_v42 = vpop.f32.mrf.mxu1  ;;  %v13331_v54 = vld [vmem:[#allocation4 + $0x314] ss:$24 sps:$4 sm:$0xff]  }
 0x8c5   :  { %v7362_v17 = vrot.slane %v7330_v30, 4  ;;  %v7331_v36 = vmul.f32 %v14744_v43, %v6941_v14  ;;  %v6943_v15 = vadd.f32 %v6942_v55, %v14802_v45  ;;  %7237 = vmatpush1.bf16.msra.mxu0 %v13320_v44  ;;  %7278 = vmatpush1.bf16.msra.mxu1 %v15742_v61  ;;  %v15752_v14 = vld [vmem:[#allocation64_spill] sm:$0xff]  ;;  %v15753_v55 = vld [vmem:[#allocation65_spill] sm:$0xff] }
 0x8c6   :  { %v6944_v22 = vpop.f32.mrf.mxu0  ;;  %v6986_v56 = vpop.f32.mrf.mxu1  ;;  %7238 = vmatprep.subr.bf16.mxu0 %v13321_v52  ;;  %7279 = vmatprep.subr.bf16.mxu1 %v15743_v20  ;;  %v13332_v42 = vld [vmem:[#allocation4 + $0x310] ss:$24 sps:$4 sm:$0xff]   ;;  %v13334_v44 = vld [vmem:[#allocation4 + $0x5e0] ss:$24 sps:$4 sm:$0xff]  }
 0x8c7   :  { %v7363_v29 = vadd.f32 %v7362_v17, %v7330_v30  ;;  %v7368_v41 = vrot.slane %v7331_v36, 4  ;;  %v7336_v60 = vmul.f32 %v14753_v21, %v6943_v15  ;;  %v6945_v13 = vadd.f32 %v6944_v22, %v14806_v28  ;;  %v13330_v30 = vld [vmem:[#allocation4 + $0x340] ss:$24 sps:$4 sm:$0xff]   ;;  %v15755_v15 = vld [vmem:[#allocation67_spill] sm:$0xff]  ;;  %v15756_v61 = vld [vmem:[#allocation68_spill] sm:$0xff] }
 0x8c8   :  { %v15754_v17 = vld [vmem:[#allocation66_spill] sm:$0xff]  ;;  %v13335_v22 = vld [vmem:[#allocation4 + $0x5b4] ss:$24 sps:$4 sm:$0xff]   ;;  %v15757_v56 = vld [vmem:[#allocation69_spill] sm:$0xff] }
 0x8c9   :  { %v7364_v7 = vrot.slane %v7363_v29, 2  ;;  %v7369_v43 = vadd.f32 %v7368_v41, %v7331_v36  ;;  %v7398_v11 = vrot.slane %v7336_v60, 4  ;;  %v7337_v45 = vmul.f32 %v14753_v21, %v6945_v13  ;;  %7239 = vmatpush1.bf16.msra.mxu0 %v13322_v6  ;;  %7280 = vmatpush1.bf16.msra.mxu1 %v15744_v24  ;;  %v13325_v21 = vld [vmem:[#allocation4 + $0x3a4] ss:$24 sps:$4 sm:$0xff]   ;;  %v13336_v52 = vld [vmem:[#allocation4 + $0x5b0] ss:$24 sps:$4 sm:$0xff]  }
 0x8ca   :  { %7240 = vmatprep.subr.bf16.mxu0 %v13323_v9  ;;  %7281 = vmatprep.subr.bf16.mxu1 %v15745_v47  ;;  %v13333_v36 = vld [vmem:[#allocation4 + $0x5e4] ss:$24 sps:$4 sm:$0xff]   ;;  %v15759_v41 = vld [vmem:[#allocation71_spill] sm:$0xff]  ;;  %v15760_v13 = vld [vmem:[#allocation72_spill] sm:$0xff] }
 0x8cb   :  { %v7365_v46 = vadd.f32 %v7364_v7, %v7363_v29  ;;  %v7370_v35 = vrot.slane %v7369_v43, 2  ;;  %v7399_v39 = vadd.f32 %v7398_v11, %v7336_v60  ;;  %v7404_v38 = vrot.slane %v7337_v45, 4  ;;  %v15758_v20 = vld [vmem:[#allocation70_spill] sm:$0xff]  ;;  %v13339_v7 = vld [vmem:[#allocation4 + $0x554] ss:$24 sps:$4 sm:$0xff]  }
 0x8cc   :  { %v13337_v29 = vld [vmem:[#allocation4 + $0x584] ss:$24 sps:$4 sm:$0xff]   ;;  %v13338_v60 = vld [vmem:[#allocation4 + $0x580] ss:$24 sps:$4 sm:$0xff]   ;;  %v13340_v11 = vld [vmem:[#allocation4 + $0x550] ss:$24 sps:$4 sm:$0xff]  }
 0x8cd   :  { %v7366_v33 = vrot.slane %v7365_v46, 1  ;;  %v7371_v8 = vadd.f32 %v7370_v35, %v7369_v43  ;;  %v7400_v28 = vrot.slane %v7399_v39, 2  ;;  %v7405_v0 = vadd.f32 %v7404_v38, %v7337_v45  ;;  %7241 = vmatpush1.bf16.msra.mxu0 %v13324_v16  ;;  %7282 = vmatpush1.bf16.msra.mxu1 %v15746_v49  ;;  %v15761_v43 = vld [vmem:[#allocation73_spill] sm:$0xff]  ;;  %v15762_v45 = vld [vmem:[#allocation74_spill] sm:$0xff]  ;;  %v15763_v24 = vld [vmem:[#allocation75_spill] sm:$0xff] }
 0x8ce   :  { %7242 = vmatprep.subr.bf16.mxu0 %v13325_v21  ;;  %7283 = vmatprep.subr.bf16.mxu1 %v15747_v50  ;;  %v13341_v6 = vld [vmem:[#allocation4 + $0x524] ss:$24 sps:$4 sm:$0xff]   ;;  %v13342_v9 = vld [vmem:[#allocation4 + $0x520] ss:$24 sps:$4 sm:$0xff]   ;;  %v15764_v47 = vld [vmem:[#allocation76_spill] sm:$0xff] }
 0x8cf   :  { %v14860_v32 = vadd.f32 %v7366_v33, %v7365_v46  ;;  %v7372_v19 = vrot.slane %v7371_v8, 1  ;;  %v7401_v5 = vadd.f32 %v7400_v28, %v7399_v39  ;;  %v7406_v40 = vrot.slane %v7405_v0, 2  ;;  %v13343_v46 = vld [vmem:[#allocation4 + $0x4f4] ss:$24 sps:$4 sm:$0xff]   ;;  %v15765_v35 = vld [vmem:[#allocation77_spill] sm:$0xff]  ;;  %v15766_v38 = vld [vmem:[#allocation78_spill] sm:$0xff] }
 0x8d0   :  { %v13344_v39 = vld [vmem:[#allocation4 + $0x4f0] ss:$24 sps:$4 sm:$0xff]   ;;  %v13345_v33 = vld [vmem:[#allocation4 + $0x4c4] ss:$24 sps:$4 sm:$0xff]   ;;  %v13346_v28 = vld [vmem:[#allocation4 + $0x4c0] ss:$24 sps:$4 sm:$0xff]  }
 0x8d1   :  { %v14862_v2 = vadd.f32 %v7372_v19, %v7371_v8  ;;  %v7402_v48 = vrot.slane %v7401_v5, 1  ;;  %v7407_v1 = vadd.f32 %v7406_v40, %v7405_v0  ;;  %7243 = vmatpush1.bf16.msra.mxu0 %v13326_v10  ;;  %7284 = vmatpush1.bf16.msra.mxu1 %v15748_v26  ;;  %v15767_v8 = vld [vmem:[#allocation79_spill] sm:$0xff]  ;;  %v15768_v0 = vld [vmem:[#allocation80_spill] sm:$0xff]  ;;  %v15769_v49 = vld [vmem:[#allocation81_spill] sm:$0xff] }
 0x8d2   :  { %7244 = vmatprep.subr.bf16.mxu0 %v13327_v63  ;;  %7285 = vmatprep.subr.bf16.mxu1 %v15749_v25  ;;  %v13347_v16 = vld [vmem:[#allocation4 + $0x494] ss:$24 sps:$4 sm:$0xff]   ;;  %v13348_v21 = vld [vmem:[#allocation4 + $0x490] ss:$24 sps:$4 sm:$0xff]   ;;  %v15770_v50 = vld [vmem:[#allocation82_spill] sm:$0xff] }
 0x8d3   :  { %v14866_v53 = vadd.f32 %v7402_v48, %v7401_v5  ;;  %v7408_v37 = vrot.slane %v7407_v1, 1 }
 0x8d5   :  { %v14868_v34 = vadd.f32 %v7408_v37, %v7407_v1  ;;  %7245 = vmatpush1.bf16.msra.mxu0 %v13328_v3  ;;  %7286 = vmatpush1.bf16.msra.mxu1 %v15750_v51 }
 0x8d6   :  { %7246 = vmatprep.subr.bf16.mxu0 %v13329_v18  ;;  %7287 = vmatprep.subr.bf16.mxu1 %v15751_v27 }
 0x8d9   :  { %7247 = vmatpush1.bf16.msra.mxu0 %v13330_v30  ;;  %7288 = vmatpush1.bf16.msra.mxu1 %v15752_v14 }
 0x8da   :  { %7248 = vmatprep.subr.bf16.mxu0 %v13331_v54  ;;  %7289 = vmatprep.subr.bf16.mxu1 %v15753_v55 }
 0x8dd   :  { %7249 = vmatpush1.bf16.msra.mxu0 %v13332_v42  ;;  %7290 = vmatpush1.bf16.msra.mxu1 %v15754_v17 }
 0x8de   :  { %7250 = vmatprep.subr.bf16.mxu0 %v13333_v36  ;;  %7291 = vmatprep.subr.bf16.mxu1 %v15755_v15 }
 0x8e1   :  { %7251 = vmatpush2.bf16.msra.mxu0 %v13334_v44  ;;  %7292 = vmatpush2.bf16.msra.mxu1 %v15756_v61 }
 0x8e2   :  { %7252 = vmatprep.subr.bf16.mxu0 %v13335_v22  ;;  %7293 = vmatprep.subr.bf16.mxu1 %v15757_v56 }
 0x8e5   :  { %7253 = vmatpush2.bf16.msra.mxu0 %v13336_v52  ;;  %7294 = vmatpush2.bf16.msra.mxu1 %v15758_v20 }
 0x8e6   :  { %7254 = vmatprep.subr.bf16.mxu0 %v13337_v29  ;;  %7295 = vmatprep.subr.bf16.mxu1 %v15759_v41 }
 0x8e9   :  { %7255 = vmatpush2.bf16.msra.mxu0 %v13338_v60  ;;  %7296 = vmatpush2.bf16.msra.mxu1 %v15760_v13 }
 0x8ea   :  { %7256 = vmatprep.subr.bf16.mxu0 %v13339_v7  ;;  %7297 = vmatprep.subr.bf16.mxu1 %v15761_v43 }
 0x8ed   :  { %7257 = vmatpush2.bf16.msra.mxu0 %v13340_v11  ;;  %7298 = vmatpush2.bf16.msra.mxu1 %v15762_v45 }
 0x8ee   :  { %7258 = vmatprep.subr.bf16.mxu0 %v13341_v6  ;;  %7299 = vmatprep.subr.bf16.mxu1 %v15763_v24 }
 0x8f1   :  { %7259 = vmatpush2.bf16.msra.mxu0 %v13342_v9  ;;  %7300 = vmatpush2.bf16.msra.mxu1 %v15764_v47 }
 0x8f2   :  { %7260 = vmatprep.subr.bf16.mxu0 %v13343_v46  ;;  %7301 = vmatprep.subr.bf16.mxu1 %v15765_v35 }
 0x8f5   :  { %7261 = vmatpush2.bf16.msra.mxu0 %v13344_v39  ;;  %7302 = vmatpush2.bf16.msra.mxu1 %v15766_v38 }
 0x8f6   :  { %7262 = vmatprep.subr.bf16.mxu0 %v13345_v33  ;;  %7303 = vmatprep.subr.bf16.mxu1 %v15767_v8 }
 0x8f9   :  { %7263 = vmatpush2.bf16.msra.mxu0 %v13346_v28  ;;  %7304 = vmatpush2.bf16.msra.mxu1 %v15768_v0 }
 0x8fa   :  { %7264 = vmatprep.subr.bf16.mxu0 %v13347_v16  ;;  %7305 = vmatprep.subr.bf16.mxu1 %v15769_v49 }
 0x8fd   :  { %7265 = vmatpush2.bf16.msra.mxu0 %v13348_v21  ;;  %7306 = vmatpush2.bf16.msra.mxu1 %v15770_v50 }
 0x900   :  { %v7022_v19 = vpop.f32.mrf.mxu0  ;;  %v7063_v5 = vpop.f32.mrf.mxu1  ;;  %7267 = vmatmul.mubr.bf16.vlgmr.msra.gmra.mxu0 %v14330_v57  ;;  %7308 = vmatmul.mubr.bf16.vlgmr.msra.gmra.mxu1 %v14338_v59 }
 0x901   :  { %v7023_v40 = vadd.f32 %v7022_v19, %v14836_v58 }
 0x902   :  { %v7024_v48 = vpop.f32.mrf.mxu0  ;;  %v7065_v1 = vpop.f32.mrf.mxu1 }
 0x903   :  { %v14894_v10 = vadd.f32 %v7063_v5, %v7023_v40  ;;  %v7025_v26 = vadd.f32 %v7024_v48, %v14842_v31 }
 0x904   :  { %v7026_v63 = vpop.f32.mrf.mxu0  ;;  %v7067_v25 = vpop.f32.mrf.mxu1 }
 0x905   :  { %v14897_v37 = vadd.f32 %v7065_v1, %v7025_v26 }
 0x906   :  { %v7027_v3 = vpop.f32.mrf.mxu0  ;;  %v7068_v51 = vpop.f32.mrf.mxu1 }
 0x940   :  { %v7104_v18 = vpop.f32.mrf.mxu0  ;;  %v7145_v27 = vpop.f32.mrf.mxu1 }
 0x941   :  { %v7146_v30 = vadd.f32 %v7145_v27, %v7104_v18 }
 0x942   :  { %v7106_v57 = vpop.f32.mrf.mxu0  ;;  %v7147_v14 = vpop.f32.mrf.mxu1 }
 0x943   :  { %v7148_v59 = vadd.f32 %v7147_v14, %v7106_v57 }
 0x944   :  { %v7108_v54 = vpop.f32.mrf.mxu0  ;;  %v7149_v58 = vpop.f32.mrf.mxu1 }
 0x946   :  { %v7109_v55 = vpop.f32.mrf.mxu0  ;;  %v7150_v42 = vpop.f32.mrf.mxu1 }
 0x980   :  { %v7186_v17 = vpop.f32.mrf.mxu0  ;;  %v7227_v36 = vpop.f32.mrf.mxu1 }
 0x981   :  { %v14899_v15 = vadd.f32 %v7186_v17, %v7146_v30 }
 0x982   :  { %v7188_v31 = vpop.f32.mrf.mxu0  ;;  %v7229_v44 = vpop.f32.mrf.mxu1 }
 0x983   :  { %v14901_v61 = vadd.f32 %v7188_v31, %v7148_v59 }
 0x984   :  { %v7190_v22 = vpop.f32.mrf.mxu0  ;;  %v7231_v56 = vpop.f32.mrf.mxu1 }
 0x986   :  { %v7191_v52 = vpop.f32.mrf.mxu0  ;;  %v7232_v20 = vpop.f32.mrf.mxu1 }
 0x9c0   :  { %v7268_v29 = vpop.f32.mrf.mxu0  ;;  %v7309_v41 = vpop.f32.mrf.mxu1 }
 0x9c1   :  { %v7269_v60 = vadd.f32 %v7268_v29, %v7227_v36 }
 0x9c2   :  { %v7270_v13 = vpop.f32.mrf.mxu0  ;;  %v7311_v7 = vpop.f32.mrf.mxu1 }
 0x9c3   :  { %v14903_v43 = vadd.f32 %v7309_v41, %v7269_v60  ;;  %v7271_v11 = vadd.f32 %v7270_v13, %v7229_v44 }
 0x9c4   :  { %v7272_v45 = vpop.f32.mrf.mxu0  ;;  %v7313_v6 = vpop.f32.mrf.mxu1 }
 0x9c5   :  { %v14905_v24 = vadd.f32 %v7311_v7, %v7271_v11 }
 0x9c6   :  { %v7273_v9 = vpop.f32.mrf.mxu0  ;;  %v7314_v47 = vpop.f32.mrf.mxu1 }
 0x9c7   :  { %14139 = dma.done.wait [#allocation7 + $0x3], 36864 }
 0x9c8   :  { %14140 = vsyncadd [#allocation7 + $0x3], 4294930432  ;;  %v15771_v46 = vld [vmem:[#allocation84_spill] sm:$0xff]  ;;  %v15772_v39 = vld [vmem:[#allocation86_spill] sm:$0xff]  ;;  %v7415_v33 = vpack.c.bf16 %v14778_v12, %v14778_v12  ;;  %v7421_v8 = vpack.c.bf16 %v14782_v23, %v14782_v23  ;;  %vm10075_vm9 = vcmask 1041408   ;;  %s14157_s4 = smov [#allocation11]  }
 0x9c9   :  { %v7413_v35 = vpack.c.bf16 %v15771_v46, %v15771_v46  ;;  %v7419_v38 = vpack.c.bf16 %v15772_v39, %v15772_v39  ;;  %v13349_v40 = vld [vmem:[#allocation5 + $0x154] ss:$24 sps:$4 sm:$0xff]   ;;  %v13353_v23 = vld [vmem:[#allocation5 + $0x150] ss:$24 sps:$4 sm:$0xff]   ;;  %v13355_v1 = vld [vmem:[#allocation5 + $0x124] ss:$24 sps:$4 sm:$0xff]  }
 0x9ca   :  { %v7727_v16 = vunpack.c.l.b16 %v7415_v33  ;;  %v7733_v49 = vunpack.c.l.b16 %v7421_v8  ;;  %v13351_v12 = vld [vmem:[#allocation5 + $0x454] ss:$24 sps:$4 sm:$0xff]   ;;  %9194 = vmatprep.subr.bf16.mxu0 %v13349_v40  ;;  %v13354_v48 = vld [vmem:[#allocation5 + $0x450] ss:$24 sps:$4 sm:$0xff]   ;;  %v13357_v26 = vld [vmem:[#allocation5 + $0x424] ss:$24 sps:$4 sm:$0xff]  }
 0x9cb   :  { %v7725_v28 = vunpack.c.l.b16 %v7413_v35  ;;  %v7731_v0 = vunpack.c.l.b16 %v7419_v38  ;;  %9235 = vmatprep.subr.bf16.mxu1 %v13351_v12  ;;  %9195 = vmatpush1.bf16.msra.mxu0 %v13353_v23  ;;  %v13359_v63 = vld [vmem:[#allocation5 + $0x120] ss:$24 sps:$4 sm:$0xff]   ;;  %v13361_v3 = vld [vmem:[#allocation5 + $0xf4] ss:$24 sps:$4 sm:$0xff]   ;;  %v13365_v18 = vld [vmem:[#allocation5 + $0xf0] ss:$24 sps:$4 sm:$0xff]  }
 0x9cc   :  { %v7739_v50 = vsel %vm4770_vm7, %v7733_v49, %v7727_v16  ;;  %9236 = vmatpush1.bf16.msra.mxu1 %v13354_v48  ;;  %9196 = vmatprep.subr.bf16.mxu0 %v13355_v1  ;;  %v13360_v25 = vld [vmem:[#allocation5 + $0x420] ss:$24 sps:$4 sm:$0xff]   ;;  %v13363_v51 = vld [vmem:[#allocation5 + $0x3f4] ss:$24 sps:$4 sm:$0xff]   ;;  %v13366_v27 = vld [vmem:[#allocation5 + $0x3f0] ss:$24 sps:$4 sm:$0xff]  }
 0x9cd   :  { %v7737_v21 = vsel %vm4770_vm7, %v7731_v0, %v7725_v28  ;;  %v14919_v5 = vpack.c.b16 %v7739_v50, %v7739_v50  ;;  %9237 = vmatprep.subr.bf16.mxu1 %v13357_v26  ;;  %v13367_v30 = vld [vmem:[#allocation5 + $0xc4] ss:$24 sps:$4 sm:$0xff]   ;;  %v13371_v14 = vld [vmem:[#allocation5 + $0xc0] ss:$24 sps:$4 sm:$0xff]   ;;  %v13373_v54 = vld [vmem:[#allocation5 + $0x94] ss:$24 sps:$4 sm:$0xff]  }
 0x9ce   :  { %v14917_v19 = vpack.c.b16 %v7737_v21, %v7737_v21  ;;  %v13369_v57 = vld [vmem:[#allocation5 + $0x3c4] ss:$24 sps:$4 sm:$0xff]   ;;  %v13372_v59 = vld [vmem:[#allocation5 + $0x3c0] ss:$24 sps:$4 sm:$0xff]   ;;  %v13375_v58 = vld [vmem:[#allocation5 + $0x394] ss:$24 sps:$4 sm:$0xff]  }
 0x9cf   :  { %9267 = vmatprep.mubr.bf16.mxu1 %v14919_v5  ;;  %9197 = vmatpush1.bf16.msra.mxu0 %v13359_v63  ;;  %v13377_v55 = vld [vmem:[#allocation5 + $0x90] ss:$24 sps:$4 sm:$0xff]   ;;  %v13379_v17 = vld [vmem:[#allocation5 + $0x64] ss:$24 sps:$4 sm:$0xff]   ;;  %v13383_v31 = vld [vmem:[#allocation5 + $0x60] ss:$24 sps:$4 sm:$0xff]  }
 0x9d0   :  { %9226 = vmatprep.mubr.bf16.mxu0 %v14917_v19  ;;  %9238 = vmatpush1.bf16.msra.mxu1 %v13360_v25  ;;  %v13378_v42 = vld [vmem:[#allocation5 + $0x390] ss:$24 sps:$4 sm:$0xff]   ;;  %v13381_v36 = vld [vmem:[#allocation5 + $0x364] ss:$24 sps:$4 sm:$0xff]   ;;  %v13384_v44 = vld [vmem:[#allocation5 + $0x360] ss:$24 sps:$4 sm:$0xff]  }
 0x9d1   :  { %9198 = vmatprep.subr.bf16.mxu0 %v13361_v3  ;;  %9239 = vmatprep.subr.bf16.mxu1 %v13363_v51  ;;  %v13385_v22 = vld [vmem:[#allocation5 + $0x34] ss:$24 sps:$4 sm:$0xff]   ;;  %v13389_v52 = vld [vmem:[#allocation5 + $0x30] ss:$24 sps:$4 sm:$0xff]   ;;  %v13391_v29 = vld [vmem:[#allocation5 + $0x4] ss:$24 sps:$4 sm:$0xff]  }
 0x9d2   :  { %v13387_v56 = vld [vmem:[#allocation5 + $0x334] ss:$24 sps:$4 sm:$0xff]   ;;  %v13390_v20 = vld [vmem:[#allocation5 + $0x330] ss:$24 sps:$4 sm:$0xff]   ;;  %v13393_v41 = vld [vmem:[#allocation5 + $0x304] ss:$24 sps:$4 sm:$0xff]  }
 0x9d3   :  { %9199 = vmatpush1.bf16.msra.mxu0 %v13365_v18  ;;  %v13395_v60 = vld [vmem:[#allocation5] ss:$24 sps:$4 sm:$0xff]   ;;  %v13397_v7 = vld [vmem:[#allocation5 + $0x2d4] ss:$24 sps:$4 sm:$0xff]   ;;  %v13401_v45 = vld [vmem:[#allocation5 + $0x2d0] ss:$24 sps:$4 sm:$0xff]  }
 0x9d4   :  { %9240 = vmatpush1.bf16.msra.mxu1 %v13366_v27  ;;  %9200 = vmatprep.subr.bf16.mxu0 %v13367_v30  ;;  %v13396_v13 = vld [vmem:[#allocation5 + $0x300] ss:$24 sps:$4 sm:$0xff]   ;;  %v13399_v11 = vld [vmem:[#allocation5 + $0x5d4] ss:$24 sps:$4 sm:$0xff]   ;;  %v13402_v6 = vld [vmem:[#allocation5 + $0x5d0] ss:$24 sps:$4 sm:$0xff]   ;;  %v7414_v27 = vpack.c.bf16 %v14776_v62, %v14776_v62  ;;  %v7420_v30 = vpack.c.bf16 %v14780_v4, %v14780_v4 }
 0x9d5   :  { %9241 = vmatprep.subr.bf16.mxu1 %v13369_v57  ;;  %v13403_v9 = vld [vmem:[#allocation5 + $0x2a4] ss:$24 sps:$4 sm:$0xff]   ;;  %v13407_v46 = vld [vmem:[#allocation5 + $0x2a0] ss:$24 sps:$4 sm:$0xff]   ;;  %v13409_v39 = vld [vmem:[#allocation5 + $0x274] ss:$24 sps:$4 sm:$0xff]  }
 0x9d6   :  { %v13405_v47 = vld [vmem:[#allocation5 + $0x5a4] ss:$24 sps:$4 sm:$0xff]   ;;  %v13408_v35 = vld [vmem:[#allocation5 + $0x5a0] ss:$24 sps:$4 sm:$0xff]   ;;  %v13411_v38 = vld [vmem:[#allocation5 + $0x574] ss:$24 sps:$4 sm:$0xff]   ;;  %v7726_v62 = vunpack.c.l.b16 %v7414_v27 }
 0x9d7   :  { %9201 = vmatpush1.bf16.msra.mxu0 %v13371_v14  ;;  %v13413_v33 = vld [vmem:[#allocation5 + $0x270] ss:$24 sps:$4 sm:$0xff]   ;;  %v13415_v28 = vld [vmem:[#allocation5 + $0x244] ss:$24 sps:$4 sm:$0xff]   ;;  %v13419_v16 = vld [vmem:[#allocation5 + $0x240] ss:$24 sps:$4 sm:$0xff]  }
 0x9d8   :  { %9242 = vmatpush1.bf16.msra.mxu1 %v13372_v59  ;;  %9202 = vmatprep.subr.bf16.mxu0 %v13373_v54  ;;  %v13414_v8 = vld [vmem:[#allocation5 + $0x570] ss:$24 sps:$4 sm:$0xff]   ;;  %v13417_v0 = vld [vmem:[#allocation5 + $0x544] ss:$24 sps:$4 sm:$0xff]   ;;  %v13420_v49 = vld [vmem:[#allocation5 + $0x540] ss:$24 sps:$4 sm:$0xff]   ;;  %v7417_v54 = vpack.c.bf16 %v14862_v2, %v14862_v2 }
 0x9d9   :  { %9243 = vmatprep.subr.bf16.mxu1 %v13375_v58  ;;  %v13421_v21 = vld [vmem:[#allocation5 + $0x214] ss:$24 sps:$4 sm:$0xff]   ;;  %v13425_v40 = vld [vmem:[#allocation5 + $0x210] ss:$24 sps:$4 sm:$0xff]   ;;  %v13427_v23 = vld [vmem:[#allocation5 + $0x1e4] ss:$24 sps:$4 sm:$0xff]   ;;  %v7423_v58 = vpack.c.bf16 %v14868_v34, %v14868_v34 }
 0x9da   :  { %v13423_v50 = vld [vmem:[#allocation5 + $0x514] ss:$24 sps:$4 sm:$0xff]   ;;  %v13426_v12 = vld [vmem:[#allocation5 + $0x510] ss:$24 sps:$4 sm:$0xff]   ;;  %v13429_v48 = vld [vmem:[#allocation5 + $0x4e4] ss:$24 sps:$4 sm:$0xff]  }
 0x9db   :  { %9203 = vmatpush1.bf16.msra.mxu0 %v13377_v55  ;;  %v13431_v1 = vld [vmem:[#allocation5 + $0x1e0] ss:$24 sps:$4 sm:$0xff]   ;;  %v15773_v63 = vld [vmem:[#allocation83_spill] sm:$0xff]  ;;  %v13439_v55 = vld [vmem:[#allocation5 + $0x184] ss:$24 sps:$4 sm:$0xff]  }
 0x9dc   :  { %9244 = vmatpush1.bf16.msra.mxu1 %v13378_v42  ;;  %9204 = vmatprep.subr.bf16.mxu0 %v13379_v17  ;;  %v13432_v26 = vld [vmem:[#allocation5 + $0x4e0] ss:$24 sps:$4 sm:$0xff]   ;;  %v7412_v25 = vpack.c.bf16 %v15773_v63, %v15773_v63  ;;  %v13433_v3 = vld [vmem:[#allocation5 + $0x1b4] ss:$24 sps:$4 sm:$0xff]   ;;  %v13437_v14 = vld [vmem:[#allocation5 + $0x1b0] ss:$24 sps:$4 sm:$0xff]  }
 0x9dd   :  { %9245 = vmatprep.subr.bf16.mxu1 %v13381_v36  ;;  %v15774_v51 = vld [vmem:[#allocation85_spill] sm:$0xff]  ;;  %v13435_v57 = vld [vmem:[#allocation5 + $0x4b4] ss:$24 sps:$4 sm:$0xff]   ;;  %v13438_v59 = vld [vmem:[#allocation5 + $0x4b0] ss:$24 sps:$4 sm:$0xff]   ;;  %v7732_v36 = vunpack.c.l.b16 %v7420_v30 }
 0x9de   :  { %v7418_v18 = vpack.c.bf16 %v15774_v51, %v15774_v51  ;;  %v7724_v42 = vunpack.c.l.b16 %v7412_v25  ;;  %v13441_v4 = vld [vmem:[#allocation5 + $0x484] ss:$24 sps:$4 sm:$0xff]   ;;  %v13481_v63 = vld [vmem:[#allocation5 + $0x630] ss:$24 sps:$4 sm:$0xff]   ;;  %v13495_v30 = vld [vmem:[#allocation5 + $0x8d4] ss:$24 sps:$4 sm:$0xff]  }
 0x9df   :  { %9205 = vmatpush1.bf16.msra.mxu0 %v13383_v31  ;;  %v13443_v31 = vld [vmem:[#allocation5 + $0x180] ss:$24 sps:$4 sm:$0xff]   ;;  %v7738_v34 = vsel %vm4770_vm7, %v7732_v36, %v7726_v62  ;;  %v13492_v51 = vld [vmem:[#allocation5 + $0xc] ss:$24 sps:$4 sm:$0xff]   ;;  %v13510_v62 = vld [vmem:[#allocation5 + $0x27c] ss:$24 sps:$4 sm:$0xff]  }
 0x9e0   :  { %9246 = vmatpush1.bf16.msra.mxu1 %v13384_v44  ;;  %9206 = vmatprep.subr.bf16.mxu0 %v13385_v22  ;;  %v7730_v17 = vunpack.c.l.b16 %v7418_v18  ;;  %v13444_v44 = vld [vmem:[#allocation5 + $0x480] ss:$24 sps:$4 sm:$0xff]   ;;  %v7729_v22 = vunpack.c.l.b16 %v7417_v54  ;;  %v13501_v54 = vld [vmem:[#allocation5 + $0x8a4] ss:$24 sps:$4 sm:$0xff]   ;;  %v13505_v36 = vld [vmem:[#allocation5 + $0x870] ss:$24 sps:$4 sm:$0xff]  }
 0x9e1   :  { %9247 = vmatprep.subr.bf16.mxu1 %v13387_v56  ;;  %v7735_v56 = vunpack.c.l.b16 %v7423_v58  ;;  %v13484_v25 = vld [vmem:[#allocation5 + $0x38] ss:$24 sps:$4 sm:$0xff]   ;;  %v13490_v27 = vld [vmem:[#allocation5 + $0x8] ss:$24 sps:$4 sm:$0xff]   ;;  %v13504_v58 = vld [vmem:[#allocation5 + $0x2ac] ss:$24 sps:$4 sm:$0xff]  }
 0x9e2   :  { %v7736_v2 = vsel %vm4770_vm7, %v7730_v17, %v7724_v42  ;;  %v13487_v18 = vld [vmem:[#allocation5 + $0x600] ss:$24 sps:$4 sm:$0xff]   ;;  %v13507_v17 = vld [vmem:[#allocation5 + $0x874] ss:$24 sps:$4 sm:$0xff]  }
 0x9e3   :  { %9207 = vmatpush1.bf16.msra.mxu0 %v13389_v52  ;;  %v13447_v52 = vld [vmem:[#allocation5 + $0x754] ss:$24 sps:$4 sm:$0xff]   ;;  %v13502_v42 = vld [vmem:[#allocation5 + $0x2a8] ss:$24 sps:$4 sm:$0xff]  }
 0x9e4   :  { %9248 = vmatpush1.bf16.msra.mxu1 %v13390_v20  ;;  %9208 = vmatprep.subr.bf16.mxu0 %v13391_v29  ;;  %v13450_v20 = vld [vmem:[#allocation5 + $0x15c] ss:$24 sps:$4 sm:$0xff]   ;;  %v14937_v29 = vpack.c.b16 %v7736_v2, %v7736_v2 }
 0x9e5   :  { %9249 = vmatprep.subr.bf16.mxu1 %v13393_v41  ;;  %v14939_v41 = vpack.c.b16 %v7738_v34, %v7738_v34  ;;  %v13519_v2 = vld [vmem:[#allocation5 + $0x814] ss:$24 sps:$4 sm:$0xff]  }
 0x9e6   :  { %v13522_v34 = vld [vmem:[#allocation5 + $0x21c] ss:$24 sps:$4 sm:$0xff]  }
 0x9e7   :  { %9209 = vmatpush1.bf16.msra.mxu0 %v13395_v60  ;;  %v13445_v60 = vld [vmem:[#allocation5 + $0x750] ss:$24 sps:$4 sm:$0xff]  }
 0x9e8   :  { %9250 = vmatpush1.bf16.msra.mxu1 %v13396_v13  ;;  %9210 = vmatprep.subr.bf16.mxu0 %v13397_v7  ;;  %v13448_v13 = vld [vmem:[#allocation5 + $0x158] ss:$24 sps:$4 sm:$0xff]   ;;  %v7741_v7 = vsel %vm4770_vm7, %v7735_v56, %v7729_v22  ;;  %v13514_v56 = vld [vmem:[#allocation5 + $0x248] ss:$24 sps:$4 sm:$0xff]  }
 0x9e9   :  { %9251 = vmatprep.subr.bf16.mxu1 %v13399_v11  ;;  %v13453_v11 = vld [vmem:[#allocation5 + $0x724] ss:$24 sps:$4 sm:$0xff]   ;;  %v13511_v22 = vld [vmem:[#allocation5 + $0x840] ss:$24 sps:$4 sm:$0xff]  }
 0x9eb   :  { %9211 = vmatpush2.bf16.msra.mxu0 %v13401_v45  ;;  %v13456_v45 = vld [vmem:[#allocation5 + $0x12c] ss:$24 sps:$4 sm:$0xff]  }
 0x9ec   :  { %9252 = vmatpush2.bf16.msra.mxu1 %v13402_v6  ;;  %9212 = vmatprep.subr.bf16.mxu0 %v13403_v9  ;;  %v14942_v6 = vpack.c.b16 %v7741_v7, %v7741_v7  ;;  %v13451_v9 = vld [vmem:[#allocation5 + $0x720] ss:$24 sps:$4 sm:$0xff]  }
 0x9ed   :  { %9253 = vmatprep.subr.bf16.mxu1 %v13405_v47  ;;  %v13454_v47 = vld [vmem:[#allocation5 + $0x128] ss:$24 sps:$4 sm:$0xff]  }
 0x9ee   :  { %v13523_v7 = vld [vmem:[#allocation5 + $0x7e0] ss:$24 sps:$4 sm:$0xff]  }
 0x9ef   :  { %9213 = vmatpush2.bf16.msra.mxu0 %v13407_v46  ;;  %v13459_v46 = vld [vmem:[#allocation5 + $0x6f4] ss:$24 sps:$4 sm:$0xff]  }
 0x9f0   :  { %9254 = vmatpush2.bf16.msra.mxu1 %v13408_v35  ;;  %9214 = vmatprep.subr.bf16.mxu0 %v13409_v39  ;;  %v13462_v35 = vld [vmem:[#allocation5 + $0xfc] ss:$24 sps:$4 sm:$0xff]   ;;  %v13457_v39 = vld [vmem:[#allocation5 + $0x6f0] ss:$24 sps:$4 sm:$0xff]  }
 0x9f1   :  { %9255 = vmatprep.subr.bf16.mxu1 %v13411_v38  ;;  %v13460_v38 = vld [vmem:[#allocation5 + $0xf8] ss:$24 sps:$4 sm:$0xff]  }
 0x9f3   :  { %9215 = vmatpush2.bf16.msra.mxu0 %v13413_v33  ;;  %v13465_v33 = vld [vmem:[#allocation5 + $0x6c4] ss:$24 sps:$4 sm:$0xff]  }
 0x9f4   :  { %9256 = vmatpush2.bf16.msra.mxu1 %v13414_v8  ;;  %9216 = vmatprep.subr.bf16.mxu0 %v13415_v28  ;;  %v13468_v8 = vld [vmem:[#allocation5 + $0xcc] ss:$24 sps:$4 sm:$0xff]   ;;  %v13463_v28 = vld [vmem:[#allocation5 + $0x6c0] ss:$24 sps:$4 sm:$0xff]  }
 0x9f5   :  { %9257 = vmatprep.subr.bf16.mxu1 %v13417_v0  ;;  %v13466_v0 = vld [vmem:[#allocation5 + $0xc8] ss:$24 sps:$4 sm:$0xff]  }
 0x9f7   :  { %9217 = vmatpush2.bf16.msra.mxu0 %v13419_v16  ;;  %v13471_v16 = vld [vmem:[#allocation5 + $0x694] ss:$24 sps:$4 sm:$0xff]  }
 0x9f8   :  { %9258 = vmatpush2.bf16.msra.mxu1 %v13420_v49  ;;  %9218 = vmatprep.subr.bf16.mxu0 %v13421_v21  ;;  %v13474_v49 = vld [vmem:[#allocation5 + $0x9c] ss:$24 sps:$4 sm:$0xff]   ;;  %v13469_v21 = vld [vmem:[#allocation5 + $0x690] ss:$24 sps:$4 sm:$0xff]  }
 0x9f9   :  { %9259 = vmatprep.subr.bf16.mxu1 %v13423_v50  ;;  %v13472_v50 = vld [vmem:[#allocation5 + $0x98] ss:$24 sps:$4 sm:$0xff]  }
 0x9fb   :  { %9219 = vmatpush2.bf16.msra.mxu0 %v13425_v40  ;;  %v13477_v40 = vld [vmem:[#allocation5 + $0x664] ss:$24 sps:$4 sm:$0xff]  }
 0x9fc   :  { %9260 = vmatpush2.bf16.msra.mxu1 %v13426_v12  ;;  %9220 = vmatprep.subr.bf16.mxu0 %v13427_v23  ;;  %v13480_v12 = vld [vmem:[#allocation5 + $0x6c] ss:$24 sps:$4 sm:$0xff]   ;;  %v13475_v23 = vld [vmem:[#allocation5 + $0x660] ss:$24 sps:$4 sm:$0xff]  }
 0x9fd   :  { %9261 = vmatprep.subr.bf16.mxu1 %v13429_v48  ;;  %v13478_v48 = vld [vmem:[#allocation5 + $0x68] ss:$24 sps:$4 sm:$0xff]  }
 0x9ff   :  { %9221 = vmatpush2.bf16.msra.mxu0 %v13431_v1  ;;  %v13483_v1 = vld [vmem:[#allocation5 + $0x634] ss:$24 sps:$4 sm:$0xff]  }
 0xa00   :  { %9262 = vmatpush2.bf16.msra.mxu1 %v13432_v26  ;;  %9222 = vmatprep.subr.bf16.mxu0 %v13433_v3  ;;  %v13486_v26 = vld [vmem:[#allocation5 + $0x3c] ss:$24 sps:$4 sm:$0xff]  }
 0xa01   :  { %9263 = vmatprep.subr.bf16.mxu1 %v13435_v57  ;;  %v13489_v3 = vld [vmem:[#allocation5 + $0x604] ss:$24 sps:$4 sm:$0xff]  }
 0xa02   :  { %v13498_v57 = vld [vmem:[#allocation5 + $0x2dc] ss:$24 sps:$4 sm:$0xff]  }
 0xa03   :  { %9223 = vmatpush2.bf16.msra.mxu0 %v13437_v14  ;;  %v13493_v14 = vld [vmem:[#allocation5 + $0x8d0] ss:$24 sps:$4 sm:$0xff]  }
 0xa04   :  { %9264 = vmatpush2.bf16.msra.mxu1 %v13438_v59  ;;  %9224 = vmatprep.subr.bf16.mxu0 %v13439_v55  ;;  %v13496_v59 = vld [vmem:[#allocation5 + $0x2d8] ss:$24 sps:$4 sm:$0xff]  }
 0xa05   :  { %9265 = vmatprep.subr.bf16.mxu1 %v13441_v4  ;;  %v13499_v55 = vld [vmem:[#allocation5 + $0x8a0] ss:$24 sps:$4 sm:$0xff]  }
 0xa06   :  { %v13508_v4 = vld [vmem:[#allocation5 + $0x278] ss:$24 sps:$4 sm:$0xff]  }
 0xa07   :  { %9225 = vmatpush2.bf16.msra.mxu0 %v13443_v31  ;;  %v13513_v31 = vld [vmem:[#allocation5 + $0x844] ss:$24 sps:$4 sm:$0xff]  }
 0xa08   :  { %9266 = vmatpush2.bf16.msra.mxu1 %v13444_v44  ;;  %9276 = vmatprep.subr.bf16.mxu0 %v13447_v52  ;;  %v13516_v44 = vld [vmem:[#allocation5 + $0x24c] ss:$24 sps:$4 sm:$0xff]   ;;  %v13517_v52 = vld [vmem:[#allocation5 + $0x810] ss:$24 sps:$4 sm:$0xff]  }
 0xa09   :  { %9317 = vmatprep.subr.bf16.mxu1 %v13450_v20  ;;  %v13520_v20 = vld [vmem:[#allocation5 + $0x218] ss:$24 sps:$4 sm:$0xff]  }
 0xa0a   :  { %9227 = vmatmul.mubr.bf16.vlgmr.msra.gmra.mxu0 %v14937_v29 }
 0xa0b   :  { %9268 = vmatmul.mubr.bf16.vlgmr.msra.gmra.mxu1 %v14939_v41  ;;  %9277 = vmatpush1.bf16.msra.mxu0 %v13445_v60  ;;  %v13525_v60 = vld [vmem:[#allocation5 + $0x7e4] ss:$24 sps:$4 sm:$0xff]  }
 0xa0c   :  { %9318 = vmatpush1.bf16.msra.mxu1 %v13448_v13  ;;  %9278 = vmatprep.subr.bf16.mxu0 %v13453_v11  ;;  %v13528_v13 = vld [vmem:[#allocation5 + $0x1ec] ss:$24 sps:$4 sm:$0xff]   ;;  %v13526_v11 = vld [vmem:[#allocation5 + $0x1e8] ss:$24 sps:$4 sm:$0xff]  }
 0xa0d   :  { %9319 = vmatprep.subr.bf16.mxu1 %v13456_v45  ;;  %9308 = vmatprep.mubr.bf16.mxu0 %v14942_v6  ;;  %v13531_v45 = vld [vmem:[#allocation5 + $0x7b4] ss:$24 sps:$4 sm:$0xff]  }
 0xa0e   :  { %9349 = vmatprep.mubr.bf16.mxu1 %v14917_v19 }
 0xa0f   :  { %9279 = vmatpush1.bf16.msra.mxu0 %v13451_v9  ;;  %v7416_v9 = vpack.c.bf16 %v14860_v32, %v14860_v32 }
 0xa10   :  { %9320 = vmatpush1.bf16.msra.mxu1 %v13454_v47  ;;  %9280 = vmatprep.subr.bf16.mxu0 %v13459_v46  ;;  %v7422_v47 = vpack.c.bf16 %v14866_v53, %v14866_v53  ;;  %v13534_v46 = vld [vmem:[#allocation5 + $0x1bc] ss:$24 sps:$4 sm:$0xff]  }
 0xa11   :  { %9321 = vmatprep.subr.bf16.mxu1 %v13462_v35  ;;  %v13529_v35 = vld [vmem:[#allocation5 + $0x7b0] ss:$24 sps:$4 sm:$0xff]   ;;  %v13543_v53 = vld [vmem:[#allocation5 + $0x45c] ss:$24 sps:$4 sm:$0xff]  }
 0xa13   :  { %9281 = vmatpush1.bf16.msra.mxu0 %v13457_v39  ;;  %v13532_v39 = vld [vmem:[#allocation5 + $0x1b8] ss:$24 sps:$4 sm:$0xff]  }
 0xa14   :  { %9322 = vmatpush1.bf16.msra.mxu1 %v13460_v38  ;;  %9282 = vmatprep.subr.bf16.mxu0 %v13465_v33  ;;  %v13537_v38 = vld [vmem:[#allocation5 + $0x784] ss:$24 sps:$4 sm:$0xff]   ;;  %v7728_v33 = vunpack.c.l.b16 %v7416_v9 }
 0xa15   :  { %9323 = vmatprep.subr.bf16.mxu1 %v13468_v8  ;;  %v7734_v8 = vunpack.c.l.b16 %v7422_v47  ;;  %v14963_v9 = vld [vmem:[#allocation5 + $0x57c] ss:$24 sps:$4 sm:$0xff]  }
 0xa16   :  { %v13606_v47 = vld [vmem:[#allocation5 + $0x87c] ss:$24 sps:$4 sm:$0xff]  }
 0xa17   :  { %9283 = vmatpush1.bf16.msra.mxu0 %v13463_v28  ;;  %v13540_v28 = vld [vmem:[#allocation5 + $0x18c] ss:$24 sps:$4 sm:$0xff]   ;;  %v7740_v32 = vsel %vm4770_vm7, %v7734_v8, %v7728_v33  ;;  %v14972_v33 = vld [vmem:[#allocation5 + $0x548] ss:$24 sps:$4 sm:$0xff]  }
 0xa18   :  { %9324 = vmatpush1.bf16.msra.mxu1 %v13466_v0  ;;  %9284 = vmatprep.subr.bf16.mxu0 %v13471_v16  ;;  %v13535_v0 = vld [vmem:[#allocation5 + $0x780] ss:$24 sps:$4 sm:$0xff]  }
 0xa19   :  { %9325 = vmatprep.subr.bf16.mxu1 %v13474_v49  ;;  %v13538_v16 = vld [vmem:[#allocation5 + $0x188] ss:$24 sps:$4 sm:$0xff]   ;;  %v13546_v49 = vld [vmem:[#allocation5 + $0x75c] ss:$24 sps:$4 sm:$0xff]  }
 0xa1a   :  { %v13610_v8 = vld [vmem:[#allocation5 + $0x848] ss:$24 sps:$4 sm:$0xff]  }
 0xa1b   :  { %9285 = vmatpush1.bf16.msra.mxu0 %v13469_v21  ;;  %v14953_v21 = vpack.c.b16 %v7740_v32, %v7740_v32  ;;  %v13616_v32 = vld [vmem:[#allocation5 + $0x818] ss:$24 sps:$4 sm:$0xff]  }
 0xa1c   :  { %9326 = vmatpush1.bf16.msra.mxu1 %v13472_v50  ;;  %9286 = vmatprep.subr.bf16.mxu0 %v13477_v40  ;;  %v13541_v50 = vld [vmem:[#allocation5 + $0x458] ss:$24 sps:$4 sm:$0xff]  }
 0xa1d   :  { %9327 = vmatprep.subr.bf16.mxu1 %v13480_v12  ;;  %v13544_v40 = vld [vmem:[#allocation5 + $0x758] ss:$24 sps:$4 sm:$0xff]   ;;  %v13549_v12 = vld [vmem:[#allocation5 + $0x42c] ss:$24 sps:$4 sm:$0xff]  }
 0xa1f   :  { %9287 = vmatpush1.bf16.msra.mxu0 %v13475_v23  ;;  %v13552_v23 = vld [vmem:[#allocation5 + $0x72c] ss:$24 sps:$4 sm:$0xff]  }
 0xa20   :  { %9328 = vmatpush1.bf16.msra.mxu1 %v13478_v48  ;;  %9288 = vmatprep.subr.bf16.mxu0 %v13483_v1  ;;  %v13547_v48 = vld [vmem:[#allocation5 + $0x428] ss:$24 sps:$4 sm:$0xff]  }
 0xa21   :  { %9329 = vmatprep.subr.bf16.mxu1 %v13486_v26  ;;  %v13550_v1 = vld [vmem:[#allocation5 + $0x728] ss:$24 sps:$4 sm:$0xff]   ;;  %v13555_v26 = vld [vmem:[#allocation5 + $0x3fc] ss:$24 sps:$4 sm:$0xff]  }
 0xa23   :  { %9289 = vmatpush1.bf16.msra.mxu0 %v13481_v63  ;;  %v13558_v63 = vld [vmem:[#allocation5 + $0x6fc] ss:$24 sps:$4 sm:$0xff]  }
 0xa24   :  { %9330 = vmatpush1.bf16.msra.mxu1 %v13484_v25  ;;  %9290 = vmatprep.subr.bf16.mxu0 %v13489_v3  ;;  %v13553_v25 = vld [vmem:[#allocation5 + $0x3f8] ss:$24 sps:$4 sm:$0xff]  }
 0xa25   :  { %9331 = vmatprep.subr.bf16.mxu1 %v13492_v51  ;;  %v13556_v3 = vld [vmem:[#allocation5 + $0x6f8] ss:$24 sps:$4 sm:$0xff]   ;;  %v13561_v51 = vld [vmem:[#allocation5 + $0x3cc] ss:$24 sps:$4 sm:$0xff]  }
 0xa27   :  { %9291 = vmatpush1.bf16.msra.mxu0 %v13487_v18  ;;  %v13564_v18 = vld [vmem:[#allocation5 + $0x6cc] ss:$24 sps:$4 sm:$0xff]  }
 0xa28   :  { %9332 = vmatpush1.bf16.msra.mxu1 %v13490_v27  ;;  %9292 = vmatprep.subr.bf16.mxu0 %v13495_v30  ;;  %v13559_v27 = vld [vmem:[#allocation5 + $0x3c8] ss:$24 sps:$4 sm:$0xff]  }
 0xa29   :  { %9333 = vmatprep.subr.bf16.mxu1 %v13498_v57  ;;  %v13562_v30 = vld [vmem:[#allocation5 + $0x6c8] ss:$24 sps:$4 sm:$0xff]   ;;  %v13567_v57 = vld [vmem:[#allocation5 + $0x39c] ss:$24 sps:$4 sm:$0xff]  }
 0xa2b   :  { %9293 = vmatpush2.bf16.msra.mxu0 %v13493_v14  ;;  %v13570_v14 = vld [vmem:[#allocation5 + $0x69c] ss:$24 sps:$4 sm:$0xff]  }
 0xa2c   :  { %9334 = vmatpush2.bf16.msra.mxu1 %v13496_v59  ;;  %9294 = vmatprep.subr.bf16.mxu0 %v13501_v54  ;;  %v13565_v59 = vld [vmem:[#allocation5 + $0x398] ss:$24 sps:$4 sm:$0xff]  }
 0xa2d   :  { %9335 = vmatprep.subr.bf16.mxu1 %v13504_v58  ;;  %v13568_v54 = vld [vmem:[#allocation5 + $0x698] ss:$24 sps:$4 sm:$0xff]   ;;  %v13573_v58 = vld [vmem:[#allocation5 + $0x36c] ss:$24 sps:$4 sm:$0xff]  }
 0xa2f   :  { %9295 = vmatpush2.bf16.msra.mxu0 %v13499_v55  ;;  %v13576_v55 = vld [vmem:[#allocation5 + $0x66c] ss:$24 sps:$4 sm:$0xff]  }
 0xa30   :  { %9336 = vmatpush2.bf16.msra.mxu1 %v13502_v42  ;;  %9296 = vmatprep.subr.bf16.mxu0 %v13507_v17  ;;  %v13571_v42 = vld [vmem:[#allocation5 + $0x368] ss:$24 sps:$4 sm:$0xff]  }
 0xa31   :  { %9337 = vmatprep.subr.bf16.mxu1 %v13510_v62  ;;  %v13574_v17 = vld [vmem:[#allocation5 + $0x668] ss:$24 sps:$4 sm:$0xff]   ;;  %v13579_v62 = vld [vmem:[#allocation5 + $0x33c] ss:$24 sps:$4 sm:$0xff]  }
 0xa33   :  { %9297 = vmatpush2.bf16.msra.mxu0 %v13505_v36  ;;  %v13582_v36 = vld [vmem:[#allocation5 + $0x63c] ss:$24 sps:$4 sm:$0xff]  }
 0xa34   :  { %9338 = vmatpush2.bf16.msra.mxu1 %v13508_v4  ;;  %9298 = vmatprep.subr.bf16.mxu0 %v13513_v31  ;;  %v13577_v4 = vld [vmem:[#allocation5 + $0x338] ss:$24 sps:$4 sm:$0xff]  }
 0xa35   :  { %9339 = vmatprep.subr.bf16.mxu1 %v13516_v44  ;;  %v13580_v31 = vld [vmem:[#allocation5 + $0x638] ss:$24 sps:$4 sm:$0xff]   ;;  %v13585_v44 = vld [vmem:[#allocation5 + $0x30c] ss:$24 sps:$4 sm:$0xff]  }
 0xa37   :  { %9299 = vmatpush2.bf16.msra.mxu0 %v13511_v22  ;;  %v13588_v22 = vld [vmem:[#allocation5 + $0x60c] ss:$24 sps:$4 sm:$0xff]  }
 0xa38   :  { %9340 = vmatpush2.bf16.msra.mxu1 %v13514_v56  ;;  %9300 = vmatprep.subr.bf16.mxu0 %v13519_v2  ;;  %v13583_v56 = vld [vmem:[#allocation5 + $0x308] ss:$24 sps:$4 sm:$0xff]  }
 0xa39   :  { %9341 = vmatprep.subr.bf16.mxu1 %v13522_v34  ;;  %v13586_v2 = vld [vmem:[#allocation5 + $0x608] ss:$24 sps:$4 sm:$0xff]   ;;  %v13591_v34 = vld [vmem:[#allocation5 + $0x5dc] ss:$24 sps:$4 sm:$0xff]  }
 0xa3b   :  { %9301 = vmatpush2.bf16.msra.mxu0 %v13517_v52  ;;  %v13594_v52 = vld [vmem:[#allocation5 + $0x8dc] ss:$24 sps:$4 sm:$0xff]  }
 0xa3c   :  { %9342 = vmatpush2.bf16.msra.mxu1 %v13520_v20  ;;  %9302 = vmatprep.subr.bf16.mxu0 %v13525_v60  ;;  %v13589_v20 = vld [vmem:[#allocation5 + $0x5d8] ss:$24 sps:$4 sm:$0xff]  }
 0xa3d   :  { %9343 = vmatprep.subr.bf16.mxu1 %v13528_v13  ;;  %v13592_v60 = vld [vmem:[#allocation5 + $0x8d8] ss:$24 sps:$4 sm:$0xff]   ;;  %v14959_v13 = vld [vmem:[#allocation5 + $0x5ac] ss:$24 sps:$4 sm:$0xff]  }
 0xa3f   :  { %9303 = vmatpush2.bf16.msra.mxu0 %v13523_v7  ;;  %v13600_v7 = vld [vmem:[#allocation5 + $0x8ac] ss:$24 sps:$4 sm:$0xff]  }
 0xa40   :  { %9344 = vmatpush2.bf16.msra.mxu1 %v13526_v11  ;;  %9304 = vmatprep.subr.bf16.mxu0 %v13531_v45  ;;  %v14961_v11 = vld [vmem:[#allocation5 + $0x5a8] ss:$24 sps:$4 sm:$0xff]  }
 0xa41   :  { %9345 = vmatprep.subr.bf16.mxu1 %v13534_v46  ;;  %v13598_v45 = vld [vmem:[#allocation5 + $0x8a8] ss:$24 sps:$4 sm:$0xff]   ;;  %v14966_v46 = vld [vmem:[#allocation5 + $0x578] ss:$24 sps:$4 sm:$0xff]  }
 0xa43   :  { %9305 = vmatpush2.bf16.msra.mxu0 %v13529_v35  ;;  %v13604_v35 = vld [vmem:[#allocation5 + $0x878] ss:$24 sps:$4 sm:$0xff]  }
 0xa44   :  { %9346 = vmatpush2.bf16.msra.mxu1 %v13532_v39  ;;  %9306 = vmatprep.subr.bf16.mxu0 %v13537_v38  ;;  %v14969_v39 = vld [vmem:[#allocation5 + $0x54c] ss:$24 sps:$4 sm:$0xff]  }
 0xa45   :  { %9347 = vmatprep.subr.bf16.mxu1 %v13540_v28  ;;  %v13612_v38 = vld [vmem:[#allocation5 + $0x84c] ss:$24 sps:$4 sm:$0xff]   ;;  %v14975_v28 = vld [vmem:[#allocation5 + $0x51c] ss:$24 sps:$4 sm:$0xff]  }
 0xa47   :  { %9307 = vmatpush2.bf16.msra.mxu0 %v13535_v0  ;;  %v13618_v0 = vld [vmem:[#allocation5 + $0x81c] ss:$24 sps:$4 sm:$0xff]  }
 0xa48   :  { %9348 = vmatpush2.bf16.msra.mxu1 %v13538_v16  ;;  %9358 = vmatprep.subr.bf16.mxu0 %v13543_v53  ;;  %v14978_v16 = vld [vmem:[#allocation5 + $0x518] ss:$24 sps:$4 sm:$0xff]   ;;  %v14981_v53 = vld [vmem:[#allocation5 + $0x4ec] ss:$24 sps:$4 sm:$0xff]  }
 0xa49   :  { %9399 = vmatprep.subr.bf16.mxu1 %v13546_v49  ;;  %v13624_v49 = vld [vmem:[#allocation5 + $0x7ec] ss:$24 sps:$4 sm:$0xff]  }
 0xa4a   :  { %9309 = vmatmul.mubr.bf16.vlgmr.msra.gmra.mxu0 %v14953_v21 }
 0xa4b   :  { %9350 = vmatmul.mubr.bf16.vlgmr.msra.gmra.mxu1 %v14937_v29  ;;  %9359 = vmatpush1.bf16.msra.mxu0 %v13541_v50  ;;  %v14984_v50 = vld [vmem:[#allocation5 + $0x4e8] ss:$24 sps:$4 sm:$0xff]  }
 0xa4c   :  { %9400 = vmatpush1.bf16.msra.mxu1 %v13544_v40  ;;  %9360 = vmatprep.subr.bf16.mxu0 %v13549_v12  ;;  %v13622_v40 = vld [vmem:[#allocation5 + $0x7e8] ss:$24 sps:$4 sm:$0xff]   ;;  %v14987_v12 = vld [vmem:[#allocation5 + $0x4bc] ss:$24 sps:$4 sm:$0xff]  }
 0xa4d   :  { %9401 = vmatprep.subr.bf16.mxu1 %v13552_v23  ;;  %9390 = vmatprep.mubr.bf16.mxu0 %v14919_v5  ;;  %v13630_v23 = vld [vmem:[#allocation5 + $0x7bc] ss:$24 sps:$4 sm:$0xff]  }
 0xa4e   :  { %9431 = vmatprep.mubr.bf16.mxu1 %v14942_v6 }
 0xa4f   :  { %9361 = vmatpush1.bf16.msra.mxu0 %v13547_v48  ;;  %v14990_v48 = vld [vmem:[#allocation5 + $0x4b8] ss:$24 sps:$4 sm:$0xff]  }
 0xa50   :  { %9402 = vmatpush1.bf16.msra.mxu1 %v13550_v1  ;;  %9362 = vmatprep.subr.bf16.mxu0 %v13555_v26  ;;  %v13628_v1 = vld [vmem:[#allocation5 + $0x7b8] ss:$24 sps:$4 sm:$0xff]   ;;  %v14993_v26 = vld [vmem:[#allocation5 + $0x48c] ss:$24 sps:$4 sm:$0xff]  }
 0xa51   :  { %9403 = vmatprep.subr.bf16.mxu1 %v13558_v63  ;;  %v13636_v63 = vld [vmem:[#allocation5 + $0x78c] ss:$24 sps:$4 sm:$0xff]  }
 0xa53   :  { %9363 = vmatpush1.bf16.msra.mxu0 %v13553_v25  ;;  %v14996_v25 = vld [vmem:[#allocation5 + $0x488] ss:$24 sps:$4 sm:$0xff]  }
 0xa54   :  { %9404 = vmatpush1.bf16.msra.mxu1 %v13556_v3  ;;  %9364 = vmatprep.subr.bf16.mxu0 %v13561_v51  ;;  %v13634_v3 = vld [vmem:[#allocation5 + $0x788] ss:$24 sps:$4 sm:$0xff]   ;;  %v14999_v51 = vld [vmem:[#allocation5 + $0x164] ss:$24 sps:$4 sm:$0xff]  }
 0xa55   :  { %9405 = vmatprep.subr.bf16.mxu1 %v13564_v18  ;;  %v13642_v18 = vld [vmem:[#allocation5 + $0x464] ss:$24 sps:$4 sm:$0xff]  }
 0xa57   :  { %9365 = vmatpush1.bf16.msra.mxu0 %v13559_v27  ;;  %v15003_v27 = vld [vmem:[#allocation5 + $0x160] ss:$24 sps:$4 sm:$0xff]  }
 0xa58   :  { %9406 = vmatpush1.bf16.msra.mxu1 %v13562_v30  ;;  %9366 = vmatprep.subr.bf16.mxu0 %v13567_v57  ;;  %v13640_v30 = vld [vmem:[#allocation5 + $0x460] ss:$24 sps:$4 sm:$0xff]   ;;  %v15006_v57 = vld [vmem:[#allocation5 + $0x134] ss:$24 sps:$4 sm:$0xff]  }
 0xa59   :  { %9407 = vmatprep.subr.bf16.mxu1 %v13570_v14  ;;  %v13648_v14 = vld [vmem:[#allocation5 + $0x434] ss:$24 sps:$4 sm:$0xff]  }
 0xa5b   :  { %9367 = vmatpush1.bf16.msra.mxu0 %v13565_v59  ;;  %v15011_v59 = vld [vmem:[#allocation5 + $0x130] ss:$24 sps:$4 sm:$0xff]  }
 0xa5c   :  { %9408 = vmatpush1.bf16.msra.mxu1 %v13568_v54  ;;  %9368 = vmatprep.subr.bf16.mxu0 %v13573_v58  ;;  %v13646_v54 = vld [vmem:[#allocation5 + $0x430] ss:$24 sps:$4 sm:$0xff]   ;;  %v15014_v58 = vld [vmem:[#allocation5 + $0x104] ss:$24 sps:$4 sm:$0xff]  }
 0xa5d   :  { %9409 = vmatprep.subr.bf16.mxu1 %v13576_v55  ;;  %v13654_v55 = vld [vmem:[#allocation5 + $0x404] ss:$24 sps:$4 sm:$0xff]  }
 0xa5f   :  { %9369 = vmatpush1.bf16.msra.mxu0 %v13571_v42  ;;  %v15019_v42 = vld [vmem:[#allocation5 + $0x100] ss:$24 sps:$4 sm:$0xff]  }
 0xa60   :  { %9410 = vmatpush1.bf16.msra.mxu1 %v13574_v17  ;;  %9370 = vmatprep.subr.bf16.mxu0 %v13579_v62  ;;  %v13652_v17 = vld [vmem:[#allocation5 + $0x400] ss:$24 sps:$4 sm:$0xff]   ;;  %v15022_v62 = vld [vmem:[#allocation5 + $0xd4] ss:$24 sps:$4 sm:$0xff]  }
 0xa61   :  { %9411 = vmatprep.subr.bf16.mxu1 %v13582_v36  ;;  %v13660_v36 = vld [vmem:[#allocation5 + $0x3d4] ss:$24 sps:$4 sm:$0xff]  }
 0xa63   :  { %9371 = vmatpush1.bf16.msra.mxu0 %v13577_v4  ;;  %v15025_v4 = vld [vmem:[#allocation5 + $0xd0] ss:$24 sps:$4 sm:$0xff]  }
 0xa64   :  { %9412 = vmatpush1.bf16.msra.mxu1 %v13580_v31  ;;  %9372 = vmatprep.subr.bf16.mxu0 %v13585_v44  ;;  %v13666_v31 = vld [vmem:[#allocation5 + $0x3a4] ss:$24 sps:$4 sm:$0xff]   ;;  %v15031_v44 = vld [vmem:[#allocation5 + $0xa0] ss:$24 sps:$4 sm:$0xff]  }
 0xa65   :  { %9413 = vmatprep.subr.bf16.mxu1 %v13588_v22  ;;  %v13664_v22 = vld [vmem:[#allocation5 + $0x3a0] ss:$24 sps:$4 sm:$0xff]  }
 0xa67   :  { %9373 = vmatpush1.bf16.msra.mxu0 %v13583_v56  ;;  %v15034_v56 = vld [vmem:[#allocation5 + $0x74] ss:$24 sps:$4 sm:$0xff]  }
 0xa68   :  { %9414 = vmatpush1.bf16.msra.mxu1 %v13586_v2  ;;  %9374 = vmatprep.subr.bf16.mxu0 %v13591_v34  ;;  %v13672_v2 = vld [vmem:[#allocation5 + $0x374] ss:$24 sps:$4 sm:$0xff]   ;;  %v15037_v34 = vld [vmem:[#allocation5 + $0x70] ss:$24 sps:$4 sm:$0xff]  }
 0xa69   :  { %9415 = vmatprep.subr.bf16.mxu1 %v13594_v52  ;;  %v13670_v52 = vld [vmem:[#allocation5 + $0x370] ss:$24 sps:$4 sm:$0xff]  }
 0xa6b   :  { %9375 = vmatpush2.bf16.msra.mxu0 %v13589_v20  ;;  %v15040_v20 = vld [vmem:[#allocation5 + $0x44] ss:$24 sps:$4 sm:$0xff]  }
 0xa6c   :  { %9416 = vmatpush2.bf16.msra.mxu1 %v13592_v60  ;;  %9376 = vmatprep.subr.bf16.mxu0 %v14959_v13  ;;  %v13678_v60 = vld [vmem:[#allocation5 + $0x344] ss:$24 sps:$4 sm:$0xff]  }
 0xa6d   :  { %9417 = vmatprep.subr.bf16.mxu1 %v13600_v7  ;;  %v15043_v7 = vld [vmem:[#allocation5 + $0x40] ss:$24 sps:$4 sm:$0xff]  }
 0xa6f   :  { %9377 = vmatpush2.bf16.msra.mxu0 %v14961_v11 }
 0xa70   :  { %9418 = vmatpush2.bf16.msra.mxu1 %v13598_v45  ;;  %9378 = vmatprep.subr.bf16.mxu0 %v14963_v9  ;;  %v13676_v45 = vld [vmem:[#allocation5 + $0x340] ss:$24 sps:$4 sm:$0xff]  }
 0xa71   :  { %9419 = vmatprep.subr.bf16.mxu1 %v13606_v47  ;;  %v15046_v47 = vld [vmem:[#allocation5 + $0x14] ss:$24 sps:$4 sm:$0xff]  }
 0xa73   :  { %9379 = vmatpush2.bf16.msra.mxu0 %v14966_v46 }
 0xa74   :  { %9420 = vmatpush2.bf16.msra.mxu1 %v13604_v35  ;;  %9380 = vmatprep.subr.bf16.mxu0 %v14969_v39  ;;  %v13684_v35 = vld [vmem:[#allocation5 + $0x314] ss:$24 sps:$4 sm:$0xff]  }
 0xa75   :  { %9421 = vmatprep.subr.bf16.mxu1 %v13612_v38  ;;  %v15049_v38 = vld [vmem:[#allocation5 + $0x10] ss:$24 sps:$4 sm:$0xff]  }
 0xa77   :  { %9381 = vmatpush2.bf16.msra.mxu0 %v14972_v33 }
 0xa78   :  { %9422 = vmatpush2.bf16.msra.mxu1 %v13610_v8  ;;  %9382 = vmatprep.subr.bf16.mxu0 %v14975_v28  ;;  %v13682_v8 = vld [vmem:[#allocation5 + $0x310] ss:$24 sps:$4 sm:$0xff]  }
 0xa79   :  { %9423 = vmatprep.subr.bf16.mxu1 %v13618_v0  ;;  %v15052_v0 = vld [vmem:[#allocation5 + $0x2e4] ss:$24 sps:$4 sm:$0xff]  }
 0xa7b   :  { %9383 = vmatpush2.bf16.msra.mxu0 %v14978_v16 }
 0xa7c   :  { %9424 = vmatpush2.bf16.msra.mxu1 %v13616_v32  ;;  %9384 = vmatprep.subr.bf16.mxu0 %v14981_v53  ;;  %v13690_v32 = vld [vmem:[#allocation5 + $0x5e4] ss:$24 sps:$4 sm:$0xff]  }
 0xa7d   :  { %9425 = vmatprep.subr.bf16.mxu1 %v13624_v49  ;;  %v15055_v49 = vld [vmem:[#allocation5 + $0x2e0] ss:$24 sps:$4 sm:$0xff]  }
 0xa7f   :  { %9385 = vmatpush2.bf16.msra.mxu0 %v14984_v50 }
 0xa80   :  { %9426 = vmatpush2.bf16.msra.mxu1 %v13622_v40  ;;  %9386 = vmatprep.subr.bf16.mxu0 %v14987_v12  ;;  %v13688_v40 = vld [vmem:[#allocation5 + $0x5e0] ss:$24 sps:$4 sm:$0xff]  }
 0xa81   :  { %9427 = vmatprep.subr.bf16.mxu1 %v13630_v23  ;;  %v15058_v23 = vld [vmem:[#allocation5 + $0x2b4] ss:$24 sps:$4 sm:$0xff]  }
 0xa83   :  { %9387 = vmatpush2.bf16.msra.mxu0 %v14990_v48 }
 0xa84   :  { %9428 = vmatpush2.bf16.msra.mxu1 %v13628_v1  ;;  %9388 = vmatprep.subr.bf16.mxu0 %v14993_v26  ;;  %v13696_v1 = vld [vmem:[#allocation5 + $0x5b4] ss:$24 sps:$4 sm:$0xff]  }
 0xa85   :  { %9429 = vmatprep.subr.bf16.mxu1 %v13636_v63  ;;  %v15061_v63 = vld [vmem:[#allocation5 + $0x2b0] ss:$24 sps:$4 sm:$0xff]  }
 0xa86   :  { %15775 = vst [vmem:[#allocation47_spill] sm:$0xff] %v15061_v63 }
 0xa87   :  { %9389 = vmatpush2.bf16.msra.mxu0 %v14996_v25 }
 0xa88   :  { %9430 = vmatpush2.bf16.msra.mxu1 %v13634_v3  ;;  %9440 = vmatprep.subr.bf16.mxu0 %v14999_v51  ;;  %v13694_v3 = vld [vmem:[#allocation5 + $0x5b0] ss:$24 sps:$4 sm:$0xff]  }
 0xa89   :  { %9481 = vmatprep.subr.bf16.mxu1 %v13642_v18  ;;  %v15064_v18 = vld [vmem:[#allocation5 + $0x284] ss:$24 sps:$4 sm:$0xff]  }
 0xa8a   :  { %9391 = vmatmul.mubr.bf16.vlgmr.msra.gmra.mxu0 %v14939_v41  ;;  %15776 = vst [vmem:[#allocation48_spill] sm:$0xff] %v15064_v18 }
 0xa8b   :  { %9432 = vmatmul.mubr.bf16.vlgmr.msra.gmra.mxu1 %v14953_v21  ;;  %9441 = vmatpush1.bf16.msra.mxu0 %v15003_v27 }
 0xa8c   :  { %9482 = vmatpush1.bf16.msra.mxu1 %v13640_v30  ;;  %9442 = vmatprep.subr.bf16.mxu0 %v15006_v57  ;;  %v13702_v30 = vld [vmem:[#allocation5 + $0x584] ss:$24 sps:$4 sm:$0xff]  }
 0xa8d   :  { %9483 = vmatprep.subr.bf16.mxu1 %v13648_v14  ;;  %9472 = vmatprep.mubr.bf16.mxu0 %v14917_v19  ;;  %v13658_v19 = vld [vmem:[#allocation5 + $0x3d0] ss:$24 sps:$4 sm:$0xff]   ;;  %v15067_v14 = vld [vmem:[#allocation5 + $0x280] ss:$24 sps:$4 sm:$0xff]  }
 0xa8e   :  { %9513 = vmatprep.mubr.bf16.mxu1 %v14919_v5  ;;  %v15028_v5 = vld [vmem:[#allocation5 + $0xa4] ss:$24 sps:$4 sm:$0xff]   ;;  %15777 = vst [vmem:[#allocation49_spill] sm:$0xff] %v15067_v14 }
 0xa8f   :  { %9443 = vmatpush1.bf16.msra.mxu0 %v15011_v59 }
 0xa90   :  { %9484 = vmatpush1.bf16.msra.mxu1 %v13646_v54  ;;  %9444 = vmatprep.subr.bf16.mxu0 %v15014_v58  ;;  %v13700_v54 = vld [vmem:[#allocation5 + $0x580] ss:$24 sps:$4 sm:$0xff]  }
 0xa91   :  { %9485 = vmatprep.subr.bf16.mxu1 %v13654_v55  ;;  %v15070_v55 = vld [vmem:[#allocation5 + $0x254] ss:$24 sps:$4 sm:$0xff]  }
 0xa92   :  { %15778 = vst [vmem:[#allocation50_spill] sm:$0xff] %v15070_v55 }
 0xa93   :  { %9445 = vmatpush1.bf16.msra.mxu0 %v15019_v42 }
 0xa94   :  { %9486 = vmatpush1.bf16.msra.mxu1 %v13652_v17  ;;  %9446 = vmatprep.subr.bf16.mxu0 %v15022_v62  ;;  %v13708_v17 = vld [vmem:[#allocation5 + $0x554] ss:$24 sps:$4 sm:$0xff]  }
 0xa95   :  { %9487 = vmatprep.subr.bf16.mxu1 %v13660_v36  ;;  %v15073_v36 = vld [vmem:[#allocation5 + $0x250] ss:$24 sps:$4 sm:$0xff]  }
 0xa96   :  { %15779 = vst [vmem:[#allocation51_spill] sm:$0xff] %v15073_v36 }
 0xa97   :  { %9447 = vmatpush1.bf16.msra.mxu0 %v15025_v4 }
 0xa98   :  { %9488 = vmatpush1.bf16.msra.mxu1 %v13658_v19  ;;  %9448 = vmatprep.subr.bf16.mxu0 %v15028_v5  ;;  %v13706_v19 = vld [vmem:[#allocation5 + $0x550] ss:$24 sps:$4 sm:$0xff]  }
 0xa99   :  { %9489 = vmatprep.subr.bf16.mxu1 %v13666_v31  ;;  %v15076_v31 = vld [vmem:[#allocation5 + $0x224] ss:$24 sps:$4 sm:$0xff]  }
 0xa9a   :  { %15780 = vst [vmem:[#allocation52_spill] sm:$0xff] %v15076_v31 }
 0xa9b   :  { %9449 = vmatpush1.bf16.msra.mxu0 %v15031_v44 }
 0xa9c   :  { %9490 = vmatpush1.bf16.msra.mxu1 %v13664_v22  ;;  %9450 = vmatprep.subr.bf16.mxu0 %v15034_v56  ;;  %v13714_v22 = vld [vmem:[#allocation5 + $0x524] ss:$24 sps:$4 sm:$0xff]  }
 0xa9d   :  { %9491 = vmatprep.subr.bf16.mxu1 %v13672_v2  ;;  %v15079_v2 = vld [vmem:[#allocation5 + $0x220] ss:$24 sps:$4 sm:$0xff]  }
 0xa9e   :  { %15781 = vst [vmem:[#allocation53_spill] sm:$0xff] %v15079_v2 }
 0xa9f   :  { %9451 = vmatpush1.bf16.msra.mxu0 %v15037_v34 }
 0xaa0   :  { %9492 = vmatpush1.bf16.msra.mxu1 %v13670_v52  ;;  %9452 = vmatprep.subr.bf16.mxu0 %v15040_v20  ;;  %v13712_v52 = vld [vmem:[#allocation5 + $0x520] ss:$24 sps:$4 sm:$0xff]  }
 0xaa1   :  { %9493 = vmatprep.subr.bf16.mxu1 %v13678_v60  ;;  %v15082_v60 = vld [vmem:[#allocation5 + $0x1f4] ss:$24 sps:$4 sm:$0xff]  }
 0xaa2   :  { %15782 = vst [vmem:[#allocation46_spill] sm:$0xff] %v15082_v60 }
 0xaa3   :  { %9453 = vmatpush1.bf16.msra.mxu0 %v15043_v7 }
 0xaa4   :  { %9494 = vmatpush1.bf16.msra.mxu1 %v13676_v45  ;;  %9454 = vmatprep.subr.bf16.mxu0 %v15046_v47  ;;  %v13720_v45 = vld [vmem:[#allocation5 + $0x4f4] ss:$24 sps:$4 sm:$0xff]  }
 0xaa5   :  { %9495 = vmatprep.subr.bf16.mxu1 %v13684_v35  ;;  %v15085_v35 = vld [vmem:[#allocation5 + $0x1f0] ss:$24 sps:$4 sm:$0xff]  }
 0xaa6   :  { %15783 = vst [vmem:[#allocation54_spill] sm:$0xff] %v15085_v35 }
 0xaa7   :  { %9455 = vmatpush1.bf16.msra.mxu0 %v15049_v38 }
 0xaa8   :  { %9496 = vmatpush1.bf16.msra.mxu1 %v13682_v8  ;;  %9456 = vmatprep.subr.bf16.mxu0 %v15052_v0  ;;  %v13718_v8 = vld [vmem:[#allocation5 + $0x4f0] ss:$24 sps:$4 sm:$0xff]  }
 0xaa9   :  { %9497 = vmatprep.subr.bf16.mxu1 %v13690_v32  ;;  %v15088_v32 = vld [vmem:[#allocation5 + $0x1c4] ss:$24 sps:$4 sm:$0xff]  }
 0xaaa   :  { %15784 = vst [vmem:[#allocation55_spill] sm:$0xff] %v15088_v32 }
 0xaab   :  { %9457 = vmatpush2.bf16.msra.mxu0 %v15055_v49 }
 0xaac   :  { %9498 = vmatpush2.bf16.msra.mxu1 %v13688_v40  ;;  %9458 = vmatprep.subr.bf16.mxu0 %v15058_v23  ;;  %v13726_v40 = vld [vmem:[#allocation5 + $0x4c4] ss:$24 sps:$4 sm:$0xff]  }
 0xaad   :  { %9499 = vmatprep.subr.bf16.mxu1 %v13696_v1  ;;  %v15091_v1 = vld [vmem:[#allocation5 + $0x1c0] ss:$24 sps:$4 sm:$0xff]  }
 0xaae   :  { %15785 = vst [vmem:[#allocation56_spill] sm:$0xff] %v15091_v1 }
 0xaaf   :  { %9459 = vmatpush2.bf16.msra.mxu0 %v15061_v63 }
 0xab0   :  { %9500 = vmatpush2.bf16.msra.mxu1 %v13694_v3  ;;  %9460 = vmatprep.subr.bf16.mxu0 %v15064_v18  ;;  %v13724_v3 = vld [vmem:[#allocation5 + $0x4c0] ss:$24 sps:$4 sm:$0xff]  }
 0xab1   :  { %9501 = vmatprep.subr.bf16.mxu1 %v13702_v30  ;;  %v15094_v30 = vld [vmem:[#allocation5 + $0x194] ss:$24 sps:$4 sm:$0xff]  }
 0xab2   :  { %15786 = vst [vmem:[#allocation57_spill] sm:$0xff] %v15094_v30 }
 0xab3   :  { %9461 = vmatpush2.bf16.msra.mxu0 %v15067_v14  ;;  %v13917_v14 = vld [vmem:[#allocation5 + $0xfc] ss:$24 sps:$4 sm:$0xff]  }
 0xab4   :  { %9502 = vmatpush2.bf16.msra.mxu1 %v13700_v54  ;;  %9462 = vmatprep.subr.bf16.mxu0 %v15070_v55  ;;  %v13732_v54 = vld [vmem:[#allocation5 + $0x494] ss:$24 sps:$4 sm:$0xff]   ;;  %v13915_v55 = vld [vmem:[#allocation5 + $0x128] ss:$24 sps:$4 sm:$0xff]  }
 0xab5   :  { %9503 = vmatprep.subr.bf16.mxu1 %v13708_v17  ;;  %v15097_v17 = vld [vmem:[#allocation5 + $0x190] ss:$24 sps:$4 sm:$0xff]  }
 0xab6   :  { %15787 = vst [vmem:[#allocation58_spill] sm:$0xff] %v15097_v17 }
 0xab7   :  { %9463 = vmatpush2.bf16.msra.mxu0 %v15073_v36 }
 0xab8   :  { %9504 = vmatpush2.bf16.msra.mxu1 %v13706_v19  ;;  %9464 = vmatprep.subr.bf16.mxu0 %v15076_v31  ;;  %v13730_v19 = vld [vmem:[#allocation5 + $0x490] ss:$24 sps:$4 sm:$0xff]  }
 0xab9   :  { %9505 = vmatprep.subr.bf16.mxu1 %v13714_v22  ;;  %v15100_v22 = vld [vmem:[#allocation5 + $0x764] ss:$24 sps:$4 sm:$0xff]  }
 0xaba   :  { %15788 = vst [vmem:[#allocation59_spill] sm:$0xff] %v15100_v22 }
 0xabb   :  { %9465 = vmatpush2.bf16.msra.mxu0 %v15079_v2 }
 0xabc   :  { %9506 = vmatpush2.bf16.msra.mxu1 %v13712_v52  ;;  %9466 = vmatprep.subr.bf16.mxu0 %v15082_v60  ;;  %v15103_v52 = vld [vmem:[#allocation5 + $0x760] ss:$24 sps:$4 sm:$0xff]   ;;  %v13913_v60 = vld [vmem:[#allocation5 + $0x12c] ss:$24 sps:$4 sm:$0xff]  }
 0xabd   :  { %9507 = vmatprep.subr.bf16.mxu1 %v13720_v45  ;;  %15789 = vst [vmem:[#allocation60_spill] sm:$0xff] %v15103_v52  ;;  %v13813_v45 = vld [vmem:[#allocation5 + $0x154] ss:$24 sps:$4 sm:$0xff]  }
 0xabf   :  { %9467 = vmatpush2.bf16.msra.mxu0 %v15085_v35 }
 0xac0   :  { %9508 = vmatpush2.bf16.msra.mxu1 %v13718_v8  ;;  %9468 = vmatprep.subr.bf16.mxu0 %v15088_v32  ;;  %v15106_v8 = vld [vmem:[#allocation5 + $0x734] ss:$24 sps:$4 sm:$0xff]  }
 0xac1   :  { %9509 = vmatprep.subr.bf16.mxu1 %v13726_v40  ;;  %15790 = vst [vmem:[#allocation61_spill] sm:$0xff] %v15106_v8  ;;  %v15110_v40 = vpack.c.bf16 %v14897_v37, %v14897_v37  ;;  %v13815_v37 = vld [vmem:[#allocation5 + $0x124] ss:$24 sps:$4 sm:$0xff]  }
 0xac3   :  { %9469 = vmatpush2.bf16.msra.mxu0 %v15091_v1  ;;  %v15120_v1 = vld [vmem:[#allocation5 + $0x704] ss:$24 sps:$4 sm:$0xff]  }
 0xac4   :  { %9510 = vmatpush2.bf16.msra.mxu1 %v13724_v3  ;;  %9470 = vmatprep.subr.bf16.mxu0 %v15094_v30  ;;  %15792 = vst [vmem:[#allocation63_spill] sm:$0xff] %v15120_v1 }
 0xac5   :  { %9511 = vmatprep.subr.bf16.mxu1 %v13732_v54 }
 0xac7   :  { %9471 = vmatpush2.bf16.msra.mxu0 %v15097_v17 }
 0xac8   :  { %9512 = vmatpush2.bf16.msra.mxu1 %v13730_v19  ;;  %9522 = vmatprep.subr.bf16.mxu0 %v15100_v22  ;;  %v13814_v19 = vld [vmem:[#allocation5 + $0x150] ss:$24 sps:$4 sm:$0xff]  }
 0xac9   :  { %9604 = vmatprep.subr.bf16.mxu1 %v13813_v45  ;;  %v15117_v22 = vld [vmem:[#allocation5 + $0x730] ss:$24 sps:$4 sm:$0xff]  }
 0xaca   :  { %v9228_v3 = vpop.f32.mrf.mxu0  ;;  %9473 = vmatmul.mubr.bf16.vlgmr.msra.gmra.mxu0 %v14937_v29  ;;  %15791 = vst [vmem:[#allocation62_spill] sm:$0xff] %v15117_v22 }
 0xacb   :  { %v9269_v30 = vpop.f32.mrf.mxu1  ;;  %9514 = vmatmul.mubr.bf16.vlgmr.msra.gmra.mxu1 %v14939_v41  ;;  %9523 = vmatpush1.bf16.msra.mxu0 %v15103_v52  ;;  %v13857_v52 = vld [vmem:[#allocation5 + $0x3c4] ss:$24 sps:$4 sm:$0xff]  }
 0xacc   :  { %v15114_v54 = vadd.f32 %v9269_v30, %v9228_v3  ;;  %9605 = vmatpush1.bf16.msra.mxu1 %v13814_v19  ;;  %v9230_v45 = vpop.f32.mrf.mxu0  ;;  %9524 = vmatprep.subr.bf16.mxu0 %v15106_v8  ;;  %v13816_v30 = vld [vmem:[#allocation5 + $0x120] ss:$24 sps:$4 sm:$0xff]  }
 0xacd   :  { %v9271_v17 = vpop.f32.mrf.mxu1  ;;  %9606 = vmatprep.subr.bf16.mxu1 %v13815_v37  ;;  %9554 = vmatprep.mubr.bf16.mxu0 %v14942_v6  ;;  %v15127_v3 = vld [vmem:[#allocation5 + $0x700] ss:$24 sps:$4 sm:$0xff]   ;;  %v13817_v37 = vld [vmem:[#allocation5 + $0xf4] ss:$24 sps:$4 sm:$0xff]   ;;  %v13818_v6 = vld [vmem:[#allocation5 + $0xf0] ss:$24 sps:$4 sm:$0xff]  }
 0xace   :  { %v15122_v32 = vadd.f32 %v9271_v17, %v9230_v45  ;;  %9636 = vmatprep.mubr.bf16.mxu1 %v15110_v40  ;;  %v9232_v29 = vpop.f32.mrf.mxu0  ;;  %15793 = vst [vmem:[#allocation64_spill] sm:$0xff] %v15127_v3  ;;  %v15130_v17 = vld [vmem:[#allocation5 + $0x6d4] ss:$24 sps:$4 sm:$0xff]   ;;  %v15133_v45 = vld [vmem:[#allocation5 + $0x6d0] ss:$24 sps:$4 sm:$0xff]  }
 0xacf   :  { %v9273_v41 = vpop.f32.mrf.mxu1  ;;  %9525 = vmatpush1.bf16.msra.mxu0 %v15117_v22  ;;  %15794 = vst [vmem:[#allocation65_spill] sm:$0xff] %v15130_v17  ;;  %15795 = vst [vmem:[#allocation66_spill] sm:$0xff] %v15133_v45  ;;  %v13819_v29 = vld [vmem:[#allocation5 + $0xc4] ss:$24 sps:$4 sm:$0xff]   ;;  %v13853_v22 = vld [vmem:[#allocation5 + $0x3f4] ss:$24 sps:$4 sm:$0xff]  }
 0xad0   :  { %9607 = vmatpush1.bf16.msra.mxu1 %v13816_v30  ;;  %v9233_v19 = vpop.f32.mrf.mxu0  ;;  %9526 = vmatprep.subr.bf16.mxu0 %v15120_v1  ;;  %v15136_v41 = vld [vmem:[#allocation5 + $0x6a4] ss:$24 sps:$4 sm:$0xff]   ;;  %v15139_v30 = vld [vmem:[#allocation5 + $0x6a0] ss:$24 sps:$4 sm:$0xff]  }
 0xad1   :  { %v9274_v8 = vpop.f32.mrf.mxu1  ;;  %9608 = vmatprep.subr.bf16.mxu1 %v13817_v37  ;;  %15796 = vst [vmem:[#allocation67_spill] sm:$0xff] %v15136_v41  ;;  %15797 = vst [vmem:[#allocation68_spill] sm:$0xff] %v15139_v30  ;;  %v13821_v19 = vld [vmem:[#allocation5 + $0x94] ss:$24 sps:$4 sm:$0xff]  }
 0xad2   :  { %v13820_v8 = vld [vmem:[#allocation5 + $0xc0] ss:$24 sps:$4 sm:$0xff]   ;;  %v15142_v37 = vld [vmem:[#allocation5 + $0x674] ss:$24 sps:$4 sm:$0xff]  }
 0xad3   :  { %9527 = vmatpush1.bf16.msra.mxu0 %v15127_v3  ;;  %15798 = vst [vmem:[#allocation69_spill] sm:$0xff] %v15142_v37 }
 0xad4   :  { %9609 = vmatpush1.bf16.msra.mxu1 %v13818_v6  ;;  %9528 = vmatprep.subr.bf16.mxu0 %v15130_v17  ;;  %v13822_v6 = vld [vmem:[#allocation5 + $0x90] ss:$24 sps:$4 sm:$0xff]  }
 0xad5   :  { %9610 = vmatprep.subr.bf16.mxu1 %v13819_v29  ;;  %v15145_v17 = vld [vmem:[#allocation5 + $0x670] ss:$24 sps:$4 sm:$0xff]   ;;  %v13823_v29 = vld [vmem:[#allocation5 + $0x64] ss:$24 sps:$4 sm:$0xff]  }
 0xad6   :  { %15799 = vst [vmem:[#allocation70_spill] sm:$0xff] %v15145_v17 }
 0xad7   :  { %9529 = vmatpush1.bf16.msra.mxu0 %v15133_v45  ;;  %v15148_v45 = vld [vmem:[#allocation5 + $0x644] ss:$24 sps:$4 sm:$0xff]  }
 0xad8   :  { %9611 = vmatpush1.bf16.msra.mxu1 %v13820_v8  ;;  %9530 = vmatprep.subr.bf16.mxu0 %v15136_v41  ;;  %15800 = vst [vmem:[#allocation71_spill] sm:$0xff] %v15148_v45  ;;  %v13824_v8 = vld [vmem:[#allocation5 + $0x60] ss:$24 sps:$4 sm:$0xff]  }
 0xad9   :  { %9612 = vmatprep.subr.bf16.mxu1 %v13821_v19  ;;  %v15151_v41 = vld [vmem:[#allocation5 + $0x640] ss:$24 sps:$4 sm:$0xff]   ;;  %v13825_v19 = vld [vmem:[#allocation5 + $0x34] ss:$24 sps:$4 sm:$0xff]  }
 0xada   :  { %15801 = vst [vmem:[#allocation72_spill] sm:$0xff] %v15151_v41 }
 0xadb   :  { %9531 = vmatpush1.bf16.msra.mxu0 %v15139_v30  ;;  %v15154_v30 = vld [vmem:[#allocation5 + $0x614] ss:$24 sps:$4 sm:$0xff]  }
 0xadc   :  { %9613 = vmatpush1.bf16.msra.mxu1 %v13822_v6  ;;  %9532 = vmatprep.subr.bf16.mxu0 %v15142_v37  ;;  %15802 = vst [vmem:[#allocation73_spill] sm:$0xff] %v15154_v30  ;;  %v13826_v6 = vld [vmem:[#allocation5 + $0x30] ss:$24 sps:$4 sm:$0xff]  }
 0xadd   :  { %9614 = vmatprep.subr.bf16.mxu1 %v13823_v29  ;;  %v15157_v37 = vld [vmem:[#allocation5 + $0x610] ss:$24 sps:$4 sm:$0xff]   ;;  %v13827_v29 = vld [vmem:[#allocation5 + $0x4] ss:$24 sps:$4 sm:$0xff]  }
 0xade   :  { %15803 = vst [vmem:[#allocation74_spill] sm:$0xff] %v15157_v37 }
 0xadf   :  { %9533 = vmatpush1.bf16.msra.mxu0 %v15145_v17  ;;  %v15160_v17 = vld [vmem:[#allocation5 + $0x8e4] ss:$24 sps:$4 sm:$0xff]  }
 0xae0   :  { %9615 = vmatpush1.bf16.msra.mxu1 %v13824_v8  ;;  %9534 = vmatprep.subr.bf16.mxu0 %v15148_v45  ;;  %15804 = vst [vmem:[#allocation75_spill] sm:$0xff] %v15160_v17  ;;  %v13828_v8 = vld [vmem:[#allocation5] ss:$24 sps:$4 sm:$0xff]  }
 0xae1   :  { %9616 = vmatprep.subr.bf16.mxu1 %v13825_v19  ;;  %v15163_v45 = vld [vmem:[#allocation5 + $0x8e0] ss:$24 sps:$4 sm:$0xff]   ;;  %v13829_v19 = vld [vmem:[#allocation5 + $0x2d4] ss:$24 sps:$4 sm:$0xff]  }
 0xae2   :  { %15805 = vst [vmem:[#allocation76_spill] sm:$0xff] %v15163_v45 }
 0xae3   :  { %9535 = vmatpush1.bf16.msra.mxu0 %v15151_v41  ;;  %v15166_v41 = vld [vmem:[#allocation5 + $0x8b4] ss:$24 sps:$4 sm:$0xff]  }
 0xae4   :  { %9617 = vmatpush1.bf16.msra.mxu1 %v13826_v6  ;;  %9536 = vmatprep.subr.bf16.mxu0 %v15154_v30  ;;  %15806 = vst [vmem:[#allocation77_spill] sm:$0xff] %v15166_v41  ;;  %v13830_v6 = vld [vmem:[#allocation5 + $0x2d0] ss:$24 sps:$4 sm:$0xff]  }
 0xae5   :  { %9618 = vmatprep.subr.bf16.mxu1 %v13827_v29  ;;  %v15169_v30 = vld [vmem:[#allocation5 + $0x8b0] ss:$24 sps:$4 sm:$0xff]   ;;  %v13831_v29 = vld [vmem:[#allocation5 + $0x2a4] ss:$24 sps:$4 sm:$0xff]  }
 0xae6   :  { %15807 = vst [vmem:[#allocation78_spill] sm:$0xff] %v15169_v30 }
 0xae7   :  { %9537 = vmatpush1.bf16.msra.mxu0 %v15157_v37  ;;  %v15172_v37 = vld [vmem:[#allocation5 + $0x884] ss:$24 sps:$4 sm:$0xff]  }
 0xae8   :  { %9619 = vmatpush1.bf16.msra.mxu1 %v13828_v8  ;;  %9538 = vmatprep.subr.bf16.mxu0 %v15160_v17  ;;  %15808 = vst [vmem:[#allocation79_spill] sm:$0xff] %v15172_v37  ;;  %v13832_v8 = vld [vmem:[#allocation5 + $0x2a0] ss:$24 sps:$4 sm:$0xff]  }
 0xae9   :  { %9620 = vmatprep.subr.bf16.mxu1 %v13829_v19  ;;  %v15175_v17 = vld [vmem:[#allocation5 + $0x880] ss:$24 sps:$4 sm:$0xff]   ;;  %v13833_v19 = vld [vmem:[#allocation5 + $0x274] ss:$24 sps:$4 sm:$0xff]  }
 0xaea   :  { %15809 = vst [vmem:[#allocation80_spill] sm:$0xff] %v15175_v17 }
 0xaeb   :  { %9539 = vmatpush2.bf16.msra.mxu0 %v15163_v45  ;;  %v15178_v45 = vld [vmem:[#allocation5 + $0x854] ss:$24 sps:$4 sm:$0xff]  }
 0xaec   :  { %9621 = vmatpush2.bf16.msra.mxu1 %v13830_v6  ;;  %9540 = vmatprep.subr.bf16.mxu0 %v15166_v41  ;;  %15810 = vst [vmem:[#allocation81_spill] sm:$0xff] %v15178_v45  ;;  %v13834_v6 = vld [vmem:[#allocation5 + $0x270] ss:$24 sps:$4 sm:$0xff]  }
 0xaed   :  { %9622 = vmatprep.subr.bf16.mxu1 %v13831_v29  ;;  %v15181_v41 = vld [vmem:[#allocation5 + $0x850] ss:$24 sps:$4 sm:$0xff]   ;;  %v13835_v29 = vld [vmem:[#allocation5 + $0x244] ss:$24 sps:$4 sm:$0xff]  }
 0xaee   :  { %15811 = vst [vmem:[#allocation82_spill] sm:$0xff] %v15181_v41 }
 0xaef   :  { %9541 = vmatpush2.bf16.msra.mxu0 %v15169_v30  ;;  %v15184_v30 = vld [vmem:[#allocation5 + $0x824] ss:$24 sps:$4 sm:$0xff]  }
 0xaf0   :  { %9623 = vmatpush2.bf16.msra.mxu1 %v13832_v8  ;;  %9542 = vmatprep.subr.bf16.mxu0 %v15172_v37  ;;  %15812 = vst [vmem:[#allocation84_spill] sm:$0xff] %v15184_v30  ;;  %v13836_v8 = vld [vmem:[#allocation5 + $0x240] ss:$24 sps:$4 sm:$0xff]  }
 0xaf1   :  { %9624 = vmatprep.subr.bf16.mxu1 %v13833_v19  ;;  %v15187_v37 = vld [vmem:[#allocation5 + $0x820] ss:$24 sps:$4 sm:$0xff]   ;;  %v13837_v19 = vld [vmem:[#allocation5 + $0x214] ss:$24 sps:$4 sm:$0xff]  }
 0xaf2   :  { %15813 = vst [vmem:[#allocation86_spill] sm:$0xff] %v15187_v37 }
 0xaf3   :  { %9543 = vmatpush2.bf16.msra.mxu0 %v15175_v17  ;;  %v15190_v17 = vld [vmem:[#allocation5 + $0x7f4] ss:$24 sps:$4 sm:$0xff]  }
 0xaf4   :  { %9625 = vmatpush2.bf16.msra.mxu1 %v13834_v6  ;;  %9544 = vmatprep.subr.bf16.mxu0 %v15178_v45  ;;  %15814 = vst [vmem:[#allocation83_spill] sm:$0xff] %v15190_v17  ;;  %v13838_v6 = vld [vmem:[#allocation5 + $0x210] ss:$24 sps:$4 sm:$0xff]  }
 0xaf5   :  { %9626 = vmatprep.subr.bf16.mxu1 %v13835_v29  ;;  %v15193_v45 = vld [vmem:[#allocation5 + $0x7f0] ss:$24 sps:$4 sm:$0xff]   ;;  %v13839_v29 = vld [vmem:[#allocation5 + $0x1e4] ss:$24 sps:$4 sm:$0xff]  }
 0xaf6   :  { %15815 = vst [vmem:[#allocation85_spill] sm:$0xff] %v15193_v45 }
 0xaf7   :  { %9545 = vmatpush2.bf16.msra.mxu0 %v15181_v41  ;;  %v15196_v41 = vld [vmem:[#allocation5 + $0x7c4] ss:$24 sps:$4 sm:$0xff]  }
 0xaf8   :  { %9627 = vmatpush2.bf16.msra.mxu1 %v13836_v8  ;;  %9546 = vmatprep.subr.bf16.mxu0 %v15184_v30  ;;  %15816 = vst [vmem:[#allocation87_spill] sm:$0xff] %v15196_v41  ;;  %v13840_v8 = vld [vmem:[#allocation5 + $0x1e0] ss:$24 sps:$4 sm:$0xff]  }
 0xaf9   :  { %9628 = vmatprep.subr.bf16.mxu1 %v13837_v19  ;;  %v15199_v30 = vld [vmem:[#allocation5 + $0x7c0] ss:$24 sps:$4 sm:$0xff]   ;;  %v13841_v19 = vld [vmem:[#allocation5 + $0x1b4] ss:$24 sps:$4 sm:$0xff]  }
 0xafa   :  { %15817 = vst [vmem:[#allocation88_spill] sm:$0xff] %v15199_v30 }
 0xafb   :  { %9547 = vmatpush2.bf16.msra.mxu0 %v15187_v37  ;;  %v15202_v37 = vld [vmem:[#allocation5 + $0x794] ss:$24 sps:$4 sm:$0xff]  }
 0xafc   :  { %9629 = vmatpush2.bf16.msra.mxu1 %v13838_v6  ;;  %9548 = vmatprep.subr.bf16.mxu0 %v15190_v17  ;;  %15818 = vst [vmem:[#allocation89_spill] sm:$0xff] %v15202_v37  ;;  %v13842_v6 = vld [vmem:[#allocation5 + $0x1b0] ss:$24 sps:$4 sm:$0xff]  }
 0xafd   :  { %9630 = vmatprep.subr.bf16.mxu1 %v13839_v29  ;;  %v15205_v17 = vld [vmem:[#allocation5 + $0x790] ss:$24 sps:$4 sm:$0xff]   ;;  %v13843_v29 = vld [vmem:[#allocation5 + $0x184] ss:$24 sps:$4 sm:$0xff]  }
 0xafe   :  { %15819 = vst [vmem:[#allocation90_spill] sm:$0xff] %v15205_v17 }
 0xaff   :  { %9549 = vmatpush2.bf16.msra.mxu0 %v15193_v45  ;;  %v13846_v45 = vld [vmem:[#allocation5 + $0x754] ss:$24 sps:$4 sm:$0xff]  }
 0xb00   :  { %9631 = vmatpush2.bf16.msra.mxu1 %v13840_v8  ;;  %9550 = vmatprep.subr.bf16.mxu0 %v15196_v41  ;;  %v15210_v8 = vpack.c.bf16 %v14894_v10, %v14894_v10  ;;  %v13844_v41 = vld [vmem:[#allocation5 + $0x180] ss:$24 sps:$4 sm:$0xff]  }
 0xb01   :  { %9632 = vmatprep.subr.bf16.mxu1 %v13841_v19  ;;  %v13845_v19 = vld [vmem:[#allocation5 + $0x454] ss:$24 sps:$4 sm:$0xff]  }
 0xb03   :  { %9551 = vmatpush2.bf16.msra.mxu0 %v15199_v30 }
 0xb04   :  { %9633 = vmatpush2.bf16.msra.mxu1 %v13842_v6  ;;  %9552 = vmatprep.subr.bf16.mxu0 %v15202_v37  ;;  %v15215_v6 = vpack.c.bf16 %v14901_v61, %v14901_v61  ;;  %v15219_v37 = vpack.c.bf16 %v14905_v24, %v14905_v24  ;;  %v13850_v24 = vld [vmem:[#allocation5 + $0x724] ss:$24 sps:$4 sm:$0xff]  }
 0xb05   :  { %9634 = vmatprep.subr.bf16.mxu1 %v13843_v29 }
 0xb06   :  { %15820 = vst [vmem:[#allocation91_spill] sm:$0xff] %v15215_v6 }
 0xb07   :  { %9553 = vmatpush2.bf16.msra.mxu0 %v15205_v17  ;;  %v13849_v17 = vld [vmem:[#allocation5 + $0x424] ss:$24 sps:$4 sm:$0xff]  }
 0xb08   :  { %9635 = vmatpush2.bf16.msra.mxu1 %v13844_v41  ;;  %9645 = vmatprep.subr.bf16.mxu0 %v13845_v19  ;;  %v13847_v41 = vld [vmem:[#allocation5 + $0x450] ss:$24 sps:$4 sm:$0xff]  }
 0xb09   :  { %9686 = vmatprep.subr.bf16.mxu1 %v13846_v45  ;;  %v13848_v45 = vld [vmem:[#allocation5 + $0x750] ss:$24 sps:$4 sm:$0xff]  }
 0xb0a   :  { %v9310_v29 = vpop.f32.mrf.mxu0  ;;  %9555 = vmatmul.mubr.bf16.vlgmr.msra.gmra.mxu0 %v14953_v21 }
 0xb0b   :  { %v15221_v30 = vpop.f32.mrf.mxu1  ;;  %9637 = vmatmul.mubr.bf16.vlgmr.msra.gmra.mxu1 %v15210_v8  ;;  %v15226_v10 = vadd.f32 %v9310_v29, %v15114_v54  ;;  %9646 = vmatpush1.bf16.msra.mxu0 %v13847_v41  ;;  %v13851_v41 = vld [vmem:[#allocation5 + $0x420] ss:$24 sps:$4 sm:$0xff]  }
 0xb0c   :  { %9687 = vmatpush1.bf16.msra.mxu1 %v13848_v45  ;;  %v9312_v61 = vpop.f32.mrf.mxu0  ;;  %9647 = vmatprep.subr.bf16.mxu0 %v13849_v17  ;;  %v13852_v45 = vld [vmem:[#allocation5 + $0x720] ss:$24 sps:$4 sm:$0xff]  }
 0xb0d   :  { %v15228_v19 = vpop.f32.mrf.mxu1  ;;  %9688 = vmatprep.subr.bf16.mxu1 %v13850_v24  ;;  %v15231_v3 = vadd.f32 %v9312_v61, %v15122_v32  ;;  %9677 = vmatprep.mubr.bf16.mxu0 %v15215_v6  ;;  %v13854_v24 = vld [vmem:[#allocation5 + $0x6f4] ss:$24 sps:$4 sm:$0xff]   ;;  %v13855_v32 = vld [vmem:[#allocation5 + $0x3f0] ss:$24 sps:$4 sm:$0xff]   ;;  %v13860_v29 = vld [vmem:[#allocation5 + $0x6c0] ss:$24 sps:$4 sm:$0xff]  }
 0xb0e   :  { %9718 = vmatprep.mubr.bf16.mxu1 %v15219_v37  ;;  %v9314_v21 = vpop.f32.mrf.mxu0  ;;  %v13856_v61 = vld [vmem:[#allocation5 + $0x6f0] ss:$24 sps:$4 sm:$0xff]  }
 0xb0f   :  { %v9355_v54 = vpop.f32.mrf.mxu1  ;;  %9648 = vmatpush1.bf16.msra.mxu0 %v13851_v41  ;;  %v13858_v21 = vld [vmem:[#allocation5 + $0x6c4] ss:$24 sps:$4 sm:$0xff]   ;;  %v13861_v41 = vld [vmem:[#allocation5 + $0x394] ss:$24 sps:$4 sm:$0xff]  }
 0xb10   :  { %9689 = vmatpush1.bf16.msra.mxu1 %v13852_v45  ;;  %v9315_v1 = vpop.f32.mrf.mxu0  ;;  %9649 = vmatprep.subr.bf16.mxu0 %v13853_v22  ;;  %v13859_v54 = vld [vmem:[#allocation5 + $0x3c0] ss:$24 sps:$4 sm:$0xff]   ;;  %v13863_v45 = vld [vmem:[#allocation5 + $0x390] ss:$24 sps:$4 sm:$0xff]  }
 0xb11   :  { %v9356_v17 = vpop.f32.mrf.mxu1  ;;  %9690 = vmatprep.subr.bf16.mxu1 %v13854_v24  ;;  %v13862_v1 = vld [vmem:[#allocation5 + $0x694] ss:$24 sps:$4 sm:$0xff]   ;;  %v13864_v22 = vld [vmem:[#allocation5 + $0x690] ss:$24 sps:$4 sm:$0xff]   ;;  %v13866_v24 = vld [vmem:[#allocation5 + $0x664] ss:$24 sps:$4 sm:$0xff]  }
 0xb12   :  { %v13865_v17 = vld [vmem:[#allocation5 + $0x364] ss:$24 sps:$4 sm:$0xff]  }
 0xb13   :  { %9650 = vmatpush1.bf16.msra.mxu0 %v13855_v32  ;;  %v13867_v32 = vld [vmem:[#allocation5 + $0x360] ss:$24 sps:$4 sm:$0xff]  }
 0xb14   :  { %9691 = vmatpush1.bf16.msra.mxu1 %v13856_v61  ;;  %9651 = vmatprep.subr.bf16.mxu0 %v13857_v52  ;;  %v13868_v52 = vld [vmem:[#allocation5 + $0x660] ss:$24 sps:$4 sm:$0xff]   ;;  %v13869_v61 = vld [vmem:[#allocation5 + $0x334] ss:$24 sps:$4 sm:$0xff]  }
 0xb15   :  { %9692 = vmatprep.subr.bf16.mxu1 %v13858_v21  ;;  %v13870_v21 = vld [vmem:[#allocation5 + $0x634] ss:$24 sps:$4 sm:$0xff]  }
 0xb17   :  { %9652 = vmatpush1.bf16.msra.mxu0 %v13859_v54  ;;  %v13872_v54 = vld [vmem:[#allocation5 + $0x630] ss:$24 sps:$4 sm:$0xff]  }
 0xb18   :  { %9693 = vmatpush1.bf16.msra.mxu1 %v13860_v29  ;;  %9653 = vmatprep.subr.bf16.mxu0 %v13861_v41  ;;  %v13871_v29 = vld [vmem:[#allocation5 + $0x330] ss:$24 sps:$4 sm:$0xff]   ;;  %v13873_v41 = vld [vmem:[#allocation5 + $0x304] ss:$24 sps:$4 sm:$0xff]  }
 0xb19   :  { %9694 = vmatprep.subr.bf16.mxu1 %v13862_v1  ;;  %v13874_v1 = vld [vmem:[#allocation5 + $0x604] ss:$24 sps:$4 sm:$0xff]  }
 0xb1b   :  { %9654 = vmatpush1.bf16.msra.mxu0 %v13863_v45  ;;  %v13875_v45 = vld [vmem:[#allocation5 + $0x300] ss:$24 sps:$4 sm:$0xff]  }
 0xb1c   :  { %9695 = vmatpush1.bf16.msra.mxu1 %v13864_v22  ;;  %9655 = vmatprep.subr.bf16.mxu0 %v13865_v17  ;;  %v13876_v22 = vld [vmem:[#allocation5 + $0x600] ss:$24 sps:$4 sm:$0xff]   ;;  %v13877_v17 = vld [vmem:[#allocation5 + $0x5d4] ss:$24 sps:$4 sm:$0xff]  }
 0xb1d   :  { %9696 = vmatprep.subr.bf16.mxu1 %v13866_v24  ;;  %v13878_v24 = vld [vmem:[#allocation5 + $0x8d4] ss:$24 sps:$4 sm:$0xff]  }
 0xb1f   :  { %9656 = vmatpush1.bf16.msra.mxu0 %v13867_v32  ;;  %v13879_v32 = vld [vmem:[#allocation5 + $0x5d0] ss:$24 sps:$4 sm:$0xff]  }
 0xb20   :  { %9697 = vmatpush1.bf16.msra.mxu1 %v13868_v52  ;;  %9657 = vmatprep.subr.bf16.mxu0 %v13869_v61  ;;  %v13880_v52 = vld [vmem:[#allocation5 + $0x8d0] ss:$24 sps:$4 sm:$0xff]   ;;  %v13881_v61 = vld [vmem:[#allocation5 + $0x5a4] ss:$24 sps:$4 sm:$0xff]  }
 0xb21   :  { %9698 = vmatprep.subr.bf16.mxu1 %v13870_v21  ;;  %v13882_v21 = vld [vmem:[#allocation5 + $0x8a4] ss:$24 sps:$4 sm:$0xff]  }
 0xb23   :  { %9658 = vmatpush1.bf16.msra.mxu0 %v13871_v29  ;;  %v13883_v29 = vld [vmem:[#allocation5 + $0x5a0] ss:$24 sps:$4 sm:$0xff]  }
 0xb24   :  { %9699 = vmatpush1.bf16.msra.mxu1 %v13872_v54  ;;  %9659 = vmatprep.subr.bf16.mxu0 %v13873_v41  ;;  %v13884_v54 = vld [vmem:[#allocation5 + $0x8a0] ss:$24 sps:$4 sm:$0xff]   ;;  %v13885_v41 = vld [vmem:[#allocation5 + $0x574] ss:$24 sps:$4 sm:$0xff]  }
 0xb25   :  { %9700 = vmatprep.subr.bf16.mxu1 %v13874_v1  ;;  %v13886_v1 = vld [vmem:[#allocation5 + $0x874] ss:$24 sps:$4 sm:$0xff]  }
 0xb27   :  { %9660 = vmatpush1.bf16.msra.mxu0 %v13875_v45  ;;  %v13887_v45 = vld [vmem:[#allocation5 + $0x570] ss:$24 sps:$4 sm:$0xff]  }
 0xb28   :  { %9701 = vmatpush1.bf16.msra.mxu1 %v13876_v22  ;;  %9661 = vmatprep.subr.bf16.mxu0 %v13877_v17  ;;  %v13888_v22 = vld [vmem:[#allocation5 + $0x870] ss:$24 sps:$4 sm:$0xff]   ;;  %v13889_v17 = vld [vmem:[#allocation5 + $0x544] ss:$24 sps:$4 sm:$0xff]  }
 0xb29   :  { %9702 = vmatprep.subr.bf16.mxu1 %v13878_v24  ;;  %v13890_v24 = vld [vmem:[#allocation5 + $0x844] ss:$24 sps:$4 sm:$0xff]  }
 0xb2b   :  { %9662 = vmatpush2.bf16.msra.mxu0 %v13879_v32  ;;  %v13891_v32 = vld [vmem:[#allocation5 + $0x540] ss:$24 sps:$4 sm:$0xff]  }
 0xb2c   :  { %9703 = vmatpush2.bf16.msra.mxu1 %v13880_v52  ;;  %9663 = vmatprep.subr.bf16.mxu0 %v13881_v61  ;;  %v13892_v52 = vld [vmem:[#allocation5 + $0x840] ss:$24 sps:$4 sm:$0xff]   ;;  %v13893_v61 = vld [vmem:[#allocation5 + $0x514] ss:$24 sps:$4 sm:$0xff]  }
 0xb2d   :  { %9704 = vmatprep.subr.bf16.mxu1 %v13882_v21  ;;  %v13894_v21 = vld [vmem:[#allocation5 + $0x814] ss:$24 sps:$4 sm:$0xff]  }
 0xb2f   :  { %9664 = vmatpush2.bf16.msra.mxu0 %v13883_v29  ;;  %v13895_v29 = vld [vmem:[#allocation5 + $0x510] ss:$24 sps:$4 sm:$0xff]  }
 0xb30   :  { %9705 = vmatpush2.bf16.msra.mxu1 %v13884_v54  ;;  %9665 = vmatprep.subr.bf16.mxu0 %v13885_v41  ;;  %v13896_v54 = vld [vmem:[#allocation5 + $0x810] ss:$24 sps:$4 sm:$0xff]   ;;  %v13897_v41 = vld [vmem:[#allocation5 + $0x4e4] ss:$24 sps:$4 sm:$0xff]  }
 0xb31   :  { %9706 = vmatprep.subr.bf16.mxu1 %v13886_v1  ;;  %v13898_v1 = vld [vmem:[#allocation5 + $0x7e4] ss:$24 sps:$4 sm:$0xff]  }
 0xb33   :  { %9666 = vmatpush2.bf16.msra.mxu0 %v13887_v45  ;;  %v13899_v45 = vld [vmem:[#allocation5 + $0x4e0] ss:$24 sps:$4 sm:$0xff]  }
 0xb34   :  { %9707 = vmatpush2.bf16.msra.mxu1 %v13888_v22  ;;  %9667 = vmatprep.subr.bf16.mxu0 %v13889_v17  ;;  %v13900_v22 = vld [vmem:[#allocation5 + $0x7e0] ss:$24 sps:$4 sm:$0xff]   ;;  %v13901_v17 = vld [vmem:[#allocation5 + $0x4b4] ss:$24 sps:$4 sm:$0xff]  }
 0xb35   :  { %9708 = vmatprep.subr.bf16.mxu1 %v13890_v24  ;;  %v13902_v24 = vld [vmem:[#allocation5 + $0x7b4] ss:$24 sps:$4 sm:$0xff]  }
 0xb37   :  { %9668 = vmatpush2.bf16.msra.mxu0 %v13891_v32  ;;  %v13903_v32 = vld [vmem:[#allocation5 + $0x4b0] ss:$24 sps:$4 sm:$0xff]  }
 0xb38   :  { %9709 = vmatpush2.bf16.msra.mxu1 %v13892_v52  ;;  %9669 = vmatprep.subr.bf16.mxu0 %v13893_v61  ;;  %v13904_v52 = vld [vmem:[#allocation5 + $0x7b0] ss:$24 sps:$4 sm:$0xff]   ;;  %v13905_v61 = vld [vmem:[#allocation5 + $0x484] ss:$24 sps:$4 sm:$0xff]  }
 0xb39   :  { %9710 = vmatprep.subr.bf16.mxu1 %v13894_v21  ;;  %v13906_v21 = vld [vmem:[#allocation5 + $0x784] ss:$24 sps:$4 sm:$0xff]  }
 0xb3b   :  { %9670 = vmatpush2.bf16.msra.mxu0 %v13895_v29  ;;  %v15239_v29 = vpack.c.bf16 %v14899_v15, %v14899_v15 }
 0xb3c   :  { %9711 = vmatpush2.bf16.msra.mxu1 %v13896_v54  ;;  %9671 = vmatprep.subr.bf16.mxu0 %v13897_v41  ;;  %v15243_v54 = vpack.c.bf16 %v14903_v43, %v14903_v43  ;;  %v13907_v41 = vld [vmem:[#allocation5 + $0x480] ss:$24 sps:$4 sm:$0xff]  }
 0xb3d   :  { %9712 = vmatprep.subr.bf16.mxu1 %v13898_v1  ;;  %v13908_v1 = vld [vmem:[#allocation5 + $0x780] ss:$24 sps:$4 sm:$0xff]  }
 0xb3e   :  { %15821 = vst [vmem:[#allocation92_spill] sm:$0xff] %v15243_v54  ;;  %v13912_v43 = vld [vmem:[#allocation5 + $0x458] ss:$24 sps:$4 sm:$0xff]  }
 0xb3f   :  { %9672 = vmatpush2.bf16.msra.mxu0 %v13899_v45  ;;  %v13909_v45 = vld [vmem:[#allocation5 + $0x15c] ss:$24 sps:$4 sm:$0xff]  }
 0xb40   :  { %9713 = vmatpush2.bf16.msra.mxu1 %v13900_v22  ;;  %9673 = vmatprep.subr.bf16.mxu0 %v13901_v17  ;;  %v13910_v22 = vld [vmem:[#allocation5 + $0x45c] ss:$24 sps:$4 sm:$0xff]  }
 0xb41   :  { %9714 = vmatprep.subr.bf16.mxu1 %v13902_v24 }
 0xb43   :  { %9674 = vmatpush2.bf16.msra.mxu0 %v13903_v32  ;;  %v13911_v32 = vld [vmem:[#allocation5 + $0x158] ss:$24 sps:$4 sm:$0xff]  }
 0xb44   :  { %9715 = vmatpush2.bf16.msra.mxu1 %v13904_v52  ;;  %9675 = vmatprep.subr.bf16.mxu0 %v13905_v61  ;;  %v15822_v52 = vld [vmem:[#allocation34_spill] sm:$0xff] }
 0xb45   :  { %9716 = vmatprep.subr.bf16.mxu1 %v13906_v21  ;;  %v10163_v61 = vsel %vm10075_vm9, %v15822_v52, -inf  ;;  %v15823_v21 = vld [vmem:[#allocation39_spill] sm:$0xff]  ;;  %v15826_v52 = vld [vmem:[#allocation38_spill] sm:$0xff] }
 0xb47   :  { %9676 = vmatpush2.bf16.msra.mxu0 %v13907_v41  ;;  %v10164_v41 = vsel %vm10075_vm9, %v15823_v21, -inf  ;;  %v10165_v21 = vsel %vm10075_vm9, %v15826_v52, -inf }
 0xb48   :  { %9717 = vmatpush2.bf16.msra.mxu1 %v13908_v1  ;;  %9727 = vmatprep.subr.bf16.mxu0 %v13909_v45  ;;  %v15824_v1 = vld [vmem:[#allocation35_spill] sm:$0xff] }
 0xb49   :  { %9768 = vmatprep.subr.bf16.mxu1 %v13910_v22  ;;  %v10167_v45 = vsel %vm10075_vm9, %v15824_v1, -inf  ;;  %v15827_v1 = vld [vmem:[#allocation44_spill] sm:$0xff] }
 0xb4a   :  { %v9392_v17 = vpop.f32.mrf.mxu0  ;;  %9678 = vmatmul.mubr.bf16.vlgmr.msra.gmra.mxu0 %v15239_v29  ;;  %v10166_v2 = vsel %vm10075_vm9, %v15827_v1, -inf  ;;  %v15828_v1 = vld [vmem:[#allocation29_spill] sm:$0xff] }
 0xb4b   :  { %v9433_v24 = vpop.f32.mrf.mxu1  ;;  %9719 = vmatmul.mubr.bf16.vlgmr.msra.gmra.mxu1 %v15243_v54  ;;  %v9393_v15 = vadd.f32 %v9392_v17, %v15221_v30  ;;  %9728 = vmatpush1.bf16.msra.mxu0 %v13911_v32  ;;  %v13914_v54 = vld [vmem:[#allocation5 + $0x42c] ss:$24 sps:$4 sm:$0xff]   ;;  %v10168_v30 = vmax.f32 %v10163_v61, %v10167_v45  ;;  %v15825_v17 = vld [vmem:[#allocation40_spill] sm:$0xff] }
 0xb4c   :  { %9769 = vmatpush1.bf16.msra.mxu1 %v13912_v43  ;;  %v9394_v22 = vpop.f32.mrf.mxu0  ;;  %9729 = vmatprep.subr.bf16.mxu0 %v13913_v60  ;;  %v10169_v32 = vsel %vm10075_vm9, %v15825_v17, -inf  ;;  %v13916_v17 = vld [vmem:[#allocation5 + $0x428] ss:$24 sps:$4 sm:$0xff]  }
 0xb4d   :  { %v9435_v35 = vpop.f32.mrf.mxu1  ;;  %9770 = vmatprep.subr.bf16.mxu1 %v13914_v54  ;;  %v9395_v43 = vadd.f32 %v9394_v22, %v15228_v19  ;;  %9759 = vmatprep.mubr.bf16.mxu0 %v15110_v40  ;;  %v10170_v36 = vmax.f32 %v10164_v41, %v10169_v32  ;;  %v10172_v54 = vmax.f32 %v10165_v21, %v10166_v2  ;;  %v13922_v41 = vld [vmem:[#allocation5 + $0x3cc] ss:$24 sps:$4 sm:$0xff]   ;;  %v13924_v32 = vld [vmem:[#allocation5 + $0x3c8] ss:$24 sps:$4 sm:$0xff]  }
 0xb4e   :  { %9800 = vmatprep.mubr.bf16.mxu1 %v15215_v6  ;;  %v9396_v31 = vpop.f32.mrf.mxu0  ;;  %v9434_v61 = vadd.f32 %v9433_v24, %v9393_v15  ;;  %v13918_v6 = vld [vmem:[#allocation5 + $0x3fc] ss:$24 sps:$4 sm:$0xff]   ;;  %v13919_v24 = vld [vmem:[#allocation5 + $0xf8] ss:$24 sps:$4 sm:$0xff]   ;;  %v13921_v15 = vld [vmem:[#allocation5 + $0xcc] ss:$24 sps:$4 sm:$0xff]  }
 0xb4f   :  { %v9437_v60 = vpop.f32.mrf.mxu1  ;;  %v9436_v45 = vadd.f32 %v9435_v35, %v9395_v43  ;;  %9730 = vmatpush1.bf16.msra.mxu0 %v13915_v55  ;;  %v10171_v52 = vmax.f32 %v10168_v30, %v10170_v36  ;;  %v15829_v31 = vcombine.low %v15226_v10, %v15231_v3  ;;  %v13920_v55 = vld [vmem:[#allocation5 + $0x3f8] ss:$24 sps:$4 sm:$0xff]   ;;  %v15830_v36 = vld [vmem:[#allocation30_spill] sm:$0xff]  ;;  %v13925_v3 = vld [vmem:[#allocation5 + $0x9c] ss:$24 sps:$4 sm:$0xff]  }
 0xb50   :  { %9771 = vmatpush1.bf16.msra.mxu1 %v13916_v17  ;;  %v9397_v19 = vpop.f32.mrf.mxu0  ;;  %9731 = vmatprep.subr.bf16.mxu0 %v13917_v14  ;;  %v13923_v30 = vld [vmem:[#allocation5 + $0xc8] ss:$24 sps:$4 sm:$0xff]   ;;  %v13928_v43 = vld [vmem:[#allocation5 + $0x398] ss:$24 sps:$4 sm:$0xff]   ;;  %v13929_v21 = vld [vmem:[#allocation5 + $0x6c] ss:$24 sps:$4 sm:$0xff]  }
 0xb51   :  { %v9438_v22 = vpop.f32.mrf.mxu1  ;;  %9772 = vmatprep.subr.bf16.mxu1 %v13918_v6  ;;  %v9570_v18 = vcombine.low %v9434_v61, %v9436_v45  ;;  %v10173_v63 = vmax.f32 %v10171_v52, %v10172_v54  ;;  %v9577_v2 = vrot.slane %v15829_v31, %v15828_v1  ;;  %v13930_v60 = vld [vmem:[#allocation5 + $0x36c] ss:$24 sps:$4 sm:$0xff]   ;;  %v13931_v54 = vld [vmem:[#allocation5 + $0x68] ss:$24 sps:$4 sm:$0xff]   ;;  %v13933_v45 = vld [vmem:[#allocation5 + $0x3c] ss:$24 sps:$4 sm:$0xff]  }
 0xb52   :  { %v13932_v61 = vld [vmem:[#allocation5 + $0x368] ss:$24 sps:$4 sm:$0xff]   ;;  %v13934_v17 = vld [vmem:[#allocation5 + $0x33c] ss:$24 sps:$4 sm:$0xff]   ;;  %v13935_v19 = vld [vmem:[#allocation5 + $0x38] ss:$24 sps:$4 sm:$0xff]  }
 0xb53   :  { %v9584_v35 = vrot.slane %v9570_v18, %v15828_v1  ;;  %9732 = vmatpush1.bf16.msra.mxu0 %v13919_v24  ;;  %10174 = vmax.xlane.f32.xlu0 %v10173_v63  ;;  %v13926_v18 = vld [vmem:[#allocation5 + $0x39c] ss:$24 sps:$4 sm:$0xff]   ;;  %v13927_v63 = vld [vmem:[#allocation5 + $0x98] ss:$24 sps:$4 sm:$0xff]   ;;  %v13937_v52 = vld [vmem:[#allocation5 + $0xc] ss:$24 sps:$4 sm:$0xff]  }
 0xb54   :  { %9773 = vmatpush1.bf16.msra.mxu1 %v13920_v55  ;;  %9733 = vmatprep.subr.bf16.mxu0 %v13921_v15  ;;  %v13936_v22 = vld [vmem:[#allocation5 + $0x338] ss:$24 sps:$4 sm:$0xff]   ;;  %v13938_v31 = vld [vmem:[#allocation5 + $0x30c] ss:$24 sps:$4 sm:$0xff]   ;;  %v13941_v24 = vld [vmem:[#allocation5 + $0x2dc] ss:$24 sps:$4 sm:$0xff]  }
 0xb55   :  { %9774 = vmatprep.subr.bf16.mxu1 %v13922_v41  ;;  %v9585_v14 = vcombine.low %v9577_v2, %v9584_v35  ;;  %v13939_v2 = vld [vmem:[#allocation5 + $0x8] ss:$24 sps:$4 sm:$0xff]   ;;  %v13942_v55 = vld [vmem:[#allocation5 + $0x5dc] ss:$24 sps:$4 sm:$0xff]   ;;  %v13943_v15 = vld [vmem:[#allocation5 + $0x2d8] ss:$24 sps:$4 sm:$0xff]  }
 0xb56   :  { %v13940_v35 = vld [vmem:[#allocation5 + $0x308] ss:$24 sps:$4 sm:$0xff]   ;;  %v13944_v41 = vld [vmem:[#allocation5 + $0x5d8] ss:$24 sps:$4 sm:$0xff]  }
 0xb57   :  { %v15269_v6 = vadd.f32 %v9585_v14, %v15830_v36  ;;  %9734 = vmatpush1.bf16.msra.mxu0 %v13923_v30  ;;  %v13945_v14 = vld [vmem:[#allocation5 + $0x2ac] ss:$24 sps:$4 sm:$0xff]   ;;  %v13946_v30 = vld [vmem:[#allocation5 + $0x2a8] ss:$24 sps:$4 sm:$0xff]  }
 0xb58   :  { %9775 = vmatpush1.bf16.msra.mxu1 %v13924_v32  ;;  %9735 = vmatprep.subr.bf16.mxu0 %v13925_v3  ;;  %v13947_v32 = vld [vmem:[#allocation5 + $0x27c] ss:$24 sps:$4 sm:$0xff]   ;;  %v13948_v3 = vld [vmem:[#allocation5 + $0x278] ss:$24 sps:$4 sm:$0xff]  }
 0xb59   :  { %9776 = vmatprep.subr.bf16.mxu1 %v13926_v18  ;;  %11788 = vst.sshfl [vmem:[%s15561_s7] sm:$0xf pattern:$0x76325410] %v15269_v6  ;;  %v15277_v10 = vcombine.high %v15269_v6, %v15269_v6  ;;  %v13949_v18 = vld [vmem:[#allocation5 + $0x24c] ss:$24 sps:$4 sm:$0xff]  }
 0xb5b   :  { %9736 = vmatpush1.bf16.msra.mxu0 %v13927_v63  ;;  %11789 = vst.sshfl [vmem:[%s15561_s7 + $0x8] sm:$0xf pattern:$0x76325410] %v15277_v10  ;;  %v13950_v63 = vld [vmem:[#allocation5 + $0x248] ss:$24 sps:$4 sm:$0xff]  }
 0xb5c   :  { %9777 = vmatpush1.bf16.msra.mxu1 %v13928_v43  ;;  %9737 = vmatprep.subr.bf16.mxu0 %v13929_v21 }
 0xb5d   :  { %9778 = vmatprep.subr.bf16.mxu1 %v13930_v60 }
 0xb5f   :  { %9738 = vmatpush1.bf16.msra.mxu0 %v13931_v54  ;;  %v13962_v54 = vld [vmem:[#allocation5 + $0x728] ss:$24 sps:$4 sm:$0xff]  }
 0xb60   :  { %9779 = vmatpush1.bf16.msra.mxu1 %v13932_v61  ;;  %9739 = vmatprep.subr.bf16.mxu0 %v13933_v45  ;;  %v13963_v45 = vld [vmem:[#allocation5 + $0x6fc] ss:$24 sps:$4 sm:$0xff]  }
 0xb61   :  { %9780 = vmatprep.subr.bf16.mxu1 %v13934_v17  ;;  %v13964_v17 = vld [vmem:[#allocation5 + $0x6f8] ss:$24 sps:$4 sm:$0xff]  }
 0xb63   :  { %9740 = vmatpush1.bf16.msra.mxu0 %v13935_v19 }
 0xb64   :  { %9781 = vmatpush1.bf16.msra.mxu1 %v13936_v22  ;;  %9741 = vmatprep.subr.bf16.mxu0 %v13937_v52  ;;  %v15833_v52 = vld [vmem:[#allocation41_spill] sm:$0xff] }
 0xb65   :  { %9782 = vmatprep.subr.bf16.mxu1 %v13938_v31  ;;  %v10423_v31 = vsel %vm10075_vm9, %v15833_v52, -inf }
 0xb67   :  { %9742 = vmatpush1.bf16.msra.mxu0 %v13939_v2 }
 0xb68   :  { %9783 = vmatpush1.bf16.msra.mxu1 %v13940_v35  ;;  %9743 = vmatprep.subr.bf16.mxu0 %v13941_v24  ;;  %v13965_v35 = vld [vmem:[#allocation5 + $0x6cc] ss:$24 sps:$4 sm:$0xff]  }
 0xb69   :  { %9784 = vmatprep.subr.bf16.mxu1 %v13942_v55 }
 0xb6b   :  { %9744 = vmatpush2.bf16.msra.mxu0 %v13943_v15 }
 0xb6c   :  { %9785 = vmatpush2.bf16.msra.mxu1 %v13944_v41  ;;  %9745 = vmatprep.subr.bf16.mxu0 %v13945_v14 }
 0xb6d   :  { %9786 = vmatprep.subr.bf16.mxu1 %v14959_v13  ;;  %v13951_v13 = vld [vmem:[#allocation5 + $0x21c] ss:$24 sps:$4 sm:$0xff]  }
 0xb6f   :  { %9746 = vmatpush2.bf16.msra.mxu0 %v13946_v30  ;;  %v13966_v30 = vld [vmem:[#allocation5 + $0x6c8] ss:$24 sps:$4 sm:$0xff]  }
 0xb70   :  { %9787 = vmatpush2.bf16.msra.mxu1 %v14961_v11  ;;  %9747 = vmatprep.subr.bf16.mxu0 %v13947_v32  ;;  %v13952_v11 = vld [vmem:[#allocation5 + $0x218] ss:$24 sps:$4 sm:$0xff]  }
 0xb71   :  { %9788 = vmatprep.subr.bf16.mxu1 %v14963_v9  ;;  %v13953_v9 = vld [vmem:[#allocation5 + $0x1ec] ss:$24 sps:$4 sm:$0xff]  }
 0xb73   :  { %9748 = vmatpush2.bf16.msra.mxu0 %v13948_v3  ;;  %v13967_v3 = vld [vmem:[#allocation5 + $0x69c] ss:$24 sps:$4 sm:$0xff]  }
 0xb74   :  { %9789 = vmatpush2.bf16.msra.mxu1 %v14966_v46  ;;  %9749 = vmatprep.subr.bf16.mxu0 %v13949_v18  ;;  %v13954_v46 = vld [vmem:[#allocation5 + $0x1e8] ss:$24 sps:$4 sm:$0xff]  }
 0xb75   :  { %9790 = vmatprep.subr.bf16.mxu1 %v14969_v39  ;;  %v13955_v39 = vld [vmem:[#allocation5 + $0x1bc] ss:$24 sps:$4 sm:$0xff]  }
 0xb77   :  { %9750 = vmatpush2.bf16.msra.mxu0 %v13950_v63  ;;  %v13969_v63 = vld [vmem:[#allocation5 + $0x66c] ss:$24 sps:$4 sm:$0xff]  }
 0xb78   :  { %9791 = vmatpush2.bf16.msra.mxu1 %v14972_v33  ;;  %9751 = vmatprep.subr.bf16.mxu0 %v13951_v13  ;;  %v13956_v33 = vld [vmem:[#allocation5 + $0x1b8] ss:$24 sps:$4 sm:$0xff]   ;;  %v13970_v13 = vld [vmem:[#allocation5 + $0x668] ss:$24 sps:$4 sm:$0xff]  }
 0xb79   :  { %9792 = vmatprep.subr.bf16.mxu1 %v14975_v28  ;;  %v13957_v28 = vld [vmem:[#allocation5 + $0x18c] ss:$24 sps:$4 sm:$0xff]  }
 0xb7b   :  { %9752 = vmatpush2.bf16.msra.mxu0 %v13952_v11  ;;  %v13972_v11 = vld [vmem:[#allocation5 + $0x638] ss:$24 sps:$4 sm:$0xff]  }
 0xb7c   :  { %9793 = vmatpush2.bf16.msra.mxu1 %v14978_v16  ;;  %9753 = vmatprep.subr.bf16.mxu0 %v13953_v9  ;;  %v13958_v16 = vld [vmem:[#allocation5 + $0x188] ss:$24 sps:$4 sm:$0xff]  }
 0xb7d   :  { %9794 = vmatprep.subr.bf16.mxu1 %v14981_v53  ;;  %v13959_v53 = vld [vmem:[#allocation5 + $0x75c] ss:$24 sps:$4 sm:$0xff]   ;;  %v15837_v9 = vld [vmem:[#allocation47_spill] sm:$0xff] }
 0xb7f   :  { %9754 = vmatpush2.bf16.msra.mxu0 %v13954_v46  ;;  %v15838_v46 = vld [vmem:[#allocation48_spill] sm:$0xff] }
 0xb80   :  { %9795 = vmatpush2.bf16.msra.mxu1 %v14984_v50  ;;  %9755 = vmatprep.subr.bf16.mxu0 %v13955_v39  ;;  %v15839_v39 = vld [vmem:[#allocation49_spill] sm:$0xff] }
 0xb81   :  { %9796 = vmatprep.subr.bf16.mxu1 %v14987_v12 }
 0xb83   :  { %9756 = vmatpush2.bf16.msra.mxu0 %v13956_v33  ;;  %v15840_v33 = vld [vmem:[#allocation50_spill] sm:$0xff] }
 0xb84   :  { %9797 = vmatpush2.bf16.msra.mxu1 %v14990_v48  ;;  %9757 = vmatprep.subr.bf16.mxu0 %v13957_v28  ;;  %v13960_v48 = vld [vmem:[#allocation5 + $0x758] ss:$24 sps:$4 sm:$0xff]   ;;  %v15841_v28 = vld [vmem:[#allocation51_spill] sm:$0xff] }
 0xb85   :  { %9798 = vmatprep.subr.bf16.mxu1 %v14993_v26 }
 0xb87   :  { %9758 = vmatpush2.bf16.msra.mxu0 %v13958_v16  ;;  %v15842_v16 = vld [vmem:[#allocation52_spill] sm:$0xff] }
 0xb88   :  { %9799 = vmatpush2.bf16.msra.mxu1 %v14996_v25  ;;  %9809 = vmatprep.subr.bf16.mxu0 %v13959_v53  ;;  %v13961_v25 = vld [vmem:[#allocation5 + $0x72c] ss:$24 sps:$4 sm:$0xff]   ;;  %v13984_v53 = vld [vmem:[#allocation5 + $0x818] ss:$24 sps:$4 sm:$0xff]  }
 0xb89   :  { %9850 = vmatprep.subr.bf16.mxu1 %v14999_v51 }
 0xb8a   :  { %v9474_v50 = vpop.f32.mrf.mxu0  ;;  %9760 = vmatmul.mubr.bf16.vlgmr.msra.gmra.mxu0 %v15210_v8 }
 0xb8b   :  { %v9515_v43 = vpop.f32.mrf.mxu1  ;;  %9801 = vmatmul.mubr.bf16.vlgmr.msra.gmra.mxu1 %v15239_v29  ;;  %9810 = vmatpush1.bf16.msra.mxu0 %v13960_v48  ;;  %v15844_v48 = vld [vmem:[#allocation46_spill] sm:$0xff] }
 0xb8c   :  { %v15300_v12 = vadd.f32 %v9515_v43, %v9474_v50  ;;  %9851 = vmatpush1.bf16.msra.mxu1 %v15003_v27  ;;  %v15303_v26 = vpop.f32.mrf.mxu0  ;;  %9811 = vmatprep.subr.bf16.mxu0 %v13961_v25  ;;  %v15843_v50 = vld [vmem:[#allocation53_spill] sm:$0xff]  ;;  %v13985_v43 = vld [vmem:[#allocation5 + $0x7ec] ss:$24 sps:$4 sm:$0xff]   ;;  %v13986_v25 = vld [vmem:[#allocation5 + $0x7e8] ss:$24 sps:$4 sm:$0xff]  }
 0xb8d   :  { %v15305_v21 = vpop.f32.mrf.mxu1  ;;  %9852 = vmatprep.subr.bf16.mxu1 %v15006_v57  ;;  %9841 = vmatprep.mubr.bf16.mxu0 %v15219_v37  ;;  %v15831_v57 = vld [vmem:[#allocation36_spill] sm:$0xff] }
 0xb8e   :  { %9882 = vmatprep.mubr.bf16.mxu1 %v15110_v40  ;;  %v9478_v51 = vpop.f32.mrf.mxu0  ;;  %v10421_v19 = vsel %vm10075_vm9, %v15831_v57, -inf  ;;  %v15832_v40 = vld [vmem:[#allocation42_spill] sm:$0xff] }
 0xb8f   :  { %v9519_v60 = vpop.f32.mrf.mxu1  ;;  %9812 = vmatpush1.bf16.msra.mxu0 %v13962_v54  ;;  %v10422_v22 = vsel %vm10075_vm9, %v15832_v40, -inf  ;;  %v15845_v51 = vld [vmem:[#allocation54_spill] sm:$0xff]  ;;  %v15846_v54 = vld [vmem:[#allocation55_spill] sm:$0xff] }
 0xb90   :  { %9853 = vmatpush1.bf16.msra.mxu1 %v15011_v59  ;;  %v9479_v61 = vpop.f32.mrf.mxu0  ;;  %9813 = vmatprep.subr.bf16.mxu0 %v13963_v45  ;;  %v15834_v59 = vld [vmem:[#allocation45_spill] sm:$0xff]  ;;  %v13989_v45 = vld [vmem:[#allocation5 + $0x78c] ss:$24 sps:$4 sm:$0xff]   ;;  %v13990_v57 = vld [vmem:[#allocation5 + $0x788] ss:$24 sps:$4 sm:$0xff]  }
 0xb91   :  { %v9520_v27 = vpop.f32.mrf.mxu1  ;;  %9854 = vmatprep.subr.bf16.mxu1 %v15014_v58  ;;  %v10424_v2 = vsel %vm10075_vm9, %v15834_v59, -inf  ;;  %v15835_v58 = vld [vmem:[#allocation37_spill] sm:$0xff]  ;;  %v15851_v59 = vld [vmem:[#allocation92_spill] sm:$0xff] }
 0xb92   :  { %v10425_v24 = vsel %vm10075_vm9, %v15835_v58, -inf  ;;  %v10430_v14 = vmax.f32 %v10423_v31, %v10424_v2  ;;  %v13987_v60 = vld [vmem:[#allocation5 + $0x7bc] ss:$24 sps:$4 sm:$0xff]   ;;  %v13988_v61 = vld [vmem:[#allocation5 + $0x7b8] ss:$24 sps:$4 sm:$0xff]   ;;  %v9518_v2 = vadd.f32 %v15305_v21, %v15303_v26 }
 0xb93   :  { %9814 = vmatpush1.bf16.msra.mxu0 %v13964_v17  ;;  %v10426_v15 = vmax.f32 %v10421_v19, %v10425_v24  ;;  %v15847_v27 = vld [vmem:[#allocation56_spill] sm:$0xff]  ;;  %v15848_v17 = vld [vmem:[#allocation57_spill] sm:$0xff]  ;;  %v15849_v19 = vld [vmem:[#allocation58_spill] sm:$0xff] }
 0xb94   :  { %9855 = vmatpush1.bf16.msra.mxu1 %v15019_v42  ;;  %9815 = vmatprep.subr.bf16.mxu0 %v13965_v35  ;;  %v15836_v42 = vld [vmem:[#allocation43_spill] sm:$0xff]  ;;  %v13991_v40 = vld [vmem:[#allocation5 + $0x464] ss:$24 sps:$4 sm:$0xff]   ;;  %v13992_v35 = vld [vmem:[#allocation5 + $0x460] ss:$24 sps:$4 sm:$0xff]  }
 0xb95   :  { %9856 = vmatprep.subr.bf16.mxu1 %v15022_v62  ;;  %v10427_v55 = vsel %vm10075_vm9, %v15836_v42, -inf  ;;  %v13968_v62 = vld [vmem:[#allocation5 + $0x698] ss:$24 sps:$4 sm:$0xff]  }
 0xb96   :  { %v10428_v41 = vmax.f32 %v10422_v22, %v10427_v55  ;;  %v15850_v22 = vld [vmem:[#allocation59_spill] sm:$0xff]  ;;  %v15852_v58 = vld [vmem:[#allocation60_spill] sm:$0xff] }
 0xb97   :  { %9816 = vmatpush1.bf16.msra.mxu0 %v13966_v30  ;;  %v13993_v55 = vld [vmem:[#allocation5 + $0x434] ss:$24 sps:$4 sm:$0xff]  }
 0xb98   :  { %9857 = vmatpush1.bf16.msra.mxu1 %v15025_v4  ;;  %v10429_v32 = vmax.f32 %v10426_v15, %v10428_v41  ;;  %9817 = vmatprep.subr.bf16.mxu0 %v13967_v3  ;;  %v13971_v4 = vld [vmem:[#allocation5 + $0x63c] ss:$24 sps:$4 sm:$0xff]   ;;  %v15854_v30 = vld [vmem:[#allocation91_spill] sm:$0xff]  ;;  %v15855_v3 = vld [vmem:[#allocation62_spill] sm:$0xff] }
 0xb99   :  { %9858 = vmatprep.subr.bf16.mxu1 %v15028_v5  ;;  %v13973_v5 = vld [vmem:[#allocation5 + $0x60c] ss:$24 sps:$4 sm:$0xff]   ;;  %v15853_v15 = vld [vmem:[#allocation61_spill] sm:$0xff] }
 0xb9a   :  { %v10431_v18 = vmax.f32 %v10429_v32, %v10430_v14  ;;  %v13994_v32 = vld [vmem:[#allocation5 + $0x430] ss:$24 sps:$4 sm:$0xff]  }
 0xb9b   :  { %9818 = vmatpush1.bf16.msra.mxu0 %v13968_v62 }
 0xb9c   :  { %9859 = vmatpush1.bf16.msra.mxu1 %v15031_v44  ;;  %9819 = vmatprep.subr.bf16.mxu0 %v13969_v63  ;;  %v13974_v44 = vld [vmem:[#allocation5 + $0x608] ss:$24 sps:$4 sm:$0xff]   ;;  %v13995_v63 = vld [vmem:[#allocation5 + $0x404] ss:$24 sps:$4 sm:$0xff]  }
 0xb9d   :  { %9860 = vmatprep.subr.bf16.mxu1 %v15034_v56  ;;  %10432 = vmax.xlane.f32.xlu0 %v10431_v18  ;;  %v13975_v56 = vld [vmem:[#allocation5 + $0x8dc] ss:$24 sps:$4 sm:$0xff]  }
 0xb9f   :  { %9820 = vmatpush1.bf16.msra.mxu0 %v13970_v13  ;;  %v15856_v13 = vld [vmem:[#allocation63_spill] sm:$0xff] }
 0xba0   :  { %9861 = vmatpush1.bf16.msra.mxu1 %v15037_v34  ;;  %9821 = vmatprep.subr.bf16.mxu0 %v13971_v4  ;;  %v13976_v34 = vld [vmem:[#allocation5 + $0x8d8] ss:$24 sps:$4 sm:$0xff]   ;;  %v10017_v4 = vrot.slane %v15269_v6, %v15828_v1 }
 0xba1   :  { %9862 = vmatprep.subr.bf16.mxu1 %v15040_v20  ;;  %v13977_v20 = vld [vmem:[#allocation5 + $0x8ac] ss:$24 sps:$4 sm:$0xff]  }
 0xba3   :  { %9822 = vmatpush1.bf16.msra.mxu0 %v13972_v11  ;;  %v15857_v11 = vld [vmem:[#allocation31_spill] sm:$0xff] }
 0xba4   :  { %9863 = vmatpush1.bf16.msra.mxu1 %v15043_v7  ;;  %9823 = vmatprep.subr.bf16.mxu0 %v13973_v5  ;;  %v13978_v7 = vld [vmem:[#allocation5 + $0x8a8] ss:$24 sps:$4 sm:$0xff]  }
 0xba5   :  { %9864 = vmatprep.subr.bf16.mxu1 %v15046_v47  ;;  %v13979_v47 = vld [vmem:[#allocation5 + $0x87c] ss:$24 sps:$4 sm:$0xff]  }
 0xba7   :  { %9824 = vmatpush1.bf16.msra.mxu0 %v13974_v44  ;;  %v13996_v44 = vld [vmem:[#allocation5 + $0x400] ss:$24 sps:$4 sm:$0xff]  }
 0xba8   :  { %9865 = vmatpush1.bf16.msra.mxu1 %v15049_v38  ;;  %9825 = vmatprep.subr.bf16.mxu0 %v13975_v56  ;;  %v13980_v38 = vld [vmem:[#allocation5 + $0x878] ss:$24 sps:$4 sm:$0xff]  }
 0xba9   :  { %9866 = vmatprep.subr.bf16.mxu1 %v15052_v0  ;;  %v13981_v0 = vld [vmem:[#allocation5 + $0x84c] ss:$24 sps:$4 sm:$0xff]   ;;  %v15858_v56 = vld [vmem:[#allocation64_spill] sm:$0xff] }
 0xbab   :  { %9826 = vmatpush2.bf16.msra.mxu0 %v13976_v34  ;;  %v14156_v34 = vmov 269488144  }
 0xbac   :  { %9867 = vmatpush2.bf16.msra.mxu1 %v15055_v49  ;;  %9827 = vmatprep.subr.bf16.mxu0 %v13977_v20  ;;  %v13982_v49 = vld [vmem:[#allocation5 + $0x848] ss:$24 sps:$4 sm:$0xff]   ;;  %v10091_v20 = vunpack.c.l.s4 %v14156_v34 }
 0xbad   :  { %9868 = vmatprep.subr.bf16.mxu1 %v15058_v23  ;;  %v13983_v23 = vld [vmem:[#allocation5 + $0x81c] ss:$24 sps:$4 sm:$0xff]  }
 0xbaf   :  { %9828 = vmatpush2.bf16.msra.mxu0 %v13978_v7  ;;  %v13997_v7 = vld [vmem:[#allocation5 + $0x3d4] ss:$24 sps:$4 sm:$0xff]  }
 0xbb0   :  { %9869 = vmatpush2.bf16.msra.mxu1 %v15837_v9  ;;  %9829 = vmatprep.subr.bf16.mxu0 %v13979_v47  ;;  %v15859_v9 = vld [vmem:[#allocation65_spill] sm:$0xff]  ;;  %v10069_v47 = vcombine.high %v10017_v4, %v10017_v4 }
 0xbb1   :  { %9870 = vmatprep.subr.bf16.mxu1 %v15838_v46 }
 0xbb3   :  { %9830 = vmatpush2.bf16.msra.mxu0 %v13980_v38  ;;  %v13998_v38 = vld [vmem:[#allocation5 + $0x3d0] ss:$24 sps:$4 sm:$0xff]  }
 0xbb4   :  { %9871 = vmatpush2.bf16.msra.mxu1 %v15839_v39  ;;  %9831 = vmatprep.subr.bf16.mxu0 %v13981_v0  ;;  %v15860_v39 = vld [vmem:[#allocation66_spill] sm:$0xff] }
 0xbb5   :  { %9872 = vmatprep.subr.bf16.mxu1 %v15840_v33 }
 0xbb7   :  { %9832 = vmatpush2.bf16.msra.mxu0 %v13982_v49  ;;  %v10092_v49 = vunpack.c.0.s8 %v10091_v20  ;;  %v14012_v20 = vld [vmem:[#allocation5 + $0x580] ss:$24 sps:$4 sm:$0xff]  }
 0xbb8   :  { %9873 = vmatpush2.bf16.msra.mxu1 %v15841_v28  ;;  %9833 = vmatprep.subr.bf16.mxu0 %v13983_v23  ;;  %v13999_v28 = vld [vmem:[#allocation5 + $0x3a4] ss:$24 sps:$4 sm:$0xff]   ;;  %v15861_v23 = vld [vmem:[#allocation67_spill] sm:$0xff] }
 0xbb9   :  { %9874 = vmatprep.subr.bf16.mxu1 %v15842_v16  ;;  %v10076_v16 = vsel %vm10075_vm9, %v10017_v4, -inf  ;;  %v14010_v4 = vld [vmem:[#allocation5 + $0x5b0] ss:$24 sps:$4 sm:$0xff]  }
 0xbbb   :  { %9834 = vmatpush2.bf16.msra.mxu0 %v13984_v53  ;;  %v10077_v53 = vsel %vm10075_vm9, %v10069_v47, -inf  ;;  %v14013_v47 = vld [vmem:[#allocation5 + $0x554] ss:$24 sps:$4 sm:$0xff]  }
 0xbbc   :  { %9875 = vmatpush2.bf16.msra.mxu1 %v15843_v50  ;;  %9835 = vmatprep.subr.bf16.mxu0 %v13985_v43 }
 0xbbd   :  { %9876 = vmatprep.subr.bf16.mxu1 %v15844_v48 }
 0xbbf   :  { %9836 = vmatpush2.bf16.msra.mxu0 %v13986_v25 }
 0xbc0   :  { %9877 = vmatpush2.bf16.msra.mxu1 %v15845_v51  ;;  %9837 = vmatprep.subr.bf16.mxu0 %v13987_v60  ;;  %v14000_v51 = vld [vmem:[#allocation5 + $0x3a0] ss:$24 sps:$4 sm:$0xff]   ;;  %v15862_v60 = vld [vmem:[#allocation68_spill] sm:$0xff] }
 0xbc1   :  { %9878 = vmatprep.subr.bf16.mxu1 %v15846_v54 }
 0xbc3   :  { %9838 = vmatpush2.bf16.msra.mxu0 %v13988_v61  ;;  %v15863_v61 = vld [vmem:[#allocation28_spill] sm:$0xff] }
 0xbc4   :  { %9879 = vmatpush2.bf16.msra.mxu1 %v15847_v27  ;;  %9839 = vmatprep.subr.bf16.mxu0 %v13989_v45  ;;  %v15393_v27 = vsub.s32 %v10092_v49, %v15863_v61  ;;  %v14001_v45 = vld [vmem:[#allocation5 + $0x374] ss:$24 sps:$4 sm:$0xff]   ;;  %v14014_v49 = vld [vmem:[#allocation5 + $0x550] ss:$24 sps:$4 sm:$0xff]   ;;  %v15879_v61 = vld [vmem:[#allocation86_spill] sm:$0xff] }
 0xbc5   :  { %9880 = vmatprep.subr.bf16.mxu1 %v15848_v17  ;;  %v15864_v17 = vld [vmem:[#allocation69_spill] sm:$0xff] }
 0xbc7   :  { %9840 = vmatpush2.bf16.msra.mxu0 %v13990_v57 }
 0xbc8   :  { %9881 = vmatpush2.bf16.msra.mxu1 %v15849_v19  ;;  %9891 = vmatprep.subr.bf16.mxu0 %v13991_v40 }
 0xbc9   :  { %9932 = vmatprep.subr.bf16.mxu1 %v15850_v22 }
 0xbca   :  { %v9556_v52 = vpop.f32.mrf.mxu0  ;;  %9842 = vmatmul.mubr.bf16.vlgmr.msra.gmra.mxu0 %v15851_v59 }
 0xbcb   :  { %v15352_v31 = vpop.f32.mrf.mxu1  ;;  %9883 = vmatmul.mubr.bf16.vlgmr.msra.gmra.mxu1 %v15210_v8  ;;  %9892 = vmatpush1.bf16.msra.mxu0 %v13992_v35  ;;  %v9557_v41 = vadd.f32 %v9556_v52, %v15300_v12  ;;  %v14002_v52 = vld [vmem:[#allocation5 + $0x370] ss:$24 sps:$4 sm:$0xff]  }
 0xbcc   :  { %9933 = vmatpush1.bf16.msra.mxu1 %v15852_v58  ;;  %v9558_v24 = vpop.f32.mrf.mxu0  ;;  %9893 = vmatprep.subr.bf16.mxu0 %v13993_v55  ;;  %v14003_v58 = vld [vmem:[#allocation5 + $0x344] ss:$24 sps:$4 sm:$0xff]  }
 0xbcd   :  { %v15359_v42 = vpop.f32.mrf.mxu1  ;;  %9934 = vmatprep.subr.bf16.mxu1 %v15853_v15  ;;  %v9559_v14 = vadd.f32 %v9558_v24, %v9518_v2  ;;  %9923 = vmatprep.mubr.bf16.mxu0 %v15854_v30  ;;  %v15865_v2 = vld [vmem:[#allocation70_spill] sm:$0xff]  ;;  %v15866_v24 = vld [vmem:[#allocation71_spill] sm:$0xff] }
 0xbce   :  { %9964 = vmatprep.mubr.bf16.mxu1 %v15219_v37  ;;  %v9560_v8 = vpop.f32.mrf.mxu0  ;;  %v10024_v37 = vrot.slane %v15277_v10, %v15828_v1 }
 0xbcf   :  { %v9642_v26 = vpop.f32.mrf.mxu1  ;;  %v9586_v21 = vcombine.low %v9557_v41, %v9559_v14  ;;  %9894 = vmatpush1.bf16.msra.mxu0 %v13994_v32  ;;  %v14004_v41 = vld [vmem:[#allocation5 + $0x340] ss:$24 sps:$4 sm:$0xff]   ;;  %v15867_v14 = vld [vmem:[#allocation72_spill] sm:$0xff] }
 0xbd0   :  { %9935 = vmatpush1.bf16.msra.mxu1 %v15855_v3  ;;  %v9561_v18 = vpop.f32.mrf.mxu0  ;;  %9895 = vmatprep.subr.bf16.mxu0 %v13995_v63  ;;  %v10070_v46 = vcombine.high %v10024_v37, %v10024_v37  ;;  %v10078_v54 = vsel %vm10075_vm9, %v10024_v37, -inf  ;;  %v14005_v26 = vld [vmem:[#allocation5 + $0x314] ss:$24 sps:$4 sm:$0xff]   ;;  %v14006_v32 = vld [vmem:[#allocation5 + $0x310] ss:$24 sps:$4 sm:$0xff]   ;;  %v15873_v37 = vld [vmem:[#allocation78_spill] sm:$0xff] }
 0xbd1   :  { %v9643_v62 = vpop.f32.mrf.mxu1  ;;  %9936 = vmatprep.subr.bf16.mxu1 %v15856_v13  ;;  %v9593_v12 = vrot.slane %v9586_v21, %v15828_v1  ;;  %v15868_v21 = vld [vmem:[#allocation73_spill] sm:$0xff]  ;;  %v15870_v18 = vld [vmem:[#allocation75_spill] sm:$0xff]  ;;  %v15871_v63 = vld [vmem:[#allocation76_spill] sm:$0xff] }
 0xbd2   :  { %v10079_v50 = vsel %vm10075_vm9, %v10070_v46, -inf  ;;  %v14007_v3 = vld [vmem:[#allocation5 + $0x5e4] ss:$24 sps:$4 sm:$0xff]   ;;  %v14008_v62 = vld [vmem:[#allocation5 + $0x5e0] ss:$24 sps:$4 sm:$0xff]  }
 0xbd3   :  { %v15373_v5 = vadd.f32 %v9593_v12, %v15857_v11  ;;  %9896 = vmatpush1.bf16.msra.mxu0 %v13996_v44  ;;  %v10085_v19 = vmax.f32 %v10078_v54, %v10079_v50  ;;  %v14009_v13 = vld [vmem:[#allocation5 + $0x5b4] ss:$24 sps:$4 sm:$0xff]   ;;  %v15872_v12 = vld [vmem:[#allocation77_spill] sm:$0xff] }
 0xbd4   :  { %9937 = vmatpush1.bf16.msra.mxu1 %v15858_v56  ;;  %9897 = vmatprep.subr.bf16.mxu0 %v13997_v7  ;;  %v15874_v44 = vld [vmem:[#allocation79_spill] sm:$0xff]  ;;  %v15875_v7 = vld [vmem:[#allocation80_spill] sm:$0xff]  ;;  %v15876_v46 = vld [vmem:[#allocation81_spill] sm:$0xff] }
 0xbd5   :  { %9938 = vmatprep.subr.bf16.mxu1 %v15859_v9  ;;  %11790 = vst.sshfl [vmem:[%s15561_s7 + $0x10] sm:$0xf pattern:$0x76325410] %v15373_v5  ;;  %v10031_v10 = vrot.slane %v15373_v5, %v15828_v1  ;;  %v14015_v50 = vld [vmem:[#allocation5 + $0x524] ss:$24 sps:$4 sm:$0xff]  }
 0xbd6   :  { %v14016_v54 = vld [vmem:[#allocation5 + $0x520] ss:$24 sps:$4 sm:$0xff]  }
 0xbd7   :  { %9898 = vmatpush1.bf16.msra.mxu0 %v13998_v38  ;;  %v10071_v0 = vcombine.high %v10031_v10, %v10031_v10  ;;  %v10080_v33 = vsel %vm10075_vm9, %v10031_v10, -inf }
 0xbd8   :  { %9939 = vmatpush1.bf16.msra.mxu1 %v15860_v39  ;;  %9899 = vmatprep.subr.bf16.mxu0 %v13999_v28  ;;  %v10081_v48 = vmax.f32 %v10076_v16, %v10080_v33  ;;  %v15877_v28 = vld [vmem:[#allocation82_spill] sm:$0xff] }
 0xbd9   :  { %9940 = vmatprep.subr.bf16.mxu1 %v15861_v23  ;;  %v10082_v43 = vsel %vm10075_vm9, %v10071_v0, -inf }
 0xbda   :  { %v10083_v25 = vmax.f32 %v10077_v53, %v10082_v43  ;;  %v15878_v43 = vld [vmem:[#allocation84_spill] sm:$0xff] }
 0xbdb   :  { %9900 = vmatpush1.bf16.msra.mxu0 %v14000_v51 }
 0xbdc   :  { %9941 = vmatpush1.bf16.msra.mxu1 %v15862_v60  ;;  %9901 = vmatprep.subr.bf16.mxu0 %v14001_v45  ;;  %v10084_v57 = vmax.f32 %v10081_v48, %v10083_v25  ;;  %v10175_v22 = vpop.xlane.xlu0 %10174 }
 0xbdd   :  { %9942 = vmatprep.subr.bf16.mxu1 %v15864_v17  ;;  %v10183_v35 = vrot.slane %v10175_v22, %v15393_v27  ;;  %v14017_v17 = vld [vmem:[#allocation5 + $0x4f4] ss:$24 sps:$4 sm:$0xff]  }
 0xbde   :  { %v10086_v40 = vmax.f32 %v10084_v57, %v10085_v19  ;;  %v15880_v57 = vld [vmem:[#allocation83_spill] sm:$0xff] }
 0xbdf   :  { %9902 = vmatpush1.bf16.msra.mxu0 %v14002_v52  ;;  %v15400_v55 = vsub.f32 %v15830_v36, %v10183_v35  ;;  %v15403_v15 = vsub.f32 %v15857_v11, %v10183_v35  ;;  %v15869_v36 = vld [vmem:[#allocation74_spill] sm:$0xff]  ;;  %v14018_v52 = vld [vmem:[#allocation5 + $0x4f0] ss:$24 sps:$4 sm:$0xff]  }
 0xbe0   :  { %9943 = vmatpush1.bf16.msra.mxu1 %v15865_v2  ;;  %10087 = vmax.xlane.f32.xlu1 %v10086_v40  ;;  %v14011_v11 = vld [vmem:[#allocation5 + $0x584] ss:$24 sps:$4 sm:$0xff]  }
 0xbe1   :  { %9903 = vmatprep.subr.bf16.mxu0 %v14003_v58  ;;  %9944 = vmatprep.subr.bf16.mxu1 %v15866_v24  ;;  %v10187_v30 = vmul.f32 1.442695, %v15400_v55  ;;  %v10189_v8 = vmul.f32 1.442695, %v15403_v15  ;;  %v15881_v2 = vld [vmem:[#allocation85_spill] sm:$0xff]  ;;  %v15882_v58 = vld [vmem:[#allocation87_spill] sm:$0xff] }
 0xbe2   :  { %v14019_v35 = vld [vmem:[#allocation5 + $0x4c4] ss:$24 sps:$4 sm:$0xff]  }
 0xbe3   :  { %9904 = vmatpush1.bf16.msra.mxu0 %v14004_v41  ;;  %13781 = vpow2.f32 %v10187_v30  ;;  %v14020_v41 = vld [vmem:[#allocation5 + $0x4c0] ss:$24 sps:$4 sm:$0xff]   ;;  %v14021_v30 = vld [vmem:[#allocation5 + $0x494] ss:$24 sps:$4 sm:$0xff]  }
 0xbe4   :  { %9945 = vmatpush1.bf16.msra.mxu1 %v15867_v14  ;;  %9905 = vmatprep.subr.bf16.mxu0 %v14005_v26  ;;  %13783 = vpow2.f32 %v10189_v8  ;;  %v15883_v14 = vld [vmem:[#allocation88_spill] sm:$0xff]  ;;  %v15884_v8 = vld [vmem:[#allocation89_spill] sm:$0xff] }
 0xbe5   :  { %9946 = vmatprep.subr.bf16.mxu1 %v15868_v21  ;;  %v14022_v26 = vld [vmem:[#allocation5 + $0x490] ss:$24 sps:$4 sm:$0xff]   ;;  %v15885_v21 = vld [vmem:[#allocation90_spill] sm:$0xff] }
 0xbe7   :  { %9906 = vmatpush1.bf16.msra.mxu0 %v14006_v32 }
 0xbe8   :  { %9947 = vmatpush1.bf16.msra.mxu1 %v15869_v36  ;;  %9907 = vmatprep.subr.bf16.mxu0 %v14007_v3 }
 0xbe9   :  { %9948 = vmatprep.subr.bf16.mxu1 %v15870_v18 }
 0xbeb   :  { %9908 = vmatpush2.bf16.msra.mxu0 %v14008_v62 }
 0xbec   :  { %9949 = vmatpush2.bf16.msra.mxu1 %v15871_v63  ;;  %9909 = vmatprep.subr.bf16.mxu0 %v14009_v13 }
 0xbed   :  { %9950 = vmatprep.subr.bf16.mxu1 %v15872_v12 }
 0xbef   :  { %9910 = vmatpush2.bf16.msra.mxu0 %v14010_v4 }
 0xbf0   :  { %9951 = vmatpush2.bf16.msra.mxu1 %v15873_v37  ;;  %9911 = vmatprep.subr.bf16.mxu0 %v14011_v11  ;;  %v13782_v56 = vpop.eup %13781 }
 0xbf1   :  { %9952 = vmatprep.subr.bf16.mxu1 %v15874_v44  ;;  %v13784_v34 = vpop.eup %13783  ;;  %v10193_v9 = vcombine.high %v13782_v56, %v13782_v56  ;;  %v10200_v10 = vrot.slane %v13782_v56, %v15828_v1 }
 0xbf2   :  { %v10216_v0 = vrot.slane %v13784_v34, %v15828_v1 }
 0xbf3   :  { %9912 = vmatpush2.bf16.msra.mxu0 %v14012_v20  ;;  %v10207_v38 = vrot.slane %v10193_v9, %v15828_v1  ;;  %v10208_v39 = vcombine.high %v10200_v10, %v10200_v10  ;;  %v10224_v33 = vsel %vm10075_vm9, %v10200_v10, 0.0 }
 0xbf4   :  { %9953 = vmatpush2.bf16.msra.mxu1 %v15875_v7  ;;  %9913 = vmatprep.subr.bf16.mxu0 %v14013_v47  ;;  %v10217_v25 = vcombine.high %v10216_v0, %v10216_v0  ;;  %v10231_v45 = vsel %vm10075_vm9, %v10216_v0, 0.0 }
 0xbf5   :  { %9954 = vmatprep.subr.bf16.mxu1 %v15876_v46  ;;  %v10209_v23 = vcombine.high %v10207_v38, %v10207_v38  ;;  %v10225_v16 = vsel %vm10075_vm9, %v10208_v39, 0.0  ;;  %v10227_v53 = vsel %vm10075_vm9, %v10207_v38, 0.0 }
 0xbf6   :  { %v10226_v48 = vadd.f32 %v10225_v16, %v10224_v33  ;;  %v10233_v40 = vsel %vm10075_vm9, %v10217_v25, 0.0 }
 0xbf7   :  { %9914 = vmatpush2.bf16.msra.mxu0 %v14014_v49  ;;  %v10229_v51 = vsel %vm10075_vm9, %v10209_v23, 0.0 }
 0xbf8   :  { %9955 = vmatpush2.bf16.msra.mxu1 %v15877_v28  ;;  %9915 = vmatprep.subr.bf16.mxu0 %v14015_v50  ;;  %v10228_v60 = vadd.f32 %v10227_v53, %v10226_v48 }
 0xbf9   :  { %9956 = vmatprep.subr.bf16.mxu1 %v15878_v43 }
 0xbfa   :  { %v10230_v19 = vadd.f32 %v10229_v51, %v10228_v60 }
 0xbfb   :  { %9916 = vmatpush2.bf16.msra.mxu0 %v14016_v54 }
 0xbfc   :  { %9957 = vmatpush2.bf16.msra.mxu1 %v15879_v61  ;;  %9917 = vmatprep.subr.bf16.mxu0 %v14017_v17  ;;  %v10232_v22 = vadd.f32 %v10231_v45, %v10230_v19 }
 0xbfd   :  { %9958 = vmatprep.subr.bf16.mxu1 %v15880_v57 }
 0xbfe   :  { %v10234_v24 = vadd.f32 %v10233_v40, %v10232_v22 }
 0xbff   :  { %9918 = vmatpush2.bf16.msra.mxu0 %v14018_v52 }
 0xc00   :  { %9959 = vmatpush2.bf16.msra.mxu1 %v15881_v2  ;;  %9919 = vmatprep.subr.bf16.mxu0 %v14019_v35 }
 0xc01   :  { %9960 = vmatprep.subr.bf16.mxu1 %v15882_v58  ;;  %10235 = vadd.xlane.f32.xlu0 %v10234_v24 }
 0xc03   :  { %9920 = vmatpush2.bf16.msra.mxu0 %v14020_v41 }
 0xc04   :  { %9961 = vmatpush2.bf16.msra.mxu1 %v15883_v14  ;;  %9921 = vmatprep.subr.bf16.mxu0 %v14021_v30 }
 0xc05   :  { %9962 = vmatprep.subr.bf16.mxu1 %v15884_v8 }
 0xc07   :  { %9922 = vmatpush2.bf16.msra.mxu0 %v14022_v26 }
 0xc08   :  { %9963 = vmatpush2.bf16.msra.mxu1 %v15885_v21 }
 0xc0a   :  { %v9679_v32 = vpop.f32.mrf.mxu0  ;;  %9924 = vmatmul.mubr.bf16.vlgmr.msra.gmra.mxu0 %v15239_v29 }
 0xc0b   :  { %v9720_v36 = vpop.f32.mrf.mxu1  ;;  %9965 = vmatmul.mubr.bf16.vlgmr.msra.gmra.mxu1 %v15851_v59  ;;  %v9680_v3 = vadd.f32 %v9679_v32, %v15352_v31 }
 0xc0c   :  { %v9681_v18 = vpop.f32.mrf.mxu0 }
 0xc0d   :  { %v9722_v62 = vpop.f32.mrf.mxu1  ;;  %v9721_v63 = vadd.f32 %v9720_v36, %v9680_v3  ;;  %v9682_v13 = vadd.f32 %v9681_v18, %v15359_v42  ;;  %v15886_v18 = vld [vmem:[#allocation32_spill] sm:$0xff] }
 0xc0e   :  { %v9683_v12 = vpop.f32.mrf.mxu0 }
 0xc0f   :  { %v9724_v4 = vpop.f32.mrf.mxu1  ;;  %v9723_v37 = vadd.f32 %v9722_v62, %v9682_v13 }
 0xc10   :  { %v9684_v11 = vpop.f32.mrf.mxu0 }
 0xc11   :  { %v9725_v44 = vpop.f32.mrf.mxu1  ;;  %v9979_v56 = vcombine.low %v9721_v63, %v9723_v37  ;;  %v15887_v11 = vld [vmem:[#allocation33_spill] sm:$0xff] }
 0xc13   :  { %v9987_v32 = vrot.slane %v9979_v56, %v15828_v1 }
 0xc26   :  { %v10433_v13 = vpop.xlane.xlu0 %10432 }
 0xc27   :  { %v10441_v12 = vrot.slane %v10433_v13, %v15393_v27 }
 0xc29   :  { %v15473_v4 = vsub.f32 %v15886_v18, %v10441_v12  ;;  %v15477_v44 = vsub.f32 %v15887_v11, %v10441_v12 }
 0xc2b   :  { %v10445_v37 = vmul.f32 1.442695, %v15473_v4  ;;  %v10447_v56 = vmul.f32 1.442695, %v15477_v44 }
 0xc4a   :  { %v9761_v34 = vpop.f32.mrf.mxu0 }
 0xc4b   :  { %v9802_v20 = vpop.f32.mrf.mxu1 }
 0xc4c   :  { %v9803_v7 = vadd.f32 %v9802_v20, %v9761_v34  ;;  %v9763_v9 = vpop.f32.mrf.mxu0 }
 0xc4d   :  { %v9804_v29 = vpop.f32.mrf.mxu1 }
 0xc4e   :  { %v9765_v10 = vpop.f32.mrf.mxu0  ;;  %v9805_v52 = vadd.f32 %v9804_v29, %v9763_v9 }
 0xc4f   :  { %v9806_v59 = vpop.f32.mrf.mxu1 }
 0xc50   :  { %v9766_v47 = vpop.f32.mrf.mxu0 }
 0xc51   :  { %v9807_v31 = vpop.f32.mrf.mxu1 }
 0xc69   :  { %v10088_v46 = vpop.xlane.xlu1 %10087 }
 0xc6a   :  { %v10096_v38 = vrot.slane %v10088_v46, %v15393_v27 }
 0xc6c   :  { %v15441_v42 = vsub.f32 %v15269_v6, %v10096_v38  ;;  %v15444_v39 = vsub.f32 %v15373_v5, %v10096_v38 }
 0xc6e   :  { %v10100_v0 = vmul.f32 1.442695, %v15441_v42  ;;  %v10102_v33 = vmul.f32 1.442695, %v15444_v39 }
 0xc70   :  { %13785 = vpow2.f32 %v10100_v0 }
 0xc71   :  { %13787 = vpow2.f32 %v10102_v33 }
 0xc72   :  { %13789 = vpow2.f32 %v10445_v37 }
 0xc73   :  { %13791 = vpow2.f32 %v10447_v56 }
 0xc7d   :  { %v13786_v49 = vpop.eup %13785 }
 0xc7e   :  { %v10106_v28 = vcombine.high %v13786_v49, %v13786_v49  ;;  %v10113_v23 = vrot.slane %v13786_v49, %v15828_v1  ;;  %v13788_v16 = vpop.eup %13787 }
 0xc7f   :  { %v10129_v6 = vrot.slane %v13788_v16, %v15828_v1  ;;  %v13790_v34 = vpop.eup %13789 }
 0xc80   :  { %v10120_v53 = vrot.slane %v10106_v28, %v15828_v1  ;;  %v10121_v50 = vcombine.high %v10113_v23, %v10113_v23  ;;  %v10137_v5 = vsel %vm10075_vm9, %v10113_v23, 0.0  ;;  %v10458_v20 = vrot.slane %v13790_v34, %v15828_v1 }
 0xc81   :  { %v10130_v54 = vcombine.high %v10129_v6, %v10129_v6  ;;  %v10144_v17 = vsel %vm10075_vm9, %v10129_v6, 0.0  ;;  %v10451_v29 = vcombine.high %v13790_v34, %v13790_v34 }
 0xc82   :  { %v10122_v43 = vcombine.high %v10120_v53, %v10120_v53  ;;  %v10138_v48 = vsel %vm10075_vm9, %v10121_v50, 0.0  ;;  %v10140_v51 = vsel %vm10075_vm9, %v10120_v53, 0.0  ;;  %v10466_v59 = vcombine.high %v10458_v20, %v10458_v20 }
 0xc83   :  { %v10139_v25 = vadd.f32 %v10138_v48, %v10137_v5  ;;  %v10146_v22 = vsel %vm10075_vm9, %v10130_v54, 0.0  ;;  %v10465_v33 = vrot.slane %v10451_v29, %v15828_v1  ;;  %v10482_v49 = vsel %vm10075_vm9, %v10458_v20, 0.0 }
 0xc84   :  { %v10142_v61 = vsel %vm10075_vm9, %v10122_v43, 0.0  ;;  %v10483_v53 = vsel %vm10075_vm9, %v10466_v59, 0.0 }
 0xc85   :  { %v10141_v60 = vadd.f32 %v10140_v51, %v10139_v25  ;;  %v10467_v5 = vcombine.high %v10465_v33, %v10465_v33  ;;  %v10484_v48 = vadd.f32 %v10483_v53, %v10482_v49  ;;  %v13792_v25 = vpop.eup %13791 }
 0xc87   :  { %v10143_v45 = vadd.f32 %v10142_v61, %v10141_v60  ;;  %v10485_v61 = vsel %vm10075_vm9, %v10465_v33, 0.0 }
 0xc89   :  { %v10145_v57 = vadd.f32 %v10144_v17, %v10143_v45  ;;  %v10474_v17 = vrot.slane %v13792_v25, %v15828_v1 }
 0xc8a   :  { %v9843_v19 = vpop.f32.mrf.mxu0  ;;  %v10236_v56 = vpop.xlane.xlu0 %10235 }
 0xc8b   :  { %v9884_v40 = vpop.f32.mrf.mxu1  ;;  %v10147_v2 = vadd.f32 %v10146_v22, %v10145_v57  ;;  %v9844_v24 = vadd.f32 %v9843_v19, %v9803_v7  ;;  %v10486_v57 = vadd.f32 %v10485_v61, %v10484_v48  ;;  %v10487_v19 = vsel %vm10075_vm9, %v10467_v5, 0.0 }
 0xc8c   :  { %v9845_v35 = vpop.f32.mrf.mxu0  ;;  %13793 = vlog2.f32 %v10236_v56 }
 0xc8d   :  { %v9886_v58 = vpop.f32.mrf.mxu1  ;;  %v9846_v41 = vadd.f32 %v9845_v35, %v9805_v52  ;;  %10148 = vadd.xlane.f32.xlu0 %v10147_v2 }
 0xc8e   :  { %v9847_v14 = vpop.f32.mrf.mxu0 }
 0xc8f   :  { %v9888_v30 = vpop.f32.mrf.mxu1  ;;  %v9980_v8 = vcombine.low %v9844_v24, %v9846_v41  ;;  %v10475_v24 = vcombine.high %v10474_v17, %v10474_v17  ;;  %v10488_v41 = vadd.f32 %v10487_v19, %v10486_v57  ;;  %v10489_v14 = vsel %vm10075_vm9, %v10474_v17, 0.0 }
 0xc90   :  { %v9848_v26 = vpop.f32.mrf.mxu0 }
 0xc91   :  { %v9889_v21 = vpop.f32.mrf.mxu1  ;;  %v9994_v36 = vrot.slane %v9980_v8, %v15828_v1  ;;  %v10490_v13 = vadd.f32 %v10489_v14, %v10488_v41  ;;  %v10491_v12 = vsel %vm10075_vm9, %v10475_v24, 0.0 }
 0xc93   :  { %v9995_v3 = vcombine.low %v9987_v32, %v9994_v36 }
 0xc95   :  { %v15460_v62 = vadd.f32 %v9995_v3, %v15886_v18 }
 0xc97   :  { %v10040_v63 = vcombine.low %v15460_v62, %v15460_v62  ;;  %11792 = vst.sshfl [vmem:[%s15561_s7 + $0x8] sm:$0xf0 pattern:$0x76325410] %v15460_v62  ;;  %v10311_v16 = vcombine.high %v15460_v62, %v15460_v62  ;;  %v10054_v60 = vrot.slane %v15460_v62, %v15828_v1 }
 0xc99   :  { %11791 = vst.sshfl [vmem:[%s15561_s7] sm:$0xf0 pattern:$0x76325410] %v10040_v63  ;;  %v10318_v54 = vrot.slane %v10311_v16, %v15828_v1  ;;  %v10319_v52 = vcombine.high %v10054_v60, %v10054_v60  ;;  %v10334_v30 = vsel %vm10075_vm9, %v10054_v60, -inf  ;;  %v13794_v34 = vpop.eup %13793 }
 0xc9a   :  { %v10238_v20 = vmul.f32 0.6931472, %v13794_v34 }
 0xc9b   :  { %v10320_v2 = vcombine.high %v10318_v54, %v10318_v54  ;;  %v10335_v8 = vsel %vm10075_vm9, %v10319_v52, -inf  ;;  %v10336_v3 = vsel %vm10075_vm9, %v10318_v54, -inf }
 0xc9d   :  { %v10337_v26 = vsel %vm10075_vm9, %v10320_v2, -inf }
 0xc9e   :  { %v10343_v63 = vmax.f32 %v10336_v3, %v10337_v26 }
 0xcca   :  { %v9925_v7 = vpop.f32.mrf.mxu0 }
 0xccb   :  { %v9966_v9 = vpop.f32.mrf.mxu1  ;;  %v9926_v10 = vadd.f32 %v9925_v7, %v9884_v40  ;;  %v10246_v7 = vrot.slane %v10238_v20, %v15393_v27 }
 0xccc   :  { %v9927_v47 = vpop.f32.mrf.mxu0 }
 0xccd   :  { %v9968_v31 = vpop.f32.mrf.mxu1  ;;  %v9928_v46 = vadd.f32 %v9927_v47, %v9886_v58  ;;  %v9967_v28 = vadd.f32 %v9966_v9, %v9926_v10  ;;  %v10248_v9 = vsub.f32 %v15400_v55, %v10246_v7  ;;  %v10249_v10 = vsub.f32 %v15403_v15, %v10246_v7 }
 0xcce   :  { %v9929_v38 = vpop.f32.mrf.mxu0 }
 0xccf   :  { %v9970_v0 = vpop.f32.mrf.mxu1  ;;  %v9969_v23 = vadd.f32 %v9968_v31, %v9928_v46  ;;  %v10250_v59 = vmul.f32 1.442695, %v10248_v9  ;;  %v10252_v47 = vmul.f32 1.442695, %v10249_v10 }
 0xcd0   :  { %v9930_v50 = vpop.f32.mrf.mxu0 }
 0xcd1   :  { %v9971_v43 = vpop.f32.mrf.mxu1  ;;  %v9996_v6 = vcombine.low %v9967_v28, %v9969_v23 }
 0xcd3   :  { %v10003_v51 = vrot.slane %v9996_v6, %v15828_v1 }
 0xcd5   :  { %v15492_v45 = vadd.f32 %v10003_v51, %v15887_v11  ;;  %v10492_v11 = vadd.f32 %v10491_v12, %v10490_v13 }
 0xcd7   :  { %v10055_v40 = vcombine.low %v15492_v45, %v15492_v45  ;;  %v10327_v22 = vrot.slane %v15492_v45, %v15828_v1 }
 0xcd9   :  { %11793 = vst.sshfl [vmem:[%s15561_s7 + $0x10] sm:$0xf0 pattern:$0x76325410] %v10055_v40  ;;  %v10328_v35 = vcombine.high %v10327_v22, %v10327_v22  ;;  %v10338_v58 = vsel %vm10075_vm9, %v10327_v22, -inf }
 0xcda   :  { %v10339_v32 = vmax.f32 %v10334_v30, %v10338_v58 }
 0xcdb   :  { %v10340_v21 = vsel %vm10075_vm9, %v10328_v35, -inf }
 0xcdc   :  { %v10341_v36 = vmax.f32 %v10335_v8, %v10340_v21 }
 0xcde   :  { %v10342_v18 = vmax.f32 %v10339_v32, %v10341_v36 }
 0xce0   :  { %v10344_v37 = vmax.f32 %v10342_v18, %v10343_v63 }
 0xce2   :  { %10345 = vmax.xlane.f32.xlu1 %v10344_v37 }
 0xce6   :  { %10493 = vadd.xlane.f32.xlu1 %v10492_v11 }
 0xd16   :  { %v10149_v29 = vpop.xlane.xlu0 %10148 }
 0xd17   :  { %13795 = vlog2.f32 %v10149_v29 }
 0xd18   :  { %13797 = vpow2.f32 %v10250_v59 }
 0xd19   :  { %13799 = vpow2.f32 %v10252_v47 }
 0xd24   :  { %v13796_v31 = vpop.eup %13795 }
 0xd25   :  { %v10151_v46 = vmul.f32 0.6931472, %v13796_v31  ;;  %v13798_v49 = vpop.eup %13797 }
 0xd26   :  { %v13800_v55 = vpop.eup %13799 }
 0xd27   :  { %v10159_v38 = vrot.slane %v10151_v46, %v15393_v27 }
 0xd29   :  { %v10161_v0 = vsub.f32 %v15441_v42, %v10159_v38  ;;  %v10162_v33 = vsub.f32 %v15444_v39, %v10159_v38 }
 0xd2b   :  { %v10254_v28 = vsub.f32 %v10248_v9, %v10161_v0  ;;  %v10255_v23 = vsub.f32 %v10249_v10, %v10162_v33 }
 0xd2d   :  { %v10256_v16 = vmul.f32 %v13798_v49, %v10254_v28  ;;  %v10257_v53 = vmul.f32 %v13800_v55, %v10255_v23 }
 0xd2f   :  { %v10260_v15 = vcombine.high %v10256_v16, %v10256_v16  ;;  %v10267_v50 = vrot.slane %v10256_v16, %v15828_v1  ;;  %v10283_v48 = vrot.slane %v10257_v53, %v15828_v1 }
 0xd31   :  { %v10274_v43 = vrot.slane %v10260_v15, %v15828_v1  ;;  %v10275_v6 = vcombine.high %v10267_v50, %v10267_v50  ;;  %v10291_v25 = vsel %vm10075_vm9, %v10267_v50, 0.0  ;;  %v10284_v54 = vcombine.high %v10283_v48, %v10283_v48 }
 0xd32   :  { %v10298_v57 = vsel %vm10075_vm9, %v10283_v48, 0.0 }
 0xd33   :  { %v10276_v5 = vcombine.high %v10274_v43, %v10274_v43  ;;  %v10292_v42 = vsel %vm10075_vm9, %v10275_v6, 0.0  ;;  %v10294_v51 = vsel %vm10075_vm9, %v10274_v43, 0.0  ;;  %v10300_v40 = vsel %vm10075_vm9, %v10284_v54, 0.0 }
 0xd34   :  { %v10293_v39 = vadd.f32 %v10292_v42, %v10291_v25 }
 0xd35   :  { %v10296_v61 = vsel %vm10075_vm9, %v10276_v5, 0.0 }
 0xd36   :  { %v10295_v60 = vadd.f32 %v10294_v51, %v10293_v39 }
 0xd38   :  { %v10297_v17 = vadd.f32 %v10296_v61, %v10295_v60 }
 0xd3a   :  { %v10299_v19 = vadd.f32 %v10298_v57, %v10297_v17 }
 0xd3c   :  { %v10301_v22 = vadd.f32 %v10300_v40, %v10299_v19 }
 0xd3e   :  { %10302 = vadd.xlane.f32.xlu0 %v10301_v22 }
 0xd6b   :  { %v10346_v52 = vpop.xlane.xlu1 %10345 }
 0xd6c   :  { %v10354_v2 = vrot.slane %v10346_v52, %v15393_v27 }
 0xd6e   :  { %v10356_v35 = vsub.f32 %v15460_v62, %v10354_v2  ;;  %v10357_v58 = vsub.f32 %v15492_v45, %v10354_v2 }
 0xd6f   :  { %v10494_v38 = vpop.xlane.xlu1 %10493 }
 0xd70   :  { %v10358_v24 = vmul.f32 1.442695, %v10356_v35  ;;  %v10360_v41 = vmul.f32 1.442695, %v10357_v58 }
 0xd72   :  { %13801 = vpow2.f32 %v10358_v24 }
 0xd73   :  { %13803 = vpow2.f32 %v10360_v41 }
 0xd74   :  { %13805 = vlog2.f32 %v10494_v38 }
 0xd7f   :  { %v13802_v14 = vpop.eup %13801 }
 0xd80   :  { %v10364_v30 = vcombine.high %v13802_v14, %v13802_v14  ;;  %v10371_v8 = vrot.slane %v13802_v14, %v15828_v1  ;;  %v13804_v26 = vpop.eup %13803 }
 0xd81   :  { %v10387_v3 = vrot.slane %v13804_v26, %v15828_v1  ;;  %v13806_v0 = vpop.eup %13805 }
 0xd82   :  { %v10378_v21 = vrot.slane %v10364_v30, %v15828_v1  ;;  %v10379_v32 = vcombine.high %v10371_v8, %v10371_v8  ;;  %v10395_v18 = vsel %vm10075_vm9, %v10371_v8, 0.0  ;;  %v10496_v33 = vmul.f32 0.6931472, %v13806_v0 }
 0xd83   :  { %v10388_v12 = vcombine.high %v10387_v3, %v10387_v3  ;;  %v10402_v56 = vsel %vm10075_vm9, %v10387_v3, 0.0 }
 0xd84   :  { %v10380_v36 = vcombine.high %v10378_v21, %v10378_v21  ;;  %v10396_v62 = vsel %vm10075_vm9, %v10379_v32, 0.0  ;;  %v10398_v63 = vsel %vm10075_vm9, %v10378_v21, 0.0  ;;  %v10504_v49 = vrot.slane %v10496_v33, %v15393_v27 }
 0xd85   :  { %v10397_v45 = vadd.f32 %v10396_v62, %v10395_v18  ;;  %v10404_v20 = vsel %vm10075_vm9, %v10388_v12, 0.0 }
 0xd86   :  { %v10400_v37 = vsel %vm10075_vm9, %v10380_v36, 0.0  ;;  %v10506_v23 = vsub.f32 %v15473_v4, %v10504_v49  ;;  %v10507_v55 = vsub.f32 %v15477_v44, %v10504_v49 }
 0xd87   :  { %v10399_v13 = vadd.f32 %v10398_v63, %v10397_v45 }
 0xd88   :  { %v10508_v16 = vmul.f32 1.442695, %v10506_v23  ;;  %v10510_v53 = vmul.f32 1.442695, %v10507_v55 }
 0xd89   :  { %v10401_v11 = vadd.f32 %v10400_v37, %v10399_v13 }
 0xd8b   :  { %v10403_v34 = vadd.f32 %v10402_v56, %v10401_v11 }
 0xd8d   :  { %v10405_v7 = vadd.f32 %v10404_v20, %v10403_v34 }
 0xd8f   :  { %10406 = vadd.xlane.f32.xlu1 %v10405_v7 }
 0xdc7   :  { %v10303_v9 = vpop.xlane.xlu0 %10302 }
 0xdc8   :  { %v10304_v29 = vrot.slane %v10303_v9, 4 }
 0xdca   :  { %v10305_v10 = vadd.f32 %v10304_v29, %v10303_v9 }
 0xdcc   :  { %v10306_v59 = vrot.slane %v10305_v10, 2 }
 0xdce   :  { %v10307_v47 = vadd.f32 %v10306_v59, %v10305_v10 }
 0xdd0   :  { %v10308_v31 = vrot.slane %v10307_v47, 1 }
 0xdd2   :  { %v10309_v46 = vadd.f32 %v10308_v31, %v10307_v47 }
 0xdd4   :  { %11804 = vpush %v10309_v46 }
 0xe05   :  { %s11805_s7 = spop %11804 }
 0xe18   :  { %v10407_v28 = vpop.xlane.xlu1 %10406 }
 0xe19   :  { %13807 = vlog2.f32 %v10407_v28 }
 0xe1a   :  { %13809 = vpow2.f32 %v10508_v16 }
 0xe1b   :  { %13811 = vpow2.f32 %v10510_v53 }
 0xe26   :  { %v13808_v15 = vpop.eup %13807 }
 0xe27   :  { %v10409_v50 = vmul.f32 0.6931472, %v13808_v15  ;;  %v13810_v42 = vpop.eup %13809 }
 0xe28   :  { %v13812_v51 = vpop.eup %13811 }
 0xe29   :  { %v10417_v43 = vrot.slane %v10409_v50, %v15393_v27 }
 0xe2b   :  { %v10419_v6 = vsub.f32 %v10356_v35, %v10417_v43  ;;  %v10420_v5 = vsub.f32 %v10357_v58, %v10417_v43 }
 0xe2d   :  { %v10512_v48 = vsub.f32 %v10506_v23, %v10419_v6  ;;  %v10513_v25 = vsub.f32 %v10507_v55, %v10420_v5 }
 0xe2f   :  { %v10514_v39 = vmul.f32 %v13810_v42, %v10512_v48  ;;  %v10515_v60 = vmul.f32 %v13812_v51, %v10513_v25 }
 0xe31   :  { %v10518_v4 = vcombine.high %v10514_v39, %v10514_v39  ;;  %v10525_v54 = vrot.slane %v10514_v39, %v15828_v1  ;;  %v10541_v57 = vrot.slane %v10515_v60, %v15828_v1 }
 0xe33   :  { %v10532_v44 = vrot.slane %v10518_v4, %v15828_v1  ;;  %v10533_v61 = vcombine.high %v10525_v54, %v10525_v54  ;;  %v10549_v19 = vsel %vm10075_vm9, %v10525_v54, 0.0  ;;  %v10542_v2 = vcombine.high %v10541_v57, %v10541_v57 }
 0xe34   :  { %v10556_v24 = vsel %vm10075_vm9, %v10541_v57, 0.0 }
 0xe35   :  { %v10534_v17 = vcombine.high %v10532_v44, %v10532_v44  ;;  %v10550_v27 = vsel %vm10075_vm9, %v10533_v61, 0.0  ;;  %v10552_v22 = vsel %vm10075_vm9, %v10532_v44, 0.0  ;;  %v10558_v14 = vsel %vm10075_vm9, %v10542_v2, 0.0 }
 0xe36   :  { %v10551_v40 = vadd.f32 %v10550_v27, %v10549_v19 }
 0xe37   :  { %v10554_v35 = vsel %vm10075_vm9, %v10534_v17, 0.0 }
 0xe38   :  { %v10553_v52 = vadd.f32 %v10552_v22, %v10551_v40 }
 0xe3a   :  { %v10555_v58 = vadd.f32 %v10554_v35, %v10553_v52 }
 0xe3c   :  { %v10557_v41 = vadd.f32 %v10556_v24, %v10555_v58 }
 0xe3e   :  { %v10559_v30 = vadd.f32 %v10558_v14, %v10557_v41 }
 0xe40   :  { %10560 = vadd.xlane.f32.xlu1 %v10559_v30 }
 0xec9   :  { %v10561_v1 = vpop.xlane.xlu1 %10560 }
 0xeca   :  { %v10562_v8 = vrot.slane %v10561_v1, 4 }
 0xecc   :  { %v10563_v26 = vadd.f32 %v10562_v8, %v10561_v1 }
 0xece   :  { %v10564_v21 = vrot.slane %v10563_v26, 2 }
 0xed0   :  { %v10565_v32 = vadd.f32 %v10564_v21, %v10563_v26 }
 0xed2   :  { %v10566_v36 = vrot.slane %v10565_v32, 1 }
 0xed4   :  { %v10567_v3 = vadd.f32 %v10566_v36, %v10565_v32 }
 0xed6   :  { %11806 = vpush %v10567_v3 }
 0xf07   :  { %s11807_s22 = spop %11806 }
 0xf08   :  { %s10569_s3 = sadd.f32 %s11807_s22, %s11805_s7 }
 0xf0a   :  { %s10572_s23 = smul.f32 0.25, %s10569_s3 }
 0xf0c   :  { %10574 = sst [smem:[#allocation11]] %s10572_s23 }
 0xf0d   :  { %10584 = dma.smem_to_hbm %s14157_s4, 16, %s15562_s8, [#allocation10]  }
 0xf0e   :  { %14141 = dma.done.wait [#allocation10], 16  }
 0xf0f   :  { %14142 = vsyncadd [#allocation10], 4294967280 }
 0xf10   :  { %10590 = sfence }
 0xf11   :  { %10591 = vsyncpa [#allocation9], 1 }
 0xf12   :  { %10592 = vsyncpa [#allocation10], 1 }
 0xf13   :  { %10593 = vsyncmov [#allocation7] }
 0xf16   :  { %s10594_s26 = vpop.sfrf %10593 }
 0xf17   :  { %p11794_p11 = scmp.ne.s32.totalorder %s10594_s26, 0 }
 0xf19   :  { %10598 = shalt.err (%p11794_p11)  }
 0xf1a   :  { %10600 = vsyncmov [#allocation7 + $0x1] }
 0xf1d   :  { %s10601_s27 = vpop.sfrf %10600 }
 0xf1e   :  { %p11795_p12 = scmp.ne.s32.totalorder %s10601_s27, 0 }
 0xf20   :  { %10605 = shalt.err (%p11795_p12)  }
 0xf21   :  { %10607 = vsyncmov [#allocation7 + $0x2] }
 0xf24   :  { %s10608_s28 = vpop.sfrf %10607 }
 0xf25   :  { %p11796_p13 = scmp.ne.s32.totalorder %s10608_s28, 0 }
 0xf27   :  { %10612 = shalt.err (%p11796_p13)  }
 0xf28   :  { %10614 = vsyncmov [#allocation7 + $0x3] }
 0xf2b   :  { %s10615_s5 = vpop.sfrf %10614 }
 0xf2c   :  { %p11797_p0 = scmp.ne.s32.totalorder %s10615_s5, 0 }
 0xf2e   :  { %10619 = shalt.err (%p11797_p0)  }

</bundles_post_ra>
